<compile_context>
chip_gen: v7x
topology: tpu7x:2x2x1
jax: 0.10.0
libtpu: 0.0.40
codegen_flags: <defaults>
</compile_context>

<pallas_src>
import jax
import jax.numpy as jnp
from jax.experimental import pallas as pl
from jax.experimental.pallas import tpu as pltpu


def get_num_DLMM_channels(C, K=4, params=("mu", "scale", "mix")):
    return C * K * len(params)


# Tap offsets (row, col) of the contributing input pixel relative to the
# output-grid pixel; shared by the 5x5/2 deconvs and the 3x3/1 deconv.
_TAP_OFFSETS = tuple((ra, rb) for ra in (-1, 0, 1) for rb in (-1, 0, 1))
# Sub-pixel phase order (ph_h, ph_w) for the stride-2 deconvs.
_PHASES = ((0, 0), (0, 1), (1, 0), (1, 1))


def _phase_uses_tap(phase, tap):
    ph_h, ph_w = phase
    ra, rb = tap
    return (ph_h == 0 or ra >= 0) and (ph_w == 0 or rb >= 0)


def _compute_tap_segments():
    """Per tap: contiguous phase runs [p0, p1) that actually use the tap."""
    segs = []
    for tap in _TAP_OFFSETS:
        used = [p for p, ph in enumerate(_PHASES) if _phase_uses_tap(ph, tap)]
        runs, start, prev = [], used[0], used[0]
        for p in used[1:]:
            if p == prev + 1:
                prev = p
            else:
                runs.append((start, prev + 1))
                start = prev = p
        runs.append((start, prev + 1))
        segs.append(tuple(runs))
    return tuple(segs)


# 25 Cout-rows of real MXU work spread over 11 phase-stacked matmuls per deconv.
_DECONV_TAP_SEGMENTS = _compute_tap_segments()


def _round_up(x, m):
    return (x + m - 1) // m * m


def _pick_chunk(hw):
    """Largest 128-multiple lane chunk (<=512) dividing H*W (bounds live vregs)."""
    for c in (512, 256, 128):
        if hw % c == 0:
            return c
    return hw


def _shift_flat(x, delta):
    """shifted[:, j] = x[:, j + delta] on the flattened spatial axis.

    Wrapped lanes are garbage but the caller multiplies by a boundary mask
    that zeroes exactly those positions.
    """
    if delta == 0:
        return x
    return jnp.roll(x, -delta, axis=1)


# ----------------------------------------------------------------------------
# One-time parameter preparation (weight folding, masks).  PyTorch layouts:
#   ConvTranspose2d weight: (Cin, Cout, KH, KW);  Conv2d weight: (Cout, Cin, 1, 1)
# ----------------------------------------------------------------------------
def _fold_deconv5x5_weight(w_t, dtype):
    """ConvTranspose2d(k=5,s=2,p=2,op=1) weight (Cin,Cout,5,5) ->
    per-tap, phase-stacked matrices of shape (9, 4*Cout, Cin).

    out[2m+ph_h, 2w+ph_w] only touches input (m+ra, w+rb), ra,rb in {-1,0,1};
    phase blocks of taps a phase does not use stay zero and are never read
    (the kernel slices only the used row segments).
    """
    cin, cout = w_t.shape[0], w_t.shape[1]
    taps = []
    for ra, rb in _TAP_OFFSETS:
        blocks = []
        for ph_h, ph_w in _PHASES:
            if _phase_uses_tap((ph_h, ph_w), (ra, rb)):
                kh = (2 if ph_h == 0 else 3) - 2 * ra
                kw = (2 if ph_w == 0 else 3) - 2 * rb
                blocks.append(w_t[:, :, kh, kw].T)                    # (Cout, Cin)
            else:
                blocks.append(jnp.zeros((cout, cin), w_t.dtype))      # never read
        taps.append(jnp.concatenate(blocks, axis=0))                  # (4*Cout, Cin)
    return jnp.stack(taps, axis=0).astype(dtype)                      # (9, 4*Cout, Cin)


def _fold_conv3x3t_weight(w_t, dtype):
    """ConvTranspose2d(k=3,s=1,p=1) weight (Cin,Cout,3,3) -> (9, Cout, Cin)."""
    taps = [w_t[:, :, 1 - ra, 1 - rb].T for ra, rb in _TAP_OFFSETS]
    return jnp.stack(taps, axis=0).astype(dtype)


def _make_tap_masks(height, width, dtype=jnp.float32):
    """(9, H*W) validity masks: tap (ra, rb) valid iff (m+ra, w+rb) in-bounds."""
    idx = jnp.arange(height * width)
    m = idx // width
    w = idx % width
    masks = []
    for ra, rb in _TAP_OFFSETS:
        valid = (m + ra >= 0) & (m + ra < height) & (w + rb >= 0) & (w + rb < width)
        masks.append(valid.astype(dtype))
    return jnp.stack(masks, axis=0)


def prepare_params(params, h_in, w_in, compute_dtype=jnp.float32):
    """Fold/cast all weights once (host side); build per-layer boundary masks.

    Use compute_dtype=jnp.bfloat16 for v6e/v7x production runs (f32 accumulation
    is kept inside the kernels either way); f32 keeps the demo check tight.
    """
    h2, w2 = 2 * h_in, 2 * w_in
    h3, w3 = 4 * h_in, 4 * w_in
    c_mid = params["w3"].shape[1]
    sub = 16 if jnp.dtype(compute_dtype) == jnp.dtype(jnp.bfloat16) else 8
    c_mid_pad = _round_up(c_mid, sub)          # sublane-multiple hidden channels

    w3f = _fold_conv3x3t_weight(params["w3"], compute_dtype)          # (9, Cmid, Cin)
    w3f = jnp.pad(w3f, ((0, 0), (0, c_mid_pad - c_mid), (0, 0)))
    b3 = jnp.pad(params["b3"].astype(jnp.float32),
                 (0, c_mid_pad - c_mid)).reshape(-1, 1)
    wof = params["w_out"][:, :, 0, 0].astype(compute_dtype)           # (Cout, Cmid)
    wof = jnp.pad(wof, ((0, 0), (0, c_mid_pad - c_mid)))

    def bias4(b):  # one bias copy per sub-pixel phase, as a column vector
        return jnp.tile(b.astype(jnp.float32), 4).reshape(-1, 1)

    return dict(
        w1f=_fold_deconv5x5_weight(params["w1"], compute_dtype),
        b1=bias4(params["b1"]), m1=_make_tap_masks(h_in, w_in),
        w2f=_fold_deconv5x5_weight(params["w2"], compute_dtype),
        b2=bias4(params["b2"]), m2=_make_tap_masks(h2, w2),
        w3f=w3f, b3=b3, m3=_make_tap_masks(h3, w3),
        wof=wof, bof=params["b_out"].astype(jnp.float32).reshape(-1, 1),
    )


# ----------------------------------------------------------------------------
# Pallas kernels
# ----------------------------------------------------------------------------
def _make_deconv5x5_kernel(cin, cout, hw, width, relu, compute_dtype):
    chunk = _pick_chunk(hw)

    def kernel(x_ref, w_ref, b_ref, m_ref, o_ref, acc_ref):
        x = x_ref[0]                                    # (Cin, H*W)
        bias = b_ref[...]                               # (4*Cout, 1), hoisted once
        acc_ref[...] = jnp.broadcast_to(bias, (4 * cout, hw))
        # Per-tap accumulation: one phase-stacked matmul per used tap segment.
        for t, (ra, rb) in enumerate(_TAP_OFFSETS):
            masked = (_shift_flat(x, ra * width + rb)
                      * m_ref[t:t + 1, :]).astype(compute_dtype)
            for p0, p1 in _DECONV_TAP_SEGMENTS[t]:      # skip unused phase blocks
                rows = slice(p0 * cout, p1 * cout)
                acc_ref[rows, :] += jnp.dot(w_ref[t, rows, :], masked,
                                            preferred_element_type=jnp.float32)
        # Epilogue: ReLU + lane-dense stores in 128-aligned chunks.
        for j in range(hw // chunk):
            sl = slice(j * chunk, (j + 1) * chunk)
            blk = acc_ref[:, sl]
            if relu:
                blk = jnp.maximum(blk, 0.0)
            o_ref[0, :, sl] = blk.astype(o_ref.dtype)

    return kernel


def _make_conv3_convout_kernel(cin, hw, width, compute_dtype):
    chunk = _pick_chunk(hw)

    def kernel(x_ref, w3_ref, b3_ref, wo_ref, bo_ref, m_ref, o_ref, mid_ref):
        x = x_ref[0]                                    # (Cin, H*W)
        b3 = b3_ref[...]                                # hoisted once
        mid_ref[...] = jnp.broadcast_to(b3, mid_ref.shape)
        # conv3: per-tap accumulation into the VMEM 'mid' scratch (no im2col).
        for t, (ra, rb) in enumerate(_TAP_OFFSETS):
            masked = (_shift_flat(x, ra * width + rb)
                      * m_ref[t:t + 1, :]).astype(compute_dtype)
            mid_ref[...] += jnp.dot(w3_ref[t], masked,
                                    preferred_element_type=jnp.float32)
        # Fused 1x1 conv_out: slice the scratch *ref* (zero-cost views) in
        # 128-aligned lane chunks; weight/bias loads hoisted out of the loop.
        wo = wo_ref[...]
        bo = bo_ref[...]
        for j in range(hw // chunk):
            sl = slice(j * chunk, (j + 1) * chunk)
            mid_c = mid_ref[:, sl].astype(compute_dtype)
            out_c = jnp.dot(wo, mid_c, preferred_element_type=jnp.float32) + bo
            o_ref[0, :, sl] = out_c.astype(o_ref.dtype)

    return kernel


# ----------------------------------------------------------------------------
# pallas_call wrappers
# ----------------------------------------------------------------------------
def _deconv5x5_s2_pallas(x_flat, w_fold, bias4, masks, width, *, relu=True):
    """ConvTranspose2d(k=5, s=2, p=2, op=1) (+ReLU) -> phase-stacked output
    of shape (B, 4*Cout, H*W) with phases ordered ((0,0),(0,1),(1,0),(1,1))."""
    batch, cin, hw = x_flat.shape
    cout = w_fold.shape[1] // 4
    compute_dtype = w_fold.dtype
    kernel = _make_deconv5x5_kernel(cin, cout, hw, width, relu, compute_dtype)
    flops = 2 * 25 * cout * cin * hw * batch
    bytes_accessed = 4 * (batch * cin * hw + int(w_fold.size)
                          + batch * 4 * cout * hw + int(masks.size))
    return pl.pallas_call(
        kernel,
        out_shape=jax.ShapeDtypeStruct((batch, 4 * cout, hw), x_flat.dtype),
        grid=(batch,),
        in_specs=[
            pl.BlockSpec((1, cin, hw), lambda n: (n, 0, 0)),
            pl.BlockSpec((9, 4 * cout, cin), lambda n: (0, 0, 0)),
            pl.BlockSpec((4 * cout, 1), lambda n: (0, 0)),
            pl.BlockSpec((9, hw), lambda n: (0, 0)),
        ],
        out_specs=pl.BlockSpec((1, 4 * cout, hw), lambda n: (n, 0, 0)),
        scratch_shapes=[pltpu.VMEM((4 * cout, hw), jnp.float32)],
        compiler_params=pltpu.CompilerParams(
            dimension_semantics=("parallel",),
            vmem_limit_bytes=32 * 1024 * 1024),
        cost_estimate=pl.CostEstimate(flops=flops, transcendentals=0,
                                      bytes_accessed=bytes_accessed),
    )(x_flat, w_fold, bias4, masks)


def _conv3t_conv1x1_pallas(x_flat, w3f, b3, wof, bof, masks, width):
    """Fused ConvTranspose2d(k=3, s=1, p=1) + Conv2d(1x1)."""
    batch, cin, hw = x_flat.shape
    c_mid_pad = w3f.shape[1]
    c_out = wof.shape[0]
    compute_dtype = w3f.dtype
    kernel = _make_conv3_convout_kernel(cin, hw, width, compute_dtype)
    flops = 2 * batch * hw * (9 * c_mid_pad * cin + c_out * c_mid_pad)
    bytes_accessed = 4 * (batch * cin * hw + int(w3f.size) + int(wof.size)
                          + batch * c_out * hw + int(masks.size))
    return pl.pallas_call(
        kernel,
        out_shape=jax.ShapeDtypeStruct((batch, c_out, hw), x_flat.dtype),
        grid=(batch,),
        in_specs=[
            pl.BlockSpec((1, cin, hw), lambda n: (n, 0, 0)),
            pl.BlockSpec((9, c_mid_pad, cin), lambda n: (0, 0, 0)),
            pl.BlockSpec((c_mid_pad, 1), lambda n: (0, 0)),
            pl.BlockSpec((c_out, c_mid_pad), lambda n: (0, 0)),
            pl.BlockSpec((c_out, 1), lambda n: (0, 0)),
            pl.BlockSpec((9, hw), lambda n: (0, 0)),
        ],
        out_specs=pl.BlockSpec((1, c_out, hw), lambda n: (n, 0, 0)),
        scratch_shapes=[pltpu.VMEM((c_mid_pad, hw), jnp.float32)],
        compiler_params=pltpu.CompilerParams(
            dimension_semantics=("parallel",),
            vmem_limit_bytes=32 * 1024 * 1024),
        cost_estimate=pl.CostEstimate(flops=flops, transcendentals=0,
                                      bytes_accessed=bytes_accessed),
    )(x_flat, w3f, b3, wof, bof, masks)


def _interleave_phases(y_ph, height, width):
    """(B, 4*C, H*W) phase-stacked output -> (B, C, (2H)*(2W)) full resolution."""
    batch, four_c, _ = y_ph.shape
    chans = four_c // 4
    y = y_ph.reshape(batch, 2, 2, chans, height, width)   # (B, ph_h, ph_w, C, H, W)
    y = y.transpose(0, 3, 4, 1, 5, 2)                     # (B, C, H, ph_h, W, ph_w)
    return y.reshape(batch, chans, 4 * height * width)


# ----------------------------------------------------------------------------
# HyperpriorSynthesisDLMM forward (activation='relu', final_activation=None)
# ----------------------------------------------------------------------------
def hyperprior_synthesis_dlmm_forward(x_nchw, prep):
    batch, cin, height, width = x_nchw.shape
    x = x_nchw.reshape(batch, cin, height * width)        # channels-first, flat spatial

    y = _deconv5x5_s2_pallas(x, prep["w1f"], prep["b1"], prep["m1"], width, relu=True)
    x = _interleave_phases(y, height, width)
    height, width = 2 * height, 2 * width

    y = _deconv5x5_s2_pallas(x, prep["w2f"], prep["b2"], prep["m2"], width, relu=True)
    x = _interleave_phases(y, height, width)
    height, width = 2 * height, 2 * width

    out = _conv3t_conv1x1_pallas(x, prep["w3f"], prep["b3"],
                                 prep["wof"], prep["bof"], prep["m3"], width)
    return out.reshape(batch, out.shape[1], height, width)   # NCHW


# ----------------------------------------------------------------------------
# Pure-JAX reference (mirrors PyTorch exactly), for correctness checking.
# ----------------------------------------------------------------------------
def _conv_transpose2d_ref(x, w, b, stride, padding, output_padding):
    kh, kw = w.shape[2], w.shape[3]
    w_flip = jnp.flip(w, axis=(2, 3))
    y = jax.lax.conv_general_dilated(
        x, w_flip, window_strides=(1, 1),
        padding=((kh - 1 - padding, kh - 1 - padding + output_padding),
                 (kw - 1 - padding, kw - 1 - padding + output_padding)),
        lhs_dilation=(stride, stride),
        dimension_numbers=("NCHW", "IOHW", "NCHW"))
    return y + b.reshape(1, -1, 1, 1)


def forward_reference(x, params):
    x = jax.nn.relu(_conv_transpose2d_ref(x, params["w1"], params["b1"], 2, 2, 1))
    x = jax.nn.relu(_conv_transpose2d_ref(x, params["w2"], params["b2"], 2, 2, 1))
    x = _conv_transpose2d_ref(x, params["w3"], params["b3"], 1, 1, 0)
    y = jax.lax.conv_general_dilated(
        x, params["w_out"], window_strides=(1, 1), padding="VALID",
        dimension_numbers=("NCHW", "OIHW", "NCHW"))
    return y + params["b_out"].reshape(1, -1, 1, 1)


# ----------------------------------------------------------------------------
# Main
# ----------------------------------------------------------------------------
if __name__ == "__main__":
    # Small shapes consistent with the module (N=320 -> 8, C=64 -> 4).
    B, N_HYP, C = 2, 8, 4
    HIN = WIN = 16
    C_OUT = get_num_DLMM_channels(C)  # C * 4 * 3 = 48

    key = jax.random.PRNGKey(0)
    ks = jax.random.split(key, 9)
    params = {
        # ConvTranspose2d weight layout: (Cin, Cout, KH, KW)
        "w1": 0.1 * jax.random.normal(ks[0], (N_HYP, N_HYP, 5, 5), jnp.float32),
        "b1": 0.1 * jax.random.normal(ks[1], (N_HYP,), jnp.float32),
        "w2": 0.1 * jax.random.normal(ks[2], (N_HYP, N_HYP, 5, 5), jnp.float32),
        "b2": 0.1 * jax.random.normal(ks[3], (N_HYP,), jnp.float32),
        "w3": 0.1 * jax.random.normal(ks[4], (N_HYP, C, 3, 3), jnp.float32),
        "b3": 0.1 * jax.random.normal(ks[5], (C,), jnp.float32),
        # Conv2d weight layout: (Cout, Cin, KH, KW)
        "w_out": 0.1 * jax.random.normal(ks[6], (C_OUT, C, 1, 1), jnp.float32),
        "b_out": 0.1 * jax.random.normal(ks[7], (C_OUT,), jnp.float32),
    }
    x = jax.random.normal(ks[8], (B, N_HYP, HIN, WIN), jnp.float32)  # NCHW

    # One-time weight folding / mask construction (use jnp.bfloat16 here for
    # v6e/v7x production runs; f32 keeps the numeric check tight in the demo).
    prep = prepare_params(params, HIN, WIN, compute_dtype=jnp.float32)

    fwd = jax.jit(hyperprior_synthesis_dlmm_forward)
    y = jax.block_until_ready(fwd(x, prep))

    assert y.shape == (B, C_OUT, 4 * HIN, 4 * WIN), y.shape
    y_ref = jax.block_until_ready(jax.jit(forward_reference)(x, params))
    max_err = float(jnp.max(jnp.abs(y - y_ref)))
    assert jnp.allclose(y, y_ref, atol=1e-3, rtol=1e-3), max_err

    print("KERNEL_OK")
</pallas_src>

<mosaic_0001>
module attributes {stable_mosaic.version = 11 : i64} {
  func.func @kernel(%arg0: i32, %arg1: memref<1x8x256xf32, #tpu.memory_space<vmem>>, %arg2: memref<9x32x8xf32, #tpu.memory_space<vmem>>, %arg3: memref<32x1xf32, #tpu.memory_space<vmem>>, %arg4: memref<9x256xf32, #tpu.memory_space<vmem>>, %arg5: memref<1x32x256xf32, #tpu.memory_space<vmem>>, %arg6: memref<32x256xf32, #tpu.memory_space<vmem>>) attributes {dimension_semantics = [#tpu.dimension_semantics<parallel>], iteration_bounds = array<i64: 2>, scalar_prefetch = 0 : i64, scratch_operands = 1 : i64, tpu.core_type = #tpu.core_type<tc>, window_params = [{transform_indices = @transform_0, window_bounds = array<i64: 1, 8, 256>}, {pipeline_mode = #tpu.pipeline_mode<synchronous>, transform_indices = @transform_1, window_bounds = array<i64: 9, 32, 8>}, {pipeline_mode = #tpu.pipeline_mode<synchronous>, transform_indices = @transform_2, window_bounds = array<i64: 32, 1>}, {pipeline_mode = #tpu.pipeline_mode<synchronous>, transform_indices = @transform_3, window_bounds = array<i64: 9, 256>}, {transform_indices = @transform_4, window_bounds = array<i64: 1, 32, 256>}]} {
    %c0 = arith.constant 0 : index
    %c0_0 = arith.constant 0 : index
    %c0_1 = arith.constant 0 : index
    %0 = vector.load %arg1[%c0, %c0_0, %c0_1] : memref<1x8x256xf32, #tpu.memory_space<vmem>>, vector<1x8x256xf32>
    %1 = vector.shape_cast %0 : vector<1x8x256xf32> to vector<8x256xf32>
    %c0_2 = arith.constant 0 : index
    %c0_3 = arith.constant 0 : index
    %2 = vector.load %arg3[%c0_2, %c0_3] : memref<32x1xf32, #tpu.memory_space<vmem>>, vector<32x1xf32>
    %3 = vector.shape_cast %2 : vector<32x1xf32> to vector<32x1xf32>
    %4 = vector.broadcast %3 : vector<32x1xf32> to vector<32x256xf32>
    %c0_4 = arith.constant 0 : index
    %c0_5 = arith.constant 0 : index
    %5 = vector.load %arg6[%c0_4, %c0_5] : memref<32x256xf32, #tpu.memory_space<vmem>>, vector<32x256xf32>
    tpu.vector_store %arg6[%c0_4, %c0_5], %4 {strides = array<i32>} : memref<32x256xf32, #tpu.memory_space<vmem>>, vector<32x256xf32>,
    %6 = vector.extract_strided_slice %1 {offsets = [0, 239], sizes = [8, 17], strides = [1, 1]} : vector<8x256xf32> to vector<8x17xf32>
    %7 = vector.extract_strided_slice %1 {offsets = [0, 0], sizes = [8, 239], strides = [1, 1]} : vector<8x256xf32> to vector<8x239xf32>
    %8 = tpu.concatenate %6, %7 in 1 : vector<8x17xf32>, vector<8x239xf32> -> vector<8x256xf32>
    %c0_6 = arith.constant 0 : index
    %c0_7 = arith.constant 0 : index
    %9 = vector.load %arg4[%c0_6, %c0_7] : memref<9x256xf32, #tpu.memory_space<vmem>>, vector<1x256xf32>
    %10 = vector.broadcast %9 : vector<1x256xf32> to vector<8x256xf32>
    %11 = arith.mulf %8, %10 : vector<8x256xf32>
    %c0_8 = arith.constant 0 : index
    %c0_9 = arith.constant 0 : index
    %12 = vector.load %arg6[%c0_8, %c0_9] : memref<32x256xf32, #tpu.memory_space<vmem>>, vector<8x256xf32>
    %c0_10 = arith.constant 0 : index
    %c0_11 = arith.constant 0 : index
    %c0_12 = arith.constant 0 : index
    %13 = vector.load %arg2[%c0_10, %c0_11, %c0_12] : memref<9x32x8xf32, #tpu.memory_space<vmem>>, vector<1x8x8xf32>
    %14 = vector.shape_cast %13 : vector<1x8x8xf32> to vector<8x8xf32>
    %cst = arith.constant dense<0.000000e+00> : vector<8x256xf32>
    %15 = tpu.matmul %14, %11, %cst {dimension_numbers = #tpu.dot_dimension_numbers<[1], [0], [0], [1], [0, 0, 1, 1], [], []>} : vector<8x8xf32>, vector<8x256xf32>, vector<8x256xf32> -> vector<8x256xf32>
    %16 = arith.addf %12, %15 : vector<8x256xf32>
    %c0_13 = arith.constant 0 : index
    %c0_14 = arith.constant 0 : index
    %17 = vector.load %arg6[%c0_13, %c0_14] : memref<32x256xf32, #tpu.memory_space<vmem>>, vector<8x256xf32>
    tpu.vector_store %arg6[%c0_13, %c0_14], %16 {strides = array<i32>} : memref<32x256xf32, #tpu.memory_space<vmem>>, vector<8x256xf32>,
    %18 = vector.extract_strided_slice %1 {offsets = [0, 240], sizes = [8, 16], strides = [1, 1]} : vector<8x256xf32> to vector<8x16xf32>
    %19 = vector.extract_strided_slice %1 {offsets = [0, 0], sizes = [8, 240], strides = [1, 1]} : vector<8x256xf32> to vector<8x240xf32>
    %20 = tpu.concatenate %18, %19 in 1 : vector<8x16xf32>, vector<8x240xf32> -> vector<8x256xf32>
    %c1 = arith.constant 1 : index
    %c0_15 = arith.constant 0 : index
    %21 = vector.load %arg4[%c1, %c0_15] : memref<9x256xf32, #tpu.memory_space<vmem>>, vector<1x256xf32>
    %22 = vector.broadcast %21 : vector<1x256xf32> to vector<8x256xf32>
    %23 = arith.mulf %20, %22 : vector<8x256xf32>
    %c0_16 = arith.constant 0 : index
    %c0_17 = arith.constant 0 : index
    %24 = vector.load %arg6[%c0_16, %c0_17] : memref<32x256xf32, #tpu.memory_space<vmem>>, vector<16x256xf32>
    %c1_18 = arith.constant 1 : index
    %c0_19 = arith.constant 0 : index
    %c0_20 = arith.constant 0 : index
    %25 = vector.load %arg2[%c1_18, %c0_19, %c0_20] : memref<9x32x8xf32, #tpu.memory_space<vmem>>, vector<1x16x8xf32>
    %26 = vector.shape_cast %25 : vector<1x16x8xf32> to vector<16x8xf32>
    %cst_21 = arith.constant dense<0.000000e+00> : vector<16x256xf32>
    %27 = tpu.matmul %26, %23, %cst_21 {dimension_numbers = #tpu.dot_dimension_numbers<[1], [0], [0], [1], [0, 0, 1, 1], [], []>} : vector<16x8xf32>, vector<8x256xf32>, vector<16x256xf32> -> vector<16x256xf32>
    %28 = arith.addf %24, %27 : vector<16x256xf32>
    %c0_22 = arith.constant 0 : index
    %c0_23 = arith.constant 0 : index
    %29 = vector.load %arg6[%c0_22, %c0_23] : memref<32x256xf32, #tpu.memory_space<vmem>>, vector<16x256xf32>
    tpu.vector_store %arg6[%c0_22, %c0_23], %28 {strides = array<i32>} : memref<32x256xf32, #tpu.memory_space<vmem>>, vector<16x256xf32>,
    %30 = vector.extract_strided_slice %1 {offsets = [0, 241], sizes = [8, 15], strides = [1, 1]} : vector<8x256xf32> to vector<8x15xf32>
    %31 = vector.extract_strided_slice %1 {offsets = [0, 0], sizes = [8, 241], strides = [1, 1]} : vector<8x256xf32> to vector<8x241xf32>
    %32 = tpu.concatenate %30, %31 in 1 : vector<8x15xf32>, vector<8x241xf32> -> vector<8x256xf32>
    %c2 = arith.constant 2 : index
    %c0_24 = arith.constant 0 : index
    %33 = vector.load %arg4[%c2, %c0_24] : memref<9x256xf32, #tpu.memory_space<vmem>>, vector<1x256xf32>
    %34 = vector.broadcast %33 : vector<1x256xf32> to vector<8x256xf32>
    %35 = arith.mulf %32, %34 : vector<8x256xf32>
    %c0_25 = arith.constant 0 : index
    %c0_26 = arith.constant 0 : index
    %36 = vector.load %arg6[%c0_25, %c0_26] : memref<32x256xf32, #tpu.memory_space<vmem>>, vector<16x256xf32>
    %c2_27 = arith.constant 2 : index
    %c0_28 = arith.constant 0 : index
    %c0_29 = arith.constant 0 : index
    %37 = vector.load %arg2[%c2_27, %c0_28, %c0_29] : memref<9x32x8xf32, #tpu.memory_space<vmem>>, vector<1x16x8xf32>
    %38 = vector.shape_cast %37 : vector<1x16x8xf32> to vector<16x8xf32>
    %cst_30 = arith.constant dense<0.000000e+00> : vector<16x256xf32>
    %39 = tpu.matmul %38, %35, %cst_30 {dimension_numbers = #tpu.dot_dimension_numbers<[1], [0], [0], [1], [0, 0, 1, 1], [], []>} : vector<16x8xf32>, vector<8x256xf32>, vector<16x256xf32> -> vector<16x256xf32>
    %40 = arith.addf %36, %39 : vector<16x256xf32>
    %c0_31 = arith.constant 0 : index
    %c0_32 = arith.constant 0 : index
    %41 = vector.load %arg6[%c0_31, %c0_32] : memref<32x256xf32, #tpu.memory_space<vmem>>, vector<16x256xf32>
    tpu.vector_store %arg6[%c0_31, %c0_32], %40 {strides = array<i32>} : memref<32x256xf32, #tpu.memory_space<vmem>>, vector<16x256xf32>,
    %42 = vector.extract_strided_slice %1 {offsets = [0, 255], sizes = [8, 1], strides = [1, 1]} : vector<8x256xf32> to vector<8x1xf32>
    %43 = vector.extract_strided_slice %1 {offsets = [0, 0], sizes = [8, 255], strides = [1, 1]} : vector<8x256xf32> to vector<8x255xf32>
    %44 = tpu.concatenate %42, %43 in 1 : vector<8x1xf32>, vector<8x255xf32> -> vector<8x256xf32>
    %c3 = arith.constant 3 : index
    %c0_33 = arith.constant 0 : index
    %45 = vector.load %arg4[%c3, %c0_33] : memref<9x256xf32, #tpu.memory_space<vmem>>, vector<1x256xf32>
    %46 = vector.broadcast %45 : vector<1x256xf32> to vector<8x256xf32>
    %47 = arith.mulf %44, %46 : vector<8x256xf32>
    %c0_34 = arith.constant 0 : index
    %c0_35 = arith.constant 0 : index
    %48 = vector.load %arg6[%c0_34, %c0_35] : memref<32x256xf32, #tpu.memory_space<vmem>>, vector<8x256xf32>
    %c3_36 = arith.constant 3 : index
    %c0_37 = arith.constant 0 : index
    %c0_38 = arith.constant 0 : index
    %49 = vector.load %arg2[%c3_36, %c0_37, %c0_38] : memref<9x32x8xf32, #tpu.memory_space<vmem>>, vector<1x8x8xf32>
    %50 = vector.shape_cast %49 : vector<1x8x8xf32> to vector<8x8xf32>
    %cst_39 = arith.constant dense<0.000000e+00> : vector<8x256xf32>
    %51 = tpu.matmul %50, %47, %cst_39 {dimension_numbers = #tpu.dot_dimension_numbers<[1], [0], [0], [1], [0, 0, 1, 1], [], []>} : vector<8x8xf32>, vector<8x256xf32>, vector<8x256xf32> -> vector<8x256xf32>
    %52 = arith.addf %48, %51 : vector<8x256xf32>
    %c0_40 = arith.constant 0 : index
    %c0_41 = arith.constant 0 : index
    %53 = vector.load %arg6[%c0_40, %c0_41] : memref<32x256xf32, #tpu.memory_space<vmem>>, vector<8x256xf32>
    tpu.vector_store %arg6[%c0_40, %c0_41], %52 {strides = array<i32>} : memref<32x256xf32, #tpu.memory_space<vmem>>, vector<8x256xf32>,
    %c16 = arith.constant 16 : index
    %c0_42 = arith.constant 0 : index
    %54 = vector.load %arg6[%c16, %c0_42] : memref<32x256xf32, #tpu.memory_space<vmem>>, vector<8x256xf32>
    %c3_43 = arith.constant 3 : index
    %c16_44 = arith.constant 16 : index
    %c0_45 = arith.constant 0 : index
    %55 = vector.load %arg2[%c3_43, %c16_44, %c0_45] : memref<9x32x8xf32, #tpu.memory_space<vmem>>, vector<1x8x8xf32>
    %56 = vector.shape_cast %55 : vector<1x8x8xf32> to vector<8x8xf32>
    %cst_46 = arith.constant dense<0.000000e+00> : vector<8x256xf32>
    %57 = tpu.matmul %56, %47, %cst_46 {dimension_numbers = #tpu.dot_dimension_numbers<[1], [0], [0], [1], [0, 0, 1, 1], [], []>} : vector<8x8xf32>, vector<8x256xf32>, vector<8x256xf32> -> vector<8x256xf32>
    %58 = arith.addf %54, %57 : vector<8x256xf32>
    %c16_47 = arith.constant 16 : index
    %c0_48 = arith.constant 0 : index
    %59 = vector.load %arg6[%c16_47, %c0_48] : memref<32x256xf32, #tpu.memory_space<vmem>>, vector<8x256xf32>
    tpu.vector_store %arg6[%c16_47, %c0_48], %58 {strides = array<i32>} : memref<32x256xf32, #tpu.memory_space<vmem>>, vector<8x256xf32>,
    %c4 = arith.constant 4 : index
    %c0_49 = arith.constant 0 : index
    %60 = vector.load %arg4[%c4, %c0_49] : memref<9x256xf32, #tpu.memory_space<vmem>>, vector<1x256xf32>
    %61 = vector.broadcast %60 : vector<1x256xf32> to vector<8x256xf32>
    %62 = arith.mulf %1, %61 : vector<8x256xf32>
    %c0_50 = arith.constant 0 : index
    %c0_51 = arith.constant 0 : index
    %63 = vector.load %arg6[%c0_50, %c0_51] : memref<32x256xf32, #tpu.memory_space<vmem>>, vector<32x256xf32>
    %c4_52 = arith.constant 4 : index
    %c0_53 = arith.constant 0 : index
    %c0_54 = arith.constant 0 : index
    %64 = vector.load %arg2[%c4_52, %c0_53, %c0_54] : memref<9x32x8xf32, #tpu.memory_space<vmem>>, vector<1x32x8xf32>
    %65 = vector.shape_cast %64 : vector<1x32x8xf32> to vector<32x8xf32>
    %cst_55 = arith.constant dense<0.000000e+00> : vector<32x256xf32>
    %66 = tpu.matmul %65, %62, %cst_55 {dimension_numbers = #tpu.dot_dimension_numbers<[1], [0], [0], [1], [0, 0, 1, 1], [], []>} : vector<32x8xf32>, vector<8x256xf32>, vector<32x256xf32> -> vector<32x256xf32>
    %67 = arith.addf %63, %66 : vector<32x256xf32>
    %c0_56 = arith.constant 0 : index
    %c0_57 = arith.constant 0 : index
    %68 = vector.load %arg6[%c0_56, %c0_57] : memref<32x256xf32, #tpu.memory_space<vmem>>, vector<32x256xf32>
    tpu.vector_store %arg6[%c0_56, %c0_57], %67 {strides = array<i32>} : memref<32x256xf32, #tpu.memory_space<vmem>>, vector<32x256xf32>,
    %69 = vector.extract_strided_slice %1 {offsets = [0, 1], sizes = [8, 255], strides = [1, 1]} : vector<8x256xf32> to vector<8x255xf32>
    %70 = vector.extract_strided_slice %1 {offsets = [0, 0], sizes = [8, 1], strides = [1, 1]} : vector<8x256xf32> to vector<8x1xf32>
    %71 = tpu.concatenate %69, %70 in 1 : vector<8x255xf32>, vector<8x1xf32> -> vector<8x256xf32>
    %c5 = arith.constant 5 : index
    %c0_58 = arith.constant 0 : index
    %72 = vector.load %arg4[%c5, %c0_58] : memref<9x256xf32, #tpu.memory_space<vmem>>, vector<1x256xf32>
    %73 = vector.broadcast %72 : vector<1x256xf32> to vector<8x256xf32>
    %74 = arith.mulf %71, %73 : vector<8x256xf32>
    %c0_59 = arith.constant 0 : index
    %c0_60 = arith.constant 0 : index
    %75 = vector.load %arg6[%c0_59, %c0_60] : memref<32x256xf32, #tpu.memory_space<vmem>>, vector<32x256xf32>
    %c5_61 = arith.constant 5 : index
    %c0_62 = arith.constant 0 : index
    %c0_63 = arith.constant 0 : index
    %76 = vector.load %arg2[%c5_61, %c0_62, %c0_63] : memref<9x32x8xf32, #tpu.memory_space<vmem>>, vector<1x32x8xf32>
    %77 = vector.shape_cast %76 : vector<1x32x8xf32> to vector<32x8xf32>
    %cst_64 = arith.constant dense<0.000000e+00> : vector<32x256xf32>
    %78 = tpu.matmul %77, %74, %cst_64 {dimension_numbers = #tpu.dot_dimension_numbers<[1], [0], [0], [1], [0, 0, 1, 1], [], []>} : vector<32x8xf32>, vector<8x256xf32>, vector<32x256xf32> -> vector<32x256xf32>
    %79 = arith.addf %75, %78 : vector<32x256xf32>
    %c0_65 = arith.constant 0 : index
    %c0_66 = arith.constant 0 : index
    %80 = vector.load %arg6[%c0_65, %c0_66] : memref<32x256xf32, #tpu.memory_space<vmem>>, vector<32x256xf32>
    tpu.vector_store %arg6[%c0_65, %c0_66], %79 {strides = array<i32>} : memref<32x256xf32, #tpu.memory_space<vmem>>, vector<32x256xf32>,
    %81 = vector.extract_strided_slice %1 {offsets = [0, 15], sizes = [8, 241], strides = [1, 1]} : vector<8x256xf32> to vector<8x241xf32>
    %82 = vector.extract_strided_slice %1 {offsets = [0, 0], sizes = [8, 15], strides = [1, 1]} : vector<8x256xf32> to vector<8x15xf32>
    %83 = tpu.concatenate %81, %82 in 1 : vector<8x241xf32>, vector<8x15xf32> -> vector<8x256xf32>
    %c6 = arith.constant 6 : index
    %c0_67 = arith.constant 0 : index
    %84 = vector.load %arg4[%c6, %c0_67] : memref<9x256xf32, #tpu.memory_space<vmem>>, vector<1x256xf32>
    %85 = vector.broadcast %84 : vector<1x256xf32> to vector<8x256xf32>
    %86 = arith.mulf %83, %85 : vector<8x256xf32>
    %c0_68 = arith.constant 0 : index
    %c0_69 = arith.constant 0 : index
    %87 = vector.load %arg6[%c0_68, %c0_69] : memref<32x256xf32, #tpu.memory_space<vmem>>, vector<8x256xf32>
    %c6_70 = arith.constant 6 : index
    %c0_71 = arith.constant 0 : index
    %c0_72 = arith.constant 0 : index
    %88 = vector.load %arg2[%c6_70, %c0_71, %c0_72] : memref<9x32x8xf32, #tpu.memory_space<vmem>>, vector<1x8x8xf32>
    %89 = vector.shape_cast %88 : vector<1x8x8xf32> to vector<8x8xf32>
    %cst_73 = arith.constant dense<0.000000e+00> : vector<8x256xf32>
    %90 = tpu.matmul %89, %86, %cst_73 {dimension_numbers = #tpu.dot_dimension_numbers<[1], [0], [0], [1], [0, 0, 1, 1], [], []>} : vector<8x8xf32>, vector<8x256xf32>, vector<8x256xf32> -> vector<8x256xf32>
    %91 = arith.addf %87, %90 : vector<8x256xf32>
    %c0_74 = arith.constant 0 : index
    %c0_75 = arith.constant 0 : index
    %92 = vector.load %arg6[%c0_74, %c0_75] : memref<32x256xf32, #tpu.memory_space<vmem>>, vector<8x256xf32>
    tpu.vector_store %arg6[%c0_74, %c0_75], %91 {strides = array<i32>} : memref<32x256xf32, #tpu.memory_space<vmem>>, vector<8x256xf32>,
    %c16_76 = arith.constant 16 : index
    %c0_77 = arith.constant 0 : index
    %93 = vector.load %arg6[%c16_76, %c0_77] : memref<32x256xf32, #tpu.memory_space<vmem>>, vector<8x256xf32>
    %c6_78 = arith.constant 6 : index
    %c16_79 = arith.constant 16 : index
    %c0_80 = arith.constant 0 : index
    %94 = vector.load %arg2[%c6_78, %c16_79, %c0_80] : memref<9x32x8xf32, #tpu.memory_space<vmem>>, vector<1x8x8xf32>
    %95 = vector.shape_cast %94 : vector<1x8x8xf32> to vector<8x8xf32>
    %cst_81 = arith.constant dense<0.000000e+00> : vector<8x256xf32>
    %96 = tpu.matmul %95, %86, %cst_81 {dimension_numbers = #tpu.dot_dimension_numbers<[1], [0], [0], [1], [0, 0, 1, 1], [], []>} : vector<8x8xf32>, vector<8x256xf32>, vector<8x256xf32> -> vector<8x256xf32>
    %97 = arith.addf %93, %96 : vector<8x256xf32>
    %c16_82 = arith.constant 16 : index
    %c0_83 = arith.constant 0 : index
    %98 = vector.load %arg6[%c16_82, %c0_83] : memref<32x256xf32, #tpu.memory_space<vmem>>, vector<8x256xf32>
    tpu.vector_store %arg6[%c16_82, %c0_83], %97 {strides = array<i32>} : memref<32x256xf32, #tpu.memory_space<vmem>>, vector<8x256xf32>,
    %99 = vector.extract_strided_slice %1 {offsets = [0, 16], sizes = [8, 240], strides = [1, 1]} : vector<8x256xf32> to vector<8x240xf32>
    %100 = vector.extract_strided_slice %1 {offsets = [0, 0], sizes = [8, 16], strides = [1, 1]} : vector<8x256xf32> to vector<8x16xf32>
    %101 = tpu.concatenate %99, %100 in 1 : vector<8x240xf32>, vector<8x16xf32> -> vector<8x256xf32>
    %c7 = arith.constant 7 : index
    %c0_84 = arith.constant 0 : index
    %102 = vector.load %arg4[%c7, %c0_84] : memref<9x256xf32, #tpu.memory_space<vmem>>, vector<1x256xf32>
    %103 = vector.broadcast %102 : vector<1x256xf32> to vector<8x256xf32>
    %104 = arith.mulf %101, %103 : vector<8x256xf32>
    %c0_85 = arith.constant 0 : index
    %c0_86 = arith.constant 0 : index
    %105 = vector.load %arg6[%c0_85, %c0_86] : memref<32x256xf32, #tpu.memory_space<vmem>>, vector<32x256xf32>
    %c7_87 = arith.constant 7 : index
    %c0_88 = arith.constant 0 : index
    %c0_89 = arith.constant 0 : index
    %106 = vector.load %arg2[%c7_87, %c0_88, %c0_89] : memref<9x32x8xf32, #tpu.memory_space<vmem>>, vector<1x32x8xf32>
    %107 = vector.shape_cast %106 : vector<1x32x8xf32> to vector<32x8xf32>
    %cst_90 = arith.constant dense<0.000000e+00> : vector<32x256xf32>
    %108 = tpu.matmul %107, %104, %cst_90 {dimension_numbers = #tpu.dot_dimension_numbers<[1], [0], [0], [1], [0, 0, 1, 1], [], []>} : vector<32x8xf32>, vector<8x256xf32>, vector<32x256xf32> -> vector<32x256xf32>
    %109 = arith.addf %105, %108 : vector<32x256xf32>
    %c0_91 = arith.constant 0 : index
    %c0_92 = arith.constant 0 : index
    %110 = vector.load %arg6[%c0_91, %c0_92] : memref<32x256xf32, #tpu.memory_space<vmem>>, vector<32x256xf32>
    tpu.vector_store %arg6[%c0_91, %c0_92], %109 {strides = array<i32>} : memref<32x256xf32, #tpu.memory_space<vmem>>, vector<32x256xf32>,
    %111 = vector.extract_strided_slice %1 {offsets = [0, 17], sizes = [8, 239], strides = [1, 1]} : vector<8x256xf32> to vector<8x239xf32>
    %112 = vector.extract_strided_slice %1 {offsets = [0, 0], sizes = [8, 17], strides = [1, 1]} : vector<8x256xf32> to vector<8x17xf32>
    %113 = tpu.concatenate %111, %112 in 1 : vector<8x239xf32>, vector<8x17xf32> -> vector<8x256xf32>
    %c8 = arith.constant 8 : index
    %c0_93 = arith.constant 0 : index
    %114 = vector.load %arg4[%c8, %c0_93] : memref<9x256xf32, #tpu.memory_space<vmem>>, vector<1x256xf32>
    %115 = vector.broadcast %114 : vector<1x256xf32> to vector<8x256xf32>
    %116 = arith.mulf %113, %115 : vector<8x256xf32>
    %c0_94 = arith.constant 0 : index
    %c0_95 = arith.constant 0 : index
    %117 = vector.load %arg6[%c0_94, %c0_95] : memref<32x256xf32, #tpu.memory_space<vmem>>, vector<32x256xf32>
    %c8_96 = arith.constant 8 : index
    %c0_97 = arith.constant 0 : index
    %c0_98 = arith.constant 0 : index
    %118 = vector.load %arg2[%c8_96, %c0_97, %c0_98] : memref<9x32x8xf32, #tpu.memory_space<vmem>>, vector<1x32x8xf32>
    %119 = vector.shape_cast %118 : vector<1x32x8xf32> to vector<32x8xf32>
    %cst_99 = arith.constant dense<0.000000e+00> : vector<32x256xf32>
    %120 = tpu.matmul %119, %116, %cst_99 {dimension_numbers = #tpu.dot_dimension_numbers<[1], [0], [0], [1], [0, 0, 1, 1], [], []>} : vector<32x8xf32>, vector<8x256xf32>, vector<32x256xf32> -> vector<32x256xf32>
    %121 = arith.addf %117, %120 : vector<32x256xf32>
    %c0_100 = arith.constant 0 : index
    %c0_101 = arith.constant 0 : index
    %122 = vector.load %arg6[%c0_100, %c0_101] : memref<32x256xf32, #tpu.memory_space<vmem>>, vector<32x256xf32>
    tpu.vector_store %arg6[%c0_100, %c0_101], %121 {strides = array<i32>} : memref<32x256xf32, #tpu.memory_space<vmem>>, vector<32x256xf32>,
    %c0_102 = arith.constant 0 : index
    %c0_103 = arith.constant 0 : index
    %123 = vector.load %arg6[%c0_102, %c0_103] : memref<32x256xf32, #tpu.memory_space<vmem>>, vector<32x256xf32>
    %cst_104 = arith.constant 0.000000e+00 : f32
    %124 = vector.broadcast %cst_104 : f32 to vector<32x256xf32>
    %125 = arith.maximumf %123, %124 : vector<32x256xf32>
    %c0_105 = arith.constant 0 : index
    %c0_106 = arith.constant 0 : index
    %c0_107 = arith.constant 0 : index
    %126 = vector.load %arg5[%c0_105, %c0_106, %c0_107] : memref<1x32x256xf32, #tpu.memory_space<vmem>>, vector<1x32x256xf32>
    %127 = vector.shape_cast %126 : vector<1x32x256xf32> to vector<32x256xf32>
    %128 = vector.shape_cast %125 : vector<32x256xf32> to vector<1x32x256xf32>
    tpu.vector_store %arg5[%c0_105, %c0_106, %c0_107], %128 {strides = array<i32>} : memref<1x32x256xf32, #tpu.memory_space<vmem>>, vector<1x32x256xf32>,
    return
  }
  func.func @transform_0(%arg0: i32) -> (i32, i32, i32) {
    %c0_i32 = arith.constant 0 : i32
    %c0_i32_0 = arith.constant 0 : i32
    %c0_i32_1 = arith.constant 0 : i32
    return %arg0, %c0_i32, %c0_i32_0 : i32, i32, i32
  }
  func.func @transform_1(%arg0: i32) -> (i32, i32, i32) {
    %c0_i32 = arith.constant 0 : i32
    %c0_i32_0 = arith.constant 0 : i32
    %c0_i32_1 = arith.constant 0 : i32
    %c0_i32_2 = arith.constant 0 : i32
    return %c0_i32, %c0_i32_0, %c0_i32_1 : i32, i32, i32
  }
  func.func @transform_2(%arg0: i32) -> (i32, i32) {
    %c0_i32 = arith.constant 0 : i32
    %c0_i32_0 = arith.constant 0 : i32
    %c0_i32_1 = arith.constant 0 : i32
    return %c0_i32, %c0_i32_0 : i32, i32
  }
  func.func @transform_3(%arg0: i32) -> (i32, i32) {
    %c0_i32 = arith.constant 0 : i32
    %c0_i32_0 = arith.constant 0 : i32
    %c0_i32_1 = arith.constant 0 : i32
    return %c0_i32, %c0_i32_0 : i32, i32
  }
  func.func @transform_4(%arg0: i32) -> (i32, i32, i32) {
    %c0_i32 = arith.constant 0 : i32
    %c0_i32_0 = arith.constant 0 : i32
    %c0_i32_1 = arith.constant 0 : i32
    return %arg0, %c0_i32, %c0_i32_0 : i32, i32, i32
  }
}

module attributes {stable_mosaic.version = 11 : i64} {
  func.func @kernel(%arg0: i32, %arg1: memref<1x8x1024xf32, #tpu.memory_space<vmem>>, %arg2: memref<9x32x8xf32, #tpu.memory_space<vmem>>, %arg3: memref<32x1xf32, #tpu.memory_space<vmem>>, %arg4: memref<9x1024xf32, #tpu.memory_space<vmem>>, %arg5: memref<1x32x1024xf32, #tpu.memory_space<vmem>>, %arg6: memref<32x1024xf32, #tpu.memory_space<vmem>>) attributes {dimension_semantics = [#tpu.dimension_semantics<parallel>], iteration_bounds = array<i64: 2>, scalar_prefetch = 0 : i64, scratch_operands = 1 : i64, tpu.core_type = #tpu.core_type<tc>, window_params = [{transform_indices = @transform_0, window_bounds = array<i64: 1, 8, 1024>}, {pipeline_mode = #tpu.pipeline_mode<synchronous>, transform_indices = @transform_1, window_bounds = array<i64: 9, 32, 8>}, {pipeline_mode = #tpu.pipeline_mode<synchronous>, transform_indices = @transform_2, window_bounds = array<i64: 32, 1>}, {pipeline_mode = #tpu.pipeline_mode<synchronous>, transform_indices = @transform_3, window_bounds = array<i64: 9, 1024>}, {transform_indices = @transform_4, window_bounds = array<i64: 1, 32, 1024>}]} {
    %c0 = arith.constant 0 : index
    %c0_0 = arith.constant 0 : index
    %c0_1 = arith.constant 0 : index
    %0 = vector.load %arg1[%c0, %c0_0, %c0_1] : memref<1x8x1024xf32, #tpu.memory_space<vmem>>, vector<1x8x1024xf32>
    %1 = vector.shape_cast %0 : vector<1x8x1024xf32> to vector<8x1024xf32>
    %c0_2 = arith.constant 0 : index
    %c0_3 = arith.constant 0 : index
    %2 = vector.load %arg3[%c0_2, %c0_3] : memref<32x1xf32, #tpu.memory_space<vmem>>, vector<32x1xf32>
    %3 = vector.shape_cast %2 : vector<32x1xf32> to vector<32x1xf32>
    %4 = vector.broadcast %3 : vector<32x1xf32> to vector<32x1024xf32>
    %c0_4 = arith.constant 0 : index
    %c0_5 = arith.constant 0 : index
    %5 = vector.load %arg6[%c0_4, %c0_5] : memref<32x1024xf32, #tpu.memory_space<vmem>>, vector<32x1024xf32>
    tpu.vector_store %arg6[%c0_4, %c0_5], %4 {strides = array<i32>} : memref<32x1024xf32, #tpu.memory_space<vmem>>, vector<32x1024xf32>,
    %6 = vector.extract_strided_slice %1 {offsets = [0, 991], sizes = [8, 33], strides = [1, 1]} : vector<8x1024xf32> to vector<8x33xf32>
    %7 = vector.extract_strided_slice %1 {offsets = [0, 0], sizes = [8, 991], strides = [1, 1]} : vector<8x1024xf32> to vector<8x991xf32>
    %8 = tpu.concatenate %6, %7 in 1 : vector<8x33xf32>, vector<8x991xf32> -> vector<8x1024xf32>
    %c0_6 = arith.constant 0 : index
    %c0_7 = arith.constant 0 : index
    %9 = vector.load %arg4[%c0_6, %c0_7] : memref<9x1024xf32, #tpu.memory_space<vmem>>, vector<1x1024xf32>
    %10 = vector.broadcast %9 : vector<1x1024xf32> to vector<8x1024xf32>
    %11 = arith.mulf %8, %10 : vector<8x1024xf32>
    %c0_8 = arith.constant 0 : index
    %c0_9 = arith.constant 0 : index
    %12 = vector.load %arg6[%c0_8, %c0_9] : memref<32x1024xf32, #tpu.memory_space<vmem>>, vector<8x1024xf32>
    %c0_10 = arith.constant 0 : index
    %c0_11 = arith.constant 0 : index
    %c0_12 = arith.constant 0 : index
    %13 = vector.load %arg2[%c0_10, %c0_11, %c0_12] : memref<9x32x8xf32, #tpu.memory_space<vmem>>, vector<1x8x8xf32>
    %14 = vector.shape_cast %13 : vector<1x8x8xf32> to vector<8x8xf32>
    %cst = arith.constant dense<0.000000e+00> : vector<8x1024xf32>
    %15 = tpu.matmul %14, %11, %cst {dimension_numbers = #tpu.dot_dimension_numbers<[1], [0], [0], [1], [0, 0, 1, 1], [], []>} : vector<8x8xf32>, vector<8x1024xf32>, vector<8x1024xf32> -> vector<8x1024xf32>
    %16 = arith.addf %12, %15 : vector<8x1024xf32>
    %c0_13 = arith.constant 0 : index
    %c0_14 = arith.constant 0 : index
    %17 = vector.load %arg6[%c0_13, %c0_14] : memref<32x1024xf32, #tpu.memory_space<vmem>>, vector<8x1024xf32>
    tpu.vector_store %arg6[%c0_13, %c0_14], %16 {strides = array<i32>} : memref<32x1024xf32, #tpu.memory_space<vmem>>, vector<8x1024xf32>,
    %18 = vector.extract_strided_slice %1 {offsets = [0, 992], sizes = [8, 32], strides = [1, 1]} : vector<8x1024xf32> to vector<8x32xf32>
    %19 = vector.extract_strided_slice %1 {offsets = [0, 0], sizes = [8, 992], strides = [1, 1]} : vector<8x1024xf32> to vector<8x992xf32>
    %20 = tpu.concatenate %18, %19 in 1 : vector<8x32xf32>, vector<8x992xf32> -> vector<8x1024xf32>
    %c1 = arith.constant 1 : index
    %c0_15 = arith.constant 0 : index
    %21 = vector.load %arg4[%c1, %c0_15] : memref<9x1024xf32, #tpu.memory_space<vmem>>, vector<1x1024xf32>
    %22 = vector.broadcast %21 : vector<1x1024xf32> to vector<8x1024xf32>
    %23 = arith.mulf %20, %22 : vector<8x1024xf32>
    %c0_16 = arith.constant 0 : index
    %c0_17 = arith.constant 0 : index
    %24 = vector.load %arg6[%c0_16, %c0_17] : memref<32x1024xf32, #tpu.memory_space<vmem>>, vector<16x1024xf32>
    %c1_18 = arith.constant 1 : index
    %c0_19 = arith.constant 0 : index
    %c0_20 = arith.constant 0 : index
    %25 = vector.load %arg2[%c1_18, %c0_19, %c0_20] : memref<9x32x8xf32, #tpu.memory_space<vmem>>, vector<1x16x8xf32>
    %26 = vector.shape_cast %25 : vector<1x16x8xf32> to vector<16x8xf32>
    %cst_21 = arith.constant dense<0.000000e+00> : vector<16x1024xf32>
    %27 = tpu.matmul %26, %23, %cst_21 {dimension_numbers = #tpu.dot_dimension_numbers<[1], [0], [0], [1], [0, 0, 1, 1], [], []>} : vector<16x8xf32>, vector<8x1024xf32>, vector<16x1024xf32> -> vector<16x1024xf32>
    %28 = arith.addf %24, %27 : vector<16x1024xf32>
    %c0_22 = arith.constant 0 : index
    %c0_23 = arith.constant 0 : index
    %29 = vector.load %arg6[%c0_22, %c0_23] : memref<32x1024xf32, #tpu.memory_space<vmem>>, vector<16x1024xf32>
    tpu.vector_store %arg6[%c0_22, %c0_23], %28 {strides = array<i32>} : memref<32x1024xf32, #tpu.memory_space<vmem>>, vector<16x1024xf32>,
    %30 = vector.extract_strided_slice %1 {offsets = [0, 993], sizes = [8, 31], strides = [1, 1]} : vector<8x1024xf32> to vector<8x31xf32>
    %31 = vector.extract_strided_slice %1 {offsets = [0, 0], sizes = [8, 993], strides = [1, 1]} : vector<8x1024xf32> to vector<8x993xf32>
    %32 = tpu.concatenate %30, %31 in 1 : vector<8x31xf32>, vector<8x993xf32> -> vector<8x1024xf32>
    %c2 = arith.constant 2 : index
    %c0_24 = arith.constant 0 : index
    %33 = vector.load %arg4[%c2, %c0_24] : memref<9x1024xf32, #tpu.memory_space<vmem>>, vector<1x1024xf32>
    %34 = vector.broadcast %33 : vector<1x1024xf32> to vector<8x1024xf32>
    %35 = arith.mulf %32, %34 : vector<8x1024xf32>
    %c0_25 = arith.constant 0 : index
    %c0_26 = arith.constant 0 : index
    %36 = vector.load %arg6[%c0_25, %c0_26] : memref<32x1024xf32, #tpu.memory_space<vmem>>, vector<16x1024xf32>
    %c2_27 = arith.constant 2 : index
    %c0_28 = arith.constant 0 : index
    %c0_29 = arith.constant 0 : index
    %37 = vector.load %arg2[%c2_27, %c0_28, %c0_29] : memref<9x32x8xf32, #tpu.memory_space<vmem>>, vector<1x16x8xf32>
    %38 = vector.shape_cast %37 : vector<1x16x8xf32> to vector<16x8xf32>
    %cst_30 = arith.constant dense<0.000000e+00> : vector<16x1024xf32>
    %39 = tpu.matmul %38, %35, %cst_30 {dimension_numbers = #tpu.dot_dimension_numbers<[1], [0], [0], [1], [0, 0, 1, 1], [], []>} : vector<16x8xf32>, vector<8x1024xf32>, vector<16x1024xf32> -> vector<16x1024xf32>
    %40 = arith.addf %36, %39 : vector<16x1024xf32>
    %c0_31 = arith.constant 0 : index
    %c0_32 = arith.constant 0 : index
    %41 = vector.load %arg6[%c0_31, %c0_32] : memref<32x1024xf32, #tpu.memory_space<vmem>>, vector<16x1024xf32>
    tpu.vector_store %arg6[%c0_31, %c0_32], %40 {strides = array<i32>} : memref<32x1024xf32, #tpu.memory_space<vmem>>, vector<16x1024xf32>,
    %42 = vector.extract_strided_slice %1 {offsets = [0, 1023], sizes = [8, 1], strides = [1, 1]} : vector<8x1024xf32> to vector<8x1xf32>
    %43 = vector.extract_strided_slice %1 {offsets = [0, 0], sizes = [8, 1023], strides = [1, 1]} : vector<8x1024xf32> to vector<8x1023xf32>
    %44 = tpu.concatenate %42, %43 in 1 : vector<8x1xf32>, vector<8x1023xf32> -> vector<8x1024xf32>
    %c3 = arith.constant 3 : index
    %c0_33 = arith.constant 0 : index
    %45 = vector.load %arg4[%c3, %c0_33] : memref<9x1024xf32, #tpu.memory_space<vmem>>, vector<1x1024xf32>
    %46 = vector.broadcast %45 : vector<1x1024xf32> to vector<8x1024xf32>
    %47 = arith.mulf %44, %46 : vector<8x1024xf32>
    %c0_34 = arith.constant 0 : index
    %c0_35 = arith.constant 0 : index
    %48 = vector.load %arg6[%c0_34, %c0_35] : memref<32x1024xf32, #tpu.memory_space<vmem>>, vector<8x1024xf32>
    %c3_36 = arith.constant 3 : index
    %c0_37 = arith.constant 0 : index
    %c0_38 = arith.constant 0 : index
    %49 = vector.load %arg2[%c3_36, %c0_37, %c0_38] : memref<9x32x8xf32, #tpu.memory_space<vmem>>, vector<1x8x8xf32>
    %50 = vector.shape_cast %49 : vector<1x8x8xf32> to vector<8x8xf32>
    %cst_39 = arith.constant dense<0.000000e+00> : vector<8x1024xf32>
    %51 = tpu.matmul %50, %47, %cst_39 {dimension_numbers = #tpu.dot_dimension_numbers<[1], [0], [0], [1], [0, 0, 1, 1], [], []>} : vector<8x8xf32>, vector<8x1024xf32>, vector<8x1024xf32> -> vector<8x1024xf32>
    %52 = arith.addf %48, %51 : vector<8x1024xf32>
    %c0_40 = arith.constant 0 : index
    %c0_41 = arith.constant 0 : index
    %53 = vector.load %arg6[%c0_40, %c0_41] : memref<32x1024xf32, #tpu.memory_space<vmem>>, vector<8x1024xf32>
    tpu.vector_store %arg6[%c0_40, %c0_41], %52 {strides = array<i32>} : memref<32x1024xf32, #tpu.memory_space<vmem>>, vector<8x1024xf32>,
    %c16 = arith.constant 16 : index
    %c0_42 = arith.constant 0 : index
    %54 = vector.load %arg6[%c16, %c0_42] : memref<32x1024xf32, #tpu.memory_space<vmem>>, vector<8x1024xf32>
    %c3_43 = arith.constant 3 : index
    %c16_44 = arith.constant 16 : index
    %c0_45 = arith.constant 0 : index
    %55 = vector.load %arg2[%c3_43, %c16_44, %c0_45] : memref<9x32x8xf32, #tpu.memory_space<vmem>>, vector<1x8x8xf32>
    %56 = vector.shape_cast %55 : vector<1x8x8xf32> to vector<8x8xf32>
    %cst_46 = arith.constant dense<0.000000e+00> : vector<8x1024xf32>
    %57 = tpu.matmul %56, %47, %cst_46 {dimension_numbers = #tpu.dot_dimension_numbers<[1], [0], [0], [1], [0, 0, 1, 1], [], []>} : vector<8x8xf32>, vector<8x1024xf32>, vector<8x1024xf32> -> vector<8x1024xf32>
    %58 = arith.addf %54, %57 : vector<8x1024xf32>
    %c16_47 = arith.constant 16 : index
    %c0_48 = arith.constant 0 : index
    %59 = vector.load %arg6[%c16_47, %c0_48] : memref<32x1024xf32, #tpu.memory_space<vmem>>, vector<8x1024xf32>
    tpu.vector_store %arg6[%c16_47, %c0_48], %58 {strides = array<i32>} : memref<32x1024xf32, #tpu.memory_space<vmem>>, vector<8x1024xf32>,
    %c4 = arith.constant 4 : index
    %c0_49 = arith.constant 0 : index
    %60 = vector.load %arg4[%c4, %c0_49] : memref<9x1024xf32, #tpu.memory_space<vmem>>, vector<1x1024xf32>
    %61 = vector.broadcast %60 : vector<1x1024xf32> to vector<8x1024xf32>
    %62 = arith.mulf %1, %61 : vector<8x1024xf32>
    %c0_50 = arith.constant 0 : index
    %c0_51 = arith.constant 0 : index
    %63 = vector.load %arg6[%c0_50, %c0_51] : memref<32x1024xf32, #tpu.memory_space<vmem>>, vector<32x1024xf32>
    %c4_52 = arith.constant 4 : index
    %c0_53 = arith.constant 0 : index
    %c0_54 = arith.constant 0 : index
    %64 = vector.load %arg2[%c4_52, %c0_53, %c0_54] : memref<9x32x8xf32, #tpu.memory_space<vmem>>, vector<1x32x8xf32>
    %65 = vector.shape_cast %64 : vector<1x32x8xf32> to vector<32x8xf32>
    %cst_55 = arith.constant dense<0.000000e+00> : vector<32x1024xf32>
    %66 = tpu.matmul %65, %62, %cst_55 {dimension_numbers = #tpu.dot_dimension_numbers<[1], [0], [0], [1], [0, 0, 1, 1], [], []>} : vector<32x8xf32>, vector<8x1024xf32>, vector<32x1024xf32> -> vector<32x1024xf32>
    %67 = arith.addf %63, %66 : vector<32x1024xf32>
    %c0_56 = arith.constant 0 : index
    %c0_57 = arith.constant 0 : index
    %68 = vector.load %arg6[%c0_56, %c0_57] : memref<32x1024xf32, #tpu.memory_space<vmem>>, vector<32x1024xf32>
    tpu.vector_store %arg6[%c0_56, %c0_57], %67 {strides = array<i32>} : memref<32x1024xf32, #tpu.memory_space<vmem>>, vector<32x1024xf32>,
    %69 = vector.extract_strided_slice %1 {offsets = [0, 1], sizes = [8, 1023], strides = [1, 1]} : vector<8x1024xf32> to vector<8x1023xf32>
    %70 = vector.extract_strided_slice %1 {offsets = [0, 0], sizes = [8, 1], strides = [1, 1]} : vector<8x1024xf32> to vector<8x1xf32>
    %71 = tpu.concatenate %69, %70 in 1 : vector<8x1023xf32>, vector<8x1xf32> -> vector<8x1024xf32>
    %c5 = arith.constant 5 : index
    %c0_58 = arith.constant 0 : index
    %72 = vector.load %arg4[%c5, %c0_58] : memref<9x1024xf32, #tpu.memory_space<vmem>>, vector<1x1024xf32>
    %73 = vector.broadcast %72 : vector<1x1024xf32> to vector<8x1024xf32>
    %74 = arith.mulf %71, %73 : vector<8x1024xf32>
    %c0_59 = arith.constant 0 : index
    %c0_60 = arith.constant 0 : index
    %75 = vector.load %arg6[%c0_59, %c0_60] : memref<32x1024xf32, #tpu.memory_space<vmem>>, vector<32x1024xf32>
    %c5_61 = arith.constant 5 : index
    %c0_62 = arith.constant 0 : index
    %c0_63 = arith.constant 0 : index
    %76 = vector.load %arg2[%c5_61, %c0_62, %c0_63] : memref<9x32x8xf32, #tpu.memory_space<vmem>>, vector<1x32x8xf32>
    %77 = vector.shape_cast %76 : vector<1x32x8xf32> to vector<32x8xf32>
    %cst_64 = arith.constant dense<0.000000e+00> : vector<32x1024xf32>
    %78 = tpu.matmul %77, %74, %cst_64 {dimension_numbers = #tpu.dot_dimension_numbers<[1], [0], [0], [1], [0, 0, 1, 1], [], []>} : vector<32x8xf32>, vector<8x1024xf32>, vector<32x1024xf32> -> vector<32x1024xf32>
    %79 = arith.addf %75, %78 : vector<32x1024xf32>
    %c0_65 = arith.constant 0 : index
    %c0_66 = arith.constant 0 : index
    %80 = vector.load %arg6[%c0_65, %c0_66] : memref<32x1024xf32, #tpu.memory_space<vmem>>, vector<32x1024xf32>
    tpu.vector_store %arg6[%c0_65, %c0_66], %79 {strides = array<i32>} : memref<32x1024xf32, #tpu.memory_space<vmem>>, vector<32x1024xf32>,
    %81 = vector.extract_strided_slice %1 {offsets = [0, 31], sizes = [8, 993], strides = [1, 1]} : vector<8x1024xf32> to vector<8x993xf32>
    %82 = vector.extract_strided_slice %1 {offsets = [0, 0], sizes = [8, 31], strides = [1, 1]} : vector<8x1024xf32> to vector<8x31xf32>
    %83 = tpu.concatenate %81, %82 in 1 : vector<8x993xf32>, vector<8x31xf32> -> vector<8x1024xf32>
    %c6 = arith.constant 6 : index
    %c0_67 = arith.constant 0 : index
    %84 = vector.load %arg4[%c6, %c0_67] : memref<9x1024xf32, #tpu.memory_space<vmem>>, vector<1x1024xf32>
    %85 = vector.broadcast %84 : vector<1x1024xf32> to vector<8x1024xf32>
    %86 = arith.mulf %83, %85 : vector<8x1024xf32>
    %c0_68 = arith.constant 0 : index
    %c0_69 = arith.constant 0 : index
    %87 = vector.load %arg6[%c0_68, %c0_69] : memref<32x1024xf32, #tpu.memory_space<vmem>>, vector<8x1024xf32>
    %c6_70 = arith.constant 6 : index
    %c0_71 = arith.constant 0 : index
    %c0_72 = arith.constant 0 : index
    %88 = vector.load %arg2[%c6_70, %c0_71, %c0_72] : memref<9x32x8xf32, #tpu.memory_space<vmem>>, vector<1x8x8xf32>
    %89 = vector.shape_cast %88 : vector<1x8x8xf32> to vector<8x8xf32>
    %cst_73 = arith.constant dense<0.000000e+00> : vector<8x1024xf32>
    %90 = tpu.matmul %89, %86, %cst_73 {dimension_numbers = #tpu.dot_dimension_numbers<[1], [0], [0], [1], [0, 0, 1, 1], [], []>} : vector<8x8xf32>, vector<8x1024xf32>, vector<8x1024xf32> -> vector<8x1024xf32>
    %91 = arith.addf %87, %90 : vector<8x1024xf32>
    %c0_74 = arith.constant 0 : index
    %c0_75 = arith.constant 0 : index
    %92 = vector.load %arg6[%c0_74, %c0_75] : memref<32x1024xf32, #tpu.memory_space<vmem>>, vector<8x1024xf32>
    tpu.vector_store %arg6[%c0_74, %c0_75], %91 {strides = array<i32>} : memref<32x1024xf32, #tpu.memory_space<vmem>>, vector<8x1024xf32>,
    %c16_76 = arith.constant 16 : index
    %c0_77 = arith.constant 0 : index
    %93 = vector.load %arg6[%c16_76, %c0_77] : memref<32x1024xf32, #tpu.memory_space<vmem>>, vector<8x1024xf32>
    %c6_78 = arith.constant 6 : index
    %c16_79 = arith.constant 16 : index
    %c0_80 = arith.constant 0 : index
    %94 = vector.load %arg2[%c6_78, %c16_79, %c0_80] : memref<9x32x8xf32, #tpu.memory_space<vmem>>, vector<1x8x8xf32>
    %95 = vector.shape_cast %94 : vector<1x8x8xf32> to vector<8x8xf32>
    %cst_81 = arith.constant dense<0.000000e+00> : vector<8x1024xf32>
    %96 = tpu.matmul %95, %86, %cst_81 {dimension_numbers = #tpu.dot_dimension_numbers<[1], [0], [0], [1], [0, 0, 1, 1], [], []>} : vector<8x8xf32>, vector<8x1024xf32>, vector<8x1024xf32> -> vector<8x1024xf32>
    %97 = arith.addf %93, %96 : vector<8x1024xf32>
    %c16_82 = arith.constant 16 : index
    %c0_83 = arith.constant 0 : index
    %98 = vector.load %arg6[%c16_82, %c0_83] : memref<32x1024xf32, #tpu.memory_space<vmem>>, vector<8x1024xf32>
    tpu.vector_store %arg6[%c16_82, %c0_83], %97 {strides = array<i32>} : memref<32x1024xf32, #tpu.memory_space<vmem>>, vector<8x1024xf32>,
    %99 = vector.extract_strided_slice %1 {offsets = [0, 32], sizes = [8, 992], strides = [1, 1]} : vector<8x1024xf32> to vector<8x992xf32>
    %100 = vector.extract_strided_slice %1 {offsets = [0, 0], sizes = [8, 32], strides = [1, 1]} : vector<8x1024xf32> to vector<8x32xf32>
    %101 = tpu.concatenate %99, %100 in 1 : vector<8x992xf32>, vector<8x32xf32> -> vector<8x1024xf32>
    %c7 = arith.constant 7 : index
    %c0_84 = arith.constant 0 : index
    %102 = vector.load %arg4[%c7, %c0_84] : memref<9x1024xf32, #tpu.memory_space<vmem>>, vector<1x1024xf32>
    %103 = vector.broadcast %102 : vector<1x1024xf32> to vector<8x1024xf32>
    %104 = arith.mulf %101, %103 : vector<8x1024xf32>
    %c0_85 = arith.constant 0 : index
    %c0_86 = arith.constant 0 : index
    %105 = vector.load %arg6[%c0_85, %c0_86] : memref<32x1024xf32, #tpu.memory_space<vmem>>, vector<32x1024xf32>
    %c7_87 = arith.constant 7 : index
    %c0_88 = arith.constant 0 : index
    %c0_89 = arith.constant 0 : index
    %106 = vector.load %arg2[%c7_87, %c0_88, %c0_89] : memref<9x32x8xf32, #tpu.memory_space<vmem>>, vector<1x32x8xf32>
    %107 = vector.shape_cast %106 : vector<1x32x8xf32> to vector<32x8xf32>
    %cst_90 = arith.constant dense<0.000000e+00> : vector<32x1024xf32>
    %108 = tpu.matmul %107, %104, %cst_90 {dimension_numbers = #tpu.dot_dimension_numbers<[1], [0], [0], [1], [0, 0, 1, 1], [], []>} : vector<32x8xf32>, vector<8x1024xf32>, vector<32x1024xf32> -> vector<32x1024xf32>
    %109 = arith.addf %105, %108 : vector<32x1024xf32>
    %c0_91 = arith.constant 0 : index
    %c0_92 = arith.constant 0 : index
    %110 = vector.load %arg6[%c0_91, %c0_92] : memref<32x1024xf32, #tpu.memory_space<vmem>>, vector<32x1024xf32>
    tpu.vector_store %arg6[%c0_91, %c0_92], %109 {strides = array<i32>} : memref<32x1024xf32, #tpu.memory_space<vmem>>, vector<32x1024xf32>,
    %111 = vector.extract_strided_slice %1 {offsets = [0, 33], sizes = [8, 991], strides = [1, 1]} : vector<8x1024xf32> to vector<8x991xf32>
    %112 = vector.extract_strided_slice %1 {offsets = [0, 0], sizes = [8, 33], strides = [1, 1]} : vector<8x1024xf32> to vector<8x33xf32>
    %113 = tpu.concatenate %111, %112 in 1 : vector<8x991xf32>, vector<8x33xf32> -> vector<8x1024xf32>
    %c8 = arith.constant 8 : index
    %c0_93 = arith.constant 0 : index
    %114 = vector.load %arg4[%c8, %c0_93] : memref<9x1024xf32, #tpu.memory_space<vmem>>, vector<1x1024xf32>
    %115 = vector.broadcast %114 : vector<1x1024xf32> to vector<8x1024xf32>
    %116 = arith.mulf %113, %115 : vector<8x1024xf32>
    %c0_94 = arith.constant 0 : index
    %c0_95 = arith.constant 0 : index
    %117 = vector.load %arg6[%c0_94, %c0_95] : memref<32x1024xf32, #tpu.memory_space<vmem>>, vector<32x1024xf32>
    %c8_96 = arith.constant 8 : index
    %c0_97 = arith.constant 0 : index
    %c0_98 = arith.constant 0 : index
    %118 = vector.load %arg2[%c8_96, %c0_97, %c0_98] : memref<9x32x8xf32, #tpu.memory_space<vmem>>, vector<1x32x8xf32>
    %119 = vector.shape_cast %118 : vector<1x32x8xf32> to vector<32x8xf32>
    %cst_99 = arith.constant dense<0.000000e+00> : vector<32x1024xf32>
    %120 = tpu.matmul %119, %116, %cst_99 {dimension_numbers = #tpu.dot_dimension_numbers<[1], [0], [0], [1], [0, 0, 1, 1], [], []>} : vector<32x8xf32>, vector<8x1024xf32>, vector<32x1024xf32> -> vector<32x1024xf32>
    %121 = arith.addf %117, %120 : vector<32x1024xf32>
    %c0_100 = arith.constant 0 : index
    %c0_101 = arith.constant 0 : index
    %122 = vector.load %arg6[%c0_100, %c0_101] : memref<32x1024xf32, #tpu.memory_space<vmem>>, vector<32x1024xf32>
    tpu.vector_store %arg6[%c0_100, %c0_101], %121 {strides = array<i32>} : memref<32x1024xf32, #tpu.memory_space<vmem>>, vector<32x1024xf32>,
    %c0_102 = arith.constant 0 : index
    %c0_103 = arith.constant 0 : index
    %123 = vector.load %arg6[%c0_102, %c0_103] : memref<32x1024xf32, #tpu.memory_space<vmem>>, vector<32x512xf32>
    %cst_104 = arith.constant 0.000000e+00 : f32
    %124 = vector.broadcast %cst_104 : f32 to vector<32x512xf32>
    %125 = arith.maximumf %123, %124 : vector<32x512xf32>
    %c0_105 = arith.constant 0 : index
    %c0_106 = arith.constant 0 : index
    %c0_107 = arith.constant 0 : index
    %126 = vector.load %arg5[%c0_105, %c0_106, %c0_107] : memref<1x32x1024xf32, #tpu.memory_space<vmem>>, vector<1x32x512xf32>
    %127 = vector.shape_cast %126 : vector<1x32x512xf32> to vector<32x512xf32>
    %128 = vector.shape_cast %125 : vector<32x512xf32> to vector<1x32x512xf32>
    tpu.vector_store %arg5[%c0_105, %c0_106, %c0_107], %128 {strides = array<i32>} : memref<1x32x1024xf32, #tpu.memory_space<vmem>>, vector<1x32x512xf32>,
    %c0_108 = arith.constant 0 : index
    %c512 = arith.constant 512 : index
    %129 = vector.load %arg6[%c0_108, %c512] : memref<32x1024xf32, #tpu.memory_space<vmem>>, vector<32x512xf32>
    %cst_109 = arith.constant 0.000000e+00 : f32
    %130 = vector.broadcast %cst_109 : f32 to vector<32x512xf32>
    %131 = arith.maximumf %129, %130 : vector<32x512xf32>
    %c0_110 = arith.constant 0 : index
    %c0_111 = arith.constant 0 : index
    %c512_112 = arith.constant 512 : index
    %132 = vector.load %arg5[%c0_110, %c0_111, %c512_112] : memref<1x32x1024xf32, #tpu.memory_space<vmem>>, vector<1x32x512xf32>
    %133 = vector.shape_cast %132 : vector<1x32x512xf32> to vector<32x512xf32>
    %134 = vector.shape_cast %131 : vector<32x512xf32> to vector<1x32x512xf32>
    tpu.vector_store %arg5[%c0_110, %c0_111, %c512_112], %134 {strides = array<i32>} : memref<1x32x1024xf32, #tpu.memory_space<vmem>>, vector<1x32x512xf32>,
    return
  }
  func.func @transform_0(%arg0: i32) -> (i32, i32, i32) {
    %c0_i32 = arith.constant 0 : i32
    %c0_i32_0 = arith.constant 0 : i32
    %c0_i32_1 = arith.constant 0 : i32
    return %arg0, %c0_i32, %c0_i32_0 : i32, i32, i32
  }
  func.func @transform_1(%arg0: i32) -> (i32, i32, i32) {
    %c0_i32 = arith.constant 0 : i32
    %c0_i32_0 = arith.constant 0 : i32
    %c0_i32_1 = arith.constant 0 : i32
    %c0_i32_2 = arith.constant 0 : i32
    return %c0_i32, %c0_i32_0, %c0_i32_1 : i32, i32, i32
  }
  func.func @transform_2(%arg0: i32) -> (i32, i32) {
    %c0_i32 = arith.constant 0 : i32
    %c0_i32_0 = arith.constant 0 : i32
    %c0_i32_1 = arith.constant 0 : i32
    return %c0_i32, %c0_i32_0 : i32, i32
  }
  func.func @transform_3(%arg0: i32) -> (i32, i32) {
    %c0_i32 = arith.constant 0 : i32
    %c0_i32_0 = arith.constant 0 : i32
    %c0_i32_1 = arith.constant 0 : i32
    return %c0_i32, %c0_i32_0 : i32, i32
  }
  func.func @transform_4(%arg0: i32) -> (i32, i32, i32) {
    %c0_i32 = arith.constant 0 : i32
    %c0_i32_0 = arith.constant 0 : i32
    %c0_i32_1 = arith.constant 0 : i32
    return %arg0, %c0_i32, %c0_i32_0 : i32, i32, i32
  }
}

module attributes {stable_mosaic.version = 11 : i64} {
  func.func @kernel(%arg0: i32, %arg1: memref<1x8x4096xf32, #tpu.memory_space<vmem>>, %arg2: memref<9x8x8xf32, #tpu.memory_space<vmem>>, %arg3: memref<8x1xf32, #tpu.memory_space<vmem>>, %arg4: memref<48x8xf32, #tpu.memory_space<vmem>>, %arg5: memref<48x1xf32, #tpu.memory_space<vmem>>, %arg6: memref<9x4096xf32, #tpu.memory_space<vmem>>, %arg7: memref<1x48x4096xf32, #tpu.memory_space<vmem>>, %arg8: memref<8x4096xf32, #tpu.memory_space<vmem>>) attributes {dimension_semantics = [#tpu.dimension_semantics<parallel>], iteration_bounds = array<i64: 2>, scalar_prefetch = 0 : i64, scratch_operands = 1 : i64, tpu.core_type = #tpu.core_type<tc>, window_params = [{transform_indices = @transform_0, window_bounds = array<i64: 1, 8, 4096>}, {pipeline_mode = #tpu.pipeline_mode<synchronous>, transform_indices = @transform_1, window_bounds = array<i64: 9, 8, 8>}, {pipeline_mode = #tpu.pipeline_mode<synchronous>, transform_indices = @transform_2, window_bounds = array<i64: 8, 1>}, {pipeline_mode = #tpu.pipeline_mode<synchronous>, transform_indices = @transform_3, window_bounds = array<i64: 48, 8>}, {pipeline_mode = #tpu.pipeline_mode<synchronous>, transform_indices = @transform_4, window_bounds = array<i64: 48, 1>}, {pipeline_mode = #tpu.pipeline_mode<synchronous>, transform_indices = @transform_5, window_bounds = array<i64: 9, 4096>}, {transform_indices = @transform_6, window_bounds = array<i64: 1, 48, 4096>}]} {
    %c0 = arith.constant 0 : index
    %c0_0 = arith.constant 0 : index
    %c0_1 = arith.constant 0 : index
    %0 = vector.load %arg1[%c0, %c0_0, %c0_1] : memref<1x8x4096xf32, #tpu.memory_space<vmem>>, vector<1x8x4096xf32>
    %1 = vector.shape_cast %0 : vector<1x8x4096xf32> to vector<8x4096xf32>
    %c0_2 = arith.constant 0 : index
    %c0_3 = arith.constant 0 : index
    %2 = vector.load %arg3[%c0_2, %c0_3] : memref<8x1xf32, #tpu.memory_space<vmem>>, vector<8x1xf32>
    %3 = vector.shape_cast %2 : vector<8x1xf32> to vector<8x1xf32>
    %4 = vector.broadcast %3 : vector<8x1xf32> to vector<8x4096xf32>
    %c0_4 = arith.constant 0 : index
    %c0_5 = arith.constant 0 : index
    %5 = vector.load %arg8[%c0_4, %c0_5] : memref<8x4096xf32, #tpu.memory_space<vmem>>, vector<8x4096xf32>
    tpu.vector_store %arg8[%c0_4, %c0_5], %4 {strides = array<i32>} : memref<8x4096xf32, #tpu.memory_space<vmem>>, vector<8x4096xf32>,
    %6 = vector.extract_strided_slice %1 {offsets = [0, 4031], sizes = [8, 65], strides = [1, 1]} : vector<8x4096xf32> to vector<8x65xf32>
    %7 = vector.extract_strided_slice %1 {offsets = [0, 0], sizes = [8, 4031], strides = [1, 1]} : vector<8x4096xf32> to vector<8x4031xf32>
    %8 = tpu.concatenate %6, %7 in 1 : vector<8x65xf32>, vector<8x4031xf32> -> vector<8x4096xf32>
    %c0_6 = arith.constant 0 : index
    %c0_7 = arith.constant 0 : index
    %9 = vector.load %arg6[%c0_6, %c0_7] : memref<9x4096xf32, #tpu.memory_space<vmem>>, vector<1x4096xf32>
    %10 = vector.broadcast %9 : vector<1x4096xf32> to vector<8x4096xf32>
    %11 = arith.mulf %8, %10 : vector<8x4096xf32>
    %c0_8 = arith.constant 0 : index
    %c0_9 = arith.constant 0 : index
    %12 = vector.load %arg8[%c0_8, %c0_9] : memref<8x4096xf32, #tpu.memory_space<vmem>>, vector<8x4096xf32>
    %c0_10 = arith.constant 0 : index
    %c0_11 = arith.constant 0 : index
    %c0_12 = arith.constant 0 : index
    %13 = vector.load %arg2[%c0_10, %c0_11, %c0_12] : memref<9x8x8xf32, #tpu.memory_space<vmem>>, vector<1x8x8xf32>
    %14 = vector.shape_cast %13 : vector<1x8x8xf32> to vector<8x8xf32>
    %cst = arith.constant dense<0.000000e+00> : vector<8x4096xf32>
    %15 = tpu.matmul %14, %11, %cst {dimension_numbers = #tpu.dot_dimension_numbers<[1], [0], [0], [1], [0, 0, 1, 1], [], []>} : vector<8x8xf32>, vector<8x4096xf32>, vector<8x4096xf32> -> vector<8x4096xf32>
    %16 = arith.addf %12, %15 : vector<8x4096xf32>
    %c0_13 = arith.constant 0 : index
    %c0_14 = arith.constant 0 : index
    %17 = vector.load %arg8[%c0_13, %c0_14] : memref<8x4096xf32, #tpu.memory_space<vmem>>, vector<8x4096xf32>
    tpu.vector_store %arg8[%c0_13, %c0_14], %16 {strides = array<i32>} : memref<8x4096xf32, #tpu.memory_space<vmem>>, vector<8x4096xf32>,
    %18 = vector.extract_strided_slice %1 {offsets = [0, 4032], sizes = [8, 64], strides = [1, 1]} : vector<8x4096xf32> to vector<8x64xf32>
    %19 = vector.extract_strided_slice %1 {offsets = [0, 0], sizes = [8, 4032], strides = [1, 1]} : vector<8x4096xf32> to vector<8x4032xf32>
    %20 = tpu.concatenate %18, %19 in 1 : vector<8x64xf32>, vector<8x4032xf32> -> vector<8x4096xf32>
    %c1 = arith.constant 1 : index
    %c0_15 = arith.constant 0 : index
    %21 = vector.load %arg6[%c1, %c0_15] : memref<9x4096xf32, #tpu.memory_space<vmem>>, vector<1x4096xf32>
    %22 = vector.broadcast %21 : vector<1x4096xf32> to vector<8x4096xf32>
    %23 = arith.mulf %20, %22 : vector<8x4096xf32>
    %c0_16 = arith.constant 0 : index
    %c0_17 = arith.constant 0 : index
    %24 = vector.load %arg8[%c0_16, %c0_17] : memref<8x4096xf32, #tpu.memory_space<vmem>>, vector<8x4096xf32>
    %c1_18 = arith.constant 1 : index
    %c0_19 = arith.constant 0 : index
    %c0_20 = arith.constant 0 : index
    %25 = vector.load %arg2[%c1_18, %c0_19, %c0_20] : memref<9x8x8xf32, #tpu.memory_space<vmem>>, vector<1x8x8xf32>
    %26 = vector.shape_cast %25 : vector<1x8x8xf32> to vector<8x8xf32>
    %cst_21 = arith.constant dense<0.000000e+00> : vector<8x4096xf32>
    %27 = tpu.matmul %26, %23, %cst_21 {dimension_numbers = #tpu.dot_dimension_numbers<[1], [0], [0], [1], [0, 0, 1, 1], [], []>} : vector<8x8xf32>, vector<8x4096xf32>, vector<8x4096xf32> -> vector<8x4096xf32>
    %28 = arith.addf %24, %27 : vector<8x4096xf32>
    %c0_22 = arith.constant 0 : index
    %c0_23 = arith.constant 0 : index
    %29 = vector.load %arg8[%c0_22, %c0_23] : memref<8x4096xf32, #tpu.memory_space<vmem>>, vector<8x4096xf32>
    tpu.vector_store %arg8[%c0_22, %c0_23], %28 {strides = array<i32>} : memref<8x4096xf32, #tpu.memory_space<vmem>>, vector<8x4096xf32>,
    %30 = vector.extract_strided_slice %1 {offsets = [0, 4033], sizes = [8, 63], strides = [1, 1]} : vector<8x4096xf32> to vector<8x63xf32>
    %31 = vector.extract_strided_slice %1 {offsets = [0, 0], sizes = [8, 4033], strides = [1, 1]} : vector<8x4096xf32> to vector<8x4033xf32>
    %32 = tpu.concatenate %30, %31 in 1 : vector<8x63xf32>, vector<8x4033xf32> -> vector<8x4096xf32>
    %c2 = arith.constant 2 : index
    %c0_24 = arith.constant 0 : index
    %33 = vector.load %arg6[%c2, %c0_24] : memref<9x4096xf32, #tpu.memory_space<vmem>>, vector<1x4096xf32>
    %34 = vector.broadcast %33 : vector<1x4096xf32> to vector<8x4096xf32>
    %35 = arith.mulf %32, %34 : vector<8x4096xf32>
    %c0_25 = arith.constant 0 : index
    %c0_26 = arith.constant 0 : index
    %36 = vector.load %arg8[%c0_25, %c0_26] : memref<8x4096xf32, #tpu.memory_space<vmem>>, vector<8x4096xf32>
    %c2_27 = arith.constant 2 : index
    %c0_28 = arith.constant 0 : index
    %c0_29 = arith.constant 0 : index
    %37 = vector.load %arg2[%c2_27, %c0_28, %c0_29] : memref<9x8x8xf32, #tpu.memory_space<vmem>>, vector<1x8x8xf32>
    %38 = vector.shape_cast %37 : vector<1x8x8xf32> to vector<8x8xf32>
    %cst_30 = arith.constant dense<0.000000e+00> : vector<8x4096xf32>
    %39 = tpu.matmul %38, %35, %cst_30 {dimension_numbers = #tpu.dot_dimension_numbers<[1], [0], [0], [1], [0, 0, 1, 1], [], []>} : vector<8x8xf32>, vector<8x4096xf32>, vector<8x4096xf32> -> vector<8x4096xf32>
    %40 = arith.addf %36, %39 : vector<8x4096xf32>
    %c0_31 = arith.constant 0 : index
    %c0_32 = arith.constant 0 : index
    %41 = vector.load %arg8[%c0_31, %c0_32] : memref<8x4096xf32, #tpu.memory_space<vmem>>, vector<8x4096xf32>
    tpu.vector_store %arg8[%c0_31, %c0_32], %40 {strides = array<i32>} : memref<8x4096xf32, #tpu.memory_space<vmem>>, vector<8x4096xf32>,
    %42 = vector.extract_strided_slice %1 {offsets = [0, 4095], sizes = [8, 1], strides = [1, 1]} : vector<8x4096xf32> to vector<8x1xf32>
    %43 = vector.extract_strided_slice %1 {offsets = [0, 0], sizes = [8, 4095], strides = [1, 1]} : vector<8x4096xf32> to vector<8x4095xf32>
    %44 = tpu.concatenate %42, %43 in 1 : vector<8x1xf32>, vector<8x4095xf32> -> vector<8x4096xf32>
    %c3 = arith.constant 3 : index
    %c0_33 = arith.constant 0 : index
    %45 = vector.load %arg6[%c3, %c0_33] : memref<9x4096xf32, #tpu.memory_space<vmem>>, vector<1x4096xf32>
    %46 = vector.broadcast %45 : vector<1x4096xf32> to vector<8x4096xf32>
    %47 = arith.mulf %44, %46 : vector<8x4096xf32>
    %c0_34 = arith.constant 0 : index
    %c0_35 = arith.constant 0 : index
    %48 = vector.load %arg8[%c0_34, %c0_35] : memref<8x4096xf32, #tpu.memory_space<vmem>>, vector<8x4096xf32>
    %c3_36 = arith.constant 3 : index
    %c0_37 = arith.constant 0 : index
    %c0_38 = arith.constant 0 : index
    %49 = vector.load %arg2[%c3_36, %c0_37, %c0_38] : memref<9x8x8xf32, #tpu.memory_space<vmem>>, vector<1x8x8xf32>
    %50 = vector.shape_cast %49 : vector<1x8x8xf32> to vector<8x8xf32>
    %cst_39 = arith.constant dense<0.000000e+00> : vector<8x4096xf32>
    %51 = tpu.matmul %50, %47, %cst_39 {dimension_numbers = #tpu.dot_dimension_numbers<[1], [0], [0], [1], [0, 0, 1, 1], [], []>} : vector<8x8xf32>, vector<8x4096xf32>, vector<8x4096xf32> -> vector<8x4096xf32>
    %52 = arith.addf %48, %51 : vector<8x4096xf32>
    %c0_40 = arith.constant 0 : index
    %c0_41 = arith.constant 0 : index
    %53 = vector.load %arg8[%c0_40, %c0_41] : memref<8x4096xf32, #tpu.memory_space<vmem>>, vector<8x4096xf32>
    tpu.vector_store %arg8[%c0_40, %c0_41], %52 {strides = array<i32>} : memref<8x4096xf32, #tpu.memory_space<vmem>>, vector<8x4096xf32>,
    %c4 = arith.constant 4 : index
    %c0_42 = arith.constant 0 : index
    %54 = vector.load %arg6[%c4, %c0_42] : memref<9x4096xf32, #tpu.memory_space<vmem>>, vector<1x4096xf32>
    %55 = vector.broadcast %54 : vector<1x4096xf32> to vector<8x4096xf32>
    %56 = arith.mulf %1, %55 : vector<8x4096xf32>
    %c0_43 = arith.constant 0 : index
    %c0_44 = arith.constant 0 : index
    %57 = vector.load %arg8[%c0_43, %c0_44] : memref<8x4096xf32, #tpu.memory_space<vmem>>, vector<8x4096xf32>
    %c4_45 = arith.constant 4 : index
    %c0_46 = arith.constant 0 : index
    %c0_47 = arith.constant 0 : index
    %58 = vector.load %arg2[%c4_45, %c0_46, %c0_47] : memref<9x8x8xf32, #tpu.memory_space<vmem>>, vector<1x8x8xf32>
    %59 = vector.shape_cast %58 : vector<1x8x8xf32> to vector<8x8xf32>
    %cst_48 = arith.constant dense<0.000000e+00> : vector<8x4096xf32>
    %60 = tpu.matmul %59, %56, %cst_48 {dimension_numbers = #tpu.dot_dimension_numbers<[1], [0], [0], [1], [0, 0, 1, 1], [], []>} : vector<8x8xf32>, vector<8x4096xf32>, vector<8x4096xf32> -> vector<8x4096xf32>
    %61 = arith.addf %57, %60 : vector<8x4096xf32>
    %c0_49 = arith.constant 0 : index
    %c0_50 = arith.constant 0 : index
    %62 = vector.load %arg8[%c0_49, %c0_50] : memref<8x4096xf32, #tpu.memory_space<vmem>>, vector<8x4096xf32>
    tpu.vector_store %arg8[%c0_49, %c0_50], %61 {strides = array<i32>} : memref<8x4096xf32, #tpu.memory_space<vmem>>, vector<8x4096xf32>,
    %63 = vector.extract_strided_slice %1 {offsets = [0, 1], sizes = [8, 4095], strides = [1, 1]} : vector<8x4096xf32> to vector<8x4095xf32>
    %64 = vector.extract_strided_slice %1 {offsets = [0, 0], sizes = [8, 1], strides = [1, 1]} : vector<8x4096xf32> to vector<8x1xf32>
    %65 = tpu.concatenate %63, %64 in 1 : vector<8x4095xf32>, vector<8x1xf32> -> vector<8x4096xf32>
    %c5 = arith.constant 5 : index
    %c0_51 = arith.constant 0 : index
    %66 = vector.load %arg6[%c5, %c0_51] : memref<9x4096xf32, #tpu.memory_space<vmem>>, vector<1x4096xf32>
    %67 = vector.broadcast %66 : vector<1x4096xf32> to vector<8x4096xf32>
    %68 = arith.mulf %65, %67 : vector<8x4096xf32>
    %c0_52 = arith.constant 0 : index
    %c0_53 = arith.constant 0 : index
    %69 = vector.load %arg8[%c0_52, %c0_53] : memref<8x4096xf32, #tpu.memory_space<vmem>>, vector<8x4096xf32>
    %c5_54 = arith.constant 5 : index
    %c0_55 = arith.constant 0 : index
    %c0_56 = arith.constant 0 : index
    %70 = vector.load %arg2[%c5_54, %c0_55, %c0_56] : memref<9x8x8xf32, #tpu.memory_space<vmem>>, vector<1x8x8xf32>
    %71 = vector.shape_cast %70 : vector<1x8x8xf32> to vector<8x8xf32>
    %cst_57 = arith.constant dense<0.000000e+00> : vector<8x4096xf32>
    %72 = tpu.matmul %71, %68, %cst_57 {dimension_numbers = #tpu.dot_dimension_numbers<[1], [0], [0], [1], [0, 0, 1, 1], [], []>} : vector<8x8xf32>, vector<8x4096xf32>, vector<8x4096xf32> -> vector<8x4096xf32>
    %73 = arith.addf %69, %72 : vector<8x4096xf32>
    %c0_58 = arith.constant 0 : index
    %c0_59 = arith.constant 0 : index
    %74 = vector.load %arg8[%c0_58, %c0_59] : memref<8x4096xf32, #tpu.memory_space<vmem>>, vector<8x4096xf32>
    tpu.vector_store %arg8[%c0_58, %c0_59], %73 {strides = array<i32>} : memref<8x4096xf32, #tpu.memory_space<vmem>>, vector<8x4096xf32>,
    %75 = vector.extract_strided_slice %1 {offsets = [0, 63], sizes = [8, 4033], strides = [1, 1]} : vector<8x4096xf32> to vector<8x4033xf32>
    %76 = vector.extract_strided_slice %1 {offsets = [0, 0], sizes = [8, 63], strides = [1, 1]} : vector<8x4096xf32> to vector<8x63xf32>
    %77 = tpu.concatenate %75, %76 in 1 : vector<8x4033xf32>, vector<8x63xf32> -> vector<8x4096xf32>
    %c6 = arith.constant 6 : index
    %c0_60 = arith.constant 0 : index
    %78 = vector.load %arg6[%c6, %c0_60] : memref<9x4096xf32, #tpu.memory_space<vmem>>, vector<1x4096xf32>
    %79 = vector.broadcast %78 : vector<1x4096xf32> to vector<8x4096xf32>
    %80 = arith.mulf %77, %79 : vector<8x4096xf32>
    %c0_61 = arith.constant 0 : index
    %c0_62 = arith.constant 0 : index
    %81 = vector.load %arg8[%c0_61, %c0_62] : memref<8x4096xf32, #tpu.memory_space<vmem>>, vector<8x4096xf32>
    %c6_63 = arith.constant 6 : index
    %c0_64 = arith.constant 0 : index
    %c0_65 = arith.constant 0 : index
    %82 = vector.load %arg2[%c6_63, %c0_64, %c0_65] : memref<9x8x8xf32, #tpu.memory_space<vmem>>, vector<1x8x8xf32>
    %83 = vector.shape_cast %82 : vector<1x8x8xf32> to vector<8x8xf32>
    %cst_66 = arith.constant dense<0.000000e+00> : vector<8x4096xf32>
    %84 = tpu.matmul %83, %80, %cst_66 {dimension_numbers = #tpu.dot_dimension_numbers<[1], [0], [0], [1], [0, 0, 1, 1], [], []>} : vector<8x8xf32>, vector<8x4096xf32>, vector<8x4096xf32> -> vector<8x4096xf32>
    %85 = arith.addf %81, %84 : vector<8x4096xf32>
    %c0_67 = arith.constant 0 : index
    %c0_68 = arith.constant 0 : index
    %86 = vector.load %arg8[%c0_67, %c0_68] : memref<8x4096xf32, #tpu.memory_space<vmem>>, vector<8x4096xf32>
    tpu.vector_store %arg8[%c0_67, %c0_68], %85 {strides = array<i32>} : memref<8x4096xf32, #tpu.memory_space<vmem>>, vector<8x4096xf32>,
    %87 = vector.extract_strided_slice %1 {offsets = [0, 64], sizes = [8, 4032], strides = [1, 1]} : vector<8x4096xf32> to vector<8x4032xf32>
    %88 = vector.extract_strided_slice %1 {offsets = [0, 0], sizes = [8, 64], strides = [1, 1]} : vector<8x4096xf32> to vector<8x64xf32>
    %89 = tpu.concatenate %87, %88 in 1 : vector<8x4032xf32>, vector<8x64xf32> -> vector<8x4096xf32>
    %c7 = arith.constant 7 : index
    %c0_69 = arith.constant 0 : index
    %90 = vector.load %arg6[%c7, %c0_69] : memref<9x4096xf32, #tpu.memory_space<vmem>>, vector<1x4096xf32>
    %91 = vector.broadcast %90 : vector<1x4096xf32> to vector<8x4096xf32>
    %92 = arith.mulf %89, %91 : vector<8x4096xf32>
    %c0_70 = arith.constant 0 : index
    %c0_71 = arith.constant 0 : index
    %93 = vector.load %arg8[%c0_70, %c0_71] : memref<8x4096xf32, #tpu.memory_space<vmem>>, vector<8x4096xf32>
    %c7_72 = arith.constant 7 : index
    %c0_73 = arith.constant 0 : index
    %c0_74 = arith.constant 0 : index
    %94 = vector.load %arg2[%c7_72, %c0_73, %c0_74] : memref<9x8x8xf32, #tpu.memory_space<vmem>>, vector<1x8x8xf32>
    %95 = vector.shape_cast %94 : vector<1x8x8xf32> to vector<8x8xf32>
    %cst_75 = arith.constant dense<0.000000e+00> : vector<8x4096xf32>
    %96 = tpu.matmul %95, %92, %cst_75 {dimension_numbers = #tpu.dot_dimension_numbers<[1], [0], [0], [1], [0, 0, 1, 1], [], []>} : vector<8x8xf32>, vector<8x4096xf32>, vector<8x4096xf32> -> vector<8x4096xf32>
    %97 = arith.addf %93, %96 : vector<8x4096xf32>
    %c0_76 = arith.constant 0 : index
    %c0_77 = arith.constant 0 : index
    %98 = vector.load %arg8[%c0_76, %c0_77] : memref<8x4096xf32, #tpu.memory_space<vmem>>, vector<8x4096xf32>
    tpu.vector_store %arg8[%c0_76, %c0_77], %97 {strides = array<i32>} : memref<8x4096xf32, #tpu.memory_space<vmem>>, vector<8x4096xf32>,
    %99 = vector.extract_strided_slice %1 {offsets = [0, 65], sizes = [8, 4031], strides = [1, 1]} : vector<8x4096xf32> to vector<8x4031xf32>
    %100 = vector.extract_strided_slice %1 {offsets = [0, 0], sizes = [8, 65], strides = [1, 1]} : vector<8x4096xf32> to vector<8x65xf32>
    %101 = tpu.concatenate %99, %100 in 1 : vector<8x4031xf32>, vector<8x65xf32> -> vector<8x4096xf32>
    %c8 = arith.constant 8 : index
    %c0_78 = arith.constant 0 : index
    %102 = vector.load %arg6[%c8, %c0_78] : memref<9x4096xf32, #tpu.memory_space<vmem>>, vector<1x4096xf32>
    %103 = vector.broadcast %102 : vector<1x4096xf32> to vector<8x4096xf32>
    %104 = arith.mulf %101, %103 : vector<8x4096xf32>
    %c0_79 = arith.constant 0 : index
    %c0_80 = arith.constant 0 : index
    %105 = vector.load %arg8[%c0_79, %c0_80] : memref<8x4096xf32, #tpu.memory_space<vmem>>, vector<8x4096xf32>
    %c8_81 = arith.constant 8 : index
    %c0_82 = arith.constant 0 : index
    %c0_83 = arith.constant 0 : index
    %106 = vector.load %arg2[%c8_81, %c0_82, %c0_83] : memref<9x8x8xf32, #tpu.memory_space<vmem>>, vector<1x8x8xf32>
    %107 = vector.shape_cast %106 : vector<1x8x8xf32> to vector<8x8xf32>
    %cst_84 = arith.constant dense<0.000000e+00> : vector<8x4096xf32>
    %108 = tpu.matmul %107, %104, %cst_84 {dimension_numbers = #tpu.dot_dimension_numbers<[1], [0], [0], [1], [0, 0, 1, 1], [], []>} : vector<8x8xf32>, vector<8x4096xf32>, vector<8x4096xf32> -> vector<8x4096xf32>
    %109 = arith.addf %105, %108 : vector<8x4096xf32>
    %c0_85 = arith.constant 0 : index
    %c0_86 = arith.constant 0 : index
    %110 = vector.load %arg8[%c0_85, %c0_86] : memref<8x4096xf32, #tpu.memory_space<vmem>>, vector<8x4096xf32>
    tpu.vector_store %arg8[%c0_85, %c0_86], %109 {strides = array<i32>} : memref<8x4096xf32, #tpu.memory_space<vmem>>, vector<8x4096xf32>,
    %c0_87 = arith.constant 0 : index
    %c0_88 = arith.constant 0 : index
    %111 = vector.load %arg4[%c0_87, %c0_88] : memref<48x8xf32, #tpu.memory_space<vmem>>, vector<48x8xf32>
    %c0_89 = arith.constant 0 : index
    %c0_90 = arith.constant 0 : index
    %112 = vector.load %arg5[%c0_89, %c0_90] : memref<48x1xf32, #tpu.memory_space<vmem>>, vector<48x1xf32>
    %c0_91 = arith.constant 0 : index
    %c0_92 = arith.constant 0 : index
    %113 = vector.load %arg8[%c0_91, %c0_92] : memref<8x4096xf32, #tpu.memory_space<vmem>>, vector<8x512xf32>
    %cst_93 = arith.constant dense<0.000000e+00> : vector<48x512xf32>
    %114 = tpu.matmul %111, %113, %cst_93 {dimension_numbers = #tpu.dot_dimension_numbers<[1], [0], [0], [1], [0, 0, 1, 1], [], []>} : vector<48x8xf32>, vector<8x512xf32>, vector<48x512xf32> -> vector<48x512xf32>
    %115 = vector.broadcast %112 : vector<48x1xf32> to vector<48x512xf32>
    %116 = arith.addf %114, %115 : vector<48x512xf32>
    %c0_94 = arith.constant 0 : index
    %c0_95 = arith.constant 0 : index
    %c0_96 = arith.constant 0 : index
    %117 = vector.load %arg7[%c0_94, %c0_95, %c0_96] : memref<1x48x4096xf32, #tpu.memory_space<vmem>>, vector<1x48x512xf32>
    %118 = vector.shape_cast %117 : vector<1x48x512xf32> to vector<48x512xf32>
    %119 = vector.shape_cast %116 : vector<48x512xf32> to vector<1x48x512xf32>
    tpu.vector_store %arg7[%c0_94, %c0_95, %c0_96], %119 {strides = array<i32>} : memref<1x48x4096xf32, #tpu.memory_space<vmem>>, vector<1x48x512xf32>,
    %c0_97 = arith.constant 0 : index
    %c512 = arith.constant 512 : index
    %120 = vector.load %arg8[%c0_97, %c512] : memref<8x4096xf32, #tpu.memory_space<vmem>>, vector<8x512xf32>
    %cst_98 = arith.constant dense<0.000000e+00> : vector<48x512xf32>
    %121 = tpu.matmul %111, %120, %cst_98 {dimension_numbers = #tpu.dot_dimension_numbers<[1], [0], [0], [1], [0, 0, 1, 1], [], []>} : vector<48x8xf32>, vector<8x512xf32>, vector<48x512xf32> -> vector<48x512xf32>
    %122 = vector.broadcast %112 : vector<48x1xf32> to vector<48x512xf32>
    %123 = arith.addf %121, %122 : vector<48x512xf32>
    %c0_99 = arith.constant 0 : index
    %c0_100 = arith.constant 0 : index
    %c512_101 = arith.constant 512 : index
    %124 = vector.load %arg7[%c0_99, %c0_100, %c512_101] : memref<1x48x4096xf32, #tpu.memory_space<vmem>>, vector<1x48x512xf32>
    %125 = vector.shape_cast %124 : vector<1x48x512xf32> to vector<48x512xf32>
    %126 = vector.shape_cast %123 : vector<48x512xf32> to vector<1x48x512xf32>
    tpu.vector_store %arg7[%c0_99, %c0_100, %c512_101], %126 {strides = array<i32>} : memref<1x48x4096xf32, #tpu.memory_space<vmem>>, vector<1x48x512xf32>,
    %c0_102 = arith.constant 0 : index
    %c1024 = arith.constant 1024 : index
    %127 = vector.load %arg8[%c0_102, %c1024] : memref<8x4096xf32, #tpu.memory_space<vmem>>, vector<8x512xf32>
    %cst_103 = arith.constant dense<0.000000e+00> : vector<48x512xf32>
    %128 = tpu.matmul %111, %127, %cst_103 {dimension_numbers = #tpu.dot_dimension_numbers<[1], [0], [0], [1], [0, 0, 1, 1], [], []>} : vector<48x8xf32>, vector<8x512xf32>, vector<48x512xf32> -> vector<48x512xf32>
    %129 = vector.broadcast %112 : vector<48x1xf32> to vector<48x512xf32>
    %130 = arith.addf %128, %129 : vector<48x512xf32>
    %c0_104 = arith.constant 0 : index
    %c0_105 = arith.constant 0 : index
    %c1024_106 = arith.constant 1024 : index
    %131 = vector.load %arg7[%c0_104, %c0_105, %c1024_106] : memref<1x48x4096xf32, #tpu.memory_space<vmem>>, vector<1x48x512xf32>
    %132 = vector.shape_cast %131 : vector<1x48x512xf32> to vector<48x512xf32>
    %133 = vector.shape_cast %130 : vector<48x512xf32> to vector<1x48x512xf32>
    tpu.vector_store %arg7[%c0_104, %c0_105, %c1024_106], %133 {strides = array<i32>} : memref<1x48x4096xf32, #tpu.memory_space<vmem>>, vector<1x48x512xf32>,
    %c0_107 = arith.constant 0 : index
    %c1536 = arith.constant 1536 : index
    %134 = vector.load %arg8[%c0_107, %c1536] : memref<8x4096xf32, #tpu.memory_space<vmem>>, vector<8x512xf32>
    %cst_108 = arith.constant dense<0.000000e+00> : vector<48x512xf32>
    %135 = tpu.matmul %111, %134, %cst_108 {dimension_numbers = #tpu.dot_dimension_numbers<[1], [0], [0], [1], [0, 0, 1, 1], [], []>} : vector<48x8xf32>, vector<8x512xf32>, vector<48x512xf32> -> vector<48x512xf32>
    %136 = vector.broadcast %112 : vector<48x1xf32> to vector<48x512xf32>
    %137 = arith.addf %135, %136 : vector<48x512xf32>
    %c0_109 = arith.constant 0 : index
    %c0_110 = arith.constant 0 : index
    %c1536_111 = arith.constant 1536 : index
    %138 = vector.load %arg7[%c0_109, %c0_110, %c1536_111] : memref<1x48x4096xf32, #tpu.memory_space<vmem>>, vector<1x48x512xf32>
    %139 = vector.shape_cast %138 : vector<1x48x512xf32> to vector<48x512xf32>
    %140 = vector.shape_cast %137 : vector<48x512xf32> to vector<1x48x512xf32>
    tpu.vector_store %arg7[%c0_109, %c0_110, %c1536_111], %140 {strides = array<i32>} : memref<1x48x4096xf32, #tpu.memory_space<vmem>>, vector<1x48x512xf32>,
    %c0_112 = arith.constant 0 : index
    %c2048 = arith.constant 2048 : index
    %141 = vector.load %arg8[%c0_112, %c2048] : memref<8x4096xf32, #tpu.memory_space<vmem>>, vector<8x512xf32>
    %cst_113 = arith.constant dense<0.000000e+00> : vector<48x512xf32>
    %142 = tpu.matmul %111, %141, %cst_113 {dimension_numbers = #tpu.dot_dimension_numbers<[1], [0], [0], [1], [0, 0, 1, 1], [], []>} : vector<48x8xf32>, vector<8x512xf32>, vector<48x512xf32> -> vector<48x512xf32>
    %143 = vector.broadcast %112 : vector<48x1xf32> to vector<48x512xf32>
    %144 = arith.addf %142, %143 : vector<48x512xf32>
    %c0_114 = arith.constant 0 : index
    %c0_115 = arith.constant 0 : index
    %c2048_116 = arith.constant 2048 : index
    %145 = vector.load %arg7[%c0_114, %c0_115, %c2048_116] : memref<1x48x4096xf32, #tpu.memory_space<vmem>>, vector<1x48x512xf32>
    %146 = vector.shape_cast %145 : vector<1x48x512xf32> to vector<48x512xf32>
    %147 = vector.shape_cast %144 : vector<48x512xf32> to vector<1x48x512xf32>
    tpu.vector_store %arg7[%c0_114, %c0_115, %c2048_116], %147 {strides = array<i32>} : memref<1x48x4096xf32, #tpu.memory_space<vmem>>, vector<1x48x512xf32>,
    %c0_117 = arith.constant 0 : index
    %c2560 = arith.constant 2560 : index
    %148 = vector.load %arg8[%c0_117, %c2560] : memref<8x4096xf32, #tpu.memory_space<vmem>>, vector<8x512xf32>
    %cst_118 = arith.constant dense<0.000000e+00> : vector<48x512xf32>
    %149 = tpu.matmul %111, %148, %cst_118 {dimension_numbers = #tpu.dot_dimension_numbers<[1], [0], [0], [1], [0, 0, 1, 1], [], []>} : vector<48x8xf32>, vector<8x512xf32>, vector<48x512xf32> -> vector<48x512xf32>
    %150 = vector.broadcast %112 : vector<48x1xf32> to vector<48x512xf32>
    %151 = arith.addf %149, %150 : vector<48x512xf32>
    %c0_119 = arith.constant 0 : index
    %c0_120 = arith.constant 0 : index
    %c2560_121 = arith.constant 2560 : index
    %152 = vector.load %arg7[%c0_119, %c0_120, %c2560_121] : memref<1x48x4096xf32, #tpu.memory_space<vmem>>, vector<1x48x512xf32>
    %153 = vector.shape_cast %152 : vector<1x48x512xf32> to vector<48x512xf32>
    %154 = vector.shape_cast %151 : vector<48x512xf32> to vector<1x48x512xf32>
    tpu.vector_store %arg7[%c0_119, %c0_120, %c2560_121], %154 {strides = array<i32>} : memref<1x48x4096xf32, #tpu.memory_space<vmem>>, vector<1x48x512xf32>,
    %c0_122 = arith.constant 0 : index
    %c3072 = arith.constant 3072 : index
    %155 = vector.load %arg8[%c0_122, %c3072] : memref<8x4096xf32, #tpu.memory_space<vmem>>, vector<8x512xf32>
    %cst_123 = arith.constant dense<0.000000e+00> : vector<48x512xf32>
    %156 = tpu.matmul %111, %155, %cst_123 {dimension_numbers = #tpu.dot_dimension_numbers<[1], [0], [0], [1], [0, 0, 1, 1], [], []>} : vector<48x8xf32>, vector<8x512xf32>, vector<48x512xf32> -> vector<48x512xf32>
    %157 = vector.broadcast %112 : vector<48x1xf32> to vector<48x512xf32>
    %158 = arith.addf %156, %157 : vector<48x512xf32>
    %c0_124 = arith.constant 0 : index
    %c0_125 = arith.constant 0 : index
    %c3072_126 = arith.constant 3072 : index
    %159 = vector.load %arg7[%c0_124, %c0_125, %c3072_126] : memref<1x48x4096xf32, #tpu.memory_space<vmem>>, vector<1x48x512xf32>
    %160 = vector.shape_cast %159 : vector<1x48x512xf32> to vector<48x512xf32>
    %161 = vector.shape_cast %158 : vector<48x512xf32> to vector<1x48x512xf32>
    tpu.vector_store %arg7[%c0_124, %c0_125, %c3072_126], %161 {strides = array<i32>} : memref<1x48x4096xf32, #tpu.memory_space<vmem>>, vector<1x48x512xf32>,
    %c0_127 = arith.constant 0 : index
    %c3584 = arith.constant 3584 : index
    %162 = vector.load %arg8[%c0_127, %c3584] : memref<8x4096xf32, #tpu.memory_space<vmem>>, vector<8x512xf32>
    %cst_128 = arith.constant dense<0.000000e+00> : vector<48x512xf32>
    %163 = tpu.matmul %111, %162, %cst_128 {dimension_numbers = #tpu.dot_dimension_numbers<[1], [0], [0], [1], [0, 0, 1, 1], [], []>} : vector<48x8xf32>, vector<8x512xf32>, vector<48x512xf32> -> vector<48x512xf32>
    %164 = vector.broadcast %112 : vector<48x1xf32> to vector<48x512xf32>
    %165 = arith.addf %163, %164 : vector<48x512xf32>
    %c0_129 = arith.constant 0 : index
    %c0_130 = arith.constant 0 : index
    %c3584_131 = arith.constant 3584 : index
    %166 = vector.load %arg7[%c0_129, %c0_130, %c3584_131] : memref<1x48x4096xf32, #tpu.memory_space<vmem>>, vector<1x48x512xf32>
    %167 = vector.shape_cast %166 : vector<1x48x512xf32> to vector<48x512xf32>
    %168 = vector.shape_cast %165 : vector<48x512xf32> to vector<1x48x512xf32>
    tpu.vector_store %arg7[%c0_129, %c0_130, %c3584_131], %168 {strides = array<i32>} : memref<1x48x4096xf32, #tpu.memory_space<vmem>>, vector<1x48x512xf32>,
    return
  }
  func.func @transform_0(%arg0: i32) -> (i32, i32, i32) {
    %c0_i32 = arith.constant 0 : i32
    %c0_i32_0 = arith.constant 0 : i32
    %c0_i32_1 = arith.constant 0 : i32
    return %arg0, %c0_i32, %c0_i32_0 : i32, i32, i32
  }
  func.func @transform_1(%arg0: i32) -> (i32, i32, i32) {
    %c0_i32 = arith.constant 0 : i32
    %c0_i32_0 = arith.constant 0 : i32
    %c0_i32_1 = arith.constant 0 : i32
    %c0_i32_2 = arith.constant 0 : i32
    return %c0_i32, %c0_i32_0, %c0_i32_1 : i32, i32, i32
  }
  func.func @transform_2(%arg0: i32) -> (i32, i32) {
    %c0_i32 = arith.constant 0 : i32
    %c0_i32_0 = arith.constant 0 : i32
    %c0_i32_1 = arith.constant 0 : i32
    return %c0_i32, %c0_i32_0 : i32, i32
  }
  func.func @transform_3(%arg0: i32) -> (i32, i32) {
    %c0_i32 = arith.constant 0 : i32
    %c0_i32_0 = arith.constant 0 : i32
    %c0_i32_1 = arith.constant 0 : i32
    return %c0_i32, %c0_i32_0 : i32, i32
  }
  func.func @transform_4(%arg0: i32) -> (i32, i32) {
    %c0_i32 = arith.constant 0 : i32
    %c0_i32_0 = arith.constant 0 : i32
    %c0_i32_1 = arith.constant 0 : i32
    return %c0_i32, %c0_i32_0 : i32, i32
  }
  func.func @transform_5(%arg0: i32) -> (i32, i32) {
    %c0_i32 = arith.constant 0 : i32
    %c0_i32_0 = arith.constant 0 : i32
    %c0_i32_1 = arith.constant 0 : i32
    return %c0_i32, %c0_i32_0 : i32, i32
  }
  func.func @transform_6(%arg0: i32) -> (i32, i32, i32) {
    %c0_i32 = arith.constant 0 : i32
    %c0_i32_0 = arith.constant 0 : i32
    %c0_i32_1 = arith.constant 0 : i32
    return %arg0, %c0_i32, %c0_i32_0 : i32, i32, i32
  }
}

</mosaic_0001>

<bundles_post_ra>
// kernel: hyperprior_synthesis_dlmm_forward.3
= control target key start
LH: loop header
LB: loop body
LE: loop exit
PB: predicated region body
PF: predicated region fallthrough
CT: control target
= control target key end

     0   :  { %9 = vsyncpa [#allocation4], 0  ;;  %s1905_s15 = smov 0   ;;  %s2174_s0 = inlined_call_operand.vmem [shape: f32[2,8,256], index: 0, kind: input, shape index: {}]   ;;  %s2175_s1 = inlined_call_operand.vmem [shape: f32[9,32,8], index: 1, kind: input, shape index: {}]   ;;  %s2176_s2 = inlined_call_operand.vmem [shape: f32[32,1], index: 2, kind: input, shape index: {}]   ;;  %s2177_s3 = inlined_call_operand.hbm [shape: f32[9,256], index: 3, kind: input, shape index: {}]   ;;  %s2178_s4 = inlined_call_operand.vmem [shape: f32[2,32,256], index: 4, kind: output, shape index: {}]  }
   0x1 LB: > { %s1911_s16 = sadd.s32 4294967295, %s1865_s15   ;;  %p1680_p0 = scmp.ge.s32.totalorder %s1865_s15, 1  ;;  %s1865_s15 = sphi %s1905_s15, %s15_s15  }
   0x2   : > { %p135_p1 = scmp.lt.s32.totalorder %s1865_s15, 3  ;;  %s1867_s17 = smov [#allocation3]  }
   0x3   : > { %s153_s18 = sshll.u32 %s1867_s17, 4  ;;  %p2179_p3 = scmp.eq.s32.totalorder %s1911_s16, 0  ;;  %s154_s18 = int_to_ptr.vmem [resolvable:$true] %s153_s18 }
   0x4   : > { %p1915_p2 = pnand %p1680_p0, %p135_p1  ;;  %s1827_s23 = scalar_lea.hbm %s2177_s3, 512 }
   0x5   : > { %p1828_p6 = scmp.ne.s32.totalorder %s2177_s3, %s1827_s23  ;;  %p1834_p10 = scmp.lt.u32.totalorder %s1827_s23, %s2177_s3 }
   0x6   : > { %s2181_s19 = scalar_select %p1915_p2, 1, 0 }
   0x7   : > { %p1798_p4 = pneg %p1915_p2 }
   0x9   : > { %p1924_p5 = pnand %p2179_p3, %p1798_p4 }
   0xb   : > { %p1829_p7 = pneg %p1924_p5 }
   0xd   : > { %p1830_p8 = pnand %p1829_p7, %p1828_p6 }
   0xf   : > { %p1831_p9 = pneg %p1830_p8 }
  0x11   : > { %p1836_p11 = pnand %p1834_p10, %p1831_p9 }
  0x13   : > { %1839 = shalt.err (!%p1836_p11)
}
  0x14   : > { %s1840_s28 = scalar_lea.vmem %s154_s18, 512  ;;  %p1848_p1 = scmp.lt.s32.totalorder %s154_s18, %s154_s18 }
  0x15   : > { %p1841_p12 = scmp.ne.s32.totalorder %s154_s18, %s1840_s28  ;;  %p1849_p4 = scmp.lt.s32.totalorder %s1840_s28, %s1840_s28 }
  0x17   : > { %p1843_p13 = pnand %p1841_p12, %p1829_p7  ;;  %p1850_p3 = por %p1849_p4, %p1848_p1 }
  0x19   : > { %p1844_p0 = pneg %p1843_p13 }
  0x1b   : > { %p1851_p2 = pnand %p1850_p3, %p1844_p0 }
  0x1d   : > { %1854 = shalt.err (!%p1851_p2)
}
  0x1e   : > { %s1868_s29 = smov 256   ;;  %s1869_s30 = smov 16  }
  0x1f   : > { %1801 = dma.hbm_to_vmem [thread:$0]  (!%p1924_p5), %s2177_s3, 512, %s154_s18, [#allocation4], %s1868_s29, %s1868_s29, %s1869_s30  }
  0x20   : > { %p2183_p6 = scmp.ne.s32.totalorder %s2181_s19, 0 }
  0x21   : > { %p2184_p8 = scmp.eq.s32.totalorder (!%p2183_p6), %s1911_s16, 0 }
  0x22   : > { %177 = sbr.rel (%p2183_p6) target bundleno = 448 (0x1c0), region = 36 }
  0x29   : > { %1860 = dma.done.wait (%p2184_p8), [#allocation4], 512   ;;  %p2185_p7 = pmov %p2184_p8 }
  0x2a   : > { %p203_p2 = scmp.lt.s32.totalorder %s1911_s16, 1  ;;  %v1870_v0 = vmov 0.0   ;;  %s1871_s11 = smov 16   ;;  %v217_v3 = vld [vmem:[%s2176_s2 + $0x10] sm:$0xff]  ;;  %v215_v4 = vld [vmem:[%s2176_s2] sm:$0xff]  ;;  %v1879_v5 = vmov 0   ;;  %v261_v8 = vlaneseq }
  0x2b   : > { %1862 = vsyncadd (%p2185_p7), [#allocation4], 4294966784  ;;  %344 = vmatprep.mubr.f32.mxu0 %v1870_v0  ;;  %778 = vmatprep.mubr.f32.mxu1 %v1870_v0  ;;  %s1872_s12 = smov 17   ;;  %s1873_s13 = smov 1   ;;  %v218_v6 = vld [vmem:[%s2176_s2 + $0x18] sm:$0xff]  ;;  %v216_v7 = vld [vmem:[%s2176_s2 + $0x8] sm:$0xff] }
  0x2c   : > { %s2187_s16 = smov (!%p203_p2, %s1911_s16), 1  ;;  %s1874_s14 = smov 15   ;;  %1825 = vset.pattern.permute.xlu0 %v1879_v5  ;;  %1826 = vset.pattern.permute.xlu1 %v1879_v5  ;;  %v262_v9 = vshrl.u32 %v261_v8, 7  ;;  %v366_v12 = vld [vmem:[#allocation3 + $0x1] ss:$8 sm:$0x3] }
  0x2d   : > { %s1740_s7 = sshll.u32 %s2187_s16, 4  ;;  %s1875_s17 = smov 127   ;;  %v259_v13 = vld [vmem:[#allocation3] ss:$8 sm:$0x3]  ;;  %vm360_vm0 = vcmask 130048  }
  0x2e   : > { %s207_s10 = scalar_lea.vmem %s2174_s0, %s1740_s7  ;;  %s1876_s18 = smov 113   ;;  %v1992_v10 = vsub.s32 0, %v262_v9  ;;  %v1994_v11 = vsub.s32 1, %v262_v9  ;;  %v612_v16 = vld [vmem:[#allocation3 + $0x3] ss:$8 sm:$0x3] }
  0x2f   : > { %v1960_v1 = vld [vmem:[%s207_s10 + $0x8] sm:$0xff]  ;;  %v1964_v2 = vld [vmem:[%s207_s10] sm:$0xff]  ;;  %s1877_s19 = smov 112   ;;  %s1878_s20 = smov 111   ;;  %vm254_vm1 = vcmask 138240   ;;  %vm606_vm2 = vcmask 7168  }
  0x30   : > { %355 = vrot.lane.b32.xlu1 %v1960_v1, %s1871_s11  ;;  %248 = vrot.lane.b32.xlu0 %v1960_v1, %s1872_s12  ;;  %v375_v17 = vrot.slane %v366_v12, %v1994_v11  ;;  %v268_v18 = vrot.slane %v259_v13, %v1994_v11  ;;  %v264_v19 = vrot.slane %v259_v13, %v1992_v10  ;;  %v275_v33 = vld [vmem:[%s2175_s1] sm:$0xff]  ;;  %vm276_vm3 = vcmask 64512   ;;  %v1700_v44 = vld [vmem:[%s2175_s1 + $0x70] sm:$0xff]  ;;  %s1741_s5 = sshll.u32 %s2187_s16, 6 }
  0x31   : > { %v371_v20 = vrot.slane %v366_v12, %v1992_v10  ;;  %v621_v23 = vrot.slane %v612_v16, %v1994_v11  ;;  %v617_v31 = vrot.slane %v612_v16, %v1992_v10  ;;  %v489_v34 = vld [vmem:[#allocation3 + $0x2] ss:$8 sm:$0x3]  ;;  %vm483_vm4 = vcmask 121856   ;;  %s2161_s8 = scalar_lea.vmem %s2178_s4, %s1741_s5 }
  0x32   : > { %v498_v39 = vrot.slane %v489_v34, %v1994_v11  ;;  %v494_v42 = vrot.slane %v489_v34, %v1992_v10  ;;  %v945_v43 = vld [vmem:[#allocation3 + $0x5] ss:$8 sm:$0x3]  ;;  %vm938_vm5 = vcmask 1039360   ;;  %vm1093_vm6 = vcmask 924672  }
  0x33   : > { %v950_v50 = vrot.slane %v945_v43, %v1992_v10  ;;  %v954_v51 = vrot.slane %v945_v43, %v1994_v11  ;;  %v1690_v53 = vld [vmem:[%s2175_s1 + $0x20] sm:$0xff]  ;;  %v1691_v63 = vld [vmem:[%s2175_s1 + $0x28] sm:$0xff]  ;;  %vm1281_vm7 = vcmask 916480   ;;  %vm1436_vm8 = vcmask 908288  }
  0x34   : > { %358 = vrot.lane.b32.xlu1 %v1964_v2, %s1871_s11  ;;  %252 = vrot.lane.b32.xlu0 %v1964_v2, %s1872_s12  ;;  %v1100_v54 = vld [vmem:[#allocation3 + $0x6] ss:$8 sm:$0x3] }
  0x35   : > { %v1105_v61 = vrot.slane %v1100_v54, %v1992_v10  ;;  %v1109_v62 = vrot.slane %v1100_v54, %v1994_v11  ;;  %v1718_v16 = vld [vmem:[%s2175_s1 + $0xc0] sm:$0xff] }
  0x36   : > { %v1730_v43 = vld [vmem:[%s2175_s1 + $0x100] sm:$0xff] }
  0x38   : > { %604 = vrot.lane.b32.xlu1 %v1964_v2, %s1873_s13  ;;  %601 = vrot.lane.b32.xlu0 %v1960_v1, %s1873_s13 }
  0x3c   : > { %481 = vrot.lane.b32.xlu1 %v1964_v2, %s1874_s14  ;;  %478 = vrot.lane.b32.xlu0 %v1960_v1, %s1874_s14 }
  0x40   : > { %936 = vrot.lane.b32.xlu1 %v1960_v1, %s1875_s17  ;;  %934 = vrot.lane.b32.xlu0 %v1964_v2, %s1875_s17 }
  0x44   : > { %1091 = vrot.lane.b32.xlu1 %v1960_v1, %s1876_s18  ;;  %1089 = vrot.lane.b32.xlu0 %v1964_v2, %s1876_s18 }
  0x48   : > { %1279 = vrot.lane.b32.xlu1 %v1960_v1, %s1877_s19  ;;  %1277 = vrot.lane.b32.xlu0 %v1964_v2, %s1877_s19 }
  0x4c   : > { %1434 = vrot.lane.b32.xlu1 %v1960_v1, %s1878_s20  ;;  %1432 = vrot.lane.b32.xlu0 %v1964_v2, %s1878_s20 }
  0x50   : > { %231 = vperm.xlu0 %1825, %v217_v3   ;;  %221 = vperm.xlu1 %1826, %v215_v4   ;;  %v1713_v3 = vld [vmem:[%s2175_s1 + $0xb8] sm:$0xff]  ;;  %v1288_v4 = vld [vmem:[#allocation3 + $0x7] ss:$8 sm:$0x3] }
  0x54   : > { %236 = vperm.xlu0 %1825, %v218_v6   ;;  %226 = vperm.xlu1 %1826, %v216_v7   ;;  %v790_v7 = vld [vmem:[#allocation3 + $0x4] ss:$8 sm:$0x3] }
  0xa2   : > { %v356_v14 = vpop.permute.xlu1 %355  ;;  %v249_v15 = vpop.permute.xlu0 %248 }
  0xa6   : > { %v359_v21 = vpop.permute.xlu1 %358  ;;  %v253_v22 = vpop.permute.xlu0 %252 }
  0xa7   : > { %v361_v24 = vsel %vm360_vm0, %v359_v21, %v356_v14  ;;  %v364_v25 = vsel %vm360_vm0, %v356_v14, %v359_v21  ;;  %v258_v26 = vsel %vm254_vm1, %v249_v15, %v253_v22  ;;  %v255_v27 = vsel %vm254_vm1, %v253_v22, %v249_v15  ;;  %v1694_v15 = vld [vmem:[%s2175_s1 + $0x40] sm:$0xff] }
  0xa8   : > { %v379_v28 = vmul.f32 %v375_v17, %v361_v24  ;;  %v272_v29 = vmul.f32 %v268_v18, %v255_v27  ;;  %v271_v30 = vmul.f32 %v264_v19, %v258_v26  ;;  %v378_v32 = vmul.f32 %v371_v20, %v364_v25  ;;  %v1443_v18 = vld [vmem:[#allocation3 + $0x10] ss:$8 sm:$0x3]  ;;  %v1695_v26 = vld [vmem:[%s2175_s1 + $0x48] sm:$0xff] }
  0xa9   : > { %v1297_v14 = vrot.slane %v1288_v4, %v1994_v11  ;;  %v799_v17 = vrot.slane %v790_v7, %v1994_v11  ;;  %v1293_v20 = vrot.slane %v1288_v4, %v1992_v10  ;;  %v1452_v25 = vrot.slane %v1443_v18, %v1994_v11  ;;  %v1720_v27 = vld [vmem:[%s2175_s1 + $0xd0] sm:$0xff] }
  0xaa   : > { %v605_v35 = vpop.permute.xlu1 %604  ;;  %280 = vmatprep.subr.mxu0 %v272_v29  ;;  %v602_v36 = vpop.permute.xlu0 %601 }
  0xab   : > { %v607_v37 = vsel %vm606_vm2, %v605_v35, %v602_v36  ;;  %v610_v38 = vsel %vm606_vm2, %v602_v36, %v605_v35  ;;  %281 = vmatpush1.msra.mxu0 %v271_v30  ;;  %v803_v29 = vmul.f32 %v799_v17, %v1960_v1  ;;  %v1722_v36 = vld [vmem:[%s2175_s1 + $0xe0] sm:$0xff] }
  0xac   : > { %1689 = vmatmul.mubr.msk.f32.vlgmr.msra.gmra.mrb[0].mxu0 %vm276_vm3, %v275_v33  ;;  %393 = vmatprep.subr.mxu0 %v379_v28  ;;  %v625_v40 = vmul.f32 %v621_v23, %v607_v37  ;;  %v2009_v41 = vmul.f32 %v617_v31, %v610_v38  ;;  %v795_v28 = vrot.slane %v790_v7, %v1992_v10  ;;  %v1702_v38 = vld [vmem:[%s2175_s1 + $0x80] sm:$0xff] }
  0xad   : > { %394 = vmatpush1.msra.mxu0 %v378_v32  ;;  %457 = vmatprep.mubr.f32.mxu0 %v1870_v0  ;;  %v1448_v31 = vrot.slane %v1443_v18, %v1992_v10  ;;  %v1698_v10 = vld [vmem:[%s2175_s1 + $0x60] sm:$0xff] }
  0xae   : > { %v482_v45 = vpop.permute.xlu1 %481  ;;  %v479_v46 = vpop.permute.xlu0 %478  ;;  %714 = vmatprep.subr.mxu1 %v625_v40  ;;  %v802_v35 = vmul.f32 %v795_v28, %v1964_v2  ;;  %v1723_v2 = vld [vmem:[%s2175_s1 + $0xe8] sm:$0xff] }
  0xaf   : > { %v484_v47 = vsel %vm483_vm4, %v482_v45, %v479_v46  ;;  %v487_v48 = vsel %vm483_vm4, %v479_v46, %v482_v45  ;;  %715 = vmatpush1.msra.mxu1 %v2009_v41  ;;  %v1731_v45 = vld [vmem:[%s2175_s1 + $0x108] sm:$0xff]  ;;  %v1710_v46 = vld [vmem:[%s2175_s1 + $0xa0] sm:$0xff] }
  0xb0   : > { %v502_v49 = vmul.f32 %v498_v39, %v484_v47  ;;  %1701 = vmatmul.mubr.msk.f32.vlgmr.msra.gmra.mrb[0].mxu1 %vm276_vm3, %v1700_v44  ;;  %v501_v52 = vmul.f32 %v494_v42, %v487_v48  ;;  %v1724_v39 = vld [vmem:[%s2175_s1 + $0xf0] sm:$0xff]  ;;  %v1705_v44 = vld [vmem:[%s2175_s1 + $0x98] sm:$0xff]  ;;  %v1711_v48 = vld [vmem:[%s2175_s1 + $0xa8] sm:$0xff] }
  0xb1   : > { %1066 = vmatprep.mubr.f32.mxu1 %v1870_v0  ;;  %v1704_v42 = vld [vmem:[%s2175_s1 + $0x90] sm:$0xff] }
  0xb2   : > { %v937_v55 = vpop.permute.xlu1 %936  ;;  %v935_v56 = vpop.permute.xlu0 %934  ;;  %516 = vmatprep.subr.mxu0 %v502_v49  ;;  %v1732_v47 = vld [vmem:[%s2175_s1 + $0x110] sm:$0xff]  ;;  %v1733_v49 = vld [vmem:[%s2175_s1 + $0x118] sm:$0xff] }
  0xb3   : > { %v939_v57 = vsel %vm938_vm5, %v935_v56, %v937_v55  ;;  %v943_v58 = vsel %vm938_vm5, %v937_v55, %v935_v56 }
  0xb4   : > { %v2024_v59 = vmul.f32 %v950_v50, %v939_v57  ;;  %v2026_v60 = vmul.f32 %v954_v51, %v943_v58  ;;  %1692 = vmatmul.mubr.msk.f32.vlgmr.msra.gmra.mrb[0].mxu0 %vm276_vm3, %v1690_v53  ;;  %v1712_v50 = vld [vmem:[%s2175_s1 + $0xb0] sm:$0xff] }
  0xb5   : > { %517 = vmatpush1.msra.mxu0 %v501_v52  ;;  %463 = vmatprep.mubr.f32.mxu0 %v1870_v0 }
  0xb6   : > { %633 = vmatprep.subr.mxu0 %v625_v40  ;;  %v1092_v5 = vpop.permute.xlu1 %1091  ;;  %1742 = vmatprep.subr.mxu1 %v2026_v60  ;;  %v1090_v6 = vpop.permute.xlu0 %1089  ;;  %v1703_v40 = vld [vmem:[%s2175_s1 + $0x88] sm:$0xff] }
  0xb7   : > { %v1094_v8 = vsel %vm1093_vm6, %v1090_v6, %v1092_v5  ;;  %v1098_v9 = vsel %vm1093_vm6, %v1092_v5, %v1090_v6  ;;  %1743 = vmatpush1.msra.mxu1 %v2024_v59 }
  0xb8   : > { %v1112_v12 = vmul.f32 %v1105_v61, %v1094_v8  ;;  %v1113_v13 = vmul.f32 %v1109_v62, %v1098_v9  ;;  %1693 = vmatmul.mubr.msk.f32.gmra.mrb[2].mxu0 %vm276_vm3, %v1691_v63  ;;  %1717 = vmatmul.mubr.msk.f32.vlgmr.msra.gmra.mrb[2].mxu1 %vm276_vm3, %v1713_v3 }
  0xb9   : > { %580 = vmatprep.mubr.f32.mxu0 %v1870_v0  ;;  %1185 = vmatprep.mubr.f32.mxu1 %v1870_v0 }
  0xba   : > { %1121 = vmatprep.subr.mxu1 %v1113_v13  ;;  %v1280_v19 = vpop.permute.xlu1 %1279  ;;  %v1278_v21 = vpop.permute.xlu0 %1277 }
  0xbb   : > { %1122 = vmatpush1.msra.mxu1 %v1112_v12  ;;  %v1282_v22 = vsel %vm1281_vm7, %v1278_v21, %v1280_v19  ;;  %v1286_v23 = vsel %vm1281_vm7, %v1280_v19, %v1278_v21 }
  0xbc   : > { %1696 = vmatmul.mubr.msk.f32.vlgmr.msra.gmra.mrb[0].mxu0 %vm276_vm3, %v1694_v15  ;;  %1719 = vmatmul.mubr.msk.f32.vlgmr.msra.gmra.mrb[4].mxu1 %vm276_vm3, %v1718_v16  ;;  %v1301_v24 = vmul.f32 %v1297_v14, %v1286_v23  ;;  %v1300_v30 = vmul.f32 %v1293_v20, %v1282_v22 }
  0xbd   : > { %634 = vmatpush1.msra.mxu0 %v2009_v41  ;;  %1202 = vmatprep.subr.mxu1 %v1113_v13  ;;  %v1725_v41 = vld [vmem:[%s2175_s1 + $0xf8] sm:$0xff] }
  0xbe   : > { %1203 = vmatpush1.msra.mxu1 %v1112_v12  ;;  %586 = vmatprep.mubr.f32.mxu0 %v1870_v0  ;;  %v1435_v11 = vpop.permute.xlu1 %1434  ;;  %v1433_v32 = vpop.permute.xlu0 %1432 }
  0xbf   : > { %1266 = vmatprep.mubr.f32.mxu1 %v1870_v0  ;;  %1327 = vmatprep.subr.mxu1 %v1301_v24  ;;  %v1437_v33 = vsel %vm1436_vm8, %v1433_v32, %v1435_v11  ;;  %v1441_v34 = vsel %vm1436_vm8, %v1435_v11, %v1433_v32 }
  0xc0   : > { %1697 = vmatmul.mubr.msk.f32.gmra.mrb[2].mxu0 %vm276_vm3, %v1695_v26  ;;  %1721 = vmatmul.mubr.msk.f32.vlgmr.msra.gmra.mrb[6].mxu1 %vm276_vm3, %v1720_v27  ;;  %v1456_v1 = vmul.f32 %v1452_v25, %v1441_v34  ;;  %v1455_v37 = vmul.f32 %v1448_v31, %v1437_v33 }
  0xc1   : > { %697 = vmatprep.mubr.f32.mxu0 %v1870_v0  ;;  %829 = vmatprep.subr.mxu0 %v803_v29 }
  0xc2   : > { %1328 = vmatpush1.msra.mxu1 %v1300_v30  ;;  %1391 = vmatprep.mubr.f32.mxu1 %v1870_v0 }
  0xc3   : > { %1482 = vmatprep.subr.mxu1 %v1456_v1 }
  0xc4   : > { %1699 = vmatmul.mubr.msk.f32.vlgmr.msra.gmra.mrb[0].mxu0 %vm276_vm3, %v1698_v10  ;;  %1726 = vmatmul.mubr.msk.f32.vlgmr.msra.gmra.mrb[4].mxu1 %vm276_vm3, %v1722_v36 }
  0xc5   : > { %830 = vmatpush1.msra.mxu0 %v802_v35  ;;  %1397 = vmatprep.mubr.f32.mxu1 %v1870_v0 }
  0xc6   : > { %984 = vmatprep.subr.mxu0 %v2026_v60  ;;  %1483 = vmatpush1.msra.mxu1 %v1455_v37 }
  0xc7   : > { %893 = vmatprep.mubr.f32.mxu0 %v1870_v0 }
  0xc8   : > { %1727 = vmatmul.mubr.msk.f32.gmra.mrb[8].mxu1 %vm276_vm3, %v1723_v2 }
  0xc9   : > { %1403 = vmatprep.mubr.f32.mxu1 %v1870_v0 }
  0xcc   : > { %1706 = vmatmul.mubr.msk.f32.vlgmr.msra.gmra.mrb[0].mxu0 %vm276_vm3, %v1702_v38  ;;  %1728 = vmatmul.mubr.msk.f32.gmra.mrb[6].mxu1 %vm276_vm3, %v1724_v39 }
  0xcd   : > { %985 = vmatpush1.msra.mxu0 %v2024_v59  ;;  %899 = vmatprep.mubr.f32.mxu0 %v1870_v0 }
  0xce   : > { %1409 = vmatprep.mubr.f32.mxu1 %v1870_v0 }
  0xcf   : > { %v232_v55 = vpop.permute.xlu0 %231  ;;  %v222_v56 = vpop.permute.xlu1 %221 }
  0xd0   : > { %1707 = vmatmul.mubr.msk.f32.gmra.mrb[2].mxu0 %vm276_vm3, %v1703_v40  ;;  %1729 = vmatmul.mubr.msk.f32.gmra.mrb[2].mxu1 %vm276_vm3, %v1725_v41 }
  0xd1   : > { %905 = vmatprep.mubr.f32.mxu0 %v1870_v0  ;;  %1546 = vmatprep.mubr.f32.mxu1 %v1870_v0 }
  0xd3   : > { %v237_v61 = vpop.permute.xlu0 %236  ;;  %v227_v6 = vpop.permute.xlu1 %226 }
  0xd4   : > { %1708 = vmatmul.mubr.msk.f32.gmra.mrb[4].mxu0 %vm276_vm3, %v1704_v42  ;;  %1734 = vmatmul.mubr.msk.f32.vlgmr.msra.gmra.mrb[4].mxu1 %vm276_vm3, %v1730_v43 }
  0xd5   : > { %911 = vmatprep.mubr.f32.mxu0 %v1870_v0  ;;  %1552 = vmatprep.mubr.f32.mxu1 %v1870_v0 }
  0xd8   : > { %1709 = vmatmul.mubr.msk.f32.gmra.mrb[6].mxu0 %vm276_vm3, %v1705_v44  ;;  %1735 = vmatmul.mubr.msk.f32.gmra.mrb[8].mxu1 %vm276_vm3, %v1731_v45 }
  0xd9   : > { %1048 = vmatprep.mubr.f32.mxu0 %v1870_v0  ;;  %1558 = vmatprep.mubr.f32.mxu1 %v1870_v0 }
  0xdc   : > { %1714 = vmatmul.mubr.msk.f32.vlgmr.msra.gmra.mrb[0].mxu0 %vm276_vm3, %v1710_v46  ;;  %1736 = vmatmul.mubr.msk.f32.gmra.mrb[6].mxu1 %vm276_vm3, %v1732_v47 }
  0xdd   : > { %1054 = vmatprep.mubr.f32.mxu0 %v1870_v0  ;;  %1564 = vmatprep.mubr.f32.mxu1 %v1870_v0 }
  0xe0   : > { %1715 = vmatmul.mubr.msk.f32.gmra.mrb[2].mxu0 %vm276_vm3, %v1711_v48  ;;  %1737 = vmatmul.mubr.msk.f32.gmra.mrb[2].mxu1 %vm276_vm3, %v1733_v49 }
  0xe1   : > { %1060 = vmatprep.mubr.f32.mxu0 %v1870_v0 }
  0xe4   : > { %1716 = vmatmul.mubr.msk.f32.gmra.mrb[4].mxu0 %vm276_vm3, %v1712_v50 }
 0x183   : > { %v780_v51 = vpop.f32.mrb[0].mxu1 }
 0x184   : > { %v782_v52 = vpop.f32.mrb[1].mxu1  ;;  %v785_v23 = vadd.f32 %v780_v51, %v232_v55 }
 0x185   : > { %v786_v26 = vadd.f32 %v782_v52, %v232_v55 }
 0x1a7   : > { %v1548_v53 = vpop.f32.mrb[4].mxu1 }
 0x1a8   : > { %v1550_v54 = vpop.f32.mrb[5].mxu1 }
 0x1ab   : > { %v913_v57 = vpop.f32.mrb[6].mxu0  ;;  %v1554_v58 = vpop.f32.mrb[8].mxu1 }
 0x1ac   : > { %v1556_v59 = vpop.f32.mrb[9].mxu1  ;;  %v915_v60 = vpop.f32.mrb[7].mxu0  ;;  %v924_v7 = vadd.f32 %v913_v57, %v237_v61 }
 0x1ad   : > { %v925_v9 = vadd.f32 %v915_v60, %v237_v61 }
 0x1af   : > { %v1050_v62 = vpop.f32.mrb[0].mxu0  ;;  %v1560_v0 = vpop.f32.mrb[6].mxu1 }
 0x1b0   : > { %v1744_v63 = vadd.f32 %v1050_v62, %v222_v56  ;;  %v1052_v3 = vpop.f32.mrb[1].mxu0  ;;  %v1562_v4 = vpop.f32.mrb[7].mxu1 }
 0x1b1   : > { %v1746_v5 = vadd.f32 %v1052_v3, %v222_v56 }
 0x1b2   : > { %v1745_v8 = vadd.f32 %v1744_v63, %v1548_v53 }
 0x1b3   : > { %v1747_v12 = vadd.f32 %v1746_v5, %v1550_v54  ;;  %v1056_v13 = vpop.f32.mrb[2].mxu0  ;;  %v1566_v14 = vpop.f32.mrb[2].mxu1 }
 0x1b4   : > { %v1595_v15 = vmax.f32 %v1745_v8, 0.0  ;;  %v1748_v16 = vadd.f32 %v1056_v13, %v227_v6  ;;  %v1759_v17 = vadd.f32 %v1566_v14, %v924_v7  ;;  %v1058_v18 = vpop.f32.mrb[3].mxu0  ;;  %v1568_v19 = vpop.f32.mrb[3].mxu1 }
 0x1b5   : > { %v1596_v20 = vmax.f32 %v1747_v12, 0.0  ;;  %v1750_v21 = vadd.f32 %v1058_v18, %v227_v6  ;;  %v1761_v22 = vadd.f32 %v1568_v19, %v925_v9 }
 0x1b6   : > { %1603 = vst [vmem:[%s2161_s8] sm:$0xff] %v1595_v15  ;;  %v1749_v24 = vadd.f32 %v1748_v16, %v1554_v58  ;;  %v1601_v25 = vmax.f32 %v1759_v17, 0.0 }
 0x1b7   : > { %1604 = vst [vmem:[%s2161_s8 + $0x8] sm:$0xff] %v1596_v20  ;;  %v1751_v27 = vadd.f32 %v1750_v21, %v1556_v59  ;;  %v1602_v28 = vmax.f32 %v1761_v22, 0.0  ;;  %v1062_v29 = vpop.f32.mrb[4].mxu0 }
 0x1b8   : > { %v1597_v30 = vmax.f32 %v1749_v24, 0.0  ;;  %1609 = vst [vmem:[%s2161_s8 + $0x30] sm:$0xff] %v1601_v25  ;;  %v1753_v11 = vadd.f32 %v1062_v29, %v785_v23  ;;  %v1064_v31 = vpop.f32.mrb[5].mxu0 }
 0x1b9   : > { %v1598_v32 = vmax.f32 %v1751_v27, 0.0  ;;  %1610 = vst [vmem:[%s2161_s8 + $0x38] sm:$0xff] %v1602_v28  ;;  %v1756_v33 = vadd.f32 %v1064_v31, %v786_v26 }
 0x1ba   : > { %1605 = vst [vmem:[%s2161_s8 + $0x10] sm:$0xff] %v1597_v30  ;;  %v1754_v34 = vadd.f32 %v1753_v11, %v1560_v0 }
 0x1bb   : > { %1606 = vst [vmem:[%s2161_s8 + $0x18] sm:$0xff] %v1598_v32  ;;  %v1757_v1 = vadd.f32 %v1756_v33, %v1562_v4 }
 0x1bc   : > { %v1599_v10 = vmax.f32 %v1754_v34, 0.0 }
 0x1bd   : > { %v1600_v35 = vmax.f32 %v1757_v1, 0.0 }
 0x1be   : > { %1607 = vst [vmem:[%s2161_s8 + $0x20] sm:$0xff] %v1599_v10 }
 0x1bf   : > { %1608 = vst [vmem:[%s2161_s8 + $0x28] sm:$0xff] %v1600_v35 }
 0x1c0 PF: > { %s15_s15 = sadd.s32 1, %s1865_s15  }
 0x1c1   : > { %p12_p3 = scmp.ge.s32.totalorder %s15_s15, 4  }
 0x1c3   :  { %14 = sbr.rel (!%p12_p3) target bundleno = 1 (0x1), region = 87 }
 0x1ca   :  { %1632 = vsyncpa [#allocation4], 1 }
 0x1cb   :  { %1634 = vsyncpa [#allocation4 + $0x1], 1 }

// kernel: hyperprior_synthesis_dlmm_forward.4
= control target key start
LH: loop header
LB: loop body
LE: loop exit
PB: predicated region body
PF: predicated region fallthrough
CT: control target
= control target key end

     0   :  { %s5754_s15 = smov 0   ;;  %s6592_s0 = inlined_call_operand.vmem [shape: f32[2,8,1024], index: 0, kind: input, shape index: {}]   ;;  %s6593_s1 = inlined_call_operand.vmem [shape: f32[9,32,8], index: 1, kind: input, shape index: {}]   ;;  %s6594_s2 = inlined_call_operand.vmem [shape: f32[32,1], index: 2, kind: input, shape index: {}]   ;;  %s6595_s3 = inlined_call_operand.vmem [shape: f32[9,1024], index: 3, kind: input, shape index: {}]   ;;  %s6596_s4 = inlined_call_operand.vmem [shape: f32[2,32,1024], index: 4, kind: output, shape index: {}]  }
   0x1 LB: > { %s5338_s16 = sadd.s32 4294967295, %s5717_s15   ;;  %p5342_p0 = scmp.ge.s32.totalorder %s5717_s15, 1  ;;  %s5717_s15 = sphi %s5754_s15, %s14_s15  }
   0x2   : > { %p162_p1 = scmp.lt.s32.totalorder %s5717_s15, 3 }
   0x4   : > { %p163_p2 = pnand %p5342_p0, %p162_p1 }
   0x5   : > { %p188_p3 = scmp.lt.s32.totalorder (!%p163_p2), %s5338_s16, 1  ;;  %s5719_s21 = smov (!%p163_p2), 33   ;;  %v5720_v4 = vmov (!%p163_p2), 0.0   ;;  %v308_v9 = vlaneseq (!%p163_p2)  ;;  %v304_v10 = vld [vmem:[%s6595_s3] ss:$8 sm:$0xf] (!%p163_p2) }
   0x6   : > { %166 = sbr.rel (%p163_p2) target bundleno = 568 (0x238), region = 36  ;;  %433 = vmatprep.mubr.f32.mxu0 (!%p163_p2), %v5720_v4  ;;  %504 = vmatprep.mubr.f32.mxu1 (!%p163_p2), %v5720_v4  ;;  %s5721_s22 = smov (!%p163_p2), 32   ;;  %v305_v12 = vld [vmem:[%s6595_s3] ss:$8 sm:$0xf0] (!%p163_p2)  ;;  %vm287_vm0 = vcmask (!%p163_p2), 269312  }
   0x7   : > { %s5722_s23 = smov (!%p163_p2), 31   ;;  %s5723_s24 = smov (!%p163_p2), 1   ;;  %v309_v11 = vshrl.u32 (!%p163_p2), %v308_v9, 7  ;;  %v5848_v13 = vor.u32 (!%p163_p2), %v305_v12, %v304_v10  ;;  %v5351_v35 = vld [vmem:[%s6595_s3 + $0x1] ss:$8 sm:$0xf] (!%p163_p2) }
   0x8   : > { %s5724_s25 = smov (!%p163_p2), 127   ;;  %s5725_s26 = smov (!%p163_p2), 97   ;;  %v5352_v37 = vld [vmem:[%s6595_s3 + $0x1] ss:$8 sm:$0xf0] (!%p163_p2)  ;;  %vm365_vm1 = vcmask (!%p163_p2), 64512  }
   0x9   : > { %s5726_s27 = smov (!%p163_p2), 96   ;;  %v5850_v14 = vsub.s32 (!%p163_p2), 3, %v309_v11  ;;  %v5852_v15 = vsub.s32 (!%p163_p2), 1, %v309_v11  ;;  %v5854_v16 = vsub.s32 (!%p163_p2), 2, %v309_v11  ;;  %s5727_s6 = smov (!%p163_p2), 95   ;;  %v5860_v19 = vsub.s32 (!%p163_p2), 0, %v309_v11 }
   0xa   : > { %v5872_v25 = vsub.s32 (!%p163_p2), 7, %v309_v11  ;;  %v5874_v26 = vsub.s32 (!%p163_p2), 5, %v309_v11  ;;  %v5881_v34 = vsub.s32 (!%p163_p2), 6, %v309_v11  ;;  %v5890_v36 = vsub.s32 (!%p163_p2), 4, %v309_v11  ;;  %v364_v38 = vld [vmem:[%s6593_s1] sm:$0xff] (!%p163_p2) }
   0xb   : > { %v323_v20 = vrot.slane (!%p163_p2), %v5848_v13, %v5850_v14  ;;  %v315_v21 = vrot.slane (!%p163_p2), %v5848_v13, %v5852_v15  ;;  %v319_v22 = vrot.slane (!%p163_p2), %v5848_v13, %v5854_v16  ;;  %v311_v30 = vrot.slane (!%p163_p2), %v5848_v13, %v5860_v19 }
   0xc   : > { %v339_v42 = vrot.slane (!%p163_p2), %v5848_v13, %v5872_v25  ;;  %v331_v43 = vrot.slane (!%p163_p2), %v5848_v13, %v5874_v26  ;;  %v335_v45 = vrot.slane (!%p163_p2), %v5848_v13, %v5881_v34  ;;  %v5905_v46 = vor.u32 (!%p163_p2), %v5352_v37, %v5351_v35  ;;  %v5354_v37 = vld [vmem:[%s6593_s1 + $0x28] sm:$0xff] (!%p163_p2) }
   0xd   : > { %s6598_s16 = smov (!%p188_p3, %s5338_s16), 1  ;;  %v327_v47 = vrot.slane %v5848_v13, %v5890_v36  ;;  %vm686_vm2 = vcmask 261120   ;;  %vm1138_vm3 = vcmask 252928   ;;  %vm1590_vm4 = vcmask 7168  }
   0xe   : > { %s5489_s17 = sshll.u32 %s6598_s16, 6  ;;  %v715_v57 = vrot.slane %v5905_v46, %v5852_v15  ;;  %v719_v63 = vrot.slane %v5905_v46, %v5854_v16  ;;  %v723_v9 = vrot.slane %v5905_v46, %v5850_v14  ;;  %v727_v35 = vrot.slane %v5905_v46, %v5890_v36 }
   0xf   : > { %s192_s20 = scalar_lea.vmem %s6592_s0, %s5489_s17  ;;  %vm2823_vm5 = vcmask 1039360   ;;  %vm3379_vm6 = vcmask 793600   ;;  %vm4091_vm7 = vcmask 785408   ;;  %vm4647_vm8 = vcmask 777216  }
  0x10   : > { %v5768_v0 = vld [vmem:[%s192_s20 + $0x10] sm:$0xff]  ;;  %v5770_v1 = vld [vmem:[%s192_s20] sm:$0xff]  ;;  %v5774_v2 = vld [vmem:[%s192_s20 + $0x18] sm:$0xff] }
  0x11   : > { %277 = vrot.lane.b32.xlu1 %v5768_v0, %s5719_s21  ;;  %273 = vrot.lane.b32.xlu0 %v5770_v1, %s5719_s21  ;;  %v5776_v3 = vld [vmem:[%s192_s20 + $0x8] sm:$0xff]  ;;  %v5782_v5 = vld [vmem:[%s192_s20 + $0x20] sm:$0xff] }
  0x12   : > { %v5784_v6 = vld [vmem:[%s192_s20 + $0x38] sm:$0xff]  ;;  %v5788_v7 = vld [vmem:[%s192_s20 + $0x30] sm:$0xff]  ;;  %v5790_v8 = vld [vmem:[%s192_s20 + $0x28] sm:$0xff] }
  0x15   : > { %279 = vrot.lane.b32.xlu1 %v5774_v2, %s5719_s21  ;;  %275 = vrot.lane.b32.xlu0 %v5776_v3, %s5719_s21 }
  0x19   : > { %281 = vrot.lane.b32.xlu1 %v5782_v5, %s5719_s21  ;;  %263 = vrot.lane.b32.xlu0 %v5784_v6, %s5719_s21 }
  0x1d   : > { %285 = vrot.lane.b32.xlu1 %v5788_v7, %s5719_s21  ;;  %283 = vrot.lane.b32.xlu0 %v5790_v8, %s5719_s21 }
  0x21   : > { %674 = vrot.lane.b32.xlu1 %v5776_v3, %s5721_s22  ;;  %672 = vrot.lane.b32.xlu0 %v5770_v1, %s5721_s22 }
  0x25   : > { %678 = vrot.lane.b32.xlu1 %v5774_v2, %s5721_s22  ;;  %676 = vrot.lane.b32.xlu0 %v5768_v0, %s5721_s22 }
  0x29   : > { %680 = vrot.lane.b32.xlu1 %v5782_v5, %s5721_s22  ;;  %669 = vrot.lane.b32.xlu0 %v5784_v6, %s5721_s22 }
  0x2d   : > { %684 = vrot.lane.b32.xlu1 %v5788_v7, %s5721_s22  ;;  %682 = vrot.lane.b32.xlu0 %v5790_v8, %s5721_s22 }
  0x31   : > { %1126 = vrot.lane.b32.xlu1 %v5776_v3, %s5722_s23  ;;  %1124 = vrot.lane.b32.xlu0 %v5770_v1, %s5722_s23 }
  0x35   : > { %1130 = vrot.lane.b32.xlu1 %v5774_v2, %s5722_s23  ;;  %1128 = vrot.lane.b32.xlu0 %v5768_v0, %s5722_s23 }
  0x39   : > { %1132 = vrot.lane.b32.xlu1 %v5782_v5, %s5722_s23  ;;  %1121 = vrot.lane.b32.xlu0 %v5784_v6, %s5722_s23 }
  0x3d   : > { %1136 = vrot.lane.b32.xlu1 %v5788_v7, %s5722_s23  ;;  %1134 = vrot.lane.b32.xlu0 %v5790_v8, %s5722_s23 }
  0x41   : > { %1578 = vrot.lane.b32.xlu1 %v5776_v3, %s5723_s24  ;;  %1576 = vrot.lane.b32.xlu0 %v5770_v1, %s5723_s24 }
  0x45   : > { %1582 = vrot.lane.b32.xlu1 %v5774_v2, %s5723_s24  ;;  %1580 = vrot.lane.b32.xlu0 %v5768_v0, %s5723_s24 }
  0x49   : > { %1584 = vrot.lane.b32.xlu1 %v5782_v5, %s5723_s24  ;;  %1573 = vrot.lane.b32.xlu0 %v5784_v6, %s5723_s24 }
  0x4d   : > { %1588 = vrot.lane.b32.xlu1 %v5788_v7, %s5723_s24  ;;  %1586 = vrot.lane.b32.xlu0 %v5790_v8, %s5723_s24 }
  0x51   : > { %2809 = vrot.lane.b32.xlu0 %v5776_v3, %s5724_s25  ;;  %2811 = vrot.lane.b32.xlu1 %v5768_v0, %s5724_s25 }
  0x55   : > { %2813 = vrot.lane.b32.xlu0 %v5774_v2, %s5724_s25  ;;  %2815 = vrot.lane.b32.xlu1 %v5782_v5, %s5724_s25 }
  0x59   : > { %2807 = vrot.lane.b32.xlu0 %v5770_v1, %s5724_s25  ;;  %2817 = vrot.lane.b32.xlu1 %v5790_v8, %s5724_s25 }
  0x5d   : > { %2821 = vrot.lane.b32.xlu1 %v5784_v6, %s5724_s25  ;;  %2819 = vrot.lane.b32.xlu0 %v5788_v7, %s5724_s25 }
  0x61   : > { %3365 = vrot.lane.b32.xlu0 %v5776_v3, %s5725_s26  ;;  %3367 = vrot.lane.b32.xlu1 %v5768_v0, %s5725_s26 }
  0x65   : > { %3369 = vrot.lane.b32.xlu0 %v5774_v2, %s5725_s26  ;;  %3371 = vrot.lane.b32.xlu1 %v5782_v5, %s5725_s26 }
  0x69   : > { %3363 = vrot.lane.b32.xlu0 %v5770_v1, %s5725_s26  ;;  %3373 = vrot.lane.b32.xlu1 %v5790_v8, %s5725_s26 }
  0x6d   : > { %3377 = vrot.lane.b32.xlu1 %v5784_v6, %s5725_s26  ;;  %3375 = vrot.lane.b32.xlu0 %v5788_v7, %s5725_s26 }
  0x71   : > { %4077 = vrot.lane.b32.xlu0 %v5776_v3, %s5726_s27  ;;  %4079 = vrot.lane.b32.xlu1 %v5768_v0, %s5726_s27 }
  0x75   : > { %4081 = vrot.lane.b32.xlu0 %v5774_v2, %s5726_s27  ;;  %4083 = vrot.lane.b32.xlu1 %v5782_v5, %s5726_s27 }
  0x79   : > { %4075 = vrot.lane.b32.xlu0 %v5770_v1, %s5726_s27  ;;  %4085 = vrot.lane.b32.xlu1 %v5790_v8, %s5726_s27 }
  0x7d   : > { %4087 = vrot.lane.b32.xlu0 %v5788_v7, %s5726_s27  ;;  %4089 = vrot.lane.b32.xlu1 %v5784_v6, %s5726_s27  ;;  %s5490_s27 = sshll.u32 %s6598_s16, 8 }
  0x7e   : > { %s6521_s30 = scalar_lea.vmem %s6596_s4, %s5490_s27 }
  0x81   : > { %4633 = vrot.lane.b32.xlu0 %v5776_v3, %s5727_s6  ;;  %4635 = vrot.lane.b32.xlu1 %v5768_v0, %s5727_s6 }
  0x83   : > { %v278_v17 = vpop.permute.xlu1 %277  ;;  %v274_v18 = vpop.permute.xlu0 %273 }
  0x85   : > { %4637 = vrot.lane.b32.xlu0 %v5774_v2, %s5727_s6  ;;  %4639 = vrot.lane.b32.xlu1 %v5782_v5, %s5727_s6 }
  0x87   : > { %v280_v23 = vpop.permute.xlu1 %279  ;;  %v276_v24 = vpop.permute.xlu0 %275 }
  0x88   : > { %v289_v27 = vsel %vm287_vm0, %v276_v24, %v278_v17  ;;  %v290_v28 = vsel %vm287_vm0, %v278_v17, %v280_v23  ;;  %v288_v29 = vsel %vm287_vm0, %v274_v18, %v276_v24 }
  0x89   : > { %v351_v31 = vmul.f32 %v323_v20, %v290_v28  ;;  %v349_v32 = vmul.f32 %v315_v21, %v288_v29  ;;  %v350_v33 = vmul.f32 %v319_v22, %v289_v27  ;;  %4631 = vrot.lane.b32.xlu0 %v5770_v1, %s5727_s6  ;;  %4641 = vrot.lane.b32.xlu1 %v5790_v8, %s5727_s6  ;;  %v5363_v21 = vld [vmem:[%s6595_s3 + $0x2] ss:$8 sm:$0xf] }
  0x8a   : > { %v711_v20 = vrot.slane %v5905_v46, %v5860_v19  ;;  %v5364_v22 = vld [vmem:[%s6595_s3 + $0x2] ss:$8 sm:$0xf0] }
  0x8b   : > { %440 = vmatprep.subr.mxu1 %v351_v31  ;;  %v282_v39 = vpop.permute.xlu1 %281  ;;  %369 = vmatprep.subr.mxu0 %v349_v32  ;;  %v264_v40 = vpop.permute.xlu0 %263  ;;  %v5946_v29 = vor.u32 %v5364_v22, %v5363_v21  ;;  %v739_v31 = vrot.slane %v5905_v46, %v5872_v25  ;;  %v731_v32 = vrot.slane %v5905_v46, %v5874_v26 }
  0x8c   : > { %v303_v41 = vsel %vm287_vm0, %v264_v40, %v274_v18  ;;  %441 = vmatpush1.msra.mxu1 %v350_v33  ;;  %v291_v48 = vsel %vm287_vm0, %v280_v23, %v282_v39  ;;  %v5353_v23 = vld [vmem:[%s6593_s1 + $0x20] sm:$0xff]  ;;  %v735_v33 = vrot.slane %v5905_v46, %v5881_v34 }
  0x8d   : > { %v348_v44 = vmul.f32 %v311_v30, %v303_v41  ;;  %5348 = vmatmul.mubr.msk.f32.vlgmr.msra.gmra.mrb[0].mxu1 %vm365_vm1, %v364_v38  ;;  %4645 = vrot.lane.b32.xlu1 %v5784_v6, %s5727_s6  ;;  %v352_v58 = vmul.f32 %v327_v47, %v291_v48  ;;  %v1187_v21 = vrot.slane %v5946_v29, %v5881_v34 }
  0x8e   : > { %646 = vmatprep.mubr.f32.mxu1 %v5720_v4  ;;  %4643 = vrot.lane.b32.xlu0 %v5788_v7, %s5727_s6  ;;  %v1179_v22 = vrot.slane %v5946_v29, %v5890_v36 }
  0x8f   : > { %v286_v49 = vpop.permute.xlu1 %285  ;;  %370 = vmatpush1.msra.mxu0 %v348_v44  ;;  %v284_v50 = vpop.permute.xlu0 %283  ;;  %v1167_v44 = vrot.slane %v5946_v29, %v5852_v15 }
  0x90   : > { %v294_v51 = vsel %vm287_vm0, %v286_v49, %v264_v40  ;;  %v292_v52 = vsel %vm287_vm0, %v282_v39, %v284_v50  ;;  %v293_v53 = vsel %vm287_vm0, %v284_v50, %v286_v49  ;;  %5347 = vmatmul.mubr.msk.f32.vlgmr.msra.gmra.mrb[0].mxu0 %vm365_vm1, %v364_v38 }
  0x91   : > { %v355_v54 = vmul.f32 %v339_v42, %v294_v51  ;;  %v353_v55 = vmul.f32 %v331_v43, %v292_v52  ;;  %v354_v56 = vmul.f32 %v335_v45, %v293_v53  ;;  %575 = vmatprep.mubr.f32.mxu0 %v5720_v4  ;;  %v1171_v53 = vrot.slane %v5946_v29, %v5854_v16 }
  0x93   : > { %v675_v59 = vpop.permute.xlu1 %674  ;;  %511 = vmatprep.subr.mxu0 %v353_v55  ;;  %582 = vmatprep.subr.mxu1 %v355_v54  ;;  %v673_v60 = vpop.permute.xlu0 %672  ;;  %v1175_v54 = vrot.slane %v5946_v29, %v5850_v14 }
  0x94   : > { %v687_v61 = vsel %vm686_vm2, %v673_v60, %v675_v59  ;;  %512 = vmatpush1.msra.mxu0 %v352_v58  ;;  %583 = vmatpush1.msra.mxu1 %v354_v56 }
  0x95   : > { %v749_v62 = vmul.f32 %v715_v57, %v687_v61  ;;  %5350 = vmatmul.mubr.msk.f32.vlgmr.msra.gmra.mrb[2].mxu1 %vm365_vm1, %v364_v38  ;;  %5349 = vmatmul.mubr.msk.f32.vlgmr.msra.gmra.mrb[2].mxu0 %vm365_vm1, %v364_v38  ;;  %v1163_v61 = vrot.slane %v5946_v29, %v5860_v19 }
  0x96   : > { %845 = vmatprep.mubr.f32.mxu0 %v5720_v4  ;;  %922 = vmatprep.mubr.f32.mxu1 %v5720_v4 }
  0x97   : > { %v679_v10 = vpop.permute.xlu1 %678  ;;  %781 = vmatprep.subr.mxu0 %v749_v62  ;;  %v677_v11 = vpop.permute.xlu0 %676  ;;  %v5375_v62 = vld [vmem:[%s6595_s3 + $0x3] ss:$8 sm:$0xf] }
  0x98   : > { %v688_v12 = vsel %vm686_vm2, %v675_v59, %v677_v11  ;;  %v689_v13 = vsel %vm686_vm2, %v677_v11, %v679_v10 }
  0x99   : > { %v750_v17 = vmul.f32 %v719_v63, %v688_v12  ;;  %v751_v18 = vmul.f32 %v723_v9, %v689_v13  ;;  %v5376_v63 = vld [vmem:[%s6595_s3 + $0x3] ss:$8 sm:$0xf0]  ;;  %v1191_v13 = vrot.slane %v5946_v29, %v5872_v25 }
  0x9a   : > { %v5365_v9 = vld [vmem:[%s6593_s1 + $0x40] sm:$0xff] }
  0x9b   : > { %v681_v24 = vpop.permute.xlu1 %680  ;;  %858 = vmatprep.subr.mxu1 %v751_v18  ;;  %v670_v27 = vpop.permute.xlu0 %669 }
  0x9c   : > { %v702_v28 = vsel %vm686_vm2, %v670_v27, %v673_v60  ;;  %859 = vmatpush1.msra.mxu1 %v750_v17  ;;  %v690_v38 = vsel %vm686_vm2, %v679_v10, %v681_v24  ;;  %v6000_v17 = vor.u32 %v5376_v63, %v5375_v62 }
  0x9d   : > { %v748_v30 = vmul.f32 %v711_v20, %v702_v28  ;;  %5357 = vmatmul.mubr.msk.f32.vlgmr.msra.gmra.mrb[0].mxu1 %vm365_vm1, %v5353_v23  ;;  %v752_v48 = vmul.f32 %v727_v35, %v690_v38  ;;  %v1183_v20 = vrot.slane %v5946_v29, %v5874_v26 }
  0x9e   : > { %928 = vmatprep.mubr.f32.mxu1 %v5720_v4  ;;  %v1619_v29 = vrot.slane %v6000_v17, %v5852_v15  ;;  %v1631_v62 = vrot.slane %v6000_v17, %v5890_v36 }
  0x9f   : > { %v685_v39 = vpop.permute.xlu1 %684  ;;  %782 = vmatpush1.msra.mxu0 %v748_v30  ;;  %v683_v40 = vpop.permute.xlu0 %682 }
  0xa0   : > { %v693_v41 = vsel %vm686_vm2, %v685_v39, %v670_v27  ;;  %v691_v42 = vsel %vm686_vm2, %v681_v24, %v683_v40  ;;  %v692_v43 = vsel %vm686_vm2, %v683_v40, %v685_v39  ;;  %5355 = vmatmul.mubr.msk.f32.vlgmr.msra.gmra.mrb[0].mxu0 %vm365_vm1, %v5353_v23 }
  0xa1   : > { %v755_v45 = vmul.f32 %v739_v31, %v693_v41  ;;  %v753_v46 = vmul.f32 %v731_v32, %v691_v42  ;;  %v754_v47 = vmul.f32 %v735_v33, %v692_v43  ;;  %851 = vmatprep.mubr.f32.mxu0 %v5720_v4  ;;  %5358 = vmatmul.mubr.msk.f32.gmra.mrb[4].mxu1 %vm365_vm1, %v5354_v37 }
  0xa2   : > { %1076 = vmatprep.mubr.f32.mxu1 %v5720_v4  ;;  %v1623_v43 = vrot.slane %v6000_v17, %v5854_v16 }
  0xa3   : > { %v1127_v49 = vpop.permute.xlu1 %1126  ;;  %935 = vmatprep.subr.mxu0 %v753_v46  ;;  %1012 = vmatprep.subr.mxu1 %v755_v45  ;;  %v1125_v50 = vpop.permute.xlu0 %1124 }
  0xa4   : > { %v1139_v51 = vsel %vm1138_vm3, %v1125_v50, %v1127_v49  ;;  %936 = vmatpush1.msra.mxu0 %v752_v48  ;;  %1013 = vmatpush1.msra.mxu1 %v754_v47 }
  0xa5   : > { %v1201_v52 = vmul.f32 %v1167_v44, %v1139_v51  ;;  %5356 = vmatmul.mubr.msk.f32.gmra.mrb[4].mxu0 %vm365_vm1, %v5354_v37  ;;  %5361 = vmatmul.mubr.msk.f32.vlgmr.msra.gmra.mrb[2].mxu1 %vm365_vm1, %v5353_v23  ;;  %v1627_v44 = vrot.slane %v6000_v17, %v5850_v14  ;;  %v1615_v51 = vrot.slane %v6000_v17, %v5860_v19 }
  0xa6   : > { %999 = vmatprep.mubr.f32.mxu0 %v5720_v4  ;;  %1082 = vmatprep.mubr.f32.mxu1 %v5720_v4 }
  0xa7   : > { %v1131_v55 = vpop.permute.xlu1 %1130  ;;  %1233 = vmatprep.subr.mxu0 %v1201_v52  ;;  %v1129_v56 = vpop.permute.xlu0 %1128  ;;  %v5377_v52 = vld [vmem:[%s6593_s1 + $0x60] sm:$0xff] }
  0xa8   : > { %v1140_v57 = vsel %vm1138_vm3, %v1127_v49, %v1129_v56  ;;  %v1141_v58 = vsel %vm1138_vm3, %v1129_v56, %v1131_v55  ;;  %v1643_v56 = vrot.slane %v6000_v17, %v5872_v25 }
  0xa9   : > { %v1202_v59 = vmul.f32 %v1171_v53, %v1140_v57  ;;  %v1203_v60 = vmul.f32 %v1175_v54, %v1141_v58  ;;  %5359 = vmatmul.mubr.msk.f32.vlgmr.msra.gmra.mrb[2].mxu0 %vm365_vm1, %v5353_v23  ;;  %5362 = vmatmul.mubr.msk.f32.gmra.mrb[6].mxu1 %vm365_vm1, %v5354_v37  ;;  %v5366_v23 = vld [vmem:[%s6593_s1 + $0x48] sm:$0xff]  ;;  %v1635_v58 = vrot.slane %v6000_v17, %v5874_v26 }
  0xaa   : > { %1005 = vmatprep.mubr.f32.mxu0 %v5720_v4  ;;  %1374 = vmatprep.mubr.f32.mxu1 %v5720_v4 }
  0xab   : > { %v1133_v10 = vpop.permute.xlu1 %1132  ;;  %1310 = vmatprep.subr.mxu1 %v1203_v60  ;;  %v1122_v11 = vpop.permute.xlu0 %1121  ;;  %v5387_v60 = vld [vmem:[%s6595_s3 + $0x4] ss:$8 sm:$0xf] }
  0xac   : > { %v1154_v12 = vsel %vm1138_vm3, %v1122_v11, %v1125_v50  ;;  %1311 = vmatpush1.msra.mxu1 %v1202_v59  ;;  %v1142_v24 = vsel %vm1138_vm3, %v1131_v55, %v1133_v10  ;;  %v1639_v59 = vrot.slane %v6000_v17, %v5881_v34 }
  0xad   : > { %v1200_v18 = vmul.f32 %v1163_v61, %v1154_v12  ;;  %5360 = vmatmul.mubr.msk.f32.gmra.mrb[6].mxu0 %vm365_vm1, %v5354_v37  ;;  %5369 = vmatmul.mubr.msk.f32.vlgmr.msra.gmra.mrb[0].mxu1 %vm365_vm1, %v5365_v9  ;;  %v1204_v38 = vmul.f32 %v1179_v22, %v1142_v24  ;;  %v5388_v61 = vld [vmem:[%s6595_s3 + $0x4] ss:$8 sm:$0xf0] }
  0xae   : > { %1297 = vmatprep.mubr.f32.mxu0 %v5720_v4  ;;  %1380 = vmatprep.mubr.f32.mxu1 %v5720_v4 }
  0xaf   : > { %v1137_v27 = vpop.permute.xlu1 %1136  ;;  %1234 = vmatpush1.msra.mxu0 %v1200_v18  ;;  %v1135_v28 = vpop.permute.xlu0 %1134  ;;  %v6068_v18 = vor.u32 %v5388_v61, %v5387_v60 }
  0xb0   : > { %v1145_v30 = vsel %vm1138_vm3, %v1137_v27, %v1122_v11  ;;  %v1143_v31 = vsel %vm1138_vm3, %v1133_v10, %v1135_v28  ;;  %v1144_v32 = vsel %vm1138_vm3, %v1135_v28, %v1137_v27  ;;  %v5409_v27 = vld [vmem:[%s6595_s3 + $0x5] ss:$8 sm:$0xf] }
  0xb1   : > { %v1207_v33 = vmul.f32 %v1191_v13, %v1145_v30  ;;  %v1205_v35 = vmul.f32 %v1183_v20, %v1143_v31  ;;  %v1206_v37 = vmul.f32 %v1187_v21, %v1144_v32  ;;  %5367 = vmatmul.mubr.msk.f32.vlgmr.msra.gmra.mrb[0].mxu0 %vm365_vm1, %v5365_v9  ;;  %5370 = vmatmul.mubr.msk.f32.gmra.mrb[4].mxu1 %vm365_vm1, %v5366_v23  ;;  %v5410_v28 = vld [vmem:[%s6595_s3 + $0x5] ss:$8 sm:$0xf0] }
  0xb2   : > { %1303 = vmatprep.mubr.f32.mxu0 %v5720_v4  ;;  %1528 = vmatprep.mubr.f32.mxu1 %v5720_v4  ;;  %v2305_v24 = vrot.slane %v6068_v18, %v5850_v14  ;;  %v5382_v30 = vld [vmem:[%s6593_s1 + $0x70] sm:$0xff]  ;;  %v2293_v31 = vrot.slane %v6068_v18, %v5860_v19  ;;  %v2301_v32 = vrot.slane %v6068_v18, %v5854_v16 }
  0xb3   : > { %v1579_v39 = vpop.permute.xlu1 %1578  ;;  %1387 = vmatprep.subr.mxu0 %v1205_v35  ;;  %1464 = vmatprep.subr.mxu1 %v1207_v33  ;;  %v1577_v40 = vpop.permute.xlu0 %1576 }
  0xb4   : > { %v1591_v41 = vsel %vm1590_vm4, %v1577_v40, %v1579_v39  ;;  %1388 = vmatpush1.msra.mxu0 %v1204_v38  ;;  %1465 = vmatpush1.msra.mxu1 %v1206_v37  ;;  %v2313_v37 = vrot.slane %v6068_v18, %v5874_v26  ;;  %v2333_v38 = vmul.f32 %v2305_v24, %v5774_v2  ;;  %v5431_v24 = vld [vmem:[%s6595_s3 + $0x6] ss:$8 sm:$0xf] }
  0xb5   : > { %v1653_v42 = vmul.f32 %v1619_v29, %v1591_v41  ;;  %5368 = vmatmul.mubr.msk.f32.gmra.mrb[4].mxu0 %vm365_vm1, %v5366_v23  ;;  %5373 = vmatmul.mubr.msk.f32.vlgmr.msra.gmra.mrb[2].mxu1 %vm365_vm1, %v5365_v9  ;;  %v2332_v41 = vmul.f32 %v2301_v32, %v5768_v0 }
  0xb6   : > { %1451 = vmatprep.mubr.f32.mxu0 %v5720_v4  ;;  %1534 = vmatprep.mubr.f32.mxu1 %v5720_v4  ;;  %v2335_v2 = vmul.f32 %v2313_v37, %v5790_v8 }
  0xb7   : > { %v1583_v45 = vpop.permute.xlu1 %1582  ;;  %1673 = vmatprep.subr.mxu0 %v1653_v42  ;;  %v1581_v46 = vpop.permute.xlu0 %1580 }
  0xb8   : > { %v1592_v47 = vsel %vm1590_vm4, %v1579_v39, %v1581_v46  ;;  %v1593_v48 = vsel %vm1590_vm4, %v1581_v46, %v1583_v45  ;;  %v2321_v39 = vrot.slane %v6068_v18, %v5872_v25 }
  0xb9   : > { %v1654_v49 = vmul.f32 %v1623_v43, %v1592_v47  ;;  %v1655_v50 = vmul.f32 %v1627_v44, %v1593_v48  ;;  %5371 = vmatmul.mubr.msk.f32.vlgmr.msra.gmra.mrb[2].mxu0 %vm365_vm1, %v5365_v9  ;;  %5374 = vmatmul.mubr.msk.f32.gmra.mrb[6].mxu1 %vm365_vm1, %v5366_v23  ;;  %v2309_v43 = vrot.slane %v6068_v18, %v5890_v36  ;;  %v5389_v47 = vld [vmem:[%s6593_s1 + $0x80] sm:$0xff] }
  0xba   : > { %1457 = vmatprep.mubr.f32.mxu0 %v5720_v4  ;;  %1808 = vmatprep.mubr.f32.mxu1 %v5720_v4  ;;  %v2337_v44 = vmul.f32 %v2321_v39, %v5784_v6 }
  0xbb   : > { %v1585_v53 = vpop.permute.xlu1 %1584  ;;  %1744 = vmatprep.subr.mxu1 %v1655_v50  ;;  %v1574_v54 = vpop.permute.xlu0 %1573 }
  0xbc   : > { %v1606_v55 = vsel %vm1590_vm4, %v1574_v54, %v1577_v40  ;;  %1745 = vmatpush1.msra.mxu1 %v1654_v49  ;;  %v1594_v63 = vsel %vm1590_vm4, %v1583_v45, %v1585_v53  ;;  %v6103_v40 = vor.u32 %v5410_v28, %v5409_v27  ;;  %v5432_v27 = vld [vmem:[%s6595_s3 + $0x6] ss:$8 sm:$0xf0] }
  0xbd   : > { %v1652_v57 = vmul.f32 %v1615_v51, %v1606_v55  ;;  %5372 = vmatmul.mubr.msk.f32.gmra.mrb[6].mxu0 %vm365_vm1, %v5366_v23  ;;  %5379 = vmatmul.mubr.msk.f32.vlgmr.msra.gmra.mrb[0].mxu1 %vm365_vm1, %v5377_v52  ;;  %v1656_v22 = vmul.f32 %v1631_v62, %v1594_v63  ;;  %v2297_v23 = vrot.slane %v6068_v18, %v5852_v15 }
  0xbe   : > { %1737 = vmatprep.mubr.f32.mxu0 %v5720_v4  ;;  %1950 = vmatprep.mubr.f32.mxu1 %v5720_v4  ;;  %v2853_v0 = vrot.slane %v6103_v40, %v5852_v15  ;;  %v2861_v45 = vrot.slane %v6103_v40, %v5850_v14  ;;  %v2849_v55 = vrot.slane %v6103_v40, %v5860_v19 }
  0xbf   : > { %v1589_v9 = vpop.permute.xlu1 %1588  ;;  %1674 = vmatpush1.msra.mxu0 %v1652_v57  ;;  %v1587_v10 = vpop.permute.xlu0 %1586  ;;  %v2331_v35 = vmul.f32 %v2297_v23, %v5776_v3  ;;  %v2330_v3 = vmul.f32 %v2293_v31, %v5770_v1  ;;  %v2877_v61 = vrot.slane %v6103_v40, %v5872_v25  ;;  %v2869_v62 = vrot.slane %v6103_v40, %v5874_v26  ;;  %v209_v23 = vld [vmem:[%s6594_s2 + $0x18] sm:$0xff] }
  0xc0   : > { %v1597_v11 = vsel %vm1590_vm4, %v1589_v9, %v1574_v54  ;;  %v1595_v12 = vsel %vm1590_vm4, %v1585_v53, %v1587_v10  ;;  %v1596_v13 = vsel %vm1590_vm4, %v1587_v10, %v1589_v9  ;;  %v2857_v54 = vrot.slane %v6103_v40, %v5854_v16  ;;  %v206_v10 = vld [vmem:[%s6594_s2] sm:$0xff] }
  0xc1   : > { %v1659_v20 = vmul.f32 %v1643_v56, %v1597_v11  ;;  %v1657_v21 = vmul.f32 %v1635_v58, %v1595_v12  ;;  %v1658_v17 = vmul.f32 %v1639_v59, %v1596_v13  ;;  %5378 = vmatmul.mubr.msk.f32.vlgmr.msra.gmra.mrb[0].mxu0 %vm365_vm1, %v5377_v52  ;;  %v5392_v56 = vld [vmem:[%s6593_s1 + $0x98] sm:$0xff]  ;;  %v207_v11 = vld [vmem:[%s6594_s2 + $0x8] sm:$0xff]  ;;  %v2873_v32 = vrot.slane %v6103_v40, %v5881_v34 }
  0xc2   : > { %1879 = vmatprep.mubr.f32.mxu0 %v5720_v4 }
  0xc3   : > { %1815 = vmatprep.subr.mxu0 %v1657_v21  ;;  %1886 = vmatprep.subr.mxu1 %v1659_v20  ;;  %v6091_v29 = vpop.permute.xlu0 %2809  ;;  %v6093_v33 = vpop.permute.xlu1 %2811 }
  0xc4   : > { %1816 = vmatpush1.msra.mxu0 %v1656_v22  ;;  %1887 = vmatpush1.msra.mxu1 %v1658_v17  ;;  %v2825_v8 = vsel %vm2823_vm5, %v6091_v29, %v6093_v33 }
  0xc5   : > { %5380 = vmatmul.mubr.msk.f32.vlgmr.msra.gmra.mrb[2].mxu0 %vm365_vm1, %v5377_v52  ;;  %5381 = vmatmul.mubr.msk.f32.vlgmr.msra.gmra.mrb[2].mxu1 %vm365_vm1, %v5377_v52  ;;  %v5390_v52 = vld [vmem:[%s6593_s1 + $0x88] sm:$0xff] }
  0xc6   : > { %1985 = vmatprep.subr.mxu0 %v1653_v42  ;;  %2056 = vmatprep.subr.mxu1 %v1655_v50  ;;  %v2317_v42 = vrot.slane %v6068_v18, %v5881_v34  ;;  %v2887_v50 = vmul.f32 %v2853_v0, %v2825_v8  ;;  %v5728_v18 = vmov 0   ;;  %v5412_v0 = vld [vmem:[%s6593_s1 + $0xa8] sm:$0xff] }
  0xc7   : > { %1986 = vmatpush1.msra.mxu0 %v1652_v57  ;;  %2057 = vmatpush1.msra.mxu1 %v1654_v49  ;;  %v2814_v1 = vpop.permute.xlu0 %2813  ;;  %v6121_v46 = vpop.permute.xlu1 %2815  ;;  %v2334_v49 = vmul.f32 %v2309_v43, %v5782_v5  ;;  %v5391_v5 = vld [vmem:[%s6593_s1 + $0x90] sm:$0xff] }
  0xc8   : > { %2127 = vmatprep.subr.mxu0 %v1657_v21  ;;  %2198 = vmatprep.subr.mxu1 %v1659_v20  ;;  %v2827_v6 = vsel %vm2823_vm5, %v2814_v1, %v6121_v46  ;;  %v2336_v48 = vmul.f32 %v2317_v42, %v5788_v7  ;;  %v2826_v59 = vsel %vm2823_vm5, %v6093_v33, %v2814_v1 }
  0xc9   : > { %2049 = vmatprep.mubr.f32.mxu0 %v5720_v4  ;;  %2120 = vmatprep.mubr.f32.mxu1 %v5720_v4  ;;  %v2889_v51 = vmul.f32 %v2861_v45, %v2827_v6  ;;  %v2888_v12 = vmul.f32 %v2857_v54, %v2826_v59  ;;  %v5413_v45 = vld [vmem:[%s6593_s1 + $0xb0] sm:$0xff] }
  0xca   : > { %5383 = vmatmul.mubr.msk.f32.vlgmr.msra.gmra.mrb[8].mxu0 %vm365_vm1, %v5382_v30  ;;  %5384 = vmatmul.mubr.msk.f32.vlgmr.msra.gmra.mrb[8].mxu1 %vm365_vm1, %v5382_v30 }
  0xcb   : > { %2128 = vmatpush1.msra.mxu0 %v1656_v22  ;;  %2199 = vmatpush1.msra.mxu1 %v1658_v17  ;;  %v6144_v7 = vpop.permute.xlu1 %2817  ;;  %v2808_v53 = vpop.permute.xlu0 %2807  ;;  %v208_v22 = vld [vmem:[%s6594_s2 + $0x10] sm:$0xff] }
  0xcc   : > { %2191 = vmatprep.mubr.f32.mxu0 %v5720_v4  ;;  %2262 = vmatprep.mubr.f32.mxu1 %v5720_v4  ;;  %v2824_v60 = vsel %vm2823_vm5, %v2808_v53, %v6091_v29  ;;  %v2865_v29 = vrot.slane %v6103_v40, %v5890_v36  ;;  %v2828_v39 = vsel %vm2823_vm5, %v6121_v46, %v6144_v7 }
  0xcd   : > { %2387 = vmatprep.subr.mxu0 %v2331_v35  ;;  %2476 = vmatprep.subr.mxu1 %v2333_v38  ;;  %v2886_v13 = vmul.f32 %v2849_v55, %v2824_v60 }
  0xce   : > { %5385 = vmatmul.mubr.msk.f32.vlgmr.msra.gmra.mrb[10].mxu0 %vm365_vm1, %v5382_v30  ;;  %5386 = vmatmul.mubr.msk.f32.vlgmr.msra.gmra.mrb[10].mxu1 %vm365_vm1, %v5382_v30  ;;  %v6205_v30 = vor.u32 %v5432_v27, %v5431_v24  ;;  %v2890_v42 = vmul.f32 %v2865_v29, %v2828_v39  ;;  %v5465_v27 = vld [vmem:[%s6595_s3 + $0x40] ss:$8 sm:$0xf] }
  0xcf   : > { %2388 = vmatpush1.msra.mxu0 %v2330_v3  ;;  %2451 = vmatprep.mubr.f32.mxu0 %v5720_v4  ;;  %v2822_v57 = vpop.permute.xlu1 %2821  ;;  %v2820_v58 = vpop.permute.xlu0 %2819 }
  0xd0   : > { %2477 = vmatpush1.msra.mxu1 %v2332_v41  ;;  %2540 = vmatprep.mubr.f32.mxu1 %v5720_v4  ;;  %v2840_v63 = vsel %vm2823_vm5, %v2822_v57, %v2808_v53  ;;  %v2829_v9 = vsel %vm2823_vm5, %v6144_v7, %v2820_v58  ;;  %v2830_v33 = vsel %vm2823_vm5, %v2820_v58, %v2822_v57  ;;  %v5411_v41 = vld [vmem:[%s6593_s1 + $0xa0] sm:$0xff] }
  0xd1   : > { %2565 = vmatprep.subr.mxu0 %v2335_v2  ;;  %2654 = vmatprep.subr.mxu1 %v2337_v44  ;;  %v2893_v20 = vmul.f32 %v2877_v61, %v2840_v63  ;;  %v2891_v21 = vmul.f32 %v2869_v62, %v2829_v9  ;;  %v3409_v35 = vrot.slane %v6205_v30, %v5852_v15 }
  0xd2   : > { %5393 = vmatmul.mubr.msk.f32.vlgmr.msra.gmra.mrb[0].mxu0 %vm365_vm1, %v5389_v47  ;;  %5397 = vmatmul.mubr.msk.f32.vlgmr.msra.gmra.mrb[0].mxu1 %vm365_vm1, %v5389_v47  ;;  %v3417_v38 = vrot.slane %v6205_v30, %v5850_v14  ;;  %v2892_v2 = vmul.f32 %v2873_v32, %v2830_v33  ;;  %v3413_v8 = vrot.slane %v6205_v30, %v5854_v16 }
  0xd3   : > { %2457 = vmatprep.mubr.f32.mxu0 %v5720_v4  ;;  %2546 = vmatprep.mubr.f32.mxu1 %v5720_v4  ;;  %v3368_v17 = vpop.permute.xlu1 %3367  ;;  %v3366_v28 = vpop.permute.xlu0 %3365  ;;  %v3405_v6 = vrot.slane %v6205_v30, %v5860_v19  ;;  %v3429_v62 = vrot.slane %v6205_v30, %v5881_v34  ;;  %v3421_v9 = vrot.slane %v6205_v30, %v5890_v36 }
  0xd4   : > { %2655 = vmatpush1.msra.mxu1 %v2336_v48  ;;  %2566 = vmatpush1.msra.mxu0 %v2334_v49  ;;  %v3381_v3 = vsel %vm3379_vm6, %v3366_v28, %v3368_v17 }
  0xd5   : > { %2943 = vmatprep.subr.mxu0 %v2887_v50  ;;  %3032 = vmatprep.subr.mxu1 %v2889_v51  ;;  %v6235_v43 = vmul.f32 %v3409_v35, %v3381_v3  ;;  %v3433_v51 = vrot.slane %v6205_v30, %v5872_v25  ;;  %v5438_v35 = vld [vmem:[%s6593_s1 + $0xd0] sm:$0xff] }
  0xd6   : > { %5394 = vmatmul.mubr.msk.f32.gmra.mrb[4].mxu0 %vm365_vm1, %v5390_v52  ;;  %5398 = vmatmul.mubr.msk.f32.gmra.mrb[4].mxu1 %vm365_vm1, %v5390_v52 }
  0xd7   : > { %2463 = vmatprep.mubr.f32.mxu0 %v5720_v4  ;;  %2552 = vmatprep.mubr.f32.mxu1 %v5720_v4  ;;  %v6211_v31 = vpop.permute.xlu1 %3371  ;;  %v3370_v37 = vpop.permute.xlu0 %3369 }
  0xd8   : > { %5709 = vset.pattern.permute.xlu0 %v5728_v18  ;;  %5710 = vset.pattern.permute.xlu1 %v5728_v18  ;;  %v3383_v40 = vsel %vm3379_vm6, %v3370_v37, %v6211_v31  ;;  %v3382_v49 = vsel %vm3379_vm6, %v3368_v17, %v3370_v37  ;;  %v5443_v18 = vld [vmem:[%s6595_s3 + $0x7] ss:$8 sm:$0xf] }
  0xd9   : > { %212 = vperm.xlu0 %5709, %v206_v10   ;;  %217 = vperm.xlu1 %5710, %v207_v11   ;;  %v6237_v44 = vmul.f32 %v3417_v38, %v3383_v40  ;;  %v3444_v54 = vmul.f32 %v3413_v8, %v3382_v49 }
  0xda   : > { %5395 = vmatmul.mubr.msk.f32.gmra.mrb[8].mxu0 %vm365_vm1, %v5391_v5  ;;  %5399 = vmatmul.mubr.msk.f32.gmra.mrb[8].mxu1 %vm365_vm1, %v5391_v5 }
  0xdb   : > { %2469 = vmatprep.mubr.f32.mxu0 %v5720_v4  ;;  %2558 = vmatprep.mubr.f32.mxu1 %v5720_v4  ;;  %v3374_v1 = vpop.permute.xlu1 %3373  ;;  %v3364_v46 = vpop.permute.xlu0 %3363 }
  0xdc   : > { %v3380_v50 = vsel %vm3379_vm6, %v3364_v46, %v3366_v28  ;;  %v3384_v11 = vsel %vm3379_vm6, %v6211_v31, %v3374_v1  ;;  %v5466_v28 = vld [vmem:[%s6595_s3 + $0x40] ss:$8 sm:$0xf0] }
  0xdd   : > { %222 = vperm.xlu1 %5710, %v208_v22   ;;  %227 = vperm.xlu0 %5709, %v209_v23   ;;  %v3442_v55 = vmul.f32 %v3405_v6, %v3380_v50  ;;  %v3446_v17 = vmul.f32 %v3421_v9, %v3384_v11  ;;  %v6356_v38 = vor.u32 %v5466_v28, %v5465_v27  ;;  %v5448_v9 = vld [vmem:[%s6593_s1 + $0xf8] sm:$0xff] }
  0xde   : > { %5396 = vmatmul.mubr.msk.f32.gmra.mrb[12].mxu0 %vm365_vm1, %v5392_v56  ;;  %5400 = vmatmul.mubr.msk.f32.gmra.mrb[12].mxu1 %vm365_vm1, %v5392_v56 }
  0xdf   : > { %2629 = vmatprep.mubr.f32.mxu0 %v5720_v4  ;;  %2718 = vmatprep.mubr.f32.mxu1 %v5720_v4  ;;  %v3378_v48 = vpop.permute.xlu1 %3377  ;;  %v3376_v7 = vpop.permute.xlu0 %3375  ;;  %v4677_v8 = vrot.slane %v6356_v38, %v5852_v15 }
  0xe0   : > { %v3385_v53 = vsel %vm3379_vm6, %v3374_v1, %v3376_v7  ;;  %v3386_v63 = vsel %vm3379_vm6, %v3376_v7, %v3378_v48 }
  0xe2   : > { %5401 = vmatmul.mubr.msk.f32.vlgmr.msra.gmra.mrb[2].mxu0 %vm365_vm1, %v5389_v47  ;;  %5405 = vmatmul.mubr.msk.f32.vlgmr.msra.gmra.mrb[2].mxu1 %vm365_vm1, %v5389_v47  ;;  %v5414_v47 = vld [vmem:[%s6593_s1 + $0xb8] sm:$0xff] }
  0xe3   : > { %2944 = vmatpush1.msra.mxu0 %v2886_v13  ;;  %3033 = vmatpush1.msra.mxu1 %v2888_v12  ;;  %v6282_v58 = vpop.permute.xlu1 %4079  ;;  %v6286_v59 = vpop.permute.xlu0 %4077  ;;  %v5433_v12 = vld [vmem:[%s6593_s1 + $0xc0] sm:$0xff]  ;;  %v3448_v13 = vmul.f32 %v3429_v62, %v3386_v63  ;;  %v4681_v62 = vrot.slane %v6356_v38, %v5854_v16  ;;  %v4673_v63 = vrot.slane %v6356_v38, %v5860_v19 }
  0xe4   : > { %2635 = vmatprep.mubr.f32.mxu0 %v5720_v4  ;;  %2724 = vmatprep.mubr.f32.mxu1 %v5720_v4  ;;  %v4093_v29 = vsel %vm4091_vm7, %v6286_v59, %v6282_v58 }
  0xe5   : > { %3210 = vmatprep.subr.mxu1 %v2893_v20  ;;  %3121 = vmatprep.subr.mxu0 %v2891_v21  ;;  %v5444_v20 = vld [vmem:[%s6595_s3 + $0x7] ss:$8 sm:$0xf0] }
  0xe6   : > { %5402 = vmatmul.mubr.msk.f32.gmra.mrb[6].mxu0 %vm365_vm1, %v5390_v52  ;;  %5406 = vmatmul.mubr.msk.f32.gmra.mrb[6].mxu1 %vm365_vm1, %v5390_v52  ;;  %v3425_v52 = vrot.slane %v6205_v30, %v5874_v26  ;;  %v6326_v22 = vor.u32 %v5444_v20, %v5443_v18 }
  0xe7   : > { %2641 = vmatprep.mubr.f32.mxu0 %v5720_v4  ;;  %2730 = vmatprep.mubr.f32.mxu1 %v5720_v4  ;;  %v6296_v60 = vpop.permute.xlu1 %4083  ;;  %v4082_v61 = vpop.permute.xlu0 %4081 }
  0xe8   : > { %v6280_v57 = vmul.f32 %v3425_v52, %v3385_v53  ;;  %v4129_v30 = vrot.slane %v6326_v22, %v5850_v14  ;;  %v4121_v31 = vrot.slane %v6326_v22, %v5852_v15  ;;  %v4095_v32 = vsel %vm4091_vm7, %v4082_v61, %v6296_v60  ;;  %v5445_v53 = vld [vmem:[%s6593_s1 + $0xe0] sm:$0xff] }
  0xe9   : > { %v4125_v33 = vrot.slane %v6326_v22, %v5854_v16  ;;  %v4117_v3 = vrot.slane %v6326_v22, %v5860_v19  ;;  %v4137_v40 = vrot.slane %v6326_v22, %v5874_v26  ;;  %v4701_v16 = vrot.slane %v6356_v38, %v5872_v25 }
  0xea   : > { %5403 = vmatmul.mubr.msk.f32.gmra.mrb[10].mxu0 %vm365_vm1, %v5391_v5  ;;  %5407 = vmatmul.mubr.msk.f32.gmra.mrb[10].mxu1 %vm365_vm1, %v5391_v5  ;;  %v3396_v5 = vsel %vm3379_vm6, %v3378_v48, %v3364_v46  ;;  %v4141_v46 = vrot.slane %v6326_v22, %v5881_v34  ;;  %v4685_v48 = vrot.slane %v6356_v38, %v5850_v14 }
  0xeb   : > { %2736 = vmatprep.mubr.f32.mxu1 %v5720_v4  ;;  %2647 = vmatprep.mubr.f32.mxu0 %v5720_v4  ;;  %v6307_v10 = vpop.permute.xlu1 %4085  ;;  %v4076_v21 = vpop.permute.xlu0 %4075  ;;  %v4693_v19 = vrot.slane %v6356_v38, %v5874_v26  ;;  %v4689_v26 = vrot.slane %v6356_v38, %v5890_v36 }
  0xec   : > { %v4096_v15 = vsel %vm4091_vm7, %v6296_v60, %v6307_v10  ;;  %v5447_v60 = vld [vmem:[%s6593_s1 + $0xf0] sm:$0xff] }
  0xee   : > { %5404 = vmatmul.mubr.msk.f32.gmra.mrb[14].mxu0 %vm365_vm1, %v5392_v56  ;;  %5408 = vmatmul.mubr.msk.f32.gmra.mrb[14].mxu1 %vm365_vm1, %v5392_v56  ;;  %v6278_v56 = vmul.f32 %v3433_v51, %v3396_v5 }
  0xef   : > { %3007 = vmatprep.mubr.f32.mxu0 %v5720_v4  ;;  %3096 = vmatprep.mubr.f32.mxu1 %v5720_v4  ;;  %v4088_v23 = vpop.permute.xlu0 %4087  ;;  %v4090_v24 = vpop.permute.xlu1 %4089 }
  0xf0   : > { %v4108_v1 = vsel %vm4091_vm7, %v4090_v24, %v4076_v21  ;;  %v4098_v50 = vsel %vm4091_vm7, %v4088_v23, %v4090_v24 }
  0xf2   : > { %5415 = vmatmul.mubr.msk.f32.vlgmr.msra.gmra.mrb[0].mxu0 %vm365_vm1, %v5411_v41  ;;  %5419 = vmatmul.mubr.msk.f32.vlgmr.msra.gmra.mrb[0].mxu1 %vm365_vm1, %v5411_v41 }
  0xf3   : > { %3122 = vmatpush1.msra.mxu0 %v2890_v42  ;;  %3013 = vmatprep.mubr.f32.mxu0 %v5720_v4  ;;  %v6354_v37 = vpop.permute.xlu0 %4633  ;;  %v6358_v39 = vpop.permute.xlu1 %4635  ;;  %v4157_v42 = vmul.f32 %v4129_v30, %v4095_v32  ;;  %v5470_v32 = vld [vmem:[%s6593_s1 + $0x118] sm:$0xff] }
  0xf4   : > { %3102 = vmatprep.mubr.f32.mxu1 %v5720_v4  ;;  %3211 = vmatpush1.msra.mxu1 %v2892_v2  ;;  %v4094_v2 = vsel %vm4091_vm7, %v6282_v58, %v4082_v61  ;;  %v4649_v14 = vsel %vm4647_vm8, %v6354_v37, %v6358_v39  ;;  %v5446_v58 = vld [vmem:[%s6593_s1 + $0xe8] sm:$0xff] }
  0xf5   : > { %3463 = vmatprep.subr.mxu0 %v6235_v43  ;;  %3534 = vmatprep.subr.mxu1 %v6237_v44  ;;  %v4156_v6 = vmul.f32 %v4125_v33, %v4094_v2 }
  0xf6   : > { %5416 = vmatmul.mubr.msk.f32.gmra.mrb[4].mxu0 %vm365_vm1, %v5412_v0  ;;  %5420 = vmatmul.mubr.msk.f32.gmra.mrb[4].mxu1 %vm365_vm1, %v5412_v0 }
  0xf7   : > { %3019 = vmatprep.mubr.f32.mxu0 %v5720_v4  ;;  %3108 = vmatprep.mubr.f32.mxu1 %v5720_v4  ;;  %v4638_v52 = vpop.permute.xlu0 %4637  ;;  %v6390_v7 = vpop.permute.xlu1 %4639 }
  0xf8   : > { %v4651_v5 = vsel %vm4647_vm8, %v4638_v52, %v6390_v7 }
  0xfa   : > { %5417 = vmatmul.mubr.msk.f32.gmra.mrb[8].mxu0 %vm365_vm1, %v5413_v45  ;;  %5421 = vmatmul.mubr.msk.f32.gmra.mrb[8].mxu1 %vm365_vm1, %v5413_v45 }
  0xfb   : > { %3025 = vmatprep.mubr.f32.mxu0 %v5720_v4  ;;  %3114 = vmatprep.mubr.f32.mxu1 %v5720_v4  ;;  %v4632_v61 = vpop.permute.xlu0 %4631 }
  0xfe   : > { %5418 = vmatmul.mubr.msk.f32.gmra.mrb[12].mxu0 %vm365_vm1, %v5414_v47  ;;  %5422 = vmatmul.mubr.msk.f32.gmra.mrb[12].mxu1 %vm365_vm1, %v5414_v47 }
  0xff   : > { %3185 = vmatprep.mubr.f32.mxu0 %v5720_v4  ;;  %3274 = vmatprep.mubr.f32.mxu1 %v5720_v4 }
 0x100   : > { %v4644_v11 = vpop.permute.xlu0 %4643 }
 0x102   : > { %5423 = vmatmul.mubr.msk.f32.vlgmr.msra.gmra.mrb[2].mxu0 %vm365_vm1, %v5411_v41  ;;  %5427 = vmatmul.mubr.msk.f32.vlgmr.msra.gmra.mrb[2].mxu1 %vm365_vm1, %v5411_v41  ;;  %v4145_v41 = vrot.slane %v6326_v22, %v5872_v25  ;;  %v4697_v25 = vrot.slane %v6356_v38, %v5881_v34  ;;  %v5467_v34 = vld [vmem:[%s6593_s1 + $0x100] sm:$0xff] }
 0x103   : > { %3464 = vmatpush1.msra.mxu0 %v3442_v55  ;;  %3535 = vmatpush1.msra.mxu1 %v3444_v54 }
 0x104   : > { %3191 = vmatprep.mubr.f32.mxu0 %v5720_v4  ;;  %3280 = vmatprep.mubr.f32.mxu1 %v5720_v4  ;;  %v4161_v51 = vmul.f32 %v4145_v41, %v4108_v1 }
 0x105   : > { %3676 = vmatprep.subr.mxu1 %v6278_v56  ;;  %3605 = vmatprep.subr.mxu0 %v6280_v57 }
 0x106   : > { %5424 = vmatmul.mubr.msk.f32.gmra.mrb[6].mxu0 %vm365_vm1, %v5412_v0  ;;  %5428 = vmatmul.mubr.msk.f32.gmra.mrb[6].mxu1 %vm365_vm1, %v5412_v0  ;;  %v4097_v0 = vsel %vm4091_vm7, %v6307_v10, %v4088_v23 }
 0x107   : > { %3197 = vmatprep.mubr.f32.mxu0 %v5720_v4  ;;  %3286 = vmatprep.mubr.f32.mxu1 %v5720_v4  ;;  %v4159_v49 = vmul.f32 %v4137_v40, %v4097_v0 }
 0x10a   : > { %5425 = vmatmul.mubr.msk.f32.gmra.mrb[10].mxu0 %vm365_vm1, %v5413_v45  ;;  %5429 = vmatmul.mubr.msk.f32.gmra.mrb[10].mxu1 %vm365_vm1, %v5413_v45  ;;  %v4133_v45 = vrot.slane %v6326_v22, %v5890_v36  ;;  %v5468_v36 = vld [vmem:[%s6593_s1 + $0x108] sm:$0xff] }
 0x10b   : > { %3203 = vmatprep.mubr.f32.mxu0 %v5720_v4  ;;  %3292 = vmatprep.mubr.f32.mxu1 %v5720_v4 }
 0x10e   : > { %5426 = vmatmul.mubr.msk.f32.gmra.mrb[14].mxu0 %vm365_vm1, %v5414_v47  ;;  %5430 = vmatmul.mubr.msk.f32.gmra.mrb[14].mxu1 %vm365_vm1, %v5414_v47 }
 0x10f   : > { %3527 = vmatprep.mubr.f32.mxu0 %v5720_v4  ;;  %3598 = vmatprep.mubr.f32.mxu1 %v5720_v4 }
 0x112   : > { %5434 = vmatmul.mubr.msk.f32.vlgmr.msra.gmra.mrb[0].mxu0 %vm365_vm1, %v5433_v12  ;;  %5435 = vmatmul.mubr.msk.f32.vlgmr.msra.gmra.mrb[0].mxu1 %vm365_vm1, %v5433_v12 }
 0x113   : > { %3606 = vmatpush1.msra.mxu0 %v3446_v17  ;;  %3677 = vmatpush1.msra.mxu1 %v3448_v13 }
 0x114   : > { %3846 = vmatprep.subr.mxu1 %v6237_v44  ;;  %3775 = vmatprep.subr.mxu0 %v6235_v43  ;;  %v4092_v43 = vsel %vm4091_vm7, %v4076_v21, %v6286_v59  ;;  %v4155_v44 = vmul.f32 %v4121_v31, %v4093_v29  ;;  %v4642_v59 = vpop.permute.xlu1 %4641  ;;  %v5469_v31 = vld [vmem:[%s6593_s1 + $0x110] sm:$0xff] }
 0x115   : > { %3669 = vmatprep.mubr.f32.mxu0 %v5720_v4  ;;  %3740 = vmatprep.mubr.f32.mxu1 %v5720_v4  ;;  %v4154_v47 = vmul.f32 %v4117_v3, %v4092_v43  ;;  %v4653_v20 = vsel %vm4647_vm8, %v4642_v59, %v4644_v11  ;;  %v4652_v27 = vsel %vm4647_vm8, %v6390_v7, %v4642_v59 }
 0x116   : > { %5436 = vmatmul.mubr.msk.f32.vlgmr.msra.gmra.mrb[2].mxu0 %vm365_vm1, %v5433_v12  ;;  %5437 = vmatmul.mubr.msk.f32.vlgmr.msra.gmra.mrb[2].mxu1 %vm365_vm1, %v5433_v12  ;;  %v4650_v12 = vsel %vm4647_vm8, %v6358_v39, %v4638_v52  ;;  %v4715_v23 = vmul.f32 %v4693_v19, %v4653_v20  ;;  %v4714_v30 = vmul.f32 %v4689_v26, %v4652_v27 }
 0x117   : > { %3776 = vmatpush1.msra.mxu0 %v3442_v55  ;;  %3847 = vmatpush1.msra.mxu1 %v3444_v54  ;;  %v4160_v54 = vmul.f32 %v4141_v46, %v4098_v50  ;;  %v4158_v55 = vmul.f32 %v4133_v45, %v4096_v15  ;;  %v4712_v21 = vmul.f32 %v4681_v62, %v4650_v12 }
 0x118   : > { %3988 = vmatprep.subr.mxu1 %v6278_v56  ;;  %3917 = vmatprep.subr.mxu0 %v6280_v57  ;;  %v4711_v56 = vmul.f32 %v4677_v8, %v4649_v14  ;;  %v4713_v57 = vmul.f32 %v4685_v48, %v4651_v5  ;;  %v4646_v10 = vpop.permute.xlu1 %4645 }
 0x119   : > { %3839 = vmatprep.mubr.f32.mxu0 %v5720_v4  ;;  %3910 = vmatprep.mubr.f32.mxu1 %v5720_v4  ;;  %v4664_v18 = vsel %vm4647_vm8, %v4646_v10, %v4632_v61  ;;  %v4654_v24 = vsel %vm4647_vm8, %v4644_v11, %v4646_v10 }
 0x11a   : > { %5439 = vmatmul.mubr.msk.f32.vlgmr.msra.gmra.mrb[8].mxu0 %vm365_vm1, %v5438_v35  ;;  %5440 = vmatmul.mubr.msk.f32.vlgmr.msra.gmra.mrb[8].mxu1 %vm365_vm1, %v5438_v35  ;;  %v4717_v22 = vmul.f32 %v4701_v16, %v4664_v18  ;;  %v4716_v28 = vmul.f32 %v4697_v25, %v4654_v24 }
 0x11b   : > { %3918 = vmatpush1.msra.mxu0 %v3446_v17  ;;  %3989 = vmatpush1.msra.mxu1 %v3448_v13  ;;  %v4648_v13 = vsel %vm4647_vm8, %v4632_v61, %v6354_v37 }
 0x11c   : > { %4211 = vmatprep.subr.mxu0 %v4155_v44  ;;  %4052 = vmatprep.mubr.f32.mxu1 %v5720_v4  ;;  %v4710_v17 = vmul.f32 %v4673_v63, %v4648_v13 }
 0x11d   : > { %4300 = vmatprep.subr.mxu1 %v4157_v42  ;;  %3981 = vmatprep.mubr.f32.mxu0 %v5720_v4 }
 0x11e   : > { %5441 = vmatmul.mubr.msk.f32.vlgmr.msra.gmra.mrb[10].mxu0 %vm365_vm1, %v5438_v35  ;;  %5442 = vmatmul.mubr.msk.f32.vlgmr.msra.gmra.mrb[10].mxu1 %vm365_vm1, %v5438_v35 }
 0x11f   : > { %4212 = vmatpush1.msra.mxu0 %v4154_v47  ;;  %4301 = vmatpush1.msra.mxu1 %v4156_v6 }
 0x120   : > { %4275 = vmatprep.mubr.f32.mxu0 %v5720_v4  ;;  %4364 = vmatprep.mubr.f32.mxu1 %v5720_v4 }
 0x121   : > { %4389 = vmatprep.subr.mxu0 %v4159_v49  ;;  %4478 = vmatprep.subr.mxu1 %v4161_v51 }
 0x122   : > { %5449 = vmatmul.mubr.msk.f32.vlgmr.msra.gmra.mrb[0].mxu0 %vm365_vm1, %v5445_v53  ;;  %5453 = vmatmul.mubr.msk.f32.vlgmr.msra.gmra.mrb[0].mxu1 %vm365_vm1, %v5445_v53 }
 0x123   : > { %4390 = vmatpush1.msra.mxu0 %v4158_v55  ;;  %4281 = vmatprep.mubr.f32.mxu0 %v5720_v4 }
 0x124   : > { %4370 = vmatprep.mubr.f32.mxu1 %v5720_v4  ;;  %4479 = vmatpush1.msra.mxu1 %v4160_v54 }
 0x125   : > { %4767 = vmatprep.subr.mxu0 %v4711_v56  ;;  %4856 = vmatprep.subr.mxu1 %v4713_v57 }
 0x126   : > { %5450 = vmatmul.mubr.msk.f32.gmra.mrb[4].mxu0 %vm365_vm1, %v5446_v58  ;;  %5454 = vmatmul.mubr.msk.f32.gmra.mrb[4].mxu1 %vm365_vm1, %v5446_v58 }
 0x127   : > { %4287 = vmatprep.mubr.f32.mxu0 %v5720_v4  ;;  %4376 = vmatprep.mubr.f32.mxu1 %v5720_v4 }
 0x12a   : > { %5451 = vmatmul.mubr.msk.f32.gmra.mrb[8].mxu0 %vm365_vm1, %v5447_v60  ;;  %5455 = vmatmul.mubr.msk.f32.gmra.mrb[8].mxu1 %vm365_vm1, %v5447_v60 }
 0x12b   : > { %4293 = vmatprep.mubr.f32.mxu0 %v5720_v4  ;;  %4382 = vmatprep.mubr.f32.mxu1 %v5720_v4 }
 0x12e   : > { %5452 = vmatmul.mubr.msk.f32.gmra.mrb[12].mxu0 %vm365_vm1, %v5448_v9  ;;  %5456 = vmatmul.mubr.msk.f32.gmra.mrb[12].mxu1 %vm365_vm1, %v5448_v9 }
 0x12f   : > { %4453 = vmatprep.mubr.f32.mxu0 %v5720_v4  ;;  %4542 = vmatprep.mubr.f32.mxu1 %v5720_v4 }
 0x132   : > { %5457 = vmatmul.mubr.msk.f32.vlgmr.msra.gmra.mrb[2].mxu0 %vm365_vm1, %v5445_v53  ;;  %5461 = vmatmul.mubr.msk.f32.vlgmr.msra.gmra.mrb[2].mxu1 %vm365_vm1, %v5445_v53 }
 0x133   : > { %4768 = vmatpush1.msra.mxu0 %v4710_v17  ;;  %4857 = vmatpush1.msra.mxu1 %v4712_v21 }
 0x134   : > { %4459 = vmatprep.mubr.f32.mxu0 %v5720_v4  ;;  %4548 = vmatprep.mubr.f32.mxu1 %v5720_v4 }
 0x135   : > { %5034 = vmatprep.subr.mxu1 %v4717_v22  ;;  %4945 = vmatprep.subr.mxu0 %v4715_v23 }
 0x136   : > { %5458 = vmatmul.mubr.msk.f32.gmra.mrb[6].mxu0 %vm365_vm1, %v5446_v58  ;;  %5462 = vmatmul.mubr.msk.f32.gmra.mrb[6].mxu1 %vm365_vm1, %v5446_v58 }
 0x137   : > { %4465 = vmatprep.mubr.f32.mxu0 %v5720_v4  ;;  %4554 = vmatprep.mubr.f32.mxu1 %v5720_v4 }
 0x13a   : > { %5459 = vmatmul.mubr.msk.f32.gmra.mrb[10].mxu0 %vm365_vm1, %v5447_v60  ;;  %5463 = vmatmul.mubr.msk.f32.gmra.mrb[10].mxu1 %vm365_vm1, %v5447_v60 }
 0x13b   : > { %4560 = vmatprep.mubr.f32.mxu1 %v5720_v4  ;;  %4471 = vmatprep.mubr.f32.mxu0 %v5720_v4 }
 0x13e   : > { %5460 = vmatmul.mubr.msk.f32.gmra.mrb[14].mxu0 %vm365_vm1, %v5448_v9  ;;  %5464 = vmatmul.mubr.msk.f32.gmra.mrb[14].mxu1 %vm365_vm1, %v5448_v9 }
 0x13f   : > { %4831 = vmatprep.mubr.f32.mxu0 %v5720_v4  ;;  %4920 = vmatprep.mubr.f32.mxu1 %v5720_v4 }
 0x142   : > { %5471 = vmatmul.mubr.msk.f32.vlgmr.msra.gmra.mrb[0].mxu0 %vm365_vm1, %v5467_v34  ;;  %5475 = vmatmul.mubr.msk.f32.vlgmr.msra.gmra.mrb[0].mxu1 %vm365_vm1, %v5467_v34 }
 0x143   : > { %4946 = vmatpush1.msra.mxu0 %v4714_v30  ;;  %4837 = vmatprep.mubr.f32.mxu0 %v5720_v4 }
 0x144   : > { %4926 = vmatprep.mubr.f32.mxu1 %v5720_v4  ;;  %5035 = vmatpush1.msra.mxu1 %v4716_v28 }
 0x146   : > { %5472 = vmatmul.mubr.msk.f32.gmra.mrb[4].mxu0 %vm365_vm1, %v5468_v36  ;;  %5476 = vmatmul.mubr.msk.f32.gmra.mrb[4].mxu1 %vm365_vm1, %v5468_v36 }
 0x147   : > { %4843 = vmatprep.mubr.f32.mxu0 %v5720_v4  ;;  %4932 = vmatprep.mubr.f32.mxu1 %v5720_v4 }
 0x14a   : > { %5473 = vmatmul.mubr.msk.f32.gmra.mrb[8].mxu0 %vm365_vm1, %v5469_v31  ;;  %5477 = vmatmul.mubr.msk.f32.gmra.mrb[8].mxu1 %vm365_vm1, %v5469_v31 }
 0x14b   : > { %4849 = vmatprep.mubr.f32.mxu0 %v5720_v4  ;;  %4938 = vmatprep.mubr.f32.mxu1 %v5720_v4 }
 0x14e   : > { %5474 = vmatmul.mubr.msk.f32.gmra.mrb[12].mxu0 %vm365_vm1, %v5470_v32  ;;  %5478 = vmatmul.mubr.msk.f32.gmra.mrb[12].mxu1 %vm365_vm1, %v5470_v32 }
 0x14f   : > { %5009 = vmatprep.mubr.f32.mxu0 %v5720_v4  ;;  %5098 = vmatprep.mubr.f32.mxu1 %v5720_v4 }
 0x152   : > { %5479 = vmatmul.mubr.msk.f32.vlgmr.msra.gmra.mrb[2].mxu0 %vm365_vm1, %v5467_v34  ;;  %5483 = vmatmul.mubr.msk.f32.vlgmr.msra.gmra.mrb[2].mxu1 %vm365_vm1, %v5467_v34 }
 0x153   : > { %5015 = vmatprep.mubr.f32.mxu0 %v5720_v4  ;;  %5104 = vmatprep.mubr.f32.mxu1 %v5720_v4 }
 0x156   : > { %5480 = vmatmul.mubr.msk.f32.gmra.mrb[6].mxu0 %vm365_vm1, %v5468_v36  ;;  %5484 = vmatmul.mubr.msk.f32.gmra.mrb[6].mxu1 %vm365_vm1, %v5468_v36 }
 0x157   : > { %5021 = vmatprep.mubr.f32.mxu0 %v5720_v4  ;;  %5110 = vmatprep.mubr.f32.mxu1 %v5720_v4 }
 0x158   : > { %v6511_v29 = vpop.permute.xlu0 %212  ;;  %v6514_v33 = vpop.permute.xlu1 %217 }
 0x15a   : > { %5481 = vmatmul.mubr.msk.f32.gmra.mrb[10].mxu0 %vm365_vm1, %v5469_v31  ;;  %5485 = vmatmul.mubr.msk.f32.gmra.mrb[10].mxu1 %vm365_vm1, %v5469_v31 }
 0x15b   : > { %5027 = vmatprep.mubr.f32.mxu0 %v5720_v4  ;;  %5116 = vmatprep.mubr.f32.mxu1 %v5720_v4 }
 0x15c   : > { %v6533_v49 = vpop.permute.xlu1 %222  ;;  %v6543_v58 = vpop.permute.xlu0 %227 }
 0x15e   : > { %5482 = vmatmul.mubr.msk.f32.gmra.mrb[14].mxu0 %vm365_vm1, %v5470_v32  ;;  %5486 = vmatmul.mubr.msk.f32.gmra.mrb[14].mxu1 %vm365_vm1, %v5470_v32 }
 0x215   : > { %v4922_v35 = vpop.f32.mrb[0].mxu1  ;;  %v4833_v37 = vpop.f32.mrb[0].mxu0 }
 0x216   : > { %v5493_v38 = vadd.f32 %v4922_v35, %v6511_v29  ;;  %v5491_v39 = vadd.f32 %v4833_v37, %v6511_v29  ;;  %v4835_v3 = vpop.f32.mrb[1].mxu0  ;;  %v4924_v40 = vpop.f32.mrb[1].mxu1 }
 0x217   : > { %v5492_v4 = vadd.f32 %v4835_v3, %v6511_v29  ;;  %v5494_v41 = vadd.f32 %v4924_v40, %v6511_v29 }
 0x218   : > { %v5205_v2 = vmax.f32 %v5493_v38, 0.0  ;;  %v5203_v42 = vmax.f32 %v5491_v39, 0.0 }
 0x219   : > { %v5204_v43 = vmax.f32 %v5492_v4, 0.0  ;;  %v5206_v44 = vmax.f32 %v5494_v41, 0.0  ;;  %v4839_v0 = vpop.f32.mrb[4].mxu0  ;;  %v4928_v1 = vpop.f32.mrb[4].mxu1 }
 0x21a   : > { %5221 = vst [vmem:[%s6521_s30 + $0x10] sm:$0xff] %v5205_v2  ;;  %5219 = vst [vmem:[%s6521_s30] sm:$0xff] %v5203_v42  ;;  %v5499_v45 = vadd.f32 %v4839_v0, %v6514_v33  ;;  %v5501_v46 = vadd.f32 %v4928_v1, %v6514_v33  ;;  %v4841_v8 = vpop.f32.mrb[5].mxu0  ;;  %v4930_v6 = vpop.f32.mrb[5].mxu1 }
 0x21b   : > { %5220 = vst [vmem:[%s6521_s30 + $0x8] sm:$0xff] %v5204_v43  ;;  %5222 = vst [vmem:[%s6521_s30 + $0x18] sm:$0xff] %v5206_v44  ;;  %v5500_v47 = vadd.f32 %v4841_v8, %v6514_v33  ;;  %v5502_v48 = vadd.f32 %v4930_v6, %v6514_v33 }
 0x21c   : > { %v5207_v50 = vmax.f32 %v5499_v45, 0.0  ;;  %v5209_v51 = vmax.f32 %v5501_v46, 0.0 }
 0x21d   : > { %v5208_v52 = vmax.f32 %v5500_v47, 0.0  ;;  %v5210_v7 = vmax.f32 %v5502_v48, 0.0  ;;  %v4845_v15 = vpop.f32.mrb[8].mxu0  ;;  %v4934_v14 = vpop.f32.mrb[8].mxu1 }
 0x21e   : > { %5223 = vst [vmem:[%s6521_s30 + $0x40] sm:$0xff] %v5207_v50  ;;  %5225 = vst [vmem:[%s6521_s30 + $0x50] sm:$0xff] %v5209_v51  ;;  %v5507_v5 = vadd.f32 %v4845_v15, %v6533_v49  ;;  %v5509_v53 = vadd.f32 %v4934_v14, %v6533_v49  ;;  %v4847_v54 = vpop.f32.mrb[9].mxu0  ;;  %v4936_v55 = vpop.f32.mrb[9].mxu1 }
 0x21f   : > { %5224 = vst [vmem:[%s6521_s30 + $0x48] sm:$0xff] %v5208_v52  ;;  %5226 = vst [vmem:[%s6521_s30 + $0x58] sm:$0xff] %v5210_v7  ;;  %v5508_v56 = vadd.f32 %v4847_v54, %v6533_v49  ;;  %v5510_v57 = vadd.f32 %v4936_v55, %v6533_v49 }
 0x220   : > { %v5211_v59 = vmax.f32 %v5507_v5, 0.0  ;;  %v5213_v60 = vmax.f32 %v5509_v53, 0.0 }
 0x221   : > { %v5212_v61 = vmax.f32 %v5508_v56, 0.0  ;;  %v5214_v62 = vmax.f32 %v5510_v57, 0.0  ;;  %v4940_v63 = vpop.f32.mrb[12].mxu1  ;;  %v4851_v9 = vpop.f32.mrb[12].mxu0 }
 0x222   : > { %5227 = vst [vmem:[%s6521_s30 + $0x80] sm:$0xff] %v5211_v59  ;;  %5229 = vst [vmem:[%s6521_s30 + $0x90] sm:$0xff] %v5213_v60  ;;  %v5517_v10 = vadd.f32 %v4940_v63, %v6543_v58  ;;  %v5515_v11 = vadd.f32 %v4851_v9, %v6543_v58  ;;  %v4853_v12 = vpop.f32.mrb[13].mxu0  ;;  %v4942_v13 = vpop.f32.mrb[13].mxu1 }
 0x223   : > { %5228 = vst [vmem:[%s6521_s30 + $0x88] sm:$0xff] %v5212_v61  ;;  %5230 = vst [vmem:[%s6521_s30 + $0x98] sm:$0xff] %v5214_v62  ;;  %v5516_v16 = vadd.f32 %v4853_v12, %v6543_v58  ;;  %v5518_v19 = vadd.f32 %v4942_v13, %v6543_v58 }
 0x224   : > { %v5217_v18 = vmax.f32 %v5517_v10, 0.0  ;;  %v5215_v20 = vmax.f32 %v5515_v11, 0.0 }
 0x225   : > { %v5216_v21 = vmax.f32 %v5516_v16, 0.0  ;;  %v5218_v17 = vmax.f32 %v5518_v19, 0.0  ;;  %v5011_v22 = vpop.f32.mrb[2].mxu0  ;;  %v5100_v23 = vpop.f32.mrb[2].mxu1 }
 0x226   : > { %5233 = vst [vmem:[%s6521_s30 + $0xd0] sm:$0xff] %v5217_v18  ;;  %5231 = vst [vmem:[%s6521_s30 + $0xc0] sm:$0xff] %v5215_v20  ;;  %v5495_v25 = vadd.f32 %v5011_v22, %v6511_v29  ;;  %v5497_v26 = vadd.f32 %v5100_v23, %v6511_v29  ;;  %v5013_v24 = vpop.f32.mrb[3].mxu0  ;;  %v5102_v27 = vpop.f32.mrb[3].mxu1 }
 0x227   : > { %5232 = vst [vmem:[%s6521_s30 + $0xc8] sm:$0xff] %v5216_v21  ;;  %5234 = vst [vmem:[%s6521_s30 + $0xd8] sm:$0xff] %v5218_v17  ;;  %v5496_v34 = vadd.f32 %v5013_v24, %v6511_v29  ;;  %v5498_v28 = vadd.f32 %v5102_v27, %v6511_v29 }
 0x228   : > { %v5251_v30 = vmax.f32 %v5495_v25, 0.0  ;;  %v5253_v36 = vmax.f32 %v5497_v26, 0.0 }
 0x229   : > { %v5252_v31 = vmax.f32 %v5496_v34, 0.0  ;;  %v5254_v32 = vmax.f32 %v5498_v28, 0.0  ;;  %v5017_v35 = vpop.f32.mrb[6].mxu0  ;;  %v5106_v37 = vpop.f32.mrb[6].mxu1 }
 0x22a   : > { %5267 = vst [vmem:[%s6521_s30 + $0x20] sm:$0xff] %v5251_v30  ;;  %5269 = vst [vmem:[%s6521_s30 + $0x30] sm:$0xff] %v5253_v36  ;;  %v5503_v38 = vadd.f32 %v5017_v35, %v6514_v33  ;;  %v5505_v39 = vadd.f32 %v5106_v37, %v6514_v33  ;;  %v5019_v3 = vpop.f32.mrb[7].mxu0  ;;  %v5108_v40 = vpop.f32.mrb[7].mxu1 }
 0x22b   : > { %5268 = vst [vmem:[%s6521_s30 + $0x28] sm:$0xff] %v5252_v31  ;;  %5270 = vst [vmem:[%s6521_s30 + $0x38] sm:$0xff] %v5254_v32  ;;  %v5504_v29 = vadd.f32 %v5019_v3, %v6514_v33  ;;  %v5506_v4 = vadd.f32 %v5108_v40, %v6514_v33 }
 0x22c   : > { %v5255_v41 = vmax.f32 %v5503_v38, 0.0  ;;  %v5257_v2 = vmax.f32 %v5505_v39, 0.0 }
 0x22d   : > { %v5256_v42 = vmax.f32 %v5504_v29, 0.0  ;;  %v5258_v43 = vmax.f32 %v5506_v4, 0.0  ;;  %v5023_v44 = vpop.f32.mrb[10].mxu0  ;;  %v5112_v0 = vpop.f32.mrb[10].mxu1 }
 0x22e   : > { %5271 = vst [vmem:[%s6521_s30 + $0x60] sm:$0xff] %v5255_v41  ;;  %5273 = vst [vmem:[%s6521_s30 + $0x70] sm:$0xff] %v5257_v2  ;;  %v5511_v1 = vadd.f32 %v5023_v44, %v6533_v49  ;;  %v5513_v45 = vadd.f32 %v5112_v0, %v6533_v49  ;;  %v5025_v46 = vpop.f32.mrb[11].mxu0  ;;  %v5114_v8 = vpop.f32.mrb[11].mxu1 }
 0x22f   : > { %5272 = vst [vmem:[%s6521_s30 + $0x68] sm:$0xff] %v5256_v42  ;;  %5274 = vst [vmem:[%s6521_s30 + $0x78] sm:$0xff] %v5258_v43  ;;  %v5512_v33 = vadd.f32 %v5025_v46, %v6533_v49  ;;  %v5514_v6 = vadd.f32 %v5114_v8, %v6533_v49 }
 0x230   : > { %v5259_v47 = vmax.f32 %v5511_v1, 0.0  ;;  %v5261_v48 = vmax.f32 %v5513_v45, 0.0 }
 0x231   : > { %v5260_v50 = vmax.f32 %v5512_v33, 0.0  ;;  %v5262_v51 = vmax.f32 %v5514_v6, 0.0  ;;  %v5029_v52 = vpop.f32.mrb[14].mxu0  ;;  %v5118_v7 = vpop.f32.mrb[14].mxu1 }
 0x232   : > { %5275 = vst [vmem:[%s6521_s30 + $0xa0] sm:$0xff] %v5259_v47  ;;  %5277 = vst [vmem:[%s6521_s30 + $0xb0] sm:$0xff] %v5261_v48  ;;  %v5519_v15 = vadd.f32 %v5029_v52, %v6543_v58  ;;  %v5521_v14 = vadd.f32 %v5118_v7, %v6543_v58  ;;  %v5031_v5 = vpop.f32.mrb[15].mxu0  ;;  %v5120_v53 = vpop.f32.mrb[15].mxu1 }
 0x233   : > { %5276 = vst [vmem:[%s6521_s30 + $0xa8] sm:$0xff] %v5260_v50  ;;  %5278 = vst [vmem:[%s6521_s30 + $0xb8] sm:$0xff] %v5262_v51  ;;  %v5520_v49 = vadd.f32 %v5031_v5, %v6543_v58  ;;  %v5522_v54 = vadd.f32 %v5120_v53, %v6543_v58 }
 0x234   : > { %v5263_v55 = vmax.f32 %v5519_v15, 0.0  ;;  %v5265_v56 = vmax.f32 %v5521_v14, 0.0 }
 0x235   : > { %v5264_v57 = vmax.f32 %v5520_v49, 0.0  ;;  %v5266_v59 = vmax.f32 %v5522_v54, 0.0 }
 0x236   : > { %5279 = vst [vmem:[%s6521_s30 + $0xe0] sm:$0xff] %v5263_v55  ;;  %5281 = vst [vmem:[%s6521_s30 + $0xf0] sm:$0xff] %v5265_v56 }
 0x237   : > { %5280 = vst [vmem:[%s6521_s30 + $0xe8] sm:$0xff] %v5264_v57  ;;  %5282 = vst [vmem:[%s6521_s30 + $0xf8] sm:$0xff] %v5266_v59 }
 0x238 PF: > { %s14_s15 = sadd.s32 1, %s5717_s15  }
 0x239   : > { %p11_p4 = scmp.ge.s32.totalorder %s14_s15, 4  }
 0x23b   :  { %13 = sbr.rel (!%p11_p4) target bundleno = 1 (0x1), region = 82 }

// kernel: hyperprior_synthesis_dlmm_forward.5
= control target key start
LH: loop header
LB: loop body
LE: loop exit
PB: predicated region body
PF: predicated region fallthrough
CT: control target
= control target key end

     0   :  { %s16724_s21 = smov 0   ;;  %s20081_s0 = inlined_call_operand.vmem [shape: f32[2,8,4096], index: 0, kind: input, shape index: {}]   ;;  %s20082_s1 = inlined_call_operand.vmem [shape: f32[9,8,8], index: 1, kind: input, shape index: {}]   ;;  %s20083_s2 = inlined_call_operand.vmem [shape: f32[8,1], index: 2, kind: input, shape index: {}]   ;;  %s20084_s3 = inlined_call_operand.vmem [shape: f32[48,8], index: 3, kind: input, shape index: {}]   ;;  %s20085_s4 = inlined_call_operand.vmem [shape: f32[48,1], index: 4, kind: input, shape index: {}]   ;;  %s20086_s5 = inlined_call_operand.vmem [shape: f32[9,4096], index: 5, kind: input, shape index: {}]   ;;  %s20087_s6 = inlined_call_operand.vmem [shape: f32[2,48,4096], index: 6, kind: output, shape index: {}]  }
   0x1 LB: > { %s15999_s22 = sadd.s32 4294967295, %s16680_s21   ;;  %p16003_p0 = scmp.ge.s32.totalorder %s16680_s21, 1  ;;  %s16680_s21 = sphi %s16724_s21, %s16_s21  }
   0x2   : > { %p212_p1 = scmp.lt.s32.totalorder %s16680_s21, 3 }
   0x4   : > { %p213_p2 = pnand %p16003_p0, %p212_p1 }
   0x6   : > { %216 = sbr.rel (%p213_p2) target bundleno = 1147 (0x47b), region = 44 }
   0xd   : > { %p242_p3 = scmp.lt.s32.totalorder %s15999_s22, 1  ;;  %s16682_s27 = smov 65   ;;  %v20088_v4 = vmov 0.0   ;;  %v503_v33 = vlaneseq  ;;  %v484_v35 = vld [vmem:[%s20086_s5] ss:$8 sm:$0xf] }
   0xe   : > { %796 = vmatprep.mubr.f32.mxu0 %v20088_v4  ;;  %867 = vmatprep.mubr.f32.mxu1 %v20088_v4  ;;  %s16684_s28 = smov 64   ;;  %v485_v36 = vld [vmem:[%s20086_s5] ss:$8 sm:$0xf0]  ;;  %vm419_vm0 = vcmask 531456   ;;  %vm728_vm1 = vcmask 64512  }
   0xf   : > { %s20368_s22 = smov (!%p242_p3, %s15999_s22), 1  ;;  %v504_v34 = vshrl.u32 %v503_v33, 7  ;;  %v16960_v37 = vor.u32 %v485_v36, %v484_v35  ;;  %v17018_v63 = vld [vmem:[%s20082_s1] sm:$0xff]  ;;  %s16685_s15 = smov 63   ;;  %vm1997_vm2 = vcmask 523264   ;;  %vm3576_vm3 = vcmask 515072  }
  0x10   : > { %s16327_s23 = sshll.u32 %s20368_s22, 8  ;;  %s16686_s13 = smov 1   ;;  %vm5155_vm4 = vcmask 7168   ;;  %vm8182_vm5 = vcmask 1039360  }
  0x11   : > { %s16738_s26 = scalar_lea.vmem %s20081_s0, %s16327_s23  ;;  %v16962_v38 = vsub.s32 3, %v504_v34  ;;  %v16964_v39 = vsub.s32 1, %v504_v34  ;;  %v16966_v40 = vsub.s32 2, %v504_v34  ;;  %v16978_v48 = vsub.s32 0, %v504_v34  ;;  %s16687_s11 = smov 127  }
  0x12   : > { %v16741_v0 = vld [vmem:[%s16738_s26 + $0x10] sm:$0xff]  ;;  %v16744_v1 = vld [vmem:[%s16738_s26] sm:$0xff]  ;;  %v16751_v2 = vld [vmem:[%s16738_s26 + $0x18] sm:$0xff]  ;;  %v16997_v55 = vsub.s32 5, %v504_v34  ;;  %v16999_v56 = vsub.s32 4, %v504_v34  ;;  %v17022_v35 = vsub.s32 7, %v504_v34 }
  0x13   : > { %361 = vrot.lane.b32.xlu1 %v16741_v0, %s16682_s27  ;;  %357 = vrot.lane.b32.xlu0 %v16744_v1, %s16682_s27  ;;  %v16754_v3 = vld [vmem:[%s16738_s26 + $0x8] sm:$0xff]  ;;  %v16763_v5 = vld [vmem:[%s16738_s26 + $0x20] sm:$0xff]  ;;  %v518_v43 = vrot.slane %v16960_v37, %v16962_v38  ;;  %v510_v44 = vrot.slane %v16960_v37, %v16964_v39  ;;  %v514_v45 = vrot.slane %v16960_v37, %v16966_v40  ;;  %v17024_v36 = vsub.s32 6, %v504_v34  ;;  %s16616_s25 = smul.u32 1536, %s20368_s22 }
  0x14   : > { %v16766_v6 = vld [vmem:[%s16738_s26 + $0xf8] sm:$0xff]  ;;  %v16773_v7 = vld [vmem:[%s16738_s26 + $0x30] sm:$0xff]  ;;  %v16776_v8 = vld [vmem:[%s16738_s26 + $0x28] sm:$0xff]  ;;  %v506_v54 = vrot.slane %v16960_v37, %v16978_v48  ;;  %v526_v62 = vrot.slane %v16960_v37, %v16997_v55  ;;  %v522_v33 = vrot.slane %v16960_v37, %v16999_v56 }
  0x15   : > { %v16783_v9 = vld [vmem:[%s16738_s26 + $0x40] sm:$0xff]  ;;  %v16786_v10 = vld [vmem:[%s16738_s26 + $0x38] sm:$0xff]  ;;  %v16793_v11 = vld [vmem:[%s16738_s26 + $0x50] sm:$0xff]  ;;  %s19682_s29 = scalar_lea.vmem %s20087_s6, %s16616_s25 }
  0x16   : > { %v16796_v12 = vld [vmem:[%s16738_s26 + $0x48] sm:$0xff]  ;;  %v16803_v13 = vld [vmem:[%s16738_s26 + $0x60] sm:$0xff]  ;;  %v16806_v14 = vld [vmem:[%s16738_s26 + $0x58] sm:$0xff] }
  0x17   : > { %363 = vrot.lane.b32.xlu1 %v16751_v2, %s16682_s27  ;;  %359 = vrot.lane.b32.xlu0 %v16754_v3, %s16682_s27  ;;  %v16813_v15 = vld [vmem:[%s16738_s26 + $0x70] sm:$0xff]  ;;  %v16816_v16 = vld [vmem:[%s16738_s26 + $0x68] sm:$0xff] }
  0x18   : > { %v16823_v17 = vld [vmem:[%s16738_s26 + $0x80] sm:$0xff]  ;;  %v16826_v18 = vld [vmem:[%s16738_s26 + $0x78] sm:$0xff]  ;;  %v16833_v19 = vld [vmem:[%s16738_s26 + $0x90] sm:$0xff] }
  0x19   : > { %v16836_v20 = vld [vmem:[%s16738_s26 + $0x88] sm:$0xff]  ;;  %v16843_v21 = vld [vmem:[%s16738_s26 + $0xa0] sm:$0xff]  ;;  %v16846_v22 = vld [vmem:[%s16738_s26 + $0x98] sm:$0xff] }
  0x1a   : > { %v16853_v23 = vld [vmem:[%s16738_s26 + $0xb0] sm:$0xff]  ;;  %v16856_v24 = vld [vmem:[%s16738_s26 + $0xa8] sm:$0xff]  ;;  %v16863_v25 = vld [vmem:[%s16738_s26 + $0xc0] sm:$0xff] }
  0x1b   : > { %365 = vrot.lane.b32.xlu1 %v16763_v5, %s16682_s27  ;;  %323 = vrot.lane.b32.xlu0 %v16766_v6, %s16682_s27  ;;  %v16866_v26 = vld [vmem:[%s16738_s26 + $0xb8] sm:$0xff]  ;;  %v16873_v27 = vld [vmem:[%s16738_s26 + $0xd0] sm:$0xff] }
  0x1c   : > { %v16876_v28 = vld [vmem:[%s16738_s26 + $0xc8] sm:$0xff]  ;;  %v16883_v29 = vld [vmem:[%s16738_s26 + $0xe0] sm:$0xff]  ;;  %v16886_v30 = vld [vmem:[%s16738_s26 + $0xd8] sm:$0xff] }
  0x1d   : > { %v16893_v31 = vld [vmem:[%s16738_s26 + $0xf0] sm:$0xff]  ;;  %v16896_v32 = vld [vmem:[%s16738_s26 + $0xe8] sm:$0xff] }
  0x1f   : > { %369 = vrot.lane.b32.xlu1 %v16773_v7, %s16682_s27  ;;  %367 = vrot.lane.b32.xlu0 %v16776_v8, %s16682_s27 }
  0x23   : > { %373 = vrot.lane.b32.xlu1 %v16783_v9, %s16682_s27  ;;  %371 = vrot.lane.b32.xlu0 %v16786_v10, %s16682_s27 }
  0x27   : > { %377 = vrot.lane.b32.xlu1 %v16793_v11, %s16682_s27  ;;  %375 = vrot.lane.b32.xlu0 %v16796_v12, %s16682_s27 }
  0x2b   : > { %381 = vrot.lane.b32.xlu1 %v16803_v13, %s16682_s27  ;;  %379 = vrot.lane.b32.xlu0 %v16806_v14, %s16682_s27 }
  0x2f   : > { %385 = vrot.lane.b32.xlu1 %v16813_v15, %s16682_s27  ;;  %383 = vrot.lane.b32.xlu0 %v16816_v16, %s16682_s27 }
  0x33   : > { %389 = vrot.lane.b32.xlu1 %v16823_v17, %s16682_s27  ;;  %387 = vrot.lane.b32.xlu0 %v16826_v18, %s16682_s27 }
  0x37   : > { %393 = vrot.lane.b32.xlu1 %v16833_v19, %s16682_s27  ;;  %391 = vrot.lane.b32.xlu0 %v16836_v20, %s16682_s27 }
  0x3b   : > { %397 = vrot.lane.b32.xlu1 %v16843_v21, %s16682_s27  ;;  %395 = vrot.lane.b32.xlu0 %v16846_v22, %s16682_s27 }
  0x3f   : > { %401 = vrot.lane.b32.xlu1 %v16853_v23, %s16682_s27  ;;  %399 = vrot.lane.b32.xlu0 %v16856_v24, %s16682_s27 }
  0x43   : > { %405 = vrot.lane.b32.xlu1 %v16863_v25, %s16682_s27  ;;  %403 = vrot.lane.b32.xlu0 %v16866_v26, %s16682_s27 }
  0x47   : > { %409 = vrot.lane.b32.xlu1 %v16873_v27, %s16682_s27  ;;  %407 = vrot.lane.b32.xlu0 %v16876_v28, %s16682_s27 }
  0x4b   : > { %413 = vrot.lane.b32.xlu1 %v16883_v29, %s16682_s27  ;;  %411 = vrot.lane.b32.xlu0 %v16886_v30, %s16682_s27 }
  0x4f   : > { %417 = vrot.lane.b32.xlu1 %v16893_v31, %s16682_s27  ;;  %415 = vrot.lane.b32.xlu0 %v16896_v32, %s16682_s27 }
  0x53   : > { %1937 = vrot.lane.b32.xlu1 %v16754_v3, %s16684_s28  ;;  %1935 = vrot.lane.b32.xlu0 %v16744_v1, %s16684_s28 }
  0x57   : > { %1941 = vrot.lane.b32.xlu1 %v16751_v2, %s16684_s28  ;;  %1939 = vrot.lane.b32.xlu0 %v16741_v0, %s16684_s28 }
  0x5b   : > { %1943 = vrot.lane.b32.xlu1 %v16763_v5, %s16684_s28  ;;  %1932 = vrot.lane.b32.xlu0 %v16766_v6, %s16684_s28 }
  0x5f   : > { %1947 = vrot.lane.b32.xlu1 %v16773_v7, %s16684_s28  ;;  %1945 = vrot.lane.b32.xlu0 %v16776_v8, %s16684_s28 }
  0x63   : > { %1951 = vrot.lane.b32.xlu1 %v16783_v9, %s16684_s28  ;;  %1949 = vrot.lane.b32.xlu0 %v16786_v10, %s16684_s28 }
  0x67   : > { %1955 = vrot.lane.b32.xlu1 %v16793_v11, %s16684_s28  ;;  %1953 = vrot.lane.b32.xlu0 %v16796_v12, %s16684_s28 }
  0x6b   : > { %1959 = vrot.lane.b32.xlu1 %v16803_v13, %s16684_s28  ;;  %1957 = vrot.lane.b32.xlu0 %v16806_v14, %s16684_s28 }
  0x6f   : > { %1963 = vrot.lane.b32.xlu1 %v16813_v15, %s16684_s28  ;;  %1961 = vrot.lane.b32.xlu0 %v16816_v16, %s16684_s28 }
  0x73   : > { %1967 = vrot.lane.b32.xlu1 %v16823_v17, %s16684_s28  ;;  %1965 = vrot.lane.b32.xlu0 %v16826_v18, %s16684_s28 }
  0x77   : > { %1971 = vrot.lane.b32.xlu1 %v16833_v19, %s16684_s28  ;;  %1969 = vrot.lane.b32.xlu0 %v16836_v20, %s16684_s28 }
  0x7b   : > { %1975 = vrot.lane.b32.xlu1 %v16843_v21, %s16684_s28  ;;  %1973 = vrot.lane.b32.xlu0 %v16846_v22, %s16684_s28 }
  0x7f   : > { %1979 = vrot.lane.b32.xlu1 %v16853_v23, %s16684_s28  ;;  %1977 = vrot.lane.b32.xlu0 %v16856_v24, %s16684_s28 }
  0x83   : > { %1983 = vrot.lane.b32.xlu1 %v16863_v25, %s16684_s28  ;;  %1981 = vrot.lane.b32.xlu0 %v16866_v26, %s16684_s28 }
  0x85   : > { %v362_v41 = vpop.permute.xlu1 %361  ;;  %v358_v42 = vpop.permute.xlu0 %357 }
  0x87   : > { %1987 = vrot.lane.b32.xlu1 %v16873_v27, %s16684_s28  ;;  %1985 = vrot.lane.b32.xlu0 %v16876_v28, %s16684_s28 }
  0x89   : > { %v364_v46 = vpop.permute.xlu1 %363  ;;  %v360_v47 = vpop.permute.xlu0 %359 }
  0x8a   : > { %v16981_v49 = vsel %vm419_vm0, %v362_v41, %v364_v46  ;;  %v16984_v50 = vsel %vm419_vm0, %v358_v42, %v360_v47  ;;  %v16987_v51 = vsel %vm419_vm0, %v360_v47, %v362_v41  ;;  %v534_v47 = vrot.slane %v16960_v37, %v17022_v35 }
  0x8b   : > { %1991 = vrot.lane.b32.xlu1 %v16883_v29, %s16684_s28  ;;  %1989 = vrot.lane.b32.xlu0 %v16886_v30, %s16684_s28  ;;  %v666_v52 = vmul.f32 %v518_v43, %v16981_v49  ;;  %v664_v53 = vmul.f32 %v510_v44, %v16984_v50  ;;  %v665_v57 = vmul.f32 %v514_v45, %v16987_v51  ;;  %v16007_v44 = vld [vmem:[%s20086_s5 + $0x40] ss:$8 sm:$0xf] }
  0x8c   : > { %v16008_v45 = vld [vmem:[%s20086_s5 + $0x40] ss:$8 sm:$0xf0] }
  0x8d   : > { %803 = vmatprep.subr.mxu1 %v666_v52  ;;  %v366_v58 = vpop.permute.xlu1 %365  ;;  %732 = vmatprep.subr.mxu0 %v664_v53  ;;  %v17002_v59 = vpop.permute.xlu0 %323  ;;  %v530_v53 = vrot.slane %v16960_v37, %v17024_v36 }
  0x8e   : > { %804 = vmatpush1.msra.mxu1 %v665_v57  ;;  %v17006_v60 = vsel %vm419_vm0, %v17002_v59, %v358_v42  ;;  %v17029_v41 = vsel %vm419_vm0, %v364_v46, %v366_v58 }
  0x8f   : > { %20182 = vst [vmem:[#allocation3_spill] sm:$0xff] %v17006_v60  ;;  %1995 = vrot.lane.b32.xlu1 %v16893_v31, %s16684_s28  ;;  %1993 = vrot.lane.b32.xlu0 %v16896_v32, %s16684_s28  ;;  %v663_v61 = vmul.f32 %v506_v54, %v17006_v60  ;;  %v667_v52 = vmul.f32 %v522_v33, %v17029_v41  ;;  %v20189_v60 = vmov 0.0  }
  0x90   : > { %16014 = vmatmul.mubr.msk.f32.vlgmr.msra.gmra.mrb[0].mxu1 %vm728_vm1, %v17018_v63  ;;  %v17053_v54 = vor.u32 %v16008_v45, %v16007_v44 }
  0x91   : > { %v370_v42 = vpop.permute.xlu1 %369  ;;  %733 = vmatpush1.msra.mxu0 %v663_v61  ;;  %v368_v43 = vpop.permute.xlu0 %367  ;;  %1009 = vmatprep.mubr.f32.mxu1 %v20088_v4 }
  0x92   : > { %v17039_v34 = vsel %vm419_vm0, %v366_v58, %v368_v43  ;;  %16013 = vmatmul.mubr.msk.f32.vlgmr.msra.gmra.mrb[0].mxu0 %vm728_vm1, %v17018_v63  ;;  %v17057_v57 = vsel %vm419_vm0, %v368_v43, %v370_v42  ;;  %v542_v33 = vrot.slane %v17053_v54, %v16964_v39  ;;  %v538_v44 = vrot.slane %v17053_v54, %v16978_v48 }
  0x93   : > { %20183 = vst [vmem:[#allocation4_spill] sm:$0xff] %v17039_v34  ;;  %3516 = vrot.lane.b32.xlu1 %v16754_v3, %s16685_s15  ;;  %3514 = vrot.lane.b32.xlu0 %v16744_v1, %s16685_s15  ;;  %v668_v46 = vmul.f32 %v526_v62, %v17039_v34  ;;  %20184 = vst [vmem:[#allocation5_spill] sm:$0xff] %v17057_v57  ;;  %v669_v43 = vmul.f32 %v530_v53, %v17057_v57 }
  0x94   : > { %938 = vmatprep.mubr.f32.mxu0 %v20088_v4  ;;  %v550_v53 = vrot.slane %v17053_v54, %v16962_v38  ;;  %v562_v34 = vrot.slane %v17053_v54, %v17024_v36 }
  0x95   : > { %v374_v58 = vpop.permute.xlu1 %373  ;;  %874 = vmatprep.subr.mxu0 %v668_v46  ;;  %v372_v61 = vpop.permute.xlu0 %371 }
  0x96   : > { %v17060_v62 = vsel %vm419_vm0, %v370_v42, %v372_v61  ;;  %875 = vmatpush1.msra.mxu0 %v667_v52  ;;  %v17075_v42 = vsel %vm419_vm0, %v372_v61, %v374_v58 }
  0x97   : > { %20185 = vst [vmem:[#allocation6_spill] sm:$0xff] %v17060_v62  ;;  %3520 = vrot.lane.b32.xlu1 %v16751_v2, %s16685_s15  ;;  %3518 = vrot.lane.b32.xlu0 %v16741_v0, %s16685_s15  ;;  %v670_v37 = vmul.f32 %v534_v47, %v17060_v62  ;;  %20186 = vst [vmem:[#allocation7_spill] sm:$0xff] %v17075_v42  ;;  %v671_v61 = vmul.f32 %v538_v44, %v17075_v42 }
  0x98   : > { %16015 = vmatmul.mubr.msk.f32.vlgmr.msra.gmra.mrb[2].mxu0 %vm728_vm1, %v17018_v63 }
  0x99   : > { %v378_v45 = vpop.permute.xlu1 %377  ;;  %945 = vmatprep.subr.mxu1 %v670_v37  ;;  %v376_v46 = vpop.permute.xlu0 %375  ;;  %1080 = vmatprep.mubr.f32.mxu0 %v20088_v4  ;;  %v546_v37 = vrot.slane %v17053_v54, %v16966_v40 }
  0x9a   : > { %v17079_v47 = vsel %vm419_vm0, %v374_v58, %v376_v46  ;;  %946 = vmatpush1.msra.mxu1 %v669_v43  ;;  %v17094_v58 = vsel %vm419_vm0, %v376_v46, %v378_v45  ;;  %v558_v46 = vrot.slane %v17053_v54, %v16997_v55 }
  0x9b   : > { %20187 = vst [vmem:[#allocation8_spill] sm:$0xff] %v17079_v47  ;;  %3522 = vrot.lane.b32.xlu1 %v16763_v5, %s16685_s15  ;;  %3511 = vrot.lane.b32.xlu0 %v16766_v6, %s16685_s15  ;;  %v672_v52 = vmul.f32 %v542_v33, %v17079_v47  ;;  %20188 = vst [vmem:[#allocation9_spill] sm:$0xff] %v17094_v58  ;;  %v554_v47 = vrot.slane %v17053_v54, %v16999_v56 }
  0x9c   : > { %16016 = vmatmul.mubr.msk.f32.vlgmr.msra.gmra.mrb[2].mxu1 %vm728_vm1, %v17018_v63 }
  0x9d   : > { %v382_v43 = vpop.permute.xlu1 %381  ;;  %1016 = vmatprep.subr.mxu0 %v672_v52  ;;  %v380_v4 = vpop.permute.xlu0 %379  ;;  %1151 = vmatprep.mubr.f32.mxu1 %v20189_v60  ;;  %v673_v52 = vmul.f32 %v546_v37, %v17094_v58  ;;  %v16010_v37 = vld [vmem:[%s20086_s5 + $0x80] ss:$8 sm:$0xf0] }
  0x9e   : > { %v17098_v33 = vsel %vm419_vm0, %v378_v45, %v380_v4  ;;  %1017 = vmatpush1.msra.mxu0 %v671_v61  ;;  %v17113_v45 = vsel %vm419_vm0, %v380_v4, %v382_v43 }
  0x9f   : > { %20190 = vst [vmem:[#allocation10_spill] sm:$0xff] %v17098_v33  ;;  %3526 = vrot.lane.b32.xlu1 %v16773_v7, %s16685_s15  ;;  %3524 = vrot.lane.b32.xlu0 %v16776_v8, %s16685_s15  ;;  %v674_v44 = vmul.f32 %v550_v53, %v17098_v33  ;;  %20191 = vst [vmem:[#allocation11_spill] sm:$0xff] %v17113_v45  ;;  %v16009_v53 = vld [vmem:[%s20086_s5 + $0x80] ss:$8 sm:$0xf]  ;;  %v675_v58 = vmul.f32 %v554_v47, %v17113_v45 }
  0xa0   : > { %16017 = vmatmul.mubr.msk.f32.vlgmr.msra.gmra.mrb[4].mxu0 %vm728_vm1, %v17018_v63  ;;  %v17135_v42 = vor.u32 %v16010_v37, %v16009_v53 }
  0xa1   : > { %v386_v61 = vpop.permute.xlu1 %385  ;;  %1087 = vmatprep.subr.mxu1 %v674_v44  ;;  %v384_v62 = vpop.permute.xlu0 %383  ;;  %1222 = vmatprep.mubr.f32.mxu0 %v20189_v60  ;;  %v566_v44 = vrot.slane %v17053_v54, %v17022_v35 }
  0xa2   : > { %v17123_v33 = vsel %vm419_vm0, %v382_v43, %v384_v62  ;;  %1088 = vmatpush1.msra.mxu1 %v673_v52  ;;  %v17140_v43 = vsel %vm419_vm0, %v384_v62, %v386_v61  ;;  %v574_v62 = vrot.slane %v17135_v42, %v16964_v39  ;;  %v570_v53 = vrot.slane %v17135_v42, %v16978_v48 }
  0xa3   : > { %20192 = vst [vmem:[#allocation12_spill] sm:$0xff] %v17123_v33  ;;  %3530 = vrot.lane.b32.xlu1 %v16783_v9, %s16685_s15  ;;  %3528 = vrot.lane.b32.xlu0 %v16786_v10, %s16685_s15  ;;  %v676_v4 = vmul.f32 %v558_v46, %v17123_v33  ;;  %20193 = vst [vmem:[#allocation13_spill] sm:$0xff] %v17140_v43  ;;  %v677_v47 = vmul.f32 %v562_v34, %v17140_v43 }
  0xa4   : > { %16018 = vmatmul.mubr.msk.f32.vlgmr.msra.gmra.mrb[4].mxu1 %vm728_vm1, %v17018_v63 }
  0xa5   : > { %v390_v52 = vpop.permute.xlu1 %389  ;;  %1158 = vmatprep.subr.mxu0 %v676_v4  ;;  %v388_v57 = vpop.permute.xlu0 %387  ;;  %1293 = vmatprep.mubr.f32.mxu1 %v20189_v60 }
  0xa6   : > { %v17144_v46 = vsel %vm419_vm0, %v386_v61, %v388_v57  ;;  %1159 = vmatpush1.msra.mxu0 %v675_v58  ;;  %v17159_v58 = vsel %vm419_vm0, %v388_v57, %v390_v52  ;;  %v582_v57 = vrot.slane %v17135_v42, %v16962_v38 }
  0xa7   : > { %20194 = vst [vmem:[#allocation14_spill] sm:$0xff] %v17144_v46  ;;  %3534 = vrot.lane.b32.xlu1 %v16793_v11, %s16685_s15  ;;  %3532 = vrot.lane.b32.xlu0 %v16796_v12, %s16685_s15  ;;  %v678_v54 = vmul.f32 %v566_v44, %v17144_v46  ;;  %20195 = vst [vmem:[#allocation15_spill] sm:$0xff] %v17159_v58  ;;  %v679_v44 = vmul.f32 %v570_v53, %v17159_v58 }
  0xa8   : > { %16019 = vmatmul.mubr.msk.f32.vlgmr.msra.gmra.mrb[6].mxu0 %vm728_vm1, %v17018_v63  ;;  %v594_v58 = vrot.slane %v17135_v42, %v17024_v36 }
  0xa9   : > { %v394_v61 = vpop.permute.xlu1 %393  ;;  %1229 = vmatprep.subr.mxu1 %v678_v54  ;;  %v392_v37 = vpop.permute.xlu0 %391  ;;  %1364 = vmatprep.mubr.f32.mxu0 %v20189_v60  ;;  %v578_v54 = vrot.slane %v17135_v42, %v16966_v40 }
  0xaa   : > { %v17163_v4 = vsel %vm419_vm0, %v390_v52, %v392_v37  ;;  %1230 = vmatpush1.msra.mxu1 %v677_v47  ;;  %v17178_v52 = vsel %vm419_vm0, %v392_v37, %v394_v61  ;;  %v590_v37 = vrot.slane %v17135_v42, %v16997_v55 }
  0xab   : > { %20196 = vst [vmem:[#allocation16_spill] sm:$0xff] %v17163_v4  ;;  %3538 = vrot.lane.b32.xlu1 %v16803_v13, %s16685_s15  ;;  %3536 = vrot.lane.b32.xlu0 %v16806_v14, %s16685_s15  ;;  %v680_v34 = vmul.f32 %v574_v62, %v17163_v4  ;;  %20197 = vst [vmem:[#allocation17_spill] sm:$0xff] %v17178_v52  ;;  %v586_v4 = vrot.slane %v17135_v42, %v16999_v56 }
  0xac   : > { %16020 = vmatmul.mubr.msk.f32.vlgmr.msra.gmra.mrb[6].mxu1 %vm728_vm1, %v17018_v63 }
  0xad   : > { %v398_v47 = vpop.permute.xlu1 %397  ;;  %1300 = vmatprep.subr.mxu0 %v680_v34  ;;  %v396_v46 = vpop.permute.xlu0 %395  ;;  %1435 = vmatprep.mubr.f32.mxu1 %v20189_v60  ;;  %v681_v34 = vmul.f32 %v578_v54, %v17178_v52  ;;  %v16012_v54 = vld [vmem:[%s20086_s5 + $0xc0] ss:$8 sm:$0xf0] }
  0xae   : > { %v17182_v62 = vsel %vm419_vm0, %v394_v61, %v396_v46  ;;  %1301 = vmatpush1.msra.mxu0 %v679_v44  ;;  %v17197_v61 = vsel %vm419_vm0, %v396_v46, %v398_v47 }
  0xaf   : > { %20198 = vst [vmem:[#allocation18_spill] sm:$0xff] %v17182_v62  ;;  %3542 = vrot.lane.b32.xlu1 %v16813_v15, %s16685_s15  ;;  %3540 = vrot.lane.b32.xlu0 %v16816_v16, %s16685_s15  ;;  %v682_v53 = vmul.f32 %v582_v57, %v17182_v62  ;;  %20199 = vst [vmem:[#allocation19_spill] sm:$0xff] %v17197_v61  ;;  %v16011_v57 = vld [vmem:[%s20086_s5 + $0xc0] ss:$8 sm:$0xf]  ;;  %v683_v52 = vmul.f32 %v586_v4, %v17197_v61 }
  0xb0   : > { %16021 = vmatmul.mubr.msk.f32.vlgmr.msra.gmra.mrb[8].mxu0 %vm728_vm1, %v17018_v63  ;;  %v17219_v43 = vor.u32 %v16012_v54, %v16011_v57 }
  0xb1   : > { %v402_v44 = vpop.permute.xlu1 %401  ;;  %1371 = vmatprep.subr.mxu1 %v682_v53  ;;  %v400_v33 = vpop.permute.xlu0 %399  ;;  %1506 = vmatprep.mubr.f32.mxu0 %v20189_v60  ;;  %v598_v53 = vrot.slane %v17135_v42, %v17022_v35 }
  0xb2   : > { %v17207_v62 = vsel %vm419_vm0, %v398_v47, %v400_v33  ;;  %1372 = vmatpush1.msra.mxu1 %v681_v34  ;;  %v17224_v47 = vsel %vm419_vm0, %v400_v33, %v402_v44  ;;  %v606_v33 = vrot.slane %v17219_v43, %v16964_v39  ;;  %v602_v57 = vrot.slane %v17219_v43, %v16978_v48 }
  0xb3   : > { %20200 = vst [vmem:[#allocation20_spill] sm:$0xff] %v17207_v62  ;;  %3546 = vrot.lane.b32.xlu1 %v16823_v17, %s16685_s15  ;;  %3544 = vrot.lane.b32.xlu0 %v16826_v18, %s16685_s15  ;;  %v684_v46 = vmul.f32 %v590_v37, %v17207_v62  ;;  %20201 = vst [vmem:[#allocation21_spill] sm:$0xff] %v17224_v47  ;;  %v685_v4 = vmul.f32 %v594_v58, %v17224_v47 }
  0xb4   : > { %16022 = vmatmul.mubr.msk.f32.vlgmr.msra.gmra.mrb[8].mxu1 %vm728_vm1, %v17018_v63  ;;  %v618_v47 = vrot.slane %v17219_v43, %v16999_v56 }
  0xb5   : > { %v406_v34 = vpop.permute.xlu1 %405  ;;  %1442 = vmatprep.subr.mxu0 %v684_v46  ;;  %v404_v45 = vpop.permute.xlu0 %403  ;;  %1577 = vmatprep.mubr.f32.mxu1 %v20189_v60 }
  0xb6   : > { %v17228_v37 = vsel %vm419_vm0, %v402_v44, %v404_v45  ;;  %1443 = vmatpush1.msra.mxu0 %v683_v52  ;;  %v17243_v52 = vsel %vm419_vm0, %v404_v45, %v406_v34  ;;  %v614_v45 = vrot.slane %v17219_v43, %v16962_v38 }
  0xb7   : > { %20202 = vst [vmem:[#allocation22_spill] sm:$0xff] %v17228_v37  ;;  %3550 = vrot.lane.b32.xlu1 %v16833_v19, %s16685_s15  ;;  %3548 = vrot.lane.b32.xlu0 %v16836_v20, %s16685_s15  ;;  %v686_v42 = vmul.f32 %v598_v53, %v17228_v37  ;;  %20203 = vst [vmem:[#allocation23_spill] sm:$0xff] %v17243_v52  ;;  %v687_v53 = vmul.f32 %v602_v57, %v17243_v52 }
  0xb8   : > { %16023 = vmatmul.mubr.msk.f32.vlgmr.msra.gmra.mrb[10].mxu0 %vm728_vm1, %v17018_v63 }
  0xb9   : > { %v410_v44 = vpop.permute.xlu1 %409  ;;  %1513 = vmatprep.subr.mxu1 %v686_v42  ;;  %v408_v54 = vpop.permute.xlu0 %407  ;;  %1648 = vmatprep.mubr.f32.mxu0 %v20189_v60  ;;  %v610_v42 = vrot.slane %v17219_v43, %v16966_v40 }
  0xba   : > { %v17247_v46 = vsel %vm419_vm0, %v406_v34, %v408_v54  ;;  %1514 = vmatpush1.msra.mxu1 %v685_v4  ;;  %v16029_v34 = vld [vmem:[%s20086_s5 + $0x1] ss:$8 sm:$0xf] }
  0xbb   : > { %20204 = vst [vmem:[#allocation24_spill] sm:$0xff] %v17247_v46  ;;  %3554 = vrot.lane.b32.xlu1 %v16843_v21, %s16685_s15  ;;  %3552 = vrot.lane.b32.xlu0 %v16846_v22, %s16685_s15  ;;  %v688_v58 = vmul.f32 %v606_v33, %v17247_v46  ;;  %v16030_v4 = vld [vmem:[%s20086_s5 + $0x1] ss:$8 sm:$0xf0]  ;;  %v17268_v33 = vsel %vm419_vm0, %v408_v54, %v410_v44 }
  0xbc   : > { %16024 = vmatmul.mubr.msk.f32.vlgmr.msra.gmra.mrb[10].mxu1 %vm728_vm1, %v17018_v63  ;;  %20205 = vst [vmem:[#allocation25_spill] sm:$0xff] %v17268_v33  ;;  %v626_v54 = vrot.slane %v17219_v43, %v17024_v36  ;;  %v17281_v52 = vor.u32 %v16030_v4, %v16029_v34 }
  0xbd   : > { %v414_v46 = vpop.permute.xlu1 %413  ;;  %1584 = vmatprep.subr.mxu0 %v688_v58  ;;  %v412_v57 = vpop.permute.xlu0 %411  ;;  %1719 = vmatprep.mubr.f32.mxu1 %v20189_v60  ;;  %v689_v58 = vmul.f32 %v610_v42, %v17268_v33 }
  0xbe   : > { %v17272_v37 = vsel %vm419_vm0, %v410_v44, %v412_v57  ;;  %1585 = vmatpush1.msra.mxu0 %v687_v53  ;;  %v622_v44 = vrot.slane %v17219_v43, %v16997_v55  ;;  %v630_v53 = vrot.slane %v17219_v43, %v17022_v35  ;;  %v17294_v34 = vsel %vm419_vm0, %v412_v57, %v414_v46 }
  0xbf   : > { %20206 = vst [vmem:[#allocation26_spill] sm:$0xff] %v17272_v37  ;;  %3558 = vrot.lane.b32.xlu1 %v16853_v23, %s16685_s15  ;;  %3556 = vrot.lane.b32.xlu0 %v16856_v24, %s16685_s15  ;;  %v690_v62 = vmul.f32 %v614_v45, %v17272_v37  ;;  %20207 = vst [vmem:[#allocation27_spill] sm:$0xff] %v17294_v34 }
  0xc0   : > { %16025 = vmatmul.mubr.msk.f32.vlgmr.msra.gmra.mrb[12].mxu0 %vm728_vm1, %v17018_v63 }
  0xc1   : > { %v418_v45 = vpop.permute.xlu1 %417  ;;  %1655 = vmatprep.subr.mxu1 %v690_v62  ;;  %v416_v37 = vpop.permute.xlu0 %415  ;;  %1790 = vmatprep.mubr.f32.mxu0 %v20189_v60 }
  0xc2   : > { %v17298_v42 = vsel %vm419_vm0, %v418_v45, %v17002_v59  ;;  %v17301_v4 = vsel %vm419_vm0, %v414_v46, %v416_v37  ;;  %v17304_v33 = vsel %vm419_vm0, %v416_v37, %v418_v45  ;;  %1656 = vmatpush1.msra.mxu1 %v689_v58  ;;  %v2089_v59 = vrot.slane %v17281_v52, %v16964_v39 }
  0xc3   : > { %20208 = vst [vmem:[#allocation28_spill] sm:$0xff] %v17298_v42  ;;  %20209 = vst [vmem:[#allocation29_spill] sm:$0xff] %v17301_v4  ;;  %v693_v43 = vmul.f32 %v626_v54, %v17304_v33  ;;  %3562 = vrot.lane.b32.xlu1 %v16863_v25, %s16685_s15  ;;  %3560 = vrot.lane.b32.xlu0 %v16866_v26, %s16685_s15  ;;  %v692_v62 = vmul.f32 %v622_v44, %v17301_v4 }
  0xc4   : > { %20210 = vst [vmem:[#allocation30_spill] sm:$0xff] %v17304_v33  ;;  %v694_v46 = vmul.f32 %v630_v53, %v17298_v42  ;;  %16026 = vmatmul.mubr.msk.f32.vlgmr.msra.gmra.mrb[12].mxu1 %vm728_vm1, %v17018_v63  ;;  %v691_v37 = vmul.f32 %v618_v47, %v17294_v34  ;;  %v2093_v58 = vrot.slane %v17281_v52, %v16966_v40  ;;  %v18069_v33 = vld [vmem:[%s16738_s26 + $0xb0] sm:$0xff] }
  0xc5   : > { %v1938_v57 = vpop.permute.xlu1 %1937  ;;  %v1936_v54 = vpop.permute.xlu0 %1935  ;;  %1861 = vmatprep.mubr.f32.mxu1 %v20189_v60  ;;  %1726 = vmatprep.subr.mxu0 %v692_v62  ;;  %v2097_v44 = vrot.slane %v17281_v52, %v16962_v38 }
  0xc6   : > { %1797 = vmatprep.subr.mxu1 %v694_v46  ;;  %v17320_v25 = vsel %vm1997_vm2, %v1936_v54, %v1938_v57  ;;  %1727 = vmatpush1.msra.mxu0 %v691_v37  ;;  %v17360_v37 = vld [vmem:[%s20082_s1 + $0x8] sm:$0xff] }
  0xc7   : > { %20211 = vst [vmem:[#allocation31_spill] sm:$0xff] %v17320_v25  ;;  %1798 = vmatpush1.msra.mxu1 %v693_v43  ;;  %v2243_v26 = vmul.f32 %v2089_v59, %v17320_v25  ;;  %3566 = vrot.lane.b32.xlu1 %v16873_v27, %s16685_s15  ;;  %v2085_v59 = vrot.slane %v17281_v52, %v16978_v48 }
  0xc8   : > { %3564 = vrot.lane.b32.xlu0 %v16876_v28, %s16685_s15  ;;  %16028 = vmatmul.mubr.msk.f32.vlgmr.msra.gmra.mrb[14].mxu1 %vm728_vm1, %v17018_v63 }
  0xc9   : > { %v1942_v47 = vpop.permute.xlu1 %1941  ;;  %2311 = vmatprep.subr.mxu0 %v2243_v26  ;;  %v1940_v53 = vpop.permute.xlu0 %1939  ;;  %16027 = vmatmul.mubr.msk.f32.vlgmr.msra.gmra.mrb[14].mxu0 %vm728_vm1, %v17018_v63 }
  0xca   : > { %v17334_v45 = vsel %vm1997_vm2, %v1938_v57, %v1940_v53  ;;  %v17337_v43 = vsel %vm1997_vm2, %v1940_v53, %v1942_v47  ;;  %2446 = vmatprep.mubr.f32.mxu1 %v20189_v60  ;;  %2375 = vmatprep.mubr.f32.mxu0 %v20189_v60  ;;  %v16032_v53 = vld [vmem:[%s20086_s5 + $0x41] ss:$8 sm:$0xf0] }
  0xcb   : > { %20212 = vst [vmem:[#allocation32_spill] sm:$0xff] %v17334_v45  ;;  %20213 = vst [vmem:[#allocation33_spill] sm:$0xff] %v17337_v43  ;;  %v2244_v27 = vmul.f32 %v2093_v58, %v17334_v45  ;;  %v2245_v28 = vmul.f32 %v2097_v44, %v17337_v43  ;;  %3570 = vrot.lane.b32.xlu1 %v16883_v29, %s16685_s15  ;;  %v2105_v29 = vrot.slane %v17281_v52, %v16997_v55  ;;  %v16031_v44 = vld [vmem:[%s20086_s5 + $0x41] ss:$8 sm:$0xf] }
  0xcc   : > { %3568 = vrot.lane.b32.xlu0 %v16886_v30, %s16685_s15  ;;  %v2101_v30 = vrot.slane %v17281_v52, %v16999_v56 }
  0xcd   : > { %v1944_v62 = vpop.permute.xlu1 %1943  ;;  %2382 = vmatprep.subr.mxu1 %v2245_v28  ;;  %v17351_v63 = vpop.permute.xlu0 %1932  ;;  %v2109_v28 = vrot.slane %v17281_v52, %v17024_v36 }
  0xce   : > { %v17355_v46 = vsel %vm1997_vm2, %v17351_v63, %v1936_v54  ;;  %2383 = vmatpush1.msra.mxu1 %v2244_v27  ;;  %v17374_v54 = vsel %vm1997_vm2, %v1942_v47, %v1944_v62  ;;  %v2113_v47 = vrot.slane %v17281_v52, %v17022_v35 }
  0xcf   : > { %20214 = vst [vmem:[#allocation34_spill] sm:$0xff] %v17355_v46  ;;  %v2242_v57 = vmul.f32 %v2085_v59, %v17355_v46  ;;  %16039 = vmatmul.mubr.msk.f32.vlgmr.msra.gmra.mrb[0].mxu1 %vm728_vm1, %v17360_v37  ;;  %3574 = vrot.lane.b32.xlu1 %v16893_v31, %s16685_s15  ;;  %20215 = vst [vmem:[#allocation35_spill] sm:$0xff] %v17374_v54  ;;  %v2246_v27 = vmul.f32 %v2101_v30, %v17374_v54  ;;  %v17659_v46 = vld [vmem:[%s16738_s26 + $0xc0] sm:$0xff] }
  0xd0   : > { %3572 = vrot.lane.b32.xlu0 %v16896_v32, %s16685_s15  ;;  %2588 = vmatprep.mubr.f32.mxu1 %v20189_v60  ;;  %v17399_v59 = vor.u32 %v16032_v53, %v16031_v44 }
  0xd1   : > { %v1948_v26 = vpop.permute.xlu1 %1947  ;;  %2312 = vmatpush1.msra.mxu0 %v2242_v57  ;;  %v1946_v58 = vpop.permute.xlu0 %1945 }
  0xd2   : > { %v17384_v31 = vsel %vm1997_vm2, %v1944_v62, %v1946_v58  ;;  %16038 = vmatmul.mubr.msk.f32.vlgmr.msra.gmra.mrb[0].mxu0 %vm728_vm1, %v17360_v37  ;;  %v17402_v62 = vsel %vm1997_vm2, %v1946_v58, %v1948_v26  ;;  %v2117_v58 = vrot.slane %v17399_v59, %v16978_v48 }
  0xd3   : > { %20216 = vst [vmem:[#allocation36_spill] sm:$0xff] %v17384_v31  ;;  %v2247_v32 = vmul.f32 %v2105_v29, %v17384_v31  ;;  %2517 = vmatprep.mubr.f32.mxu0 %v20189_v60  ;;  %5095 = vrot.lane.b32.xlu1 %v16754_v3, %s16686_s13  ;;  %20217 = vst [vmem:[#allocation37_spill] sm:$0xff] %v17402_v62  ;;  %v2121_v3 = vrot.slane %v17399_v59, %v16964_v39  ;;  %v17980_v31 = vld [vmem:[%s16738_s26 + $0x88] sm:$0xff] }
  0xd4   : > { %5093 = vrot.lane.b32.xlu0 %v16744_v1, %s16686_s13  ;;  %v2248_v1 = vmul.f32 %v2109_v28, %v17402_v62 }
  0xd5   : > { %v1952_v57 = vpop.permute.xlu1 %1951  ;;  %2453 = vmatprep.subr.mxu0 %v2247_v32  ;;  %v1950_v29 = vpop.permute.xlu0 %1949 }
  0xd6   : > { %v17405_v30 = vsel %vm1997_vm2, %v1948_v26, %v1950_v29  ;;  %2454 = vmatpush1.msra.mxu0 %v2246_v27  ;;  %v17420_v26 = vsel %vm1997_vm2, %v1950_v29, %v1952_v57  ;;  %v2125_v27 = vrot.slane %v17399_v59, %v16966_v40 }
  0xd7   : > { %20218 = vst [vmem:[#allocation38_spill] sm:$0xff] %v17405_v30  ;;  %v2249_v52 = vmul.f32 %v2113_v47, %v17405_v30  ;;  %16040 = vmatmul.mubr.msk.f32.vlgmr.msra.gmra.mrb[2].mxu0 %vm728_vm1, %v17360_v37  ;;  %5099 = vrot.lane.b32.xlu1 %v16751_v2, %s16686_s13  ;;  %20219 = vst [vmem:[#allocation39_spill] sm:$0xff] %v17420_v26  ;;  %v2129_v2 = vrot.slane %v17399_v59, %v16962_v38  ;;  %v16061_v30 = vld [vmem:[%s20086_s5 + $0xc2] ss:$8 sm:$0xf0] }
  0xd8   : > { %5097 = vrot.lane.b32.xlu0 %v16741_v0, %s16686_s13  ;;  %2659 = vmatprep.mubr.f32.mxu0 %v20189_v60  ;;  %v2250_v0 = vmul.f32 %v2117_v58, %v17420_v26  ;;  %v17985_v26 = vld [vmem:[%s16738_s26 + $0x80] sm:$0xff] }
  0xd9   : > { %v1956_v44 = vpop.permute.xlu1 %1955  ;;  %2524 = vmatprep.subr.mxu1 %v2249_v52  ;;  %v1954_v53 = vpop.permute.xlu0 %1953 }
  0xda   : > { %v17424_v32 = vsel %vm1997_vm2, %v1952_v57, %v1954_v53  ;;  %2525 = vmatpush1.msra.mxu1 %v2248_v1  ;;  %v17439_v28 = vsel %vm1997_vm2, %v1954_v53, %v1956_v44  ;;  %v2133_v1 = vrot.slane %v17399_v59, %v16999_v56 }
  0xdb   : > { %20220 = vst [vmem:[#allocation40_spill] sm:$0xff] %v17424_v32  ;;  %v2251_v47 = vmul.f32 %v2121_v3, %v17424_v32  ;;  %16041 = vmatmul.mubr.msk.f32.vlgmr.msra.gmra.mrb[2].mxu1 %vm728_vm1, %v17360_v37  ;;  %5101 = vrot.lane.b32.xlu1 %v16763_v5, %s16686_s13  ;;  %20221 = vst [vmem:[#allocation41_spill] sm:$0xff] %v17439_v28  ;;  %v2137_v5 = vrot.slane %v17399_v59, %v16997_v55  ;;  %v17924_v32 = vld [vmem:[%s16738_s26 + $0x68] sm:$0xff] }
  0xdc   : > { %5090 = vrot.lane.b32.xlu0 %v16766_v6, %s16686_s13  ;;  %2730 = vmatprep.mubr.f32.mxu1 %v20189_v60  ;;  %v2252_v6 = vmul.f32 %v2125_v27, %v17439_v28  ;;  %v17949_v28 = vld [vmem:[%s16738_s26 + $0x78] sm:$0xff] }
  0xdd   : > { %v1960_v57 = vpop.permute.xlu1 %1959  ;;  %2595 = vmatprep.subr.mxu0 %v2251_v47  ;;  %v1958_v29 = vpop.permute.xlu0 %1957  ;;  %v16033_v47 = vld [vmem:[%s20086_s5 + $0x81] ss:$8 sm:$0xf] }
  0xde   : > { %v17443_v52 = vsel %vm1997_vm2, %v1956_v44, %v1958_v29  ;;  %2596 = vmatpush1.msra.mxu0 %v2250_v0  ;;  %v17458_v58 = vsel %vm1997_vm2, %v1958_v29, %v1960_v57  ;;  %v2145_v0 = vrot.slane %v17399_v59, %v17022_v35  ;;  %v2141_v29 = vrot.slane %v17399_v59, %v17024_v36 }
  0xdf   : > { %20222 = vst [vmem:[#allocation42_spill] sm:$0xff] %v17443_v52  ;;  %v2253_v3 = vmul.f32 %v2129_v2, %v17443_v52  ;;  %16042 = vmatmul.mubr.msk.f32.vlgmr.msra.gmra.mrb[4].mxu0 %vm728_vm1, %v17360_v37  ;;  %5105 = vrot.lane.b32.xlu1 %v16773_v7, %s16686_s13  ;;  %20223 = vst [vmem:[#allocation43_spill] sm:$0xff] %v17458_v58  ;;  %v16034_v2 = vld [vmem:[%s20086_s5 + $0x81] ss:$8 sm:$0xf0]  ;;  %v2254_v27 = vmul.f32 %v2133_v1, %v17458_v58 }
  0xe0   : > { %5103 = vrot.lane.b32.xlu0 %v16776_v8, %s16686_s13  ;;  %2801 = vmatprep.mubr.f32.mxu0 %v20189_v60 }
  0xe1   : > { %v1964_v44 = vpop.permute.xlu1 %1963  ;;  %2666 = vmatprep.subr.mxu1 %v2253_v3  ;;  %v1962_v53 = vpop.permute.xlu0 %1961 }
  0xe2   : > { %v17468_v7 = vsel %vm1997_vm2, %v1960_v57, %v1962_v53  ;;  %2667 = vmatpush1.msra.mxu1 %v2252_v6  ;;  %v17482_v57 = vor.u32 %v16034_v2, %v16033_v47  ;;  %v17485_v3 = vsel %vm1997_vm2, %v1962_v53, %v1964_v44 }
  0xe3   : > { %20224 = vst [vmem:[#allocation44_spill] sm:$0xff] %v17468_v7  ;;  %v2255_v8 = vmul.f32 %v2137_v5, %v17468_v7  ;;  %16043 = vmatmul.mubr.msk.f32.vlgmr.msra.gmra.mrb[4].mxu1 %vm728_vm1, %v17360_v37  ;;  %5109 = vrot.lane.b32.xlu1 %v16783_v9, %s16686_s13  ;;  %20225 = vst [vmem:[#allocation45_spill] sm:$0xff] %v17485_v3 }
  0xe4   : > { %5107 = vrot.lane.b32.xlu0 %v16786_v10, %s16686_s13  ;;  %2872 = vmatprep.mubr.f32.mxu1 %v20189_v60  ;;  %v2153_v9 = vrot.slane %v17482_v57, %v16964_v39  ;;  %v2256_v10 = vmul.f32 %v2141_v29, %v17485_v3  ;;  %v2149_v53 = vrot.slane %v17482_v57, %v16978_v48  ;;  %v17872_v3 = vld [vmem:[%s16738_s26 + $0x48] sm:$0xff] }
  0xe5   : > { %v1968_v5 = vpop.permute.xlu1 %1967  ;;  %2737 = vmatprep.subr.mxu0 %v2255_v8  ;;  %v1966_v6 = vpop.permute.xlu0 %1965 }
  0xe6   : > { %v17489_v1 = vsel %vm1997_vm2, %v1964_v44, %v1966_v6  ;;  %2738 = vmatpush1.msra.mxu0 %v2254_v27  ;;  %v17504_v44 = vsel %vm1997_vm2, %v1966_v6, %v1968_v5  ;;  %v2157_v27 = vrot.slane %v17482_v57, %v16966_v40 }
  0xe7   : > { %20226 = vst [vmem:[#allocation46_spill] sm:$0xff] %v17489_v1  ;;  %v2257_v59 = vmul.f32 %v2145_v0, %v17489_v1  ;;  %16044 = vmatmul.mubr.msk.f32.vlgmr.msra.gmra.mrb[6].mxu0 %vm728_vm1, %v17360_v37  ;;  %5113 = vrot.lane.b32.xlu1 %v16793_v11, %s16686_s13  ;;  %20227 = vst [vmem:[#allocation47_spill] sm:$0xff] %v17504_v44  ;;  %v2161_v11 = vrot.slane %v17482_v57, %v16962_v38 }
  0xe8   : > { %5111 = vrot.lane.b32.xlu0 %v16796_v12, %s16686_s13  ;;  %2943 = vmatprep.mubr.f32.mxu0 %v20189_v60  ;;  %v2258_v12 = vmul.f32 %v2149_v53, %v17504_v44 }
  0xe9   : > { %v1972_v47 = vpop.permute.xlu1 %1971  ;;  %2808 = vmatprep.subr.mxu1 %v2257_v59  ;;  %v1970_v2 = vpop.permute.xlu0 %1969 }
  0xea   : > { %v17508_v8 = vsel %vm1997_vm2, %v1968_v5, %v1970_v2  ;;  %2809 = vmatpush1.msra.mxu1 %v2256_v10  ;;  %v17523_v29 = vsel %vm1997_vm2, %v1970_v2, %v1972_v47  ;;  %v2165_v10 = vrot.slane %v17482_v57, %v16999_v56 }
  0xeb   : > { %20228 = vst [vmem:[#allocation48_spill] sm:$0xff] %v17508_v8  ;;  %v2259_v0 = vmul.f32 %v2153_v9, %v17508_v8  ;;  %16045 = vmatmul.mubr.msk.f32.vlgmr.msra.gmra.mrb[6].mxu1 %vm728_vm1, %v17360_v37  ;;  %5117 = vrot.lane.b32.xlu1 %v16803_v13, %s16686_s13  ;;  %20229 = vst [vmem:[#allocation49_spill] sm:$0xff] %v17523_v29  ;;  %v2169_v13 = vrot.slane %v17482_v57, %v16997_v55  ;;  %v17816_v8 = vld [vmem:[%s16738_s26 + $0x28] sm:$0xff] }
  0xec   : > { %5115 = vrot.lane.b32.xlu0 %v16806_v14, %s16686_s13  ;;  %3014 = vmatprep.mubr.f32.mxu1 %v20189_v60  ;;  %v2260_v14 = vmul.f32 %v2157_v27, %v17523_v29  ;;  %v17841_v29 = vld [vmem:[%s16738_s26 + $0x38] sm:$0xff] }
  0xed   : > { %v1976_v5 = vpop.permute.xlu1 %1975  ;;  %2879 = vmatprep.subr.mxu0 %v2259_v0  ;;  %v1974_v6 = vpop.permute.xlu0 %1973  ;;  %v16035_v0 = vld [vmem:[%s20086_s5 + $0xc1] ss:$8 sm:$0xf] }
  0xee   : > { %v17527_v59 = vsel %vm1997_vm2, %v1972_v47, %v1974_v6  ;;  %2880 = vmatpush1.msra.mxu0 %v2258_v12  ;;  %v17542_v53 = vsel %vm1997_vm2, %v1974_v6, %v1976_v5  ;;  %v2177_v12 = vrot.slane %v17482_v57, %v17022_v35  ;;  %v2173_v6 = vrot.slane %v17482_v57, %v17024_v36 }
  0xef   : > { %20230 = vst [vmem:[#allocation50_spill] sm:$0xff] %v17527_v59  ;;  %v2261_v9 = vmul.f32 %v2161_v11, %v17527_v59  ;;  %16046 = vmatmul.mubr.msk.f32.vlgmr.msra.gmra.mrb[8].mxu0 %vm728_vm1, %v17360_v37  ;;  %5121 = vrot.lane.b32.xlu1 %v16813_v15, %s16686_s13  ;;  %20231 = vst [vmem:[#allocation51_spill] sm:$0xff] %v17542_v53  ;;  %v16036_v11 = vld [vmem:[%s20086_s5 + $0xc1] ss:$8 sm:$0xf0]  ;;  %v2262_v27 = vmul.f32 %v2165_v10, %v17542_v53 }
  0xf0   : > { %5119 = vrot.lane.b32.xlu0 %v16816_v16, %s16686_s13  ;;  %3085 = vmatprep.mubr.f32.mxu0 %v20189_v60 }
  0xf1   : > { %v1980_v47 = vpop.permute.xlu1 %1979  ;;  %2950 = vmatprep.subr.mxu1 %v2261_v9  ;;  %v1978_v2 = vpop.permute.xlu0 %1977 }
  0xf2   : > { %v17552_v15 = vsel %vm1997_vm2, %v1976_v5, %v1978_v2  ;;  %2951 = vmatpush1.msra.mxu1 %v2260_v14  ;;  %v17566_v5 = vor.u32 %v16036_v11, %v16035_v0  ;;  %v17569_v9 = vsel %vm1997_vm2, %v1978_v2, %v1980_v47 }
  0xf3   : > { %20232 = vst [vmem:[#allocation52_spill] sm:$0xff] %v17552_v15  ;;  %v2263_v16 = vmul.f32 %v2169_v13, %v17552_v15  ;;  %16047 = vmatmul.mubr.msk.f32.vlgmr.msra.gmra.mrb[8].mxu1 %vm728_vm1, %v17360_v37  ;;  %5125 = vrot.lane.b32.xlu1 %v16823_v17, %s16686_s13  ;;  %20233 = vst [vmem:[#allocation53_spill] sm:$0xff] %v17569_v9 }
  0xf4   : > { %5123 = vrot.lane.b32.xlu0 %v16826_v18, %s16686_s13  ;;  %3156 = vmatprep.mubr.f32.mxu1 %v20189_v60  ;;  %v2185_v17 = vrot.slane %v17566_v5, %v16964_v39  ;;  %v2264_v18 = vmul.f32 %v2173_v6, %v17569_v9  ;;  %v2181_v2 = vrot.slane %v17566_v5, %v16978_v48  ;;  %v16054_v6 = vld [vmem:[%s20086_s5 + $0x2] ss:$8 sm:$0xf] }
  0xf5   : > { %v1984_v13 = vpop.permute.xlu1 %1983  ;;  %3021 = vmatprep.subr.mxu0 %v2263_v16  ;;  %v1982_v14 = vpop.permute.xlu0 %1981 }
  0xf6   : > { %v17573_v10 = vsel %vm1997_vm2, %v1980_v47, %v1982_v14  ;;  %3022 = vmatpush1.msra.mxu0 %v2262_v27  ;;  %v17588_v47 = vsel %vm1997_vm2, %v1982_v14, %v1984_v13  ;;  %v2189_v27 = vrot.slane %v17566_v5, %v16966_v40 }
  0xf7   : > { %20234 = vst [vmem:[#allocation54_spill] sm:$0xff] %v17573_v10  ;;  %v2265_v57 = vmul.f32 %v2177_v12, %v17573_v10  ;;  %16048 = vmatmul.mubr.msk.f32.vlgmr.msra.gmra.mrb[10].mxu0 %vm728_vm1, %v17360_v37  ;;  %5129 = vrot.lane.b32.xlu1 %v16833_v19, %s16686_s13  ;;  %20235 = vst [vmem:[#allocation55_spill] sm:$0xff] %v17588_v47  ;;  %v2193_v19 = vrot.slane %v17566_v5, %v16962_v38 }
  0xf8   : > { %5127 = vrot.lane.b32.xlu0 %v16836_v20, %s16686_s13  ;;  %3227 = vmatprep.mubr.f32.mxu0 %v20189_v60  ;;  %v2266_v20 = vmul.f32 %v2181_v2, %v17588_v47  ;;  %v2201_v2 = vrot.slane %v17566_v5, %v16997_v55  ;;  %v17765_v47 = vld [vmem:[%s16738_s26 + $0x10] sm:$0xff] }
  0xf9   : > { %v1988_v0 = vpop.permute.xlu1 %1987  ;;  %3092 = vmatprep.subr.mxu1 %v2265_v57  ;;  %v1986_v11 = vpop.permute.xlu0 %1985 }
  0xfa   : > { %v17592_v16 = vsel %vm1997_vm2, %v1984_v13, %v1986_v11  ;;  %3093 = vmatpush1.msra.mxu1 %v2264_v18  ;;  %v16055_v13 = vld [vmem:[%s20086_s5 + $0x2] ss:$8 sm:$0xf0]  ;;  %v17613_v14 = vsel %vm1997_vm2, %v1986_v11, %v1988_v0  ;;  %v2205_v18 = vrot.slane %v17566_v5, %v17024_v36 }
  0xfb   : > { %20236 = vst [vmem:[#allocation56_spill] sm:$0xff] %v17592_v16  ;;  %v2267_v12 = vmul.f32 %v2185_v17, %v17592_v16  ;;  %16049 = vmatmul.mubr.msk.f32.vlgmr.msra.gmra.mrb[10].mxu1 %vm728_vm1, %v17360_v37  ;;  %5133 = vrot.lane.b32.xlu1 %v16843_v21, %s16686_s13  ;;  %20237 = vst [vmem:[#allocation57_spill] sm:$0xff] %v17613_v14  ;;  %v17626_v11 = vor.u32 %v16055_v13, %v16054_v6  ;;  %v16056_v16 = vld [vmem:[%s20086_s5 + $0x42] ss:$8 sm:$0xf] }
  0xfc   : > { %5131 = vrot.lane.b32.xlu0 %v16846_v22, %s16686_s13  ;;  %3298 = vmatprep.mubr.f32.mxu1 %v20189_v60 }
  0xfd   : > { %v1992_v57 = vpop.permute.xlu1 %1991  ;;  %3163 = vmatprep.subr.mxu0 %v2267_v12  ;;  %v1990_v17 = vpop.permute.xlu0 %1989  ;;  %v2268_v12 = vmul.f32 %v2189_v27, %v17613_v14  ;;  %v3688_v15 = vrot.slane %v17626_v11, %v17024_v36 }
  0xfe   : > { %v17617_v21 = vsel %vm1997_vm2, %v1988_v0, %v1990_v17  ;;  %3164 = vmatpush1.msra.mxu0 %v2266_v20  ;;  %v2197_v0 = vrot.slane %v17566_v5, %v16999_v56  ;;  %v17638_v20 = vsel %vm1997_vm2, %v1990_v17, %v1992_v57 }
  0xff   : > { %20238 = vst [vmem:[#allocation58_spill] sm:$0xff] %v17617_v21  ;;  %v2269_v22 = vmul.f32 %v2193_v19, %v17617_v21  ;;  %16050 = vmatmul.mubr.msk.f32.vlgmr.msra.gmra.mrb[12].mxu0 %vm728_vm1, %v17360_v37  ;;  %5137 = vrot.lane.b32.xlu1 %v16853_v23, %s16686_s13  ;;  %v2209_v19 = vrot.slane %v17566_v5, %v17022_v35  ;;  %20239 = vst [vmem:[#allocation59_spill] sm:$0xff] %v17638_v20  ;;  %v17733_v21 = vld [vmem:[%s16738_s26 + $0xf0] sm:$0xff] }
 0x100   : > { %5135 = vrot.lane.b32.xlu0 %v16856_v24, %s16686_s13  ;;  %3369 = vmatprep.mubr.f32.mxu0 %v20189_v60 }
 0x101   : > { %v1996_v6 = vpop.permute.xlu1 %1995  ;;  %3234 = vmatprep.subr.mxu1 %v2269_v22  ;;  %v1994_v27 = vpop.permute.xlu0 %1993  ;;  %v3668_v22 = vrot.slane %v17626_v11, %v16964_v39 }
 0x102   : > { %v17643_v13 = vsel %vm1997_vm2, %v1996_v6, %v17351_v63  ;;  %v17646_v23 = vsel %vm1997_vm2, %v1992_v57, %v1994_v27  ;;  %v17649_v24 = vsel %vm1997_vm2, %v1994_v27, %v1996_v6  ;;  %3235 = vmatpush1.msra.mxu1 %v2268_v12  ;;  %v2270_v63 = vmul.f32 %v2197_v0, %v17638_v20  ;;  %v17664_v57 = vld [vmem:[%s16738_s26 + $0xb8] sm:$0xff] }
 0x103   : > { %20240 = vst [vmem:[#allocation60_spill] sm:$0xff] %v17643_v13  ;;  %20241 = vst [vmem:[#allocation61_spill] sm:$0xff] %v17646_v23  ;;  %v2272_v5 = vmul.f32 %v2205_v18, %v17649_v24  ;;  %v2271_v17 = vmul.f32 %v2201_v2, %v17646_v23  ;;  %16051 = vmatmul.mubr.msk.f32.vlgmr.msra.gmra.mrb[12].mxu1 %vm728_vm1, %v17360_v37  ;;  %5141 = vrot.lane.b32.xlu1 %v17659_v46, %s16686_s13  ;;  %v16057_v20 = vld [vmem:[%s20086_s5 + $0x42] ss:$8 sm:$0xf0] }
 0x104   : > { %20242 = vst [vmem:[#allocation62_spill] sm:$0xff] %v17649_v24  ;;  %5139 = vrot.lane.b32.xlu0 %v17664_v57, %s16686_s13  ;;  %v2273_v18 = vmul.f32 %v2209_v19, %v17643_v13  ;;  %3440 = vmatprep.mubr.f32.mxu1 %v20189_v60  ;;  %v3672_v27 = vrot.slane %v17626_v11, %v16966_v40  ;;  %v17681_v19 = vld [vmem:[%s16738_s26 + $0xd0] sm:$0xff]  ;;  %v17705_v24 = vld [vmem:[%s16738_s26 + $0xe0] sm:$0xff] }
 0x105   : > { %v3517_v2 = vpop.permute.xlu1 %3516  ;;  %3305 = vmatprep.subr.mxu0 %v2271_v17  ;;  %v3515_v12 = vpop.permute.xlu0 %3514  ;;  %v3676_v23 = vrot.slane %v17626_v11, %v16962_v38  ;;  %v17686_v17 = vld [vmem:[%s16738_s26 + $0xc8] sm:$0xff] }
 0x106   : > { %3376 = vmatprep.subr.mxu1 %v2273_v18  ;;  %v17671_v0 = vsel %vm3576_vm3, %v3515_v12, %v3517_v2  ;;  %3306 = vmatpush1.msra.mxu0 %v2270_v63 }
 0x107   : > { %20243 = vst [vmem:[#allocation63_spill] sm:$0xff] %v17671_v0  ;;  %3377 = vmatpush1.msra.mxu1 %v2272_v5  ;;  %v3822_v6 = vmul.f32 %v3668_v22, %v17671_v0  ;;  %16052 = vmatmul.mubr.msk.f32.vlgmr.msra.gmra.mrb[14].mxu0 %vm728_vm1, %v17360_v37 }
 0x108   : > { %5145 = vrot.lane.b32.xlu1 %v17681_v19, %s16686_s13  ;;  %5143 = vrot.lane.b32.xlu0 %v17686_v17, %s16686_s13 }
 0x109   : > { %v3521_v5 = vpop.permute.xlu1 %3520  ;;  %3890 = vmatprep.subr.mxu0 %v3822_v6  ;;  %v3519_v22 = vpop.permute.xlu0 %3518  ;;  %16053 = vmatmul.mubr.msk.f32.vlgmr.msra.gmra.mrb[14].mxu1 %vm728_vm1, %v17360_v37  ;;  %v3664_v6 = vrot.slane %v17626_v11, %v16978_v48  ;;  %v17710_v37 = vld [vmem:[%s16738_s26 + $0xd8] sm:$0xff] }
 0x10a   : > { %v17693_v63 = vsel %vm3576_vm3, %v3517_v2, %v3519_v22  ;;  %v17696_v18 = vsel %vm3576_vm3, %v3519_v22, %v3521_v5  ;;  %3954 = vmatprep.mubr.f32.mxu0 %v20189_v60  ;;  %4025 = vmatprep.mubr.f32.mxu1 %v20189_v60  ;;  %v17723_v22 = vld [vmem:[%s20082_s1 + $0x10] sm:$0xff] }
 0x10b   : > { %20244 = vst [vmem:[#allocation64_spill] sm:$0xff] %v17693_v63  ;;  %20245 = vst [vmem:[#allocation65_spill] sm:$0xff] %v17696_v18  ;;  %v3823_v0 = vmul.f32 %v3672_v27, %v17693_v63  ;;  %v3824_v13 = vmul.f32 %v3676_v23, %v17696_v18  ;;  %v3684_v63 = vrot.slane %v17626_v11, %v16997_v55 }
 0x10c   : > { %5149 = vrot.lane.b32.xlu1 %v17705_v24, %s16686_s13  ;;  %5147 = vrot.lane.b32.xlu0 %v17710_v37, %s16686_s13 }
 0x10d   : > { %v3523_v2 = vpop.permute.xlu1 %3522  ;;  %3961 = vmatprep.subr.mxu1 %v3824_v13  ;;  %v17714_v27 = vpop.permute.xlu0 %3511  ;;  %v3680_v13 = vrot.slane %v17626_v11, %v16999_v56 }
 0x10e   : > { %v17718_v23 = vsel %vm3576_vm3, %v17714_v27, %v3515_v12  ;;  %3962 = vmatpush1.msra.mxu1 %v3823_v0  ;;  %v17738_v12 = vld [vmem:[%s16738_s26 + $0xe8] sm:$0xff]  ;;  %v17743_v0 = vsel %vm3576_vm3, %v3521_v5, %v3523_v2 }
 0x10f   : > { %20246 = vst [vmem:[#allocation66_spill] sm:$0xff] %v17718_v23  ;;  %v3821_v18 = vmul.f32 %v3664_v6, %v17718_v23  ;;  %16064 = vmatmul.mubr.msk.f32.vlgmr.msra.gmra.mrb[0].mxu1 %vm728_vm1, %v17723_v22  ;;  %20247 = vst [vmem:[#allocation67_spill] sm:$0xff] %v17743_v0  ;;  %v3825_v10 = vmul.f32 %v3680_v13, %v17743_v0 }
 0x110   : > { %5153 = vrot.lane.b32.xlu1 %v17733_v21, %s16686_s13  ;;  %5151 = vrot.lane.b32.xlu0 %v17738_v12, %s16686_s13 }
 0x111   : > { %v3527_v6 = vpop.permute.xlu1 %3526  ;;  %3891 = vmatpush1.msra.mxu0 %v3821_v18  ;;  %v3525_v23 = vpop.permute.xlu0 %3524  ;;  %4167 = vmatprep.mubr.f32.mxu1 %v20189_v60  ;;  %v3692_v18 = vrot.slane %v17626_v11, %v17022_v35 }
 0x112   : > { %v17753_v14 = vsel %vm3576_vm3, %v3523_v2, %v3525_v23  ;;  %16063 = vmatmul.mubr.msk.f32.vlgmr.msra.gmra.mrb[0].mxu0 %vm728_vm1, %v17723_v22  ;;  %v17770_v2 = vld [vmem:[%s16738_s26 + $0x8] sm:$0xff]  ;;  %v17777_v13 = vsel %vm3576_vm3, %v3525_v23, %v3527_v6  ;;  %v17791_v23 = vld [vmem:[%s16738_s26 + $0x20] sm:$0xff] }
 0x113   : > { %20248 = vst [vmem:[#allocation68_spill] sm:$0xff] %v17753_v14  ;;  %v3826_v5 = vmul.f32 %v3684_v63, %v17753_v14  ;;  %4096 = vmatprep.mubr.f32.mxu0 %v20189_v60  ;;  %v17774_v63 = vor.u32 %v16057_v20, %v16056_v16  ;;  %20249 = vst [vmem:[#allocation69_spill] sm:$0xff] %v17777_v13  ;;  %v3827_v16 = vmul.f32 %v3688_v15, %v17777_v13 }
 0x114   : > { %8122 = vrot.lane.b32.xlu1 %v17765_v47, %s16687_s11  ;;  %8120 = vrot.lane.b32.xlu0 %v17770_v2, %s16687_s11 }
 0x115   : > { %v3531_v14 = vpop.permute.xlu1 %3530  ;;  %4032 = vmatprep.subr.mxu0 %v3826_v5  ;;  %v3529_v11 = vpop.permute.xlu0 %3528  ;;  %v3700_v59 = vrot.slane %v17774_v63, %v16964_v39  ;;  %v3696_v20 = vrot.slane %v17774_v63, %v16978_v48  ;;  %v3708_v13 = vrot.slane %v17774_v63, %v16962_v38  ;;  %v3716_v53 = vrot.slane %v17774_v63, %v16997_v55 }
 0x116   : > { %v17780_v0 = vsel %vm3576_vm3, %v3527_v6, %v3529_v11  ;;  %4033 = vmatpush1.msra.mxu0 %v3825_v10  ;;  %v17796_v10 = vld [vmem:[%s16738_s26 + $0x18] sm:$0xff]  ;;  %v17801_v6 = vsel %vm3576_vm3, %v3529_v11, %v3531_v14  ;;  %v3720_v44 = vrot.slane %v17774_v63, %v17024_v36 }
 0x117   : > { %20250 = vst [vmem:[#allocation70_spill] sm:$0xff] %v17780_v0  ;;  %v3828_v9 = vmul.f32 %v3692_v18, %v17780_v0  ;;  %16065 = vmatmul.mubr.msk.f32.vlgmr.msra.gmra.mrb[2].mxu0 %vm728_vm1, %v17723_v22  ;;  %20251 = vst [vmem:[#allocation71_spill] sm:$0xff] %v17801_v6  ;;  %v3829_v11 = vmul.f32 %v3696_v20, %v17801_v6 }
 0x118   : > { %8126 = vrot.lane.b32.xlu1 %v17791_v23, %s16687_s11  ;;  %8124 = vrot.lane.b32.xlu0 %v17796_v10, %s16687_s11 }
 0x119   : > { %v3535_v5 = vpop.permute.xlu1 %3534  ;;  %4103 = vmatprep.subr.mxu1 %v3828_v9  ;;  %v3533_v15 = vpop.permute.xlu0 %3532  ;;  %4238 = vmatprep.mubr.f32.mxu0 %v20189_v60  ;;  %v3704_v9 = vrot.slane %v17774_v63, %v16966_v40 }
 0x11a   : > { %v17805_v18 = vsel %vm3576_vm3, %v3531_v14, %v3533_v15  ;;  %4104 = vmatpush1.msra.mxu1 %v3827_v16  ;;  %v17821_v14 = vld [vmem:[%s16738_s26] sm:$0xff] }
 0x11b   : > { %20252 = vst [vmem:[#allocation72_spill] sm:$0xff] %v17805_v18  ;;  %v3830_v0 = vmul.f32 %v3700_v59, %v17805_v18  ;;  %16066 = vmatmul.mubr.msk.f32.vlgmr.msra.gmra.mrb[2].mxu1 %vm728_vm1, %v17723_v22  ;;  %v17826_v59 = vsel %vm3576_vm3, %v3533_v15, %v3535_v5 }
 0x11c   : > { %8128 = vrot.lane.b32.xlu1 %v17816_v8, %s16687_s11  ;;  %8118 = vrot.lane.b32.xlu0 %v17821_v14, %s16687_s11  ;;  %20253 = vst [vmem:[#allocation73_spill] sm:$0xff] %v17826_v59  ;;  %v3831_v15 = vmul.f32 %v3704_v9, %v17826_v59  ;;  %v16059_v59 = vld [vmem:[%s20086_s5 + $0x82] ss:$8 sm:$0xf0] }
 0x11d   : > { %v3539_v16 = vpop.permute.xlu1 %3538  ;;  %4174 = vmatprep.subr.mxu0 %v3830_v0  ;;  %v3537_v20 = vpop.permute.xlu0 %3536  ;;  %4309 = vmatprep.mubr.f32.mxu1 %v20189_v60  ;;  %v3712_v0 = vrot.slane %v17774_v63, %v16999_v56 }
 0x11e   : > { %v17830_v18 = vsel %vm3576_vm3, %v3535_v5, %v3537_v20  ;;  %4175 = vmatpush1.msra.mxu0 %v3829_v11  ;;  %v17846_v5 = vld [vmem:[%s16738_s26 + $0x30] sm:$0xff] }
 0x11f   : > { %20254 = vst [vmem:[#allocation74_spill] sm:$0xff] %v17830_v18  ;;  %v3832_v6 = vmul.f32 %v3708_v13, %v17830_v18  ;;  %16067 = vmatmul.mubr.msk.f32.vlgmr.msra.gmra.mrb[4].mxu0 %vm728_vm1, %v17723_v22  ;;  %v17851_v13 = vsel %vm3576_vm3, %v3537_v20, %v3539_v16  ;;  %v16058_v18 = vld [vmem:[%s20086_s5 + $0x82] ss:$8 sm:$0xf] }
 0x120   : > { %8132 = vrot.lane.b32.xlu1 %v17841_v29, %s16687_s11  ;;  %8130 = vrot.lane.b32.xlu0 %v17846_v5, %s16687_s11  ;;  %20255 = vst [vmem:[#allocation75_spill] sm:$0xff] %v17851_v13  ;;  %v3833_v7 = vmul.f32 %v3712_v0, %v17851_v13 }
 0x121   : > { %v3543_v11 = vpop.permute.xlu1 %3542  ;;  %4245 = vmatprep.subr.mxu1 %v3832_v6  ;;  %v3541_v9 = vpop.permute.xlu0 %3540  ;;  %4380 = vmatprep.mubr.f32.mxu0 %v20189_v60  ;;  %v3724_v6 = vrot.slane %v17774_v63, %v17022_v35 }
 0x122   : > { %v17861_v1 = vsel %vm3576_vm3, %v3539_v16, %v3541_v9  ;;  %4246 = vmatpush1.msra.mxu1 %v3831_v15  ;;  %v17877_v16 = vld [vmem:[%s16738_s26 + $0x40] sm:$0xff]  ;;  %v17884_v15 = vsel %vm3576_vm3, %v3541_v9, %v3543_v11  ;;  %v17899_v9 = vld [vmem:[%s16738_s26 + $0x58] sm:$0xff] }
 0x123   : > { %20256 = vst [vmem:[#allocation76_spill] sm:$0xff] %v17861_v1  ;;  %v3834_v20 = vmul.f32 %v3716_v53, %v17861_v1  ;;  %16068 = vmatmul.mubr.msk.f32.vlgmr.msra.gmra.mrb[4].mxu1 %vm728_vm1, %v17723_v22  ;;  %v17881_v53 = vor.u32 %v16059_v59, %v16058_v18  ;;  %20257 = vst [vmem:[#allocation77_spill] sm:$0xff] %v17884_v15  ;;  %v3835_v18 = vmul.f32 %v3720_v44, %v17884_v15 }
 0x124   : > { %8136 = vrot.lane.b32.xlu1 %v17872_v3, %s16687_s11  ;;  %8134 = vrot.lane.b32.xlu0 %v17877_v16, %s16687_s11 }
 0x125   : > { %v3547_v0 = vpop.permute.xlu1 %3546  ;;  %4316 = vmatprep.subr.mxu0 %v3834_v20  ;;  %v3545_v63 = vpop.permute.xlu0 %3544  ;;  %4451 = vmatprep.mubr.f32.mxu1 %v20189_v60  ;;  %v3732_v52 = vrot.slane %v17881_v53, %v16964_v39  ;;  %v3728_v59 = vrot.slane %v17881_v53, %v16978_v48  ;;  %v3740_v15 = vrot.slane %v17881_v53, %v16962_v38 }
 0x126   : > { %v17888_v1 = vsel %vm3576_vm3, %v3543_v11, %v3545_v63  ;;  %4317 = vmatpush1.msra.mxu0 %v3833_v7  ;;  %v17904_v7 = vld [vmem:[%s16738_s26 + $0x50] sm:$0xff]  ;;  %v17909_v11 = vsel %vm3576_vm3, %v3545_v63, %v3547_v0  ;;  %v3748_v58 = vrot.slane %v17881_v53, %v16997_v55 }
 0x127   : > { %20258 = vst [vmem:[#allocation78_spill] sm:$0xff] %v17888_v1  ;;  %v3836_v13 = vmul.f32 %v3724_v6, %v17888_v1  ;;  %16069 = vmatmul.mubr.msk.f32.vlgmr.msra.gmra.mrb[6].mxu0 %vm728_vm1, %v17723_v22  ;;  %20259 = vst [vmem:[#allocation79_spill] sm:$0xff] %v17909_v11  ;;  %v3837_v63 = vmul.f32 %v3728_v59, %v17909_v11 }
 0x128   : > { %8140 = vrot.lane.b32.xlu1 %v17899_v9, %s16687_s11  ;;  %8138 = vrot.lane.b32.xlu0 %v17904_v7, %s16687_s11 }
 0x129   : > { %v3551_v20 = vpop.permute.xlu1 %3550  ;;  %4387 = vmatprep.subr.mxu1 %v3836_v13  ;;  %v3549_v44 = vpop.permute.xlu0 %3548  ;;  %4522 = vmatprep.mubr.f32.mxu0 %v20189_v60  ;;  %v3736_v13 = vrot.slane %v17881_v53, %v16966_v40 }
 0x12a   : > { %v17913_v6 = vsel %vm3576_vm3, %v3547_v0, %v3549_v44  ;;  %4388 = vmatpush1.msra.mxu1 %v3835_v18  ;;  %v17929_v0 = vld [vmem:[%s16738_s26 + $0x60] sm:$0xff] }
 0x12b   : > { %20260 = vst [vmem:[#allocation80_spill] sm:$0xff] %v17913_v6  ;;  %v3838_v1 = vmul.f32 %v3732_v52, %v17913_v6  ;;  %16070 = vmatmul.mubr.msk.f32.vlgmr.msra.gmra.mrb[6].mxu1 %vm728_vm1, %v17723_v22  ;;  %v17934_v52 = vsel %vm3576_vm3, %v3549_v44, %v3551_v20 }
 0x12c   : > { %8144 = vrot.lane.b32.xlu1 %v17924_v32, %s16687_s11  ;;  %8142 = vrot.lane.b32.xlu0 %v17929_v0, %s16687_s11  ;;  %20261 = vst [vmem:[#allocation81_spill] sm:$0xff] %v17934_v52  ;;  %v3839_v44 = vmul.f32 %v3736_v13, %v17934_v52  ;;  %v16060_v52 = vld [vmem:[%s20086_s5 + $0xc2] ss:$8 sm:$0xf] }
 0x12d   : > { %v3555_v18 = vpop.permute.xlu1 %3554  ;;  %4458 = vmatprep.subr.mxu0 %v3838_v1  ;;  %v3553_v59 = vpop.permute.xlu0 %3552  ;;  %4593 = vmatprep.mubr.f32.mxu1 %v20189_v60  ;;  %v3744_v1 = vrot.slane %v17881_v53, %v16999_v56 }
 0x12e   : > { %v17938_v6 = vsel %vm3576_vm3, %v3551_v20, %v3553_v59  ;;  %4459 = vmatpush1.msra.mxu0 %v3837_v63  ;;  %v17954_v20 = vld [vmem:[%s16738_s26 + $0x70] sm:$0xff] }
 0x12f   : > { %20262 = vst [vmem:[#allocation82_spill] sm:$0xff] %v17938_v6  ;;  %v3840_v11 = vmul.f32 %v3740_v15, %v17938_v6  ;;  %16071 = vmatmul.mubr.msk.f32.vlgmr.msra.gmra.mrb[8].mxu0 %vm728_vm1, %v17723_v22  ;;  %v17959_v15 = vsel %vm3576_vm3, %v3553_v59, %v3555_v18 }
 0x130   : > { %8148 = vrot.lane.b32.xlu1 %v17949_v28, %s16687_s11  ;;  %8146 = vrot.lane.b32.xlu0 %v17954_v20, %s16687_s11  ;;  %20263 = vst [vmem:[#allocation83_spill] sm:$0xff] %v17959_v15 }
 0x131   : > { %v3559_v63 = vpop.permute.xlu1 %3558  ;;  %4529 = vmatprep.subr.mxu1 %v3840_v11  ;;  %v3557_v13 = vpop.permute.xlu0 %3556  ;;  %4664 = vmatprep.mubr.f32.mxu0 %v20189_v60  ;;  %v3756_v11 = vrot.slane %v17881_v53, %v17022_v35 }
 0x132   : > { %v17963_v6 = vsel %vm3576_vm3, %v3555_v18, %v3557_v13  ;;  %4530 = vmatpush1.msra.mxu1 %v3839_v44  ;;  %v3841_v18 = vmul.f32 %v3744_v1, %v17959_v15  ;;  %v3752_v44 = vrot.slane %v17881_v53, %v17024_v36  ;;  %v17992_v1 = vor.u32 %v16061_v30, %v16060_v52  ;;  %v18008_v30 = vld [vmem:[%s16738_s26 + $0x90] sm:$0xff] }
 0x133   : > { %20264 = vst [vmem:[#allocation84_spill] sm:$0xff] %v17963_v6  ;;  %v3842_v59 = vmul.f32 %v3748_v58, %v17963_v6  ;;  %16072 = vmatmul.mubr.msk.f32.vlgmr.msra.gmra.mrb[8].mxu1 %vm728_vm1, %v17723_v22  ;;  %v17990_v58 = vsel %vm3576_vm3, %v3557_v13, %v3559_v63  ;;  %v18003_v13 = vld [vmem:[%s16738_s26 + $0x98] sm:$0xff] }
 0x134   : > { %8152 = vrot.lane.b32.xlu1 %v17980_v31, %s16687_s11  ;;  %8150 = vrot.lane.b32.xlu0 %v17985_v26, %s16687_s11  ;;  %20265 = vst [vmem:[#allocation85_spill] sm:$0xff] %v17990_v58  ;;  %v3843_v43 = vmul.f32 %v3752_v44, %v17990_v58  ;;  %v3764_v52 = vrot.slane %v17992_v1, %v16964_v39  ;;  %v18027_v58 = vld [vmem:[%s16738_s26 + $0xa8] sm:$0xff] }
 0x135   : > { %v3563_v6 = vpop.permute.xlu1 %3562  ;;  %4600 = vmatprep.subr.mxu0 %v3842_v59  ;;  %v3561_v53 = vpop.permute.xlu0 %3560  ;;  %4735 = vmatprep.mubr.f32.mxu1 %v20189_v60  ;;  %v3788_v45 = vrot.slane %v17992_v1, %v17022_v35  ;;  %v3780_v42 = vrot.slane %v17992_v1, %v16997_v55 }
 0x136   : > { %v17996_v15 = vsel %vm3576_vm3, %v3559_v63, %v3561_v53  ;;  %4601 = vmatpush1.msra.mxu0 %v3841_v18  ;;  %v3760_v63 = vrot.slane %v17992_v1, %v16978_v48  ;;  %v18018_v59 = vsel %vm3576_vm3, %v3561_v53, %v3563_v6 }
 0x137   : > { %20266 = vst [vmem:[#allocation86_spill] sm:$0xff] %v17996_v15  ;;  %v3844_v62 = vmul.f32 %v3756_v11, %v17996_v15  ;;  %16073 = vmatmul.mubr.msk.f32.vlgmr.msra.gmra.mrb[10].mxu0 %vm728_vm1, %v17723_v22  ;;  %20267 = vst [vmem:[#allocation87_spill] sm:$0xff] %v18018_v59 }
 0x138   : > { %8156 = vrot.lane.b32.xlu1 %v18003_v13, %s16687_s11  ;;  %8154 = vrot.lane.b32.xlu0 %v18008_v30, %s16687_s11  ;;  %v3845_v53 = vmul.f32 %v3760_v63, %v18018_v59 }
 0x139   : > { %4671 = vmatprep.subr.mxu1 %v3844_v62  ;;  %4806 = vmatprep.mubr.f32.mxu0 %v20189_v60  ;;  %v3567_v11 = vpop.permute.xlu1 %3566  ;;  %v3772_v62 = vrot.slane %v17992_v1, %v16962_v38 }
 0x13a   : > { %v3565_v18 = vpop.permute.xlu0 %3564  ;;  %4672 = vmatpush1.msra.mxu1 %v3843_v43  ;;  %v3768_v43 = vrot.slane %v17992_v1, %v16966_v40 }
 0x13b   : > { %v18021_v44 = vsel %vm3576_vm3, %v3563_v6, %v3565_v18  ;;  %16074 = vmatmul.mubr.msk.f32.vlgmr.msra.gmra.mrb[10].mxu1 %vm728_vm1, %v17723_v22  ;;  %v18037_v6 = vld [vmem:[%s16738_s26 + $0xa0] sm:$0xff]  ;;  %v18049_v63 = vsel %vm3576_vm3, %v3565_v18, %v3567_v11  ;;  %v3784_v18 = vrot.slane %v17992_v1, %v17024_v36 }
 0x13c   : > { %20268 = vst [vmem:[#allocation88_spill] sm:$0xff] %v18021_v44  ;;  %v3846_v15 = vmul.f32 %v3764_v52, %v18021_v44  ;;  %8160 = vrot.lane.b32.xlu1 %v18027_v58, %s16687_s11  ;;  %8158 = vrot.lane.b32.xlu0 %v18037_v6, %s16687_s11  ;;  %v16079_v52 = vld [vmem:[%s20086_s5 + $0x3] ss:$8 sm:$0xf]  ;;  %20269 = vst [vmem:[#allocation89_spill] sm:$0xff] %v18049_v63 }
 0x13d   : > { %4877 = vmatprep.mubr.f32.mxu1 %v20189_v60  ;;  %v16080_v44 = vld [vmem:[%s20086_s5 + $0x3] ss:$8 sm:$0xf0]  ;;  %v3571_v59 = vpop.permute.xlu1 %3570 }
 0x13e   : > { %4742 = vmatprep.subr.mxu0 %v3846_v15  ;;  %v3569_v25 = vpop.permute.xlu0 %3568  ;;  %v18063_v15 = vor.u32 %v16080_v44, %v16079_v52 }
 0x13f   : > { %v18052_v54 = vsel %vm3576_vm3, %v3567_v11, %v3569_v25  ;;  %4743 = vmatpush1.msra.mxu0 %v3845_v53  ;;  %v3847_v11 = vmul.f32 %v3768_v43, %v18049_v63  ;;  %v3776_v53 = vrot.slane %v17992_v1, %v16999_v56 }
 0x140   : > { %20270 = vst [vmem:[#allocation90_spill] sm:$0xff] %v18052_v54  ;;  %v3848_v4 = vmul.f32 %v3772_v62, %v18052_v54  ;;  %8164 = vrot.lane.b32.xlu1 %v17664_v57, %s16687_s11  ;;  %8162 = vrot.lane.b32.xlu0 %v18069_v33, %s16687_s11  ;;  %v18076_v57 = vsel %vm3576_vm3, %v3569_v25, %v3571_v59 }
 0x141   : > { %16075 = vmatmul.mubr.msk.f32.vlgmr.msra.gmra.mrb[12].mxu0 %vm728_vm1, %v17723_v22  ;;  %20271 = vst [vmem:[#allocation91_spill] sm:$0xff] %v18076_v57  ;;  %v3575_v62 = vpop.permute.xlu1 %3574 }
 0x142   : > { %4813 = vmatprep.subr.mxu1 %v3848_v4  ;;  %v3573_v44 = vpop.permute.xlu0 %3572  ;;  %4948 = vmatprep.mubr.f32.mxu0 %v20189_v60  ;;  %v18081_v43 = vsel %vm3576_vm3, %v3575_v62, %v17714_v27  ;;  %v5247_v27 = vrot.slane %v18063_v15, %v16964_v39 }
 0x143   : > { %20272 = vst [vmem:[#allocation92_spill] sm:$0xff] %v18081_v43  ;;  %v18084_v1 = vsel %vm3576_vm3, %v3571_v59, %v3573_v44  ;;  %v18087_v52 = vsel %vm3576_vm3, %v3573_v44, %v3575_v62  ;;  %4814 = vmatpush1.msra.mxu1 %v3847_v11  ;;  %v3852_v25 = vmul.f32 %v3788_v45, %v18081_v43 }
 0x144   : > { %20273 = vst [vmem:[#allocation93_spill] sm:$0xff] %v18084_v1  ;;  %20274 = vst [vmem:[#allocation94_spill] sm:$0xff] %v18087_v52  ;;  %v3850_v54 = vmul.f32 %v3780_v42, %v18084_v1  ;;  %v3851_v4 = vmul.f32 %v3784_v18, %v18087_v52  ;;  %8168 = vrot.lane.b32.xlu1 %v17686_v17, %s16687_s11  ;;  %v3849_v59 = vmul.f32 %v3776_v53, %v18076_v57 }
 0x145   : > { %8166 = vrot.lane.b32.xlu0 %v17659_v46, %s16687_s11  ;;  %16076 = vmatmul.mubr.msk.f32.vlgmr.msra.gmra.mrb[12].mxu1 %vm728_vm1, %v17723_v22  ;;  %v5096_v11 = vpop.permute.xlu1 %5095  ;;  %v5251_v18 = vrot.slane %v18063_v15, %v16966_v40  ;;  %v5255_v46 = vrot.slane %v18063_v15, %v16962_v38 }
 0x146   : > { %4884 = vmatprep.subr.mxu0 %v3850_v54  ;;  %4955 = vmatprep.subr.mxu1 %v3852_v25  ;;  %v5094_v42 = vpop.permute.xlu0 %5093  ;;  %v5243_v25 = vrot.slane %v18063_v15, %v16978_v48 }
 0x147   : > { %v5156_v45 = vsel %vm5155_vm4, %v5094_v42, %v5096_v11  ;;  %4885 = vmatpush1.msra.mxu0 %v3849_v59  ;;  %4956 = vmatpush1.msra.mxu1 %v3851_v4  ;;  %v18132_v59 = vld [vmem:[%s20082_s1 + $0x18] sm:$0xff] }
 0x148   : > { %v5401_v17 = vmul.f32 %v5247_v27, %v5156_v45  ;;  %8172 = vrot.lane.b32.xlu1 %v17710_v37, %s16687_s11  ;;  %5019 = vmatprep.mubr.f32.mxu1 %v20189_v60 }
 0x149   : > { %8170 = vrot.lane.b32.xlu0 %v17681_v19, %s16687_s11  ;;  %16078 = vmatmul.mubr.msk.f32.vlgmr.msra.gmra.mrb[14].mxu1 %vm728_vm1, %v17723_v22  ;;  %v5100_v54 = vpop.permute.xlu1 %5099 }
 0x14a   : > { %5469 = vmatprep.subr.mxu0 %v5401_v17  ;;  %v5098_v53 = vpop.permute.xlu0 %5097  ;;  %16077 = vmatmul.mubr.msk.f32.vlgmr.msra.gmra.mrb[14].mxu0 %vm728_vm1, %v17723_v22 }
 0x14b   : > { %v5157_v37 = vsel %vm5155_vm4, %v5096_v11, %v5098_v53  ;;  %v5158_v62 = vsel %vm5155_vm4, %v5098_v53, %v5100_v54  ;;  %5533 = vmatprep.mubr.f32.mxu0 %v20189_v60  ;;  %5604 = vmatprep.mubr.f32.mxu1 %v20189_v60  ;;  %v18135_v11 = vld [vmem:[%s16738_s26 + $0xf8] sm:$0xff] }
 0x14c   : > { %v5402_v44 = vmul.f32 %v5251_v18, %v5157_v37  ;;  %v5403_v19 = vmul.f32 %v5255_v46, %v5158_v62  ;;  %8176 = vrot.lane.b32.xlu1 %v17738_v12, %s16687_s11  ;;  %v16081_v46 = vld [vmem:[%s20086_s5 + $0x43] ss:$8 sm:$0xf] }
 0x14d   : > { %8174 = vrot.lane.b32.xlu0 %v17705_v24, %s16687_s11  ;;  %v5102_v22 = vpop.permute.xlu1 %5101  ;;  %v5263_v24 = vrot.slane %v18063_v15, %v16997_v55  ;;  %v16082_v53 = vld [vmem:[%s20086_s5 + $0x43] ss:$8 sm:$0xf0] }
 0x14e   : > { %5540 = vmatprep.subr.mxu1 %v5403_v19  ;;  %v18125_v4 = vpop.permute.xlu0 %5090  ;;  %v5159_v45 = vsel %vm5155_vm4, %v5100_v54, %v5102_v22  ;;  %v5271_v54 = vrot.slane %v18063_v15, %v17022_v35  ;;  %v5227_v19 = vor.u32 %v16082_v53, %v16081_v46 }
 0x14f   : > { %v5219_v27 = vsel %vm5155_vm4, %v18125_v4, %v5094_v42  ;;  %5541 = vmatpush1.msra.mxu1 %v5402_v44  ;;  %v5259_v42 = vrot.slane %v18063_v15, %v16999_v56  ;;  %v5267_v44 = vrot.slane %v18063_v15, %v17024_v36 }
 0x150   : > { %v5400_v12 = vmul.f32 %v5243_v25, %v5219_v27  ;;  %8180 = vrot.lane.b32.xlu1 %v18135_v11, %s16687_s11  ;;  %16089 = vmatmul.mubr.msk.f32.vlgmr.msra.gmra.mrb[0].mxu1 %vm728_vm1, %v18132_v59  ;;  %v5287_v53 = vrot.slane %v5227_v19, %v16962_v38 }
 0x151   : > { %8178 = vrot.lane.b32.xlu0 %v17733_v21, %s16687_s11  ;;  %5746 = vmatprep.mubr.f32.mxu1 %v20189_v60  ;;  %v5106_v17 = vpop.permute.xlu1 %5105  ;;  %v5404_v62 = vmul.f32 %v5259_v42, %v5159_v45  ;;  %v5275_v42 = vrot.slane %v5227_v19, %v16978_v48 }
 0x152   : > { %5470 = vmatpush1.msra.mxu0 %v5400_v12  ;;  %v5104_v18 = vpop.permute.xlu0 %5103 }
 0x153   : > { %v5160_v37 = vsel %vm5155_vm4, %v5102_v22, %v5104_v18  ;;  %16088 = vmatmul.mubr.msk.f32.vlgmr.msra.gmra.mrb[0].mxu0 %vm728_vm1, %v18132_v59  ;;  %v5161_v25 = vsel %vm5155_vm4, %v5104_v18, %v5106_v17 }
 0x154   : > { %v5405_v21 = vmul.f32 %v5263_v24, %v5160_v37  ;;  %5675 = vmatprep.mubr.f32.mxu0 %v20189_v60  ;;  %v5279_v24 = vrot.slane %v5227_v19, %v16964_v39  ;;  %v5406_v37 = vmul.f32 %v5267_v44, %v5161_v25 }
 0x155   : > { %v5110_v27 = vpop.permute.xlu1 %5109 }
 0x156   : > { %5611 = vmatprep.subr.mxu0 %v5405_v21  ;;  %v5108_v12 = vpop.permute.xlu0 %5107 }
 0x157   : > { %v5162_v22 = vsel %vm5155_vm4, %v5106_v17, %v5108_v12  ;;  %5612 = vmatpush1.msra.mxu0 %v5404_v62  ;;  %v5163_v15 = vsel %vm5155_vm4, %v5108_v12, %v5110_v27  ;;  %v5295_v12 = vrot.slane %v5227_v19, %v16997_v55 }
 0x158   : > { %v5407_v1 = vmul.f32 %v5271_v54, %v5162_v22  ;;  %16090 = vmatmul.mubr.msk.f32.vlgmr.msra.gmra.mrb[2].mxu0 %vm728_vm1, %v18132_v59  ;;  %v5408_v21 = vmul.f32 %v5275_v42, %v5163_v15  ;;  %v5283_v54 = vrot.slane %v5227_v19, %v16966_v40 }
 0x159   : > { %5817 = vmatprep.mubr.f32.mxu0 %v20189_v60  ;;  %v5114_v45 = vpop.permute.xlu1 %5113 }
 0x15a   : > { %5682 = vmatprep.subr.mxu1 %v5407_v1  ;;  %v5112_v18 = vpop.permute.xlu0 %5111 }
 0x15b   : > { %v5164_v46 = vsel %vm5155_vm4, %v5110_v27, %v5112_v18  ;;  %5683 = vmatpush1.msra.mxu1 %v5406_v37  ;;  %v5165_v62 = vsel %vm5155_vm4, %v5112_v18, %v5114_v45  ;;  %v16084_v18 = vld [vmem:[%s20086_s5 + $0x83] ss:$8 sm:$0xf0] }
 0x15c   : > { %v5409_v17 = vmul.f32 %v5279_v24, %v5164_v46  ;;  %16091 = vmatmul.mubr.msk.f32.vlgmr.msra.gmra.mrb[2].mxu1 %vm728_vm1, %v18132_v59  ;;  %v5410_v22 = vmul.f32 %v5283_v54, %v5165_v62  ;;  %v5291_v24 = vrot.slane %v5227_v19, %v16999_v56  ;;  %v5299_v54 = vrot.slane %v5227_v19, %v17024_v36 }
 0x15d   : > { %5888 = vmatprep.mubr.f32.mxu1 %v20189_v60  ;;  %v5118_v44 = vpop.permute.xlu1 %5117 }
 0x15e   : > { %5753 = vmatprep.subr.mxu0 %v5409_v17  ;;  %v5116_v1 = vpop.permute.xlu0 %5115 }
 0x15f   : > { %v5166_v25 = vsel %vm5155_vm4, %v5114_v45, %v5116_v1  ;;  %5754 = vmatpush1.msra.mxu0 %v5408_v21  ;;  %v5167_v37 = vsel %vm5155_vm4, %v5116_v1, %v5118_v44  ;;  %v16083_v45 = vld [vmem:[%s20086_s5 + $0x83] ss:$8 sm:$0xf] }
 0x160   : > { %v5411_v27 = vmul.f32 %v5287_v53, %v5166_v25  ;;  %16092 = vmatmul.mubr.msk.f32.vlgmr.msra.gmra.mrb[4].mxu0 %vm728_vm1, %v18132_v59  ;;  %v5303_v53 = vrot.slane %v5227_v19, %v17022_v35  ;;  %v5412_v21 = vmul.f32 %v5291_v24, %v5167_v37  ;;  %v18196_v62 = vor.u32 %v16084_v18, %v16083_v45 }
 0x161   : > { %5959 = vmatprep.mubr.f32.mxu0 %v20189_v60  ;;  %v5122_v42 = vpop.permute.xlu1 %5121 }
 0x162   : > { %5824 = vmatprep.subr.mxu1 %v5411_v27  ;;  %v5120_v15 = vpop.permute.xlu0 %5119  ;;  %v5307_v24 = vrot.slane %v18196_v62, %v16978_v48 }
 0x163   : > { %v5168_v46 = vsel %vm5155_vm4, %v5118_v44, %v5120_v15  ;;  %5825 = vmatpush1.msra.mxu1 %v5410_v22  ;;  %v5169_v1 = vsel %vm5155_vm4, %v5120_v15, %v5122_v42  ;;  %v5311_v22 = vrot.slane %v18196_v62, %v16964_v39 }
 0x164   : > { %v5413_v17 = vmul.f32 %v5295_v12, %v5168_v46  ;;  %16093 = vmatmul.mubr.msk.f32.vlgmr.msra.gmra.mrb[4].mxu1 %vm728_vm1, %v18132_v59  ;;  %v5414_v19 = vmul.f32 %v5299_v54, %v5169_v1  ;;  %v5319_v46 = vrot.slane %v18196_v62, %v16962_v38 }
 0x165   : > { %6030 = vmatprep.mubr.f32.mxu1 %v20189_v60  ;;  %v5126_v25 = vpop.permute.xlu1 %5125 }
 0x166   : > { %5895 = vmatprep.subr.mxu0 %v5413_v17  ;;  %v5124_v27 = vpop.permute.xlu0 %5123 }
 0x167   : > { %v5170_v44 = vsel %vm5155_vm4, %v5122_v42, %v5124_v27  ;;  %5896 = vmatpush1.msra.mxu0 %v5412_v21  ;;  %v5171_v37 = vsel %vm5155_vm4, %v5124_v27, %v5126_v25 }
 0x168   : > { %v5415_v12 = vmul.f32 %v5303_v53, %v5170_v44  ;;  %16094 = vmatmul.mubr.msk.f32.vlgmr.msra.gmra.mrb[6].mxu0 %vm728_vm1, %v18132_v59  ;;  %v5416_v17 = vmul.f32 %v5307_v24, %v5171_v37  ;;  %v5315_v53 = vrot.slane %v18196_v62, %v16966_v40  ;;  %v5327_v44 = vrot.slane %v18196_v62, %v16997_v55 }
 0x169   : > { %6101 = vmatprep.mubr.f32.mxu0 %v20189_v60  ;;  %v5130_v15 = vpop.permute.xlu1 %5129 }
 0x16a   : > { %5966 = vmatprep.subr.mxu1 %v5415_v12  ;;  %v5128_v45 = vpop.permute.xlu0 %5127 }
 0x16b   : > { %v5172_v42 = vsel %vm5155_vm4, %v5126_v25, %v5128_v45  ;;  %5967 = vmatpush1.msra.mxu1 %v5414_v19  ;;  %v5173_v21 = vsel %vm5155_vm4, %v5128_v45, %v5130_v15  ;;  %v16086_v45 = vld [vmem:[%s20086_s5 + $0xc3] ss:$8 sm:$0xf0] }
 0x16c   : > { %v5417_v18 = vmul.f32 %v5311_v22, %v5172_v42  ;;  %16095 = vmatmul.mubr.msk.f32.vlgmr.msra.gmra.mrb[6].mxu1 %vm728_vm1, %v18132_v59  ;;  %v5418_v12 = vmul.f32 %v5315_v53, %v5173_v21  ;;  %v5323_v22 = vrot.slane %v18196_v62, %v16999_v56  ;;  %v5331_v53 = vrot.slane %v18196_v62, %v17024_v36 }
 0x16d   : > { %6172 = vmatprep.mubr.f32.mxu1 %v20189_v60  ;;  %v5134_v54 = vpop.permute.xlu1 %5133 }
 0x16e   : > { %6037 = vmatprep.subr.mxu0 %v5417_v18  ;;  %v5132_v1 = vpop.permute.xlu0 %5131 }
 0x16f   : > { %v5174_v25 = vsel %vm5155_vm4, %v5130_v15, %v5132_v1  ;;  %6038 = vmatpush1.msra.mxu0 %v5416_v17  ;;  %v5175_v19 = vsel %vm5155_vm4, %v5132_v1, %v5134_v54  ;;  %v16085_v15 = vld [vmem:[%s20086_s5 + $0xc3] ss:$8 sm:$0xf] }
 0x170   : > { %v5419_v27 = vmul.f32 %v5319_v46, %v5174_v25  ;;  %16096 = vmatmul.mubr.msk.f32.vlgmr.msra.gmra.mrb[8].mxu0 %vm728_vm1, %v18132_v59  ;;  %v5335_v46 = vrot.slane %v18196_v62, %v17022_v35  ;;  %v5420_v17 = vmul.f32 %v5323_v22, %v5175_v19  ;;  %v18240_v21 = vor.u32 %v16086_v45, %v16085_v15  ;;  %v16104_v62 = vld [vmem:[%s20086_s5 + $0x4] ss:$8 sm:$0xf] }
 0x171   : > { %6243 = vmatprep.mubr.f32.mxu0 %v20189_v60  ;;  %v5138_v24 = vpop.permute.xlu1 %5137  ;;  %v16105_v22 = vld [vmem:[%s20086_s5 + $0x4] ss:$8 sm:$0xf0] }
 0x172   : > { %6108 = vmatprep.subr.mxu1 %v5419_v27  ;;  %v5136_v37 = vpop.permute.xlu0 %5135 }
 0x173   : > { %v5176_v42 = vsel %vm5155_vm4, %v5134_v54, %v5136_v37  ;;  %6109 = vmatpush1.msra.mxu1 %v5418_v12  ;;  %v5177_v1 = vsel %vm5155_vm4, %v5136_v37, %v5138_v24  ;;  %v5343_v12 = vrot.slane %v18240_v21, %v16964_v39 }
 0x174   : > { %v5421_v18 = vmul.f32 %v5327_v44, %v5176_v42  ;;  %16097 = vmatmul.mubr.msk.f32.vlgmr.msra.gmra.mrb[8].mxu1 %vm728_vm1, %v18132_v59  ;;  %v5422_v19 = vmul.f32 %v5331_v53, %v5177_v1  ;;  %v5347_v1 = vrot.slane %v18240_v21, %v16966_v40 }
 0x175   : > { %6314 = vmatprep.mubr.f32.mxu1 %v20189_v60  ;;  %v5142_v25 = vpop.permute.xlu1 %5141 }
 0x176   : > { %6179 = vmatprep.subr.mxu0 %v5421_v18  ;;  %v5140_v54 = vpop.permute.xlu0 %5139  ;;  %v18260_v18 = vor.u32 %v16105_v22, %v16104_v62  ;;  %v5367_v22 = vrot.slane %v18240_v21, %v17022_v35 }
 0x177   : > { %v5178_v27 = vsel %vm5155_vm4, %v5138_v24, %v5140_v54  ;;  %6180 = vmatpush1.msra.mxu0 %v5420_v17  ;;  %v5339_v24 = vrot.slane %v18240_v21, %v16978_v48  ;;  %v5179_v37 = vsel %vm5155_vm4, %v5140_v54, %v5142_v25  ;;  %v5351_v17 = vrot.slane %v18240_v21, %v16962_v38 }
 0x178   : > { %v5423_v44 = vmul.f32 %v5335_v46, %v5178_v27  ;;  %16098 = vmatmul.mubr.msk.f32.vlgmr.msra.gmra.mrb[10].mxu0 %vm728_vm1, %v18132_v59  ;;  %v6720_v34 = vrot.slane %v18260_v18, %v17022_v35 }
 0x179   : > { %6385 = vmatprep.mubr.f32.mxu0 %v20189_v60  ;;  %v5424_v53 = vmul.f32 %v5339_v24, %v5179_v37  ;;  %v5363_v24 = vrot.slane %v18240_v21, %v17024_v36 }
 0x17a   : > { %v5146_v15 = vpop.permute.xlu1 %5145  ;;  %6250 = vmatprep.subr.mxu1 %v5423_v44  ;;  %v5144_v45 = vpop.permute.xlu0 %5143 }
 0x17b   : > { %v5180_v42 = vsel %vm5155_vm4, %v5142_v25, %v5144_v45  ;;  %6251 = vmatpush1.msra.mxu1 %v5422_v19  ;;  %v5181_v54 = vsel %vm5155_vm4, %v5144_v45, %v5146_v15  ;;  %v5359_v19 = vrot.slane %v18240_v21, %v16997_v55  ;;  %v6704_v45 = vrot.slane %v18260_v18, %v16962_v38 }
 0x17c   : > { %v5425_v46 = vmul.f32 %v5343_v12, %v5180_v42  ;;  %16099 = vmatmul.mubr.msk.f32.vlgmr.msra.gmra.mrb[10].mxu1 %vm728_vm1, %v18132_v59  ;;  %v6696_v12 = vrot.slane %v18260_v18, %v16964_v39  ;;  %v5426_v37 = vmul.f32 %v5347_v1, %v5181_v54  ;;  %v16107_v1 = vld [vmem:[%s20086_s5 + $0x44] ss:$8 sm:$0xf0] }
 0x17d   : > { %6456 = vmatprep.mubr.f32.mxu1 %v20189_v60 }
 0x17e   : > { %v5150_v27 = vpop.permute.xlu1 %5149  ;;  %6321 = vmatprep.subr.mxu0 %v5425_v46  ;;  %v5148_v25 = vpop.permute.xlu0 %5147  ;;  %v6850_v43 = vmul.f32 %v17770_v2, %v6696_v12 }
 0x17f   : > { %v5182_v44 = vsel %vm5155_vm4, %v5146_v15, %v5148_v25  ;;  %6322 = vmatpush1.msra.mxu0 %v5424_v53  ;;  %v5355_v15 = vrot.slane %v18240_v21, %v16999_v56  ;;  %v5183_v42 = vsel %vm5155_vm4, %v5148_v25, %v5150_v27  ;;  %v6692_v53 = vrot.slane %v18260_v18, %v16978_v48  ;;  %v16106_v21 = vld [vmem:[%s20086_s5 + $0x44] ss:$8 sm:$0xf] }
 0x180   : > { %v5427_v62 = vmul.f32 %v5351_v17, %v5182_v44  ;;  %16100 = vmatmul.mubr.msk.f32.vlgmr.msra.gmra.mrb[12].mxu0 %vm728_vm1, %v18132_v59  ;;  %v6700_v44 = vrot.slane %v18260_v18, %v16966_v40 }
 0x181   : > { %6527 = vmatprep.mubr.f32.mxu0 %v20189_v60  ;;  %v5428_v61 = vmul.f32 %v5355_v15, %v5183_v42 }
 0x182   : > { %v5154_v46 = vpop.permute.xlu1 %5153  ;;  %6392 = vmatprep.subr.mxu1 %v5427_v62  ;;  %v5152_v17 = vpop.permute.xlu0 %5151 }
 0x183   : > { %v5186_v54 = vsel %vm5155_vm4, %v5154_v46, %v18125_v4  ;;  %v5184_v25 = vsel %vm5155_vm4, %v5150_v27, %v5152_v17  ;;  %v5185_v62 = vsel %vm5155_vm4, %v5152_v17, %v5154_v46  ;;  %6393 = vmatpush1.msra.mxu1 %v5426_v37  ;;  %v6852_v4 = vmul.f32 %v17796_v10, %v6704_v45 }
 0x184   : > { %v5431_v52 = vmul.f32 %v5367_v22, %v5186_v54  ;;  %v5429_v57 = vmul.f32 %v5359_v19, %v5184_v25  ;;  %v5430_v63 = vmul.f32 %v5363_v24, %v5185_v62  ;;  %16101 = vmatmul.mubr.msk.f32.vlgmr.msra.gmra.mrb[12].mxu1 %vm728_vm1, %v18132_v59  ;;  %v6712_v27 = vrot.slane %v18260_v18, %v16997_v55  ;;  %v16110_v25 = vld [vmem:[%s20086_s5 + $0xc4] ss:$8 sm:$0xf] }
 0x185   : > { %6598 = vmatprep.mubr.f32.mxu1 %v20189_v60  ;;  %v18310_v37 = vor.u32 %v16107_v1, %v16106_v21  ;;  %v6849_v22 = vmul.f32 %v17821_v14, %v6692_v53  ;;  %v6708_v19 = vrot.slane %v18260_v18, %v16999_v56  ;;  %v6851_v10 = vmul.f32 %v17765_v47, %v6700_v44  ;;  %v16111_v62 = vld [vmem:[%s20086_s5 + $0xc4] ss:$8 sm:$0xf0] }
 0x186   : > { %v18312_v2 = vpop.permute.xlu1 %8122  ;;  %6463 = vmatprep.subr.mxu0 %v5429_v57  ;;  %6534 = vmatprep.subr.mxu1 %v5431_v52  ;;  %v18314_v12 = vpop.permute.xlu0 %8120  ;;  %v6716_v24 = vrot.slane %v18260_v18, %v17024_v36  ;;  %v6856_v57 = vmul.f32 %v17841_v29, %v6720_v34  ;;  %v6854_v47 = vmul.f32 %v17816_v8, %v6712_v27  ;;  %v16108_v8 = vld [vmem:[%s20086_s5 + $0x84] ss:$8 sm:$0xf] }
 0x187   : > { %6464 = vmatpush1.msra.mxu0 %v5428_v61  ;;  %6535 = vmatpush1.msra.mxu1 %v5430_v63  ;;  %v18330_v61 = vld [vmem:[%s20082_s1 + $0x20] sm:$0xff]  ;;  %v6736_v14 = vrot.slane %v18310_v37, %v16962_v38  ;;  %v6728_v63 = vrot.slane %v18310_v37, %v16964_v39  ;;  %v6853_v34 = vmul.f32 %v17791_v23, %v6708_v19 }
 0x188   : > { %16102 = vmatmul.mubr.msk.f32.vlgmr.msra.gmra.mrb[14].mxu0 %vm728_vm1, %v18132_v59  ;;  %16103 = vmatmul.mubr.msk.f32.vlgmr.msra.gmra.mrb[14].mxu1 %vm728_vm1, %v18132_v59  ;;  %v6724_v29 = vrot.slane %v18310_v37, %v16978_v48  ;;  %v6855_v18 = vmul.f32 %v17846_v5, %v6716_v24  ;;  %v6732_v15 = vrot.slane %v18310_v37, %v16966_v40 }
 0x189   : > { %6918 = vmatprep.subr.mxu0 %v6850_v43  ;;  %6989 = vmatprep.subr.mxu1 %v6852_v4  ;;  %v16109_v43 = vld [vmem:[%s20086_s5 + $0x84] ss:$8 sm:$0xf0]  ;;  %v6752_v23 = vrot.slane %v18310_v37, %v17022_v35  ;;  %v6744_v45 = vrot.slane %v18310_v37, %v16997_v55  ;;  %v6860_v42 = vmul.f32 %v17899_v9, %v6736_v14 }
 0x18a   : > { %v18337_v52 = vpop.permute.xlu1 %8126  ;;  %v18339_v59 = vpop.permute.xlu0 %8124  ;;  %6919 = vmatpush1.msra.mxu0 %v6849_v22  ;;  %6982 = vmatprep.mubr.f32.mxu0 %v20189_v60  ;;  %v6858_v5 = vmul.f32 %v17872_v3, %v6728_v63  ;;  %v18365_v46 = vor.u32 %v16109_v43, %v16108_v8  ;;  %v6857_v44 = vmul.f32 %v17877_v16, %v6724_v29  ;;  %v16130_v29 = vld [vmem:[%s20086_s5 + $0x5] ss:$8 sm:$0xf0] }
 0x18b   : > { %6990 = vmatpush1.msra.mxu1 %v6851_v10  ;;  %7053 = vmatprep.mubr.f32.mxu1 %v20189_v60  ;;  %v6740_v21 = vrot.slane %v18310_v37, %v16999_v56  ;;  %v6859_v9 = vmul.f32 %v17904_v7, %v6732_v15  ;;  %v6748_v3 = vrot.slane %v18310_v37, %v17024_v36 }
 0x18c   : > { %16113 = vmatmul.mubr.msk.f32.vlgmr.msra.gmra.mrb[0].mxu0 %vm728_vm1, %v18330_v61  ;;  %16114 = vmatmul.mubr.msk.f32.vlgmr.msra.gmra.mrb[0].mxu1 %vm728_vm1, %v18330_v61  ;;  %v6864_v1 = vmul.f32 %v17949_v28, %v6752_v23  ;;  %v6862_v16 = vmul.f32 %v17924_v32, %v6744_v45  ;;  %v6768_v54 = vrot.slane %v18365_v46, %v16962_v38 }
 0x18d   : > { %7131 = vmatprep.subr.mxu1 %v6856_v57  ;;  %7060 = vmatprep.subr.mxu0 %v6854_v47  ;;  %v6760_v7 = vrot.slane %v18365_v46, %v16964_v39  ;;  %v6861_v32 = vmul.f32 %v17929_v0, %v6740_v21  ;;  %v6756_v27 = vrot.slane %v18365_v46, %v16978_v48  ;;  %v16667_v21 = vld [vmem:[%s16738_s26 + $0xc8] sm:$0xff] }
 0x18e   : > { %v18367_v17 = vpop.permute.xlu1 %8128  ;;  %v18369_v53 = vpop.permute.xlu0 %8118  ;;  %7061 = vmatpush1.msra.mxu0 %v6853_v34  ;;  %7124 = vmatprep.mubr.f32.mxu0 %v20189_v60  ;;  %v6863_v37 = vmul.f32 %v17954_v20, %v6748_v3  ;;  %v6764_v22 = vrot.slane %v18365_v46, %v16966_v40  ;;  %v6784_v0 = vrot.slane %v18365_v46, %v17022_v35  ;;  %v16129_v34 = vld [vmem:[%s20086_s5 + $0x5] ss:$8 sm:$0xf] }
 0x18f   : > { %7132 = vmatpush1.msra.mxu1 %v6855_v18  ;;  %7195 = vmatprep.mubr.f32.mxu1 %v20189_v60  ;;  %v18413_v19 = vor.u32 %v16111_v62, %v16110_v25  ;;  %v6868_v10 = vmul.f32 %v18003_v13, %v6768_v54  ;;  %v6866_v20 = vmul.f32 %v17980_v31, %v6760_v7  ;;  %v16668_v3 = vld [vmem:[%s16738_s26 + $0xd8] sm:$0xff] }
 0x190   : > { %16115 = vmatmul.mubr.msk.f32.vlgmr.msra.gmra.mrb[2].mxu0 %vm728_vm1, %v18330_v61  ;;  %16116 = vmatmul.mubr.msk.f32.vlgmr.msra.gmra.mrb[2].mxu1 %vm728_vm1, %v18330_v61  ;;  %v6776_v24 = vrot.slane %v18365_v46, %v16997_v55  ;;  %v6865_v14 = vmul.f32 %v17985_v26, %v6756_v27  ;;  %v6772_v63 = vrot.slane %v18365_v46, %v16999_v56  ;;  %v16666_v26 = vld [vmem:[%s16738_s26 + $0xb8] sm:$0xff] }
 0x191   : > { %7273 = vmatprep.subr.mxu1 %v6860_v42  ;;  %7202 = vmatprep.subr.mxu0 %v6858_v5  ;;  %v6867_v31 = vmul.f32 %v18008_v30, %v6764_v22  ;;  %v6780_v13 = vrot.slane %v18365_v46, %v17024_v36  ;;  %v6872_v8 = vmul.f32 %v16666_v26, %v6784_v0  ;;  %v16131_v54 = vld [vmem:[%s20086_s5 + $0x45] ss:$8 sm:$0xf] }
 0x192   : > { %v18395_v4 = vpop.permute.xlu1 %8132  ;;  %v18397_v28 = vpop.permute.xlu0 %8130  ;;  %7203 = vmatpush1.msra.mxu0 %v6857_v44  ;;  %7266 = vmatprep.mubr.f32.mxu0 %v20189_v60  ;;  %v6792_v30 = vrot.slane %v18413_v19, %v16964_v39  ;;  %v6870_v43 = vmul.f32 %v18027_v58, %v6776_v24  ;;  %v6800_v18 = vrot.slane %v18413_v19, %v16962_v38  ;;  %v16132_v7 = vld [vmem:[%s20086_s5 + $0x45] ss:$8 sm:$0xf0] }
 0x193   : > { %7274 = vmatpush1.msra.mxu1 %v6859_v9  ;;  %7337 = vmatprep.mubr.f32.mxu1 %v20189_v60  ;;  %v6796_v15 = vrot.slane %v18413_v19, %v16966_v40  ;;  %v6869_v42 = vmul.f32 %v18037_v6, %v6772_v63  ;;  %v6788_v58 = vrot.slane %v18413_v19, %v16978_v48 }
 0x194   : > { %16117 = vmatmul.mubr.msk.f32.vlgmr.msra.gmra.mrb[4].mxu0 %vm728_vm1, %v18330_v61  ;;  %16118 = vmatmul.mubr.msk.f32.vlgmr.msra.gmra.mrb[4].mxu1 %vm728_vm1, %v18330_v61  ;;  %v18457_v5 = vor.u32 %v16130_v29, %v16129_v34  ;;  %v6871_v46 = vmul.f32 %v18069_v33, %v6780_v13  ;;  %v6808_v6 = vrot.slane %v18413_v19, %v16997_v55 }
 0x195   : > { %7415 = vmatprep.subr.mxu1 %v6864_v1  ;;  %7344 = vmatprep.subr.mxu0 %v6862_v16  ;;  %v6816_v44 = vrot.slane %v18413_v19, %v17022_v35  ;;  %v6874_v9 = vmul.f32 %v16667_v21, %v6792_v30  ;;  %v6876_v33 = vmul.f32 %v16668_v3, %v6800_v18  ;;  %v16669_v1 = vld [vmem:[%s16738_s26 + $0xd0] sm:$0xff] }
 0x196   : > { %v18419_v57 = vpop.permute.xlu1 %8136  ;;  %v18421_v47 = vpop.permute.xlu0 %8134  ;;  %7345 = vmatpush1.msra.mxu0 %v6861_v32  ;;  %7408 = vmatprep.mubr.f32.mxu0 %v20189_v60  ;;  %v6875_v16 = vmul.f32 %v16669_v1, %v6796_v15  ;;  %v16670_v32 = vld [vmem:[%s16738_s26 + $0xc0] sm:$0xff]  ;;  %v6812_v22 = vrot.slane %v18413_v19, %v17024_v36  ;;  %v8275_v0 = vrot.slane %v18457_v5, %v16964_v39 }
 0x197   : > { %7416 = vmatpush1.msra.mxu1 %v6863_v37  ;;  %7479 = vmatprep.mubr.f32.mxu1 %v20189_v60  ;;  %v6873_v27 = vmul.f32 %v16670_v32, %v6788_v58  ;;  %v6804_v37 = vrot.slane %v18413_v19, %v16999_v56  ;;  %v6880_v19 = vmul.f32 %v18135_v11, %v6816_v44  ;;  %v16672_v11 = vld [vmem:[%s16738_s26 + $0xe0] sm:$0xff] }
 0x198   : > { %16119 = vmatmul.mubr.msk.f32.vlgmr.msra.gmra.mrb[6].mxu0 %vm728_vm1, %v18330_v61  ;;  %16120 = vmatmul.mubr.msk.f32.vlgmr.msra.gmra.mrb[6].mxu1 %vm728_vm1, %v18330_v61  ;;  %v8283_v63 = vrot.slane %v18457_v5, %v16962_v38  ;;  %v8186_v13 = vsel %vm8182_vm5, %v18339_v59, %v18337_v52  ;;  %v8271_v18 = vrot.slane %v18457_v5, %v16978_v48  ;;  %v16133_v32 = vld [vmem:[%s20086_s5 + $0x85] ss:$8 sm:$0xf] }
 0x199   : > { %7557 = vmatprep.subr.mxu1 %v6868_v10  ;;  %7486 = vmatprep.subr.mxu0 %v6866_v20  ;;  %v8279_v10 = vrot.slane %v18457_v5, %v16966_v40  ;;  %v16671_v20 = vld [vmem:[%s16738_s26 + $0xe8] sm:$0xff]  ;;  %v6877_v26 = vmul.f32 %v16672_v11, %v6804_v37  ;;  %v8291_v15 = vrot.slane %v18457_v5, %v16997_v55 }
 0x19a   : > { %v18449_v23 = vpop.permute.xlu1 %8140  ;;  %v18451_v45 = vpop.permute.xlu0 %8138  ;;  %7487 = vmatpush1.msra.mxu0 %v6865_v14  ;;  %7550 = vmatprep.mubr.f32.mxu0 %v20189_v60  ;;  %v6878_v24 = vmul.f32 %v16671_v20, %v6808_v6  ;;  %v8184_v14 = vsel %vm8182_vm5, %v18314_v12, %v18312_v2  ;;  %v8295_v58 = vrot.slane %v18457_v5, %v17024_v36  ;;  %v18584_v20 = vld [vmem:[%s20082_s1 + $0x28] sm:$0xff] }
 0x19b   : > { %7558 = vmatpush1.msra.mxu1 %v6867_v31  ;;  %7621 = vmatprep.mubr.f32.mxu1 %v20189_v60  ;;  %v18504_v31 = vor.u32 %v16132_v7, %v16131_v54  ;;  %v8185_v6 = vsel %vm8182_vm5, %v18312_v2, %v18339_v59  ;;  %v8431_v44 = vmul.f32 %v8283_v63, %v8186_v13 }
 0x19c   : > { %16121 = vmatmul.mubr.msk.f32.vlgmr.msra.gmra.mrb[8].mxu0 %vm728_vm1, %v18330_v61  ;;  %16122 = vmatmul.mubr.msk.f32.vlgmr.msra.gmra.mrb[8].mxu1 %vm728_vm1, %v18330_v61  ;;  %v8183_v21 = vsel %vm8182_vm5, %v18369_v53, %v18314_v12  ;;  %v8190_v2 = vsel %vm8182_vm5, %v18395_v4, %v18421_v47  ;;  %v8187_v54 = vsel %vm8182_vm5, %v18337_v52, %v18367_v17 }
 0x19d   : > { %7699 = vmatprep.subr.mxu1 %v6872_v8  ;;  %7628 = vmatprep.subr.mxu0 %v6870_v43  ;;  %v16673_v8 = vld [vmem:[%s16738_s26 + $0xf0] sm:$0xff]  ;;  %v8287_v43 = vrot.slane %v18457_v5, %v16999_v56  ;;  %v8307_v3 = vrot.slane %v18504_v31, %v16964_v39  ;;  %v8315_v1 = vrot.slane %v18504_v31, %v16962_v38 }
 0x19e   : > { %v18478_v25 = vpop.permute.xlu1 %8144  ;;  %v18480_v62 = vpop.permute.xlu0 %8142  ;;  %7629 = vmatpush1.msra.mxu0 %v6869_v42  ;;  %7692 = vmatprep.mubr.f32.mxu0 %v20189_v60  ;;  %v6879_v30 = vmul.f32 %v16673_v8, %v6812_v22  ;;  %v8429_v42 = vmul.f32 %v8275_v0, %v8184_v14  ;;  %v8428_v7 = vmul.f32 %v8271_v18, %v8183_v21 }
 0x19f   : > { %7700 = vmatpush1.msra.mxu1 %v6871_v46  ;;  %7763 = vmatprep.mubr.f32.mxu1 %v20189_v60  ;;  %v8299_v46 = vrot.slane %v18457_v5, %v17022_v35  ;;  %v8188_v5 = vsel %vm8182_vm5, %v18367_v17, %v18397_v28  ;;  %v8189_v37 = vsel %vm8182_vm5, %v18397_v28, %v18395_v4 }
 0x1a0   : > { %16123 = vmatmul.mubr.msk.f32.vlgmr.msra.gmra.mrb[10].mxu0 %vm728_vm1, %v18330_v61  ;;  %16124 = vmatmul.mubr.msk.f32.vlgmr.msra.gmra.mrb[10].mxu1 %vm728_vm1, %v18330_v61  ;;  %v8433_v22 = vmul.f32 %v8291_v15, %v8188_v5  ;;  %v8192_v52 = vsel %vm8182_vm5, %v18419_v57, %v18451_v45  ;;  %v8319_v17 = vrot.slane %v18504_v31, %v16999_v56 }
 0x1a1   : > { %7770 = vmatprep.subr.mxu0 %v6874_v9  ;;  %7841 = vmatprep.subr.mxu1 %v6876_v33  ;;  %v8303_v9 = vrot.slane %v18504_v31, %v16978_v48  ;;  %v8311_v33 = vrot.slane %v18504_v31, %v16966_v40  ;;  %v8435_v0 = vmul.f32 %v8299_v46, %v8190_v2  ;;  %v16135_v46 = vld [vmem:[%s20086_s5 + $0xc5] ss:$8 sm:$0xf] }
 0x1a2   : > { %v18509_v34 = vpop.permute.xlu1 %8148  ;;  %7842 = vmatpush1.msra.mxu1 %v6875_v16  ;;  %v18511_v29 = vpop.permute.xlu0 %8146  ;;  %7771 = vmatpush1.msra.mxu0 %v6873_v27  ;;  %v8430_v16 = vmul.f32 %v8279_v10, %v8185_v6  ;;  %v16134_v27 = vld [vmem:[%s20086_s5 + $0x85] ss:$8 sm:$0xf0]  ;;  %v8194_v10 = vsel %vm8182_vm5, %v18449_v23, %v18480_v62  ;;  %v8432_v14 = vmul.f32 %v8287_v43, %v8187_v54 }
 0x1a3   : > { %7834 = vmatprep.mubr.f32.mxu0 %v20189_v60  ;;  %7905 = vmatprep.mubr.f32.mxu1 %v20189_v60  ;;  %v8434_v63 = vmul.f32 %v8295_v58, %v8189_v37  ;;  %v8191_v13 = vsel %vm8182_vm5, %v18421_v47, %v18419_v57  ;;  %v8193_v11 = vsel %vm8182_vm5, %v18451_v45, %v18449_v23  ;;  %v16136_v6 = vld [vmem:[%s20086_s5 + $0xc5] ss:$8 sm:$0xf0] }
 0x1a4   : > { %7912 = vmatprep.subr.mxu0 %v6878_v24  ;;  %7983 = vmatprep.subr.mxu1 %v6880_v19  ;;  %v18588_v24 = vor.u32 %v16134_v27, %v16133_v32  ;;  %v8331_v19 = vrot.slane %v18504_v31, %v17022_v35  ;;  %v8439_v8 = vmul.f32 %v8315_v1, %v8194_v10  ;;  %v16154_v10 = vld [vmem:[%s20086_s5 + $0x6] ss:$8 sm:$0xf] }
 0x1a5   : > { %16125 = vmatmul.mubr.msk.f32.vlgmr.msra.gmra.mrb[12].mxu0 %vm728_vm1, %v18330_v61  ;;  %16126 = vmatmul.mubr.msk.f32.vlgmr.msra.gmra.mrb[12].mxu1 %vm728_vm1, %v18330_v61  ;;  %v8196_v57 = vsel %vm8182_vm5, %v18478_v25, %v18511_v29  ;;  %v8436_v15 = vmul.f32 %v8303_v9, %v8191_v13  ;;  %v8195_v58 = vsel %vm8182_vm5, %v18480_v62, %v18478_v25 }
 0x1a6   : > { %7913 = vmatpush1.msra.mxu0 %v6877_v26  ;;  %7984 = vmatpush1.msra.mxu1 %v6879_v30  ;;  %v18545_v12 = vpop.permute.xlu1 %8152  ;;  %v18547_v59 = vpop.permute.xlu0 %8150  ;;  %v8437_v26 = vmul.f32 %v8307_v3, %v8192_v52  ;;  %v8327_v30 = vrot.slane %v18504_v31, %v17024_v36  ;;  %v8335_v45 = vrot.slane %v18588_v24, %v16978_v48 }
 0x1a7   : > { %8497 = vmatprep.subr.mxu0 %v8429_v42  ;;  %8568 = vmatprep.subr.mxu1 %v8431_v44  ;;  %v8198_v47 = vsel %vm8182_vm5, %v18509_v34, %v18547_v59  ;;  %v8339_v43 = vrot.slane %v18588_v24, %v16964_v39  ;;  %v8438_v42 = vmul.f32 %v8311_v33, %v8193_v11 }
 0x1a8   : > { %7976 = vmatprep.mubr.f32.mxu0 %v20189_v60  ;;  %8047 = vmatprep.mubr.f32.mxu1 %v20189_v60  ;;  %v8197_v44 = vsel %vm8182_vm5, %v18511_v29, %v18509_v34  ;;  %v8443_v5 = vmul.f32 %v8331_v19, %v8198_v47  ;;  %v8343_v25 = vrot.slane %v18588_v24, %v16966_v40 }
 0x1a9   : > { %16127 = vmatmul.mubr.msk.f32.vlgmr.msra.gmra.mrb[14].mxu0 %vm728_vm1, %v18330_v61  ;;  %16128 = vmatmul.mubr.msk.f32.vlgmr.msra.gmra.mrb[14].mxu1 %vm728_vm1, %v18330_v61  ;;  %v8323_v61 = vrot.slane %v18504_v31, %v16997_v55  ;;  %v8347_v31 = vrot.slane %v18588_v24, %v16962_v38  ;;  %v8355_v34 = vrot.slane %v18588_v24, %v16997_v55 }
 0x1aa   : > { %8498 = vmatpush1.msra.mxu0 %v8428_v7  ;;  %8569 = vmatpush1.msra.mxu1 %v8430_v16  ;;  %v8157_v4 = vpop.permute.xlu1 %8156  ;;  %v8155_v28 = vpop.permute.xlu0 %8154  ;;  %v18643_v3 = vor.u32 %v16136_v6, %v16135_v46  ;;  %v8363_v33 = vrot.slane %v18588_v24, %v17022_v35  ;;  %v8440_v1 = vmul.f32 %v8319_v17, %v8195_v58 }
 0x1ab   : > { %8639 = vmatprep.subr.mxu0 %v8433_v22  ;;  %8710 = vmatprep.subr.mxu1 %v8435_v0  ;;  %v8441_v21 = vmul.f32 %v8323_v61, %v8196_v57  ;;  %v8200_v62 = vsel %vm8182_vm5, %v18545_v12, %v8155_v28  ;;  %v8442_v16 = vmul.f32 %v8327_v30, %v8197_v44 }
 0x1ac   : > { %8561 = vmatprep.mubr.f32.mxu0 %v20189_v60  ;;  %8632 = vmatprep.mubr.f32.mxu1 %v20189_v60  ;;  %v8199_v54 = vsel %vm8182_vm5, %v18547_v59, %v18545_v12  ;;  %v8201_v7 = vsel %vm8182_vm5, %v8155_v28, %v8157_v4  ;;  %v8445_v32 = vmul.f32 %v8339_v43, %v8200_v62 }
 0x1ad   : > { %16138 = vmatmul.mubr.msk.f32.vlgmr.msra.gmra.mrb[0].mxu0 %vm728_vm1, %v18584_v20  ;;  %16139 = vmatmul.mubr.msk.f32.vlgmr.msra.gmra.mrb[0].mxu1 %vm728_vm1, %v18584_v20  ;;  %v8351_v37 = vrot.slane %v18588_v24, %v16999_v56  ;;  %v8444_v59 = vmul.f32 %v8335_v45, %v8199_v54  ;;  %v8359_v0 = vrot.slane %v18588_v24, %v17024_v36 }
 0x1ae   : > { %8640 = vmatpush1.msra.mxu0 %v8432_v14  ;;  %8711 = vmatpush1.msra.mxu1 %v8434_v63  ;;  %v8161_v23 = vpop.permute.xlu1 %8160  ;;  %v8159_v18 = vpop.permute.xlu0 %8158  ;;  %v8371_v17 = vrot.slane %v18643_v3, %v16964_v39  ;;  %v8446_v28 = vmul.f32 %v8343_v25, %v8201_v7  ;;  %v8379_v43 = vrot.slane %v18643_v3, %v16962_v38 }
 0x1af   : > { %8781 = vmatprep.subr.mxu0 %v8437_v26  ;;  %8852 = vmatprep.subr.mxu1 %v8439_v8  ;;  %v8202_v9 = vsel %vm8182_vm5, %v8157_v4, %v8159_v18  ;;  %v16155_v4 = vld [vmem:[%s20086_s5 + $0x6] ss:$8 sm:$0xf0]  ;;  %v8203_v61 = vsel %vm8182_vm5, %v8159_v18, %v8161_v23  ;;  %v8367_v26 = vrot.slane %v18643_v3, %v16978_v48 }
 0x1b0   : > { %8703 = vmatprep.mubr.f32.mxu0 %v20189_v60  ;;  %8774 = vmatprep.mubr.f32.mxu1 %v20189_v60  ;;  %v8447_v27 = vmul.f32 %v8347_v31, %v8202_v9  ;;  %v18679_v11 = vor.u32 %v16155_v4, %v16154_v10  ;;  %v8448_v30 = vmul.f32 %v8351_v37, %v8203_v61 }
 0x1b1   : > { %16140 = vmatmul.mubr.msk.f32.vlgmr.msra.gmra.mrb[2].mxu0 %vm728_vm1, %v18584_v20  ;;  %16141 = vmatmul.mubr.msk.f32.vlgmr.msra.gmra.mrb[2].mxu1 %vm728_vm1, %v18584_v20  ;;  %v8375_v31 = vrot.slane %v18643_v3, %v16966_v40  ;;  %v8387_v62 = vrot.slane %v18643_v3, %v16997_v55  ;;  %v8391_v9 = vrot.slane %v18643_v3, %v17024_v36 }
 0x1b2   : > { %8782 = vmatpush1.msra.mxu0 %v8436_v15  ;;  %8853 = vmatpush1.msra.mxu1 %v8438_v42  ;;  %v8165_v2 = vpop.permute.xlu1 %8164  ;;  %v8163_v29 = vpop.permute.xlu0 %8162  ;;  %v9728_v15 = vrot.slane %v18679_v11, %v16966_v40  ;;  %v9720_v42 = vrot.slane %v18679_v11, %v16978_v48  ;;  %v9732_v37 = vrot.slane %v18679_v11, %v16962_v38 }
 0x1b3   : > { %8923 = vmatprep.subr.mxu0 %v8441_v21  ;;  %8994 = vmatprep.subr.mxu1 %v8443_v5  ;;  %v8204_v22 = vsel %vm8182_vm5, %v8161_v23, %v8163_v29  ;;  %v8205_v24 = vsel %vm8182_vm5, %v8163_v29, %v8165_v2  ;;  %v8395_v21 = vrot.slane %v18643_v3, %v17022_v35  ;;  %v16688_v5 = vmov 0   ;;  %v16156_v29 = vld [vmem:[%s20086_s5 + $0x46] ss:$8 sm:$0xf] }
 0x1b4   : > { %8845 = vmatprep.mubr.f32.mxu0 %v20189_v60  ;;  %8916 = vmatprep.mubr.f32.mxu1 %v20189_v60  ;;  %v8449_v14 = vmul.f32 %v8355_v34, %v8204_v22  ;;  %v8450_v57 = vmul.f32 %v8359_v0, %v8205_v24  ;;  %v9724_v34 = vrot.slane %v18679_v11, %v16964_v39 }
 0x1b5   : > { %16142 = vmatmul.mubr.msk.f32.vlgmr.msra.gmra.mrb[4].mxu0 %vm728_vm1, %v18584_v20  ;;  %16143 = vmatmul.mubr.msk.f32.vlgmr.msra.gmra.mrb[4].mxu1 %vm728_vm1, %v18584_v20  ;;  %v9748_v10 = vrot.slane %v18679_v11, %v17022_v35  ;;  %v9736_v4 = vrot.slane %v18679_v11, %v16999_v56  ;;  %v9744_v61 = vrot.slane %v18679_v11, %v17024_v36 }
 0x1b6   : > { %8924 = vmatpush1.msra.mxu0 %v8440_v1  ;;  %8995 = vmatpush1.msra.mxu1 %v8442_v16  ;;  %v8169_v12 = vpop.permute.xlu1 %8168  ;;  %v8383_v16 = vrot.slane %v18643_v3, %v16999_v56  ;;  %v9879_v24 = vmul.f32 %v9728_v15, %v16981_v49  ;;  %v20275_v49 = vld [vmem:[#allocation5_spill] sm:$0xff] }
 0x1b7   : > { %9065 = vmatprep.subr.mxu0 %v8445_v32  ;;  %9136 = vmatprep.subr.mxu1 %v8447_v27  ;;  %v8167_v52 = vpop.permute.xlu0 %8166 }
 0x1b8   : > { %v8206_v19 = vsel %vm8182_vm5, %v8165_v2, %v8167_v52  ;;  %8987 = vmatprep.mubr.f32.mxu0 %v20189_v60  ;;  %9058 = vmatprep.mubr.f32.mxu1 %v20189_v60  ;;  %v8207_v23 = vsel %vm8182_vm5, %v8167_v52, %v8169_v12  ;;  %v284_v2 = vld [vmem:[%s20083_s2] sm:$0xff] }
 0x1b9   : > { %v8451_v63 = vmul.f32 %v8363_v33, %v8206_v19  ;;  %16144 = vmatmul.mubr.msk.f32.vlgmr.msra.gmra.mrb[6].mxu0 %vm728_vm1, %v18584_v20  ;;  %16145 = vmatmul.mubr.msk.f32.vlgmr.msra.gmra.mrb[6].mxu1 %vm728_vm1, %v18584_v20  ;;  %v8452_v6 = vmul.f32 %v8367_v26, %v8207_v23  ;;  %v16157_v33 = vld [vmem:[%s20086_s5 + $0x46] ss:$8 sm:$0xf0]  ;;  %v9880_v19 = vmul.f32 %v9732_v37, %v17029_v41 }
 0x1ba   : > { %9066 = vmatpush1.msra.mxu0 %v8444_v59  ;;  %9137 = vmatpush1.msra.mxu1 %v8446_v28  ;;  %v8173_v13 = vpop.permute.xlu1 %8172  ;;  %v18736_v59 = vor.u32 %v16157_v33, %v16156_v29  ;;  %v9878_v28 = vmul.f32 %v9724_v34, %v16987_v51  ;;  %v16159_v41 = vld [vmem:[%s20086_s5 + $0x86] ss:$8 sm:$0xf0] }
 0x1bb   : > { %9207 = vmatprep.subr.mxu0 %v8449_v14  ;;  %9278 = vmatprep.subr.mxu1 %v8451_v63  ;;  %v8171_v8 = vpop.permute.xlu0 %8170  ;;  %v9877_v14 = vmul.f32 %v9720_v42, %v16984_v50  ;;  %v16158_v63 = vld [vmem:[%s20086_s5 + $0x86] ss:$8 sm:$0xf] }
 0x1bc   : > { %v8208_v47 = vsel %vm8182_vm5, %v8169_v12, %v8171_v8  ;;  %9129 = vmatprep.mubr.f32.mxu0 %v20189_v60  ;;  %9200 = vmatprep.mubr.f32.mxu1 %v20189_v60  ;;  %v8209_v58 = vsel %vm8182_vm5, %v8171_v8, %v8173_v13  ;;  %v9756_v51 = vrot.slane %v18736_v59, %v16964_v39  ;;  %v18775_v26 = vld [vmem:[%s20082_s1 + $0x30] sm:$0xff]  ;;  %v20280_v42 = vld [vmem:[#allocation11_spill] sm:$0xff]  ;;  %v20285_v37 = vld [vmem:[#allocation12_spill] sm:$0xff] }
 0x1bd   : > { %v8453_v45 = vmul.f32 %v8371_v17, %v8208_v47  ;;  %16146 = vmatmul.mubr.msk.f32.vlgmr.msra.gmra.mrb[8].mxu0 %vm728_vm1, %v18584_v20  ;;  %16147 = vmatmul.mubr.msk.f32.vlgmr.msra.gmra.mrb[8].mxu1 %vm728_vm1, %v18584_v20  ;;  %v8454_v1 = vmul.f32 %v8375_v31, %v8209_v58  ;;  %v9740_v17 = vrot.slane %v18679_v11, %v16997_v55  ;;  %v20277_v47 = vld [vmem:[#allocation4_spill] sm:$0xff]  ;;  %v20283_v34 = vld [vmem:[#allocation13_spill] sm:$0xff]  ;;  %v20284_v33 = vld [vmem:[#allocation15_spill] sm:$0xff] }
 0x1be   : > { %9208 = vmatpush1.msra.mxu0 %v8448_v30  ;;  %9279 = vmatpush1.msra.mxu1 %v8450_v57  ;;  %v8177_v18 = vpop.permute.xlu1 %8176  ;;  %v9752_v8 = vrot.slane %v18736_v59, %v16978_v48  ;;  %v9760_v30 = vrot.slane %v18736_v59, %v16966_v40  ;;  %v9772_v57 = vrot.slane %v18736_v59, %v16997_v55 }
 0x1bf   : > { %v8175_v46 = vpop.permute.xlu0 %8174  ;;  %9349 = vmatprep.subr.mxu0 %v8453_v45  ;;  %9271 = vmatprep.mubr.f32.mxu0 %v20189_v60  ;;  %v9882_v50 = vmul.f32 %v9740_v17, %v20275_v49  ;;  %v9881_v23 = vmul.f32 %v9736_v4, %v20277_v47  ;;  %v20278_v45 = vld [vmem:[#allocation6_spill] sm:$0xff]  ;;  %v18785_v31 = vor.u32 %v16159_v41, %v16158_v63  ;;  %v20291_v41 = vld [vmem:[#allocation21_spill] sm:$0xff]  ;;  %v20293_v47 = vld [vmem:[#allocation20_spill] sm:$0xff] }
 0x1c0   : > { %v8210_v44 = vsel %vm8182_vm5, %v8173_v13, %v8175_v46  ;;  %9342 = vmatprep.mubr.f32.mxu1 %v20189_v60  ;;  %16632 = vset.pattern.permute.xlu0 %v16688_v5  ;;  %v8211_v7 = vsel %vm8182_vm5, %v8175_v46, %v8177_v18  ;;  %v20276_v13 = vld [vmem:[#allocation7_spill] sm:$0xff]  ;;  %v9780_v46 = vrot.slane %v18736_v59, %v17022_v35 }
 0x1c1   : > { %v8455_v25 = vmul.f32 %v8379_v43, %v8210_v44  ;;  %16148 = vmatmul.mubr.msk.f32.vlgmr.msra.gmra.mrb[10].mxu0 %vm728_vm1, %v18584_v20  ;;  %16149 = vmatmul.mubr.msk.f32.vlgmr.msra.gmra.mrb[10].mxu1 %vm728_vm1, %v18584_v20  ;;  %v9884_v11 = vmul.f32 %v9748_v10, %v20276_v13  ;;  %v9883_v43 = vmul.f32 %v9744_v61, %v20278_v45  ;;  %v20294_v45 = vld [vmem:[#allocation22_spill] sm:$0xff] }
 0x1c2   : > { %9350 = vmatpush1.msra.mxu0 %v8452_v6  ;;  %v8181_v54 = vpop.permute.xlu1 %8180  ;;  %9413 = vmatprep.mubr.f32.mxu0 %v20189_v60  ;;  %v9768_v6 = vrot.slane %v18736_v59, %v16999_v56  ;;  %v9776_v44 = vrot.slane %v18736_v59, %v17024_v36  ;;  %v9890_v29 = vmul.f32 %v9772_v57, %v20283_v34  ;;  %v16180_v57 = vld [vmem:[%s20086_s5 + $0x7] ss:$8 sm:$0xf0] }
 0x1c3   : > { %v8247_v32 = vsel %vm8182_vm5, %v8181_v54, %v18369_v53  ;;  %9420 = vmatprep.subr.mxu1 %v8455_v25  ;;  %v8179_v27 = vpop.permute.xlu0 %8178  ;;  %9484 = vmatprep.mubr.f32.mxu1 %v20189_v60  ;;  %v8456_v53 = vmul.f32 %v8383_v16, %v8211_v7  ;;  %v9796_v16 = vrot.slane %v18785_v31, %v16962_v38  ;;  %v16161_v7 = vld [vmem:[%s20086_s5 + $0xc6] ss:$8 sm:$0xf0] }
 0x1c4   : > { %v8459_v22 = vmul.f32 %v8395_v21, %v8247_v32  ;;  %v8212_v12 = vsel %vm8182_vm5, %v8177_v18, %v8179_v27  ;;  %v8213_v3 = vsel %vm8182_vm5, %v8179_v27, %v8181_v54  ;;  %9421 = vmatpush1.msra.mxu1 %v8454_v1  ;;  %287 = vperm.xlu0 %16632, %v284_v2   ;;  %v20279_v18 = vld [vmem:[#allocation9_spill] sm:$0xff]  ;;  %v20281_v21 = vld [vmem:[#allocation8_spill] sm:$0xff] }
 0x1c5   : > { %v8457_v0 = vmul.f32 %v8387_v62, %v8212_v12  ;;  %v8458_v52 = vmul.f32 %v8391_v9, %v8213_v3  ;;  %16150 = vmatmul.mubr.msk.f32.vlgmr.msra.gmra.mrb[12].mxu0 %vm728_vm1, %v18584_v20  ;;  %16151 = vmatmul.mubr.msk.f32.vlgmr.msra.gmra.mrb[12].mxu1 %vm728_vm1, %v18584_v20  ;;  %v9886_v15 = vmul.f32 %v9756_v51, %v20279_v18  ;;  %v20282_v62 = vld [vmem:[#allocation10_spill] sm:$0xff]  ;;  %v20295_v18 = vld [vmem:[#allocation25_spill] sm:$0xff] }
 0x1c6   : > { %9562 = vmatprep.subr.mxu1 %v8459_v22  ;;  %9555 = vmatprep.mubr.f32.mxu0 %v20189_v60  ;;  %v9885_v25 = vmul.f32 %v9752_v8, %v20281_v21  ;;  %v9887_v9 = vmul.f32 %v9760_v30, %v20282_v62  ;;  %v9788_v2 = vrot.slane %v18785_v31, %v16964_v39  ;;  %v16160_v54 = vld [vmem:[%s20086_s5 + $0xc6] ss:$8 sm:$0xf]  ;;  %v16179_v30 = vld [vmem:[%s20086_s5 + $0x7] ss:$8 sm:$0xf] }
 0x1c7   : > { %9491 = vmatprep.subr.mxu0 %v8457_v0  ;;  %9563 = vmatpush1.msra.mxu1 %v8458_v52  ;;  %v9892_v1 = vmul.f32 %v9780_v46, %v20284_v33  ;;  %v9784_v32 = vrot.slane %v18785_v31, %v16978_v48  ;;  %v9792_v27 = vrot.slane %v18785_v31, %v16966_v40  ;;  %v20286_v12 = vld [vmem:[#allocation14_spill] sm:$0xff]  ;;  %v20287_v0 = vld [vmem:[#allocation17_spill] sm:$0xff] }
 0x1c8   : > { %9492 = vmatpush1.msra.mxu0 %v8456_v53  ;;  %9626 = vmatprep.mubr.f32.mxu1 %v20189_v60  ;;  %v9889_v22 = vmul.f32 %v9768_v6, %v20285_v37  ;;  %v9891_v3 = vmul.f32 %v9776_v44, %v20286_v12  ;;  %v9894_v52 = vmul.f32 %v9788_v2, %v20287_v0  ;;  %v20288_v53 = vld [vmem:[#allocation19_spill] sm:$0xff]  ;;  %v20301_v12 = vld [vmem:[#allocation28_spill] sm:$0xff] }
 0x1c9   : > { %16152 = vmatmul.mubr.msk.f32.vlgmr.msra.gmra.mrb[14].mxu0 %vm728_vm1, %v18584_v20  ;;  %16153 = vmatmul.mubr.msk.f32.vlgmr.msra.gmra.mrb[14].mxu1 %vm728_vm1, %v18584_v20  ;;  %v9764_v20 = vrot.slane %v18736_v59, %v16962_v38  ;;  %v9804_v59 = vrot.slane %v18785_v31, %v16997_v55  ;;  %v9896_v17 = vmul.f32 %v9796_v16, %v20288_v53  ;;  %v16182_v16 = vld [vmem:[%s20086_s5 + $0x47] ss:$8 sm:$0xf0] }
 0x1ca   : > { %9946 = vmatprep.subr.mxu0 %v9878_v28  ;;  %10017 = vmatprep.subr.mxu1 %v9880_v19  ;;  %v9812_v10 = vrot.slane %v18785_v31, %v17022_v35  ;;  %v18839_v4 = vor.u32 %v16161_v7, %v16160_v54  ;;  %v9800_v28 = vrot.slane %v18785_v31, %v16999_v56  ;;  %v20289_v19 = vld [vmem:[#allocation16_spill] sm:$0xff]  ;;  %v20300_v54 = vld [vmem:[#allocation30_spill] sm:$0xff] }
 0x1cb   : > { %9947 = vmatpush1.msra.mxu0 %v9877_v14  ;;  %10018 = vmatpush1.msra.mxu1 %v9879_v24  ;;  %v9888_v58 = vmul.f32 %v9764_v20, %v20280_v42  ;;  %v9808_v61 = vrot.slane %v18785_v31, %v17024_v36  ;;  %v9893_v24 = vmul.f32 %v9784_v32, %v20289_v19  ;;  %v20290_v14 = vld [vmem:[#allocation18_spill] sm:$0xff]  ;;  %v20296_v42 = vld [vmem:[#allocation27_spill] sm:$0xff]  ;;  %v20303_v53 = vld [vmem:[#allocation32_spill] sm:$0xff] }
 0x1cc   : > { %10088 = vmatprep.subr.mxu0 %v9882_v50  ;;  %10159 = vmatprep.subr.mxu1 %v9884_v11  ;;  %v9895_v51 = vmul.f32 %v9792_v27, %v20290_v14  ;;  %v9820_v63 = vrot.slane %v18839_v4, %v16964_v39  ;;  %v9898_v49 = vmul.f32 %v9804_v59, %v20291_v41  ;;  %v20292_v50 = vld [vmem:[#allocation23_spill] sm:$0xff]  ;;  %v20302_v59 = vld [vmem:[#allocation29_spill] sm:$0xff] }
 0x1cd   : > { %10010 = vmatprep.mubr.f32.mxu0 %v20189_v60  ;;  %10081 = vmatprep.mubr.f32.mxu1 %v20189_v60  ;;  %v9900_v13 = vmul.f32 %v9812_v10, %v20292_v50  ;;  %v9828_v11 = vrot.slane %v18839_v4, %v16962_v38  ;;  %v9844_v20 = vrot.slane %v18839_v4, %v17022_v35  ;;  %v20304_v10 = vld [vmem:[#allocation35_spill] sm:$0xff] }
 0x1ce   : > { %16163 = vmatmul.mubr.msk.f32.vlgmr.msra.gmra.mrb[0].mxu0 %vm728_vm1, %v18775_v26  ;;  %16164 = vmatmul.mubr.msk.f32.vlgmr.msra.gmra.mrb[0].mxu1 %vm728_vm1, %v18775_v26  ;;  %v9816_v8 = vrot.slane %v18839_v4, %v16978_v48  ;;  %v9824_v31 = vrot.slane %v18839_v4, %v16966_v40  ;;  %v9836_v46 = vrot.slane %v18839_v4, %v16997_v55  ;;  %v16184_v50 = vld [vmem:[%s20086_s5 + $0x87] ss:$8 sm:$0xf0] }
 0x1cf   : > { %10089 = vmatpush1.msra.mxu0 %v9881_v23  ;;  %10160 = vmatpush1.msra.mxu1 %v9883_v43  ;;  %v9897_v23 = vmul.f32 %v9800_v28, %v20293_v47  ;;  %v9899_v43 = vmul.f32 %v9808_v61, %v20294_v45  ;;  %v18883_v6 = vor.u32 %v16180_v57, %v16179_v30  ;;  %v18956_v57 = vld [vmem:[%s20082_s1 + $0x38] sm:$0xff]  ;;  %v20309_v45 = vld [vmem:[#allocation36_spill] sm:$0xff] }
 0x1d0   : > { %10230 = vmatprep.subr.mxu0 %v9886_v15  ;;  %10301 = vmatprep.subr.mxu1 %v9888_v58  ;;  %v9902_v15 = vmul.f32 %v9820_v63, %v20295_v18  ;;  %v9904_v58 = vmul.f32 %v9828_v11, %v20296_v42  ;;  %v9840_v44 = vrot.slane %v18839_v4, %v17024_v36  ;;  %v20311_v42 = vld [vmem:[#allocation41_spill] sm:$0xff] }
 0x1d1   : > { %10152 = vmatprep.mubr.f32.mxu0 %v20189_v60  ;;  %10223 = vmatprep.mubr.f32.mxu1 %v20189_v60  ;;  %v9832_v21 = vrot.slane %v18839_v4, %v16999_v56  ;;  %v11173_v34 = vrot.slane %v18883_v6, %v16964_v39  ;;  %v9906_v7 = vmul.f32 %v9836_v46, %v20300_v54  ;;  %v20312_v46 = vld [vmem:[#allocation43_spill] sm:$0xff] }
 0x1d2   : > { %16165 = vmatmul.mubr.msk.f32.vlgmr.msra.gmra.mrb[2].mxu0 %vm728_vm1, %v18775_v26  ;;  %16166 = vmatmul.mubr.msk.f32.vlgmr.msra.gmra.mrb[2].mxu1 %vm728_vm1, %v18775_v26  ;;  %v11181_v32 = vrot.slane %v18883_v6, %v16962_v38  ;;  %v11169_v27 = vrot.slane %v18883_v6, %v16978_v48  ;;  %v11177_v37 = vrot.slane %v18883_v6, %v16966_v40 }
 0x1d3   : > { %10231 = vmatpush1.msra.mxu0 %v9885_v25  ;;  %10302 = vmatpush1.msra.mxu1 %v9887_v9  ;;  %v20297_v25 = vld [vmem:[#allocation24_spill] sm:$0xff]  ;;  %v20298_v9 = vld [vmem:[#allocation26_spill] sm:$0xff]  ;;  %v9905_v0 = vmul.f32 %v9832_v21, %v20302_v59  ;;  %v11197_v28 = vrot.slane %v18883_v6, %v17022_v35  ;;  %v11185_v61 = vrot.slane %v18883_v6, %v16999_v56 }
 0x1d4   : > { %10372 = vmatprep.subr.mxu0 %v9890_v29  ;;  %10443 = vmatprep.subr.mxu1 %v9892_v1  ;;  %v9901_v62 = vmul.f32 %v9816_v8, %v20297_v25  ;;  %v9903_v2 = vmul.f32 %v9824_v31, %v20298_v9  ;;  %v20299_v29 = vld [vmem:[#allocation3_spill] sm:$0xff]  ;;  %v11329_v4 = vmul.f32 %v11181_v32, %v20304_v10  ;;  %v20310_v31 = vld [vmem:[#allocation38_spill] sm:$0xff] }
 0x1d5   : > { %10294 = vmatprep.mubr.f32.mxu0 %v20189_v60  ;;  %10365 = vmatprep.mubr.f32.mxu1 %v20189_v60  ;;  %v9908_v33 = vmul.f32 %v9844_v20, %v20299_v29  ;;  %v16181_v1 = vld [vmem:[%s20086_s5 + $0x47] ss:$8 sm:$0xf]  ;;  %v11193_v19 = vrot.slane %v18883_v6, %v17024_v36 }
 0x1d6   : > { %16167 = vmatmul.mubr.msk.f32.vlgmr.msra.gmra.mrb[4].mxu0 %vm728_vm1, %v18775_v26  ;;  %16168 = vmatmul.mubr.msk.f32.vlgmr.msra.gmra.mrb[4].mxu1 %vm728_vm1, %v18775_v26  ;;  %v20308_v20 = vld [vmem:[#allocation39_spill] sm:$0xff]  ;;  %v20318_v59 = vld [vmem:[#allocation46_spill] sm:$0xff] }
 0x1d7   : > { %10373 = vmatpush1.msra.mxu0 %v9889_v22  ;;  %10444 = vmatpush1.msra.mxu1 %v9891_v3  ;;  %v11189_v22 = vrot.slane %v18883_v6, %v16997_v55  ;;  %v9907_v3 = vmul.f32 %v9840_v44, %v20301_v12  ;;  %v11333_v8 = vmul.f32 %v11197_v28, %v20308_v20  ;;  %v20317_v12 = vld [vmem:[#allocation44_spill] sm:$0xff]  ;;  %v20320_v10 = vld [vmem:[#allocation51_spill] sm:$0xff] }
 0x1d8   : > { %10514 = vmatprep.subr.mxu0 %v9894_v52  ;;  %10585 = vmatprep.subr.mxu1 %v9896_v17  ;;  %v18917_v52 = vor.u32 %v16182_v16, %v16181_v1  ;;  %v11327_v17 = vmul.f32 %v11173_v34, %v20303_v53  ;;  %v11332_v18 = vmul.f32 %v11193_v19, %v20310_v31  ;;  %v20316_v16 = vld [vmem:[#allocation47_spill] sm:$0xff]  ;;  %v20319_v53 = vld [vmem:[#allocation49_spill] sm:$0xff]  ;;  %v20326_v31 = vld [vmem:[#allocation54_spill] sm:$0xff] }
 0x1d9   : > { %10436 = vmatprep.mubr.f32.mxu0 %v20189_v60  ;;  %10507 = vmatprep.mubr.f32.mxu1 %v20189_v60 }
 0x1da   : > { %16169 = vmatmul.mubr.msk.f32.vlgmr.msra.gmra.mrb[6].mxu0 %vm728_vm1, %v18775_v26  ;;  %16170 = vmatmul.mubr.msk.f32.vlgmr.msra.gmra.mrb[6].mxu1 %vm728_vm1, %v18775_v26  ;;  %v11205_v41 = vrot.slane %v18917_v52, %v16964_v39  ;;  %v11213_v30 = vrot.slane %v18917_v52, %v16962_v38  ;;  %v11201_v47 = vrot.slane %v18917_v52, %v16978_v48 }
 0x1db   : > { %10515 = vmatpush1.msra.mxu0 %v9893_v24  ;;  %10586 = vmatpush1.msra.mxu1 %v9895_v51  ;;  %v20305_v24 = vld [vmem:[#allocation31_spill] sm:$0xff]  ;;  %v20306_v51 = vld [vmem:[#allocation33_spill] sm:$0xff]  ;;  %v11229_v44 = vrot.slane %v18917_v52, %v17022_v35  ;;  %v11217_v21 = vrot.slane %v18917_v52, %v16999_v56  ;;  %v11225_v25 = vrot.slane %v18917_v52, %v17024_v36 }
 0x1dc   : > { %10656 = vmatprep.subr.mxu0 %v9898_v49  ;;  %10727 = vmatprep.subr.mxu1 %v9900_v13  ;;  %v11326_v14 = vmul.f32 %v11169_v27, %v20305_v24  ;;  %v11328_v63 = vmul.f32 %v11177_v37, %v20306_v51  ;;  %v16183_v49 = vld [vmem:[%s20086_s5 + $0x87] ss:$8 sm:$0xf]  ;;  %v11337_v6 = vmul.f32 %v11213_v30, %v20312_v46 }
 0x1dd   : > { %10578 = vmatprep.mubr.f32.mxu0 %v20189_v60  ;;  %10649 = vmatprep.mubr.f32.mxu1 %v20189_v60  ;;  %v20307_v13 = vld [vmem:[#allocation37_spill] sm:$0xff]  ;;  %v11341_v54 = vmul.f32 %v11229_v44, %v20316_v16  ;;  %v20328_v46 = vld [vmem:[#allocation59_spill] sm:$0xff] }
 0x1de   : > { %16171 = vmatmul.mubr.msk.f32.vlgmr.msra.gmra.mrb[8].mxu0 %vm728_vm1, %v18775_v26  ;;  %16172 = vmatmul.mubr.msk.f32.vlgmr.msra.gmra.mrb[8].mxu1 %vm728_vm1, %v18775_v26  ;;  %v11331_v11 = vmul.f32 %v11189_v22, %v20307_v13  ;;  %v16185_v37 = vld [vmem:[%s20086_s5 + $0xc7] ss:$8 sm:$0xf]  ;;  %v16207_v16 = vld [vmem:[%s20086_s5 + $0x140] ss:$8 sm:$0xf0] }
 0x1df   : > { %10657 = vmatpush1.msra.mxu0 %v9897_v23  ;;  %10728 = vmatpush1.msra.mxu1 %v9899_v43  ;;  %v11221_v23 = vrot.slane %v18917_v52, %v16997_v55  ;;  %v11330_v43 = vmul.f32 %v11185_v61, %v20309_v45  ;;  %v16186_v22 = vld [vmem:[%s20086_s5 + $0xc7] ss:$8 sm:$0xf0] }
 0x1e0   : > { %10798 = vmatprep.subr.mxu0 %v9902_v15  ;;  %10869 = vmatprep.subr.mxu1 %v9904_v58  ;;  %v18966_v15 = vor.u32 %v16184_v50, %v16183_v49  ;;  %v11335_v58 = vmul.f32 %v11205_v41, %v20311_v42  ;;  %v19020_v61 = vor.u32 %v16186_v22, %v16185_v37  ;;  %v20323_v50 = vld [vmem:[#allocation53_spill] sm:$0xff]  ;;  %v20325_v45 = vld [vmem:[#allocation52_spill] sm:$0xff] }
 0x1e1   : > { %10720 = vmatprep.mubr.f32.mxu0 %v20189_v60  ;;  %10791 = vmatprep.mubr.f32.mxu1 %v20189_v60  ;;  %v20327_v42 = vld [vmem:[#allocation57_spill] sm:$0xff] }
 0x1e2   : > { %16173 = vmatmul.mubr.msk.f32.vlgmr.msra.gmra.mrb[10].mxu0 %vm728_vm1, %v18775_v26  ;;  %16174 = vmatmul.mubr.msk.f32.vlgmr.msra.gmra.mrb[10].mxu1 %vm728_vm1, %v18775_v26  ;;  %v11237_v29 = vrot.slane %v18966_v15, %v16964_v39  ;;  %v11233_v32 = vrot.slane %v18966_v15, %v16978_v48  ;;  %v11241_v27 = vrot.slane %v18966_v15, %v16966_v40 }
 0x1e3   : > { %10799 = vmatpush1.msra.mxu0 %v9901_v62  ;;  %10870 = vmatpush1.msra.mxu1 %v9903_v2  ;;  %v20313_v62 = vld [vmem:[#allocation40_spill] sm:$0xff]  ;;  %v20314_v2 = vld [vmem:[#allocation42_spill] sm:$0xff]  ;;  %v11261_v28 = vrot.slane %v18966_v15, %v17022_v35  ;;  %v11249_v19 = vrot.slane %v18966_v15, %v16999_v56  ;;  %v11257_v24 = vrot.slane %v18966_v15, %v17024_v36 }
 0x1e4   : > { %10940 = vmatprep.subr.mxu0 %v9906_v7  ;;  %11011 = vmatprep.subr.mxu1 %v9908_v33  ;;  %v11334_v9 = vmul.f32 %v11201_v47, %v20313_v62  ;;  %v20315_v33 = vld [vmem:[#allocation45_spill] sm:$0xff]  ;;  %v11245_v7 = vrot.slane %v18966_v15, %v16962_v38  ;;  %v11269_v49 = vrot.slane %v19020_v61, %v16964_v39 }
 0x1e5   : > { %10862 = vmatprep.mubr.f32.mxu0 %v20189_v60  ;;  %10933 = vmatprep.mubr.f32.mxu1 %v20189_v60  ;;  %v11339_v1 = vmul.f32 %v11221_v23, %v20315_v33  ;;  %v11265_v30 = vrot.slane %v19020_v61, %v16978_v48  ;;  %v16204_v47 = vld [vmem:[%s20086_s5 + $0x100] ss:$8 sm:$0xf]  ;;  %v11293_v23 = vrot.slane %v19020_v61, %v17022_v35 }
 0x1e6   : > { %16175 = vmatmul.mubr.msk.f32.vlgmr.msra.gmra.mrb[12].mxu0 %vm728_vm1, %v18775_v26  ;;  %16176 = vmatmul.mubr.msk.f32.vlgmr.msra.gmra.mrb[12].mxu1 %vm728_vm1, %v18775_v26  ;;  %v11285_v44 = vrot.slane %v19020_v61, %v16997_v55  ;;  %v11281_v62 = vrot.slane %v19020_v61, %v16999_v56 }
 0x1e7   : > { %10941 = vmatpush1.msra.mxu0 %v9905_v0  ;;  %11012 = vmatpush1.msra.mxu1 %v9907_v3  ;;  %v11338_v3 = vmul.f32 %v11217_v21, %v20317_v12  ;;  %v11340_v0 = vmul.f32 %v11225_v25, %v20318_v59  ;;  %v11289_v25 = vrot.slane %v19020_v61, %v17024_v36  ;;  %v20333_v59 = vld [vmem:[#allocation60_spill] sm:$0xff] }
 0x1e8   : > { %11395 = vmatprep.subr.mxu0 %v11327_v17  ;;  %11466 = vmatprep.subr.mxu1 %v11329_v4  ;;  %v11343_v17 = vmul.f32 %v11237_v29, %v20319_v53  ;;  %v11345_v4 = vmul.f32 %v11245_v7, %v20320_v10 }
 0x1e9   : > { %11004 = vmatprep.mubr.f32.mxu0 %v20189_v60  ;;  %11075 = vmatprep.mubr.f32.mxu1 %v20189_v60 }
 0x1ea   : > { %16177 = vmatmul.mubr.msk.f32.vlgmr.msra.gmra.mrb[14].mxu0 %vm728_vm1, %v18775_v26  ;;  %16178 = vmatmul.mubr.msk.f32.vlgmr.msra.gmra.mrb[14].mxu1 %vm728_vm1, %v18775_v26  ;;  %v11209_v26 = vrot.slane %v18917_v52, %v16966_v40  ;;  %v11253_v52 = vrot.slane %v18966_v15, %v16997_v55  ;;  %v11273_v15 = vrot.slane %v19020_v61, %v16966_v40 }
 0x1eb   : > { %11396 = vmatpush1.msra.mxu0 %v11326_v14  ;;  %11467 = vmatpush1.msra.mxu1 %v11328_v63  ;;  %v20321_v14 = vld [vmem:[#allocation48_spill] sm:$0xff]  ;;  %v20322_v63 = vld [vmem:[#allocation50_spill] sm:$0xff] }
 0x1ec   : > { %11537 = vmatprep.subr.mxu0 %v11331_v11  ;;  %11608 = vmatprep.subr.mxu1 %v11333_v8  ;;  %v11336_v34 = vmul.f32 %v11209_v26, %v20314_v2  ;;  %v11342_v51 = vmul.f32 %v11233_v32, %v20321_v14  ;;  %v11344_v41 = vmul.f32 %v11241_v27, %v20322_v63  ;;  %v20324_v11 = vld [vmem:[#allocation55_spill] sm:$0xff]  ;;  %v20332_v32 = vld [vmem:[#allocation34_spill] sm:$0xff] }
 0x1ed   : > { %11459 = vmatprep.mubr.f32.mxu0 %v20189_v60  ;;  %11530 = vmatprep.mubr.f32.mxu1 %v20189_v60  ;;  %v11347_v13 = vmul.f32 %v11253_v52, %v20323_v50  ;;  %v11349_v20 = vmul.f32 %v11261_v28, %v20324_v11  ;;  %v11277_v8 = vrot.slane %v19020_v61, %v16962_v38  ;;  %v16205_v26 = vld [vmem:[%s20086_s5 + $0x100] ss:$8 sm:$0xf0] }
 0x1ee   : > { %16188 = vmatmul.mubr.msk.f32.vlgmr.msra.gmra.mrb[0].mxu0 %vm728_vm1, %v18956_v57  ;;  %16189 = vmatmul.mubr.msk.f32.vlgmr.msra.gmra.mrb[0].mxu1 %vm728_vm1, %v18956_v57  ;;  %v19064_v21 = vor.u32 %v16205_v26, %v16204_v47  ;;  %v11357_v27 = vmul.f32 %v11293_v23, %v20332_v32  ;;  %v20334_v52 = vld [vmem:[#allocation61_spill] sm:$0xff]  ;;  %v20336_v61 = vld [vmem:[#allocation67_spill] sm:$0xff] }
 0x1ef   : > { %11538 = vmatpush1.msra.mxu0 %v11330_v43  ;;  %11609 = vmatpush1.msra.mxu1 %v11332_v18  ;;  %v11346_v43 = vmul.f32 %v11249_v19, %v20325_v45  ;;  %v11348_v18 = vmul.f32 %v11257_v24, %v20326_v31  ;;  %v11354_v53 = vmul.f32 %v11281_v62, %v20334_v52  ;;  %v16208_v47 = vld [vmem:[%s20086_s5 + $0x180] ss:$8 sm:$0xf] }
 0x1f0   : > { %11679 = vmatprep.subr.mxu0 %v11335_v58  ;;  %11750 = vmatprep.subr.mxu1 %v11337_v6  ;;  %v11351_v58 = vmul.f32 %v11269_v49, %v20327_v42  ;;  %v11353_v6 = vmul.f32 %v11277_v8, %v20328_v46  ;;  %v12622_v33 = vrot.slane %v19064_v21, %v16964_v39  ;;  %v16209_v26 = vld [vmem:[%s20086_s5 + $0x180] ss:$8 sm:$0xf0] }
 0x1f1   : > { %11601 = vmatprep.mubr.f32.mxu0 %v20189_v60  ;;  %11672 = vmatprep.mubr.f32.mxu1 %v20189_v60  ;;  %v12630_v37 = vrot.slane %v19064_v21, %v16962_v38  ;;  %v12618_v22 = vrot.slane %v19064_v21, %v16978_v48  ;;  %v12626_v12 = vrot.slane %v19064_v21, %v16966_v40  ;;  %v19137_v23 = vld [vmem:[%s20082_s1 + $0x40] sm:$0xff]  ;;  %v20343_v46 = vld [vmem:[#allocation73_spill] sm:$0xff]  ;;  %v20350_v52 = vld [vmem:[#allocation78_spill] sm:$0xff] }
 0x1f2   : > { %16190 = vmatmul.mubr.msk.f32.vlgmr.msra.gmra.mrb[2].mxu0 %vm728_vm1, %v18956_v57  ;;  %16191 = vmatmul.mubr.msk.f32.vlgmr.msra.gmra.mrb[2].mxu1 %vm728_vm1, %v18956_v57  ;;  %v12646_v10 = vrot.slane %v19064_v21, %v17022_v35  ;;  %v12634_v24 = vrot.slane %v19064_v21, %v16999_v56  ;;  %v12642_v14 = vrot.slane %v19064_v21, %v17024_v36 }
 0x1f3   : > { %11680 = vmatpush1.msra.mxu0 %v11334_v9  ;;  %11751 = vmatpush1.msra.mxu1 %v11336_v34  ;;  %v20329_v9 = vld [vmem:[#allocation56_spill] sm:$0xff]  ;;  %v20330_v34 = vld [vmem:[#allocation58_spill] sm:$0xff]  ;;  %v12778_v19 = vmul.f32 %v12630_v37, %v20336_v61 }
 0x1f4   : > { %11821 = vmatprep.subr.mxu0 %v11339_v1  ;;  %11892 = vmatprep.subr.mxu1 %v11341_v54  ;;  %v11350_v2 = vmul.f32 %v11265_v30, %v20329_v9  ;;  %v11352_v29 = vmul.f32 %v11273_v15, %v20330_v34  ;;  %v16206_v1 = vld [vmem:[%s20086_s5 + $0x140] ss:$8 sm:$0xf] }
 0x1f5   : > { %11743 = vmatprep.mubr.f32.mxu0 %v20189_v60  ;;  %11814 = vmatprep.mubr.f32.mxu1 %v20189_v60  ;;  %v20331_v54 = vld [vmem:[#allocation62_spill] sm:$0xff] }
 0x1f6   : > { %16192 = vmatmul.mubr.msk.f32.vlgmr.msra.gmra.mrb[4].mxu0 %vm728_vm1, %v18956_v57  ;;  %16193 = vmatmul.mubr.msk.f32.vlgmr.msra.gmra.mrb[4].mxu1 %vm728_vm1, %v18956_v57  ;;  %v11355_v7 = vmul.f32 %v11285_v44, %v20331_v54  ;;  %v20342_v15 = vld [vmem:[#allocation70_spill] sm:$0xff]  ;;  %v20344_v44 = vld [vmem:[#allocation75_spill] sm:$0xff] }
 0x1f7   : > { %11822 = vmatpush1.msra.mxu0 %v11338_v3  ;;  %11893 = vmatpush1.msra.mxu1 %v11340_v0  ;;  %v12638_v3 = vrot.slane %v19064_v21, %v16997_v55  ;;  %v11356_v0 = vmul.f32 %v11289_v25, %v20333_v59  ;;  %v12781_v42 = vmul.f32 %v12642_v14, %v20342_v15  ;;  %v16210_v37 = vld [vmem:[%s20086_s5 + $0x1c0] ss:$8 sm:$0xf] }
 0x1f8   : > { %11963 = vmatprep.subr.mxu0 %v11343_v17  ;;  %12034 = vmatprep.subr.mxu1 %v11345_v4  ;;  %v19098_v17 = vor.u32 %v16207_v16, %v16206_v1  ;;  %v20335_v4 = vld [vmem:[#allocation64_spill] sm:$0xff]  ;;  %v20347_v16 = vld [vmem:[#allocation77_spill] sm:$0xff] }
 0x1f9   : > { %11885 = vmatprep.mubr.f32.mxu0 %v20189_v60  ;;  %11956 = vmatprep.mubr.f32.mxu1 %v20189_v60  ;;  %v12776_v28 = vmul.f32 %v12622_v33, %v20335_v4  ;;  %v20349_v59 = vld [vmem:[#allocation76_spill] sm:$0xff] }
 0x1fa   : > { %16194 = vmatmul.mubr.msk.f32.vlgmr.msra.gmra.mrb[6].mxu0 %vm728_vm1, %v18956_v57  ;;  %16195 = vmatmul.mubr.msk.f32.vlgmr.msra.gmra.mrb[6].mxu1 %vm728_vm1, %v18956_v57  ;;  %v12654_v50 = vrot.slane %v19098_v17, %v16964_v39  ;;  %v12662_v30 = vrot.slane %v19098_v17, %v16962_v38  ;;  %v12650_v45 = vrot.slane %v19098_v17, %v16978_v48 }
 0x1fb   : > { %11964 = vmatpush1.msra.mxu0 %v11342_v51  ;;  %12035 = vmatpush1.msra.mxu1 %v11344_v41  ;;  %v20337_v51 = vld [vmem:[#allocation63_spill] sm:$0xff]  ;;  %v20338_v41 = vld [vmem:[#allocation65_spill] sm:$0xff]  ;;  %v12670_v31 = vrot.slane %v19098_v17, %v16997_v55  ;;  %v12678_v25 = vrot.slane %v19098_v17, %v17022_v35  ;;  %v12666_v62 = vrot.slane %v19098_v17, %v16999_v56 }
 0x1fc   : > { %12105 = vmatprep.subr.mxu0 %v11347_v13  ;;  %12176 = vmatprep.subr.mxu1 %v11349_v20  ;;  %v12775_v63 = vmul.f32 %v12618_v22, %v20337_v51  ;;  %v12777_v49 = vmul.f32 %v12626_v12, %v20338_v41  ;;  %v20339_v13 = vld [vmem:[#allocation69_spill] sm:$0xff]  ;;  %v20340_v20 = vld [vmem:[#allocation71_spill] sm:$0xff]  ;;  %v12786_v21 = vmul.f32 %v12662_v30, %v20344_v44 }
 0x1fd   : > { %12027 = vmatprep.mubr.f32.mxu0 %v20189_v60  ;;  %12098 = vmatprep.mubr.f32.mxu1 %v20189_v60  ;;  %v12780_v11 = vmul.f32 %v12638_v3, %v20339_v13  ;;  %v12782_v8 = vmul.f32 %v12646_v10, %v20340_v20  ;;  %v12674_v9 = vrot.slane %v19098_v17, %v17024_v36  ;;  %v16211_v22 = vld [vmem:[%s20086_s5 + $0x1c0] ss:$8 sm:$0xf0] }
 0x1fe   : > { %16196 = vmatmul.mubr.msk.f32.vlgmr.msra.gmra.mrb[8].mxu0 %vm728_vm1, %v18956_v57  ;;  %16197 = vmatmul.mubr.msk.f32.vlgmr.msra.gmra.mrb[8].mxu1 %vm728_vm1, %v18956_v57  ;;  %v12788_v54 = vmul.f32 %v12670_v31, %v20347_v16  ;;  %v20351_v10 = vld [vmem:[#allocation81_spill] sm:$0xff]  ;;  %v20358_v31 = vld [vmem:[#allocation86_spill] sm:$0xff]  ;;  %v14055_v16 = vld [vmem:[%s20085_s4 + $0x28] sm:$0xff] }
 0x1ff   : > { %12106 = vmatpush1.msra.mxu0 %v11346_v43  ;;  %12177 = vmatpush1.msra.mxu1 %v11348_v18  ;;  %v12658_v43 = vrot.slane %v19098_v17, %v16966_v40  ;;  %v20341_v18 = vld [vmem:[#allocation68_spill] sm:$0xff] }
 0x200   : > { %12247 = vmatprep.subr.mxu0 %v11351_v58  ;;  %12318 = vmatprep.subr.mxu1 %v11353_v6  ;;  %v19147_v58 = vor.u32 %v16209_v26, %v16208_v47  ;;  %v12784_v6 = vmul.f32 %v12654_v50, %v20343_v46 }
 0x201   : > { %12169 = vmatprep.mubr.f32.mxu0 %v20189_v60  ;;  %12240 = vmatprep.mubr.f32.mxu1 %v20189_v60 }
 0x202   : > { %16198 = vmatmul.mubr.msk.f32.vlgmr.msra.gmra.mrb[10].mxu0 %vm728_vm1, %v18956_v57  ;;  %16199 = vmatmul.mubr.msk.f32.vlgmr.msra.gmra.mrb[10].mxu1 %vm728_vm1, %v18956_v57  ;;  %v12686_v1 = vrot.slane %v19147_v58, %v16964_v39  ;;  %v12682_v12 = vrot.slane %v19147_v58, %v16978_v48  ;;  %v12690_v3 = vrot.slane %v19147_v58, %v16966_v40 }
 0x203   : > { %12248 = vmatpush1.msra.mxu0 %v11350_v2  ;;  %12319 = vmatpush1.msra.mxu1 %v11352_v29  ;;  %v20345_v2 = vld [vmem:[#allocation72_spill] sm:$0xff]  ;;  %v20346_v29 = vld [vmem:[#allocation74_spill] sm:$0xff]  ;;  %v12702_v17 = vrot.slane %v19147_v58, %v16997_v55  ;;  %v12698_v14 = vrot.slane %v19147_v58, %v16999_v56  ;;  %v12706_v51 = vrot.slane %v19147_v58, %v17024_v36 }
 0x204   : > { %12389 = vmatprep.subr.mxu0 %v11355_v7  ;;  %12460 = vmatprep.subr.mxu1 %v11357_v27  ;;  %v12783_v34 = vmul.f32 %v12650_v45, %v20345_v2  ;;  %v12785_v33 = vmul.f32 %v12658_v43, %v20346_v29  ;;  %v20348_v7 = vld [vmem:[#allocation79_spill] sm:$0xff]  ;;  %v12694_v27 = vrot.slane %v19147_v58, %v16962_v38  ;;  %v20357_v45 = vld [vmem:[#allocation84_spill] sm:$0xff]  ;;  %v20366_v2 = vld [vmem:[#allocation93_spill] sm:$0xff] }
 0x205   : > { %12311 = vmatprep.mubr.f32.mxu0 %v20189_v60  ;;  %12382 = vmatprep.mubr.f32.mxu1 %v20189_v60  ;;  %v12790_v32 = vmul.f32 %v12678_v25, %v20348_v7  ;;  %v12792_v4 = vmul.f32 %v12686_v1, %v20351_v10  ;;  %v12795_v43 = vmul.f32 %v12698_v14, %v20357_v45  ;;  %v14052_v29 = vld [vmem:[%s20085_s4 + $0x10] sm:$0xff]  ;;  %v14050_v1 = vld [vmem:[%s20085_s4] sm:$0xff] }
 0x206   : > { %16200 = vmatmul.mubr.msk.f32.vlgmr.msra.gmra.mrb[12].mxu0 %vm728_vm1, %v18956_v57  ;;  %16201 = vmatmul.mubr.msk.f32.vlgmr.msra.gmra.mrb[12].mxu1 %vm728_vm1, %v18956_v57 }
 0x207   : > { %12390 = vmatpush1.msra.mxu0 %v11354_v53  ;;  %12461 = vmatpush1.msra.mxu1 %v11356_v0  ;;  %v12787_v0 = vmul.f32 %v12666_v62, %v20349_v59  ;;  %v12789_v53 = vmul.f32 %v12674_v9, %v20350_v52  ;;  %v20364_v62 = vld [vmem:[#allocation94_spill] sm:$0xff] }
 0x208   : > { %12844 = vmatprep.subr.mxu0 %v12776_v28  ;;  %12915 = vmatprep.subr.mxu1 %v12778_v19  ;;  %v20352_v28 = vld [vmem:[#allocation83_spill] sm:$0xff]  ;;  %v12710_v19 = vrot.slane %v19147_v58, %v17022_v35 }
 0x209   : > { %12453 = vmatprep.mubr.f32.mxu0 %v20189_v60  ;;  %12524 = vmatprep.mubr.f32.mxu1 %v20189_v60  ;;  %v12794_v61 = vmul.f32 %v12694_v27, %v20352_v28 }
 0x20a   : > { %16202 = vmatmul.mubr.msk.f32.vlgmr.msra.gmra.mrb[14].mxu0 %vm728_vm1, %v18956_v57  ;;  %16203 = vmatmul.mubr.msk.f32.vlgmr.msra.gmra.mrb[14].mxu1 %vm728_vm1, %v18956_v57  ;;  %v12779_v57 = vmul.f32 %v12634_v24, %v20341_v18  ;;  %v12610_v24 = vor.u32 %v16211_v22, %v16210_v37  ;;  %v12797_v18 = vmul.f32 %v12706_v51, %v20358_v31  ;;  %v19345_v31 = vld [vmem:[%s20084_s3 + $0x20] sm:$0xff] }
 0x20b   : > { %12845 = vmatpush1.msra.mxu0 %v12775_v63  ;;  %12916 = vmatpush1.msra.mxu1 %v12777_v49  ;;  %v20353_v63 = vld [vmem:[#allocation80_spill] sm:$0xff]  ;;  %v20354_v49 = vld [vmem:[#allocation82_spill] sm:$0xff] }
 0x20c   : > { %12986 = vmatprep.subr.mxu0 %v12780_v11  ;;  %13057 = vmatprep.subr.mxu1 %v12782_v8  ;;  %v12791_v41 = vmul.f32 %v12682_v12, %v20353_v63  ;;  %v12793_v50 = vmul.f32 %v12690_v3, %v20354_v49  ;;  %v12718_v13 = vrot.slane %v12610_v24, %v16964_v39  ;;  %v20355_v11 = vld [vmem:[#allocation85_spill] sm:$0xff]  ;;  %v20356_v8 = vld [vmem:[#allocation87_spill] sm:$0xff] }
 0x20d   : > { %12908 = vmatprep.mubr.f32.mxu0 %v20189_v60  ;;  %12979 = vmatprep.mubr.f32.mxu1 %v20189_v60  ;;  %v12796_v20 = vmul.f32 %v12702_v17, %v20355_v11  ;;  %v12798_v30 = vmul.f32 %v12710_v19, %v20356_v8  ;;  %v12726_v47 = vrot.slane %v12610_v24, %v16962_v38 }
 0x20e   : > { %16213 = vmatmul.mubr.msk.f32.vlgmr.msra.gmra.mrb[0].mxu0 %vm728_vm1, %v19137_v23  ;;  %16214 = vmatmul.mubr.msk.f32.vlgmr.msra.gmra.mrb[0].mxu1 %vm728_vm1, %v19137_v23  ;;  %v12742_v39 = vrot.slane %v12610_v24, %v17022_v35  ;;  %v12714_v26 = vrot.slane %v12610_v24, %v16978_v48  ;;  %v12722_v38 = vrot.slane %v12610_v24, %v16966_v40  ;;  %v20361_v48 = vld [vmem:[#allocation88_spill] sm:$0xff] }
 0x20f   : > { %12987 = vmatpush1.msra.mxu0 %v12779_v57  ;;  %13058 = vmatpush1.msra.mxu1 %v12781_v42  ;;  %v20359_v57 = vld [vmem:[#allocation89_spill] sm:$0xff]  ;;  %v20360_v42 = vld [vmem:[#allocation91_spill] sm:$0xff]  ;;  %v12734_v35 = vrot.slane %v12610_v24, %v16997_v55  ;;  %v12738_v40 = vrot.slane %v12610_v24, %v17024_v36  ;;  %v20363_v55 = vld [vmem:[#allocation66_spill] sm:$0xff] }
 0x210   : > { %13128 = vmatprep.subr.mxu0 %v12784_v6  ;;  %13199 = vmatprep.subr.mxu1 %v12786_v21  ;;  %v12800_v15 = vmul.f32 %v12718_v13, %v20359_v57  ;;  %v12802_v58 = vmul.f32 %v12726_v47, %v20360_v42  ;;  %v12799_v46 = vmul.f32 %v12714_v26, %v20361_v48  ;;  %v20362_v6 = vld [vmem:[#allocation90_spill] sm:$0xff]  ;;  %v20365_v36 = vld [vmem:[#allocation92_spill] sm:$0xff]  ;;  %v19315_v13 = vld [vmem:[%s20084_s3 + $0x10] sm:$0xff] }
 0x211   : > { %13050 = vmatprep.mubr.f32.mxu0 %v20189_v60  ;;  %13121 = vmatprep.mubr.f32.mxu1 %v20189_v60  ;;  %v12801_v44 = vmul.f32 %v12722_v38, %v20362_v6  ;;  %v12730_v21 = vrot.slane %v12610_v24, %v16999_v56  ;;  %v12806_v25 = vmul.f32 %v12742_v39, %v20363_v55  ;;  %v19302_v24 = vld [vmem:[%s20084_s3 + $0x8] sm:$0xff]  ;;  %v19330_v47 = vld [vmem:[%s20084_s3 + $0x18] sm:$0xff] }
 0x212   : > { %16215 = vmatmul.mubr.msk.f32.vlgmr.msra.gmra.mrb[2].mxu0 %vm728_vm1, %v19137_v23  ;;  %16216 = vmatmul.mubr.msk.f32.vlgmr.msra.gmra.mrb[2].mxu1 %vm728_vm1, %v19137_v23  ;;  %v12804_v9 = vmul.f32 %v12734_v35, %v20364_v62  ;;  %v12805_v56 = vmul.f32 %v12738_v40, %v20365_v36  ;;  %v19364_v42 = vld [vmem:[%s20084_s3 + $0x28] sm:$0xff] }
 0x213   : > { %13129 = vmatpush1.msra.mxu0 %v12783_v34  ;;  %13200 = vmatpush1.msra.mxu1 %v12785_v33  ;;  %v12803_v34 = vmul.f32 %v12730_v21, %v20366_v2  ;;  %v14054_v33 = vld [vmem:[%s20085_s4 + $0x20] sm:$0xff] }
 0x214   : > { %13270 = vmatprep.subr.mxu0 %v12788_v54  ;;  %13341 = vmatprep.subr.mxu1 %v12790_v32 }
 0x215   : > { %13192 = vmatprep.mubr.f32.mxu0 %v20189_v60  ;;  %13263 = vmatprep.mubr.f32.mxu1 %v20189_v60 }
 0x216   : > { %16217 = vmatmul.mubr.msk.f32.vlgmr.msra.gmra.mrb[4].mxu0 %vm728_vm1, %v19137_v23  ;;  %16218 = vmatmul.mubr.msk.f32.vlgmr.msra.gmra.mrb[4].mxu1 %vm728_vm1, %v19137_v23 }
 0x217   : > { %13271 = vmatpush1.msra.mxu0 %v12787_v0  ;;  %13342 = vmatpush1.msra.mxu1 %v12789_v53  ;;  %v19287_v0 = vld [vmem:[%s20084_s3] sm:$0xff] }
 0x218   : > { %13412 = vmatprep.subr.mxu0 %v12792_v4  ;;  %13483 = vmatprep.subr.mxu1 %v12794_v61 }
 0x219   : > { %13334 = vmatprep.mubr.f32.mxu0 %v20189_v60  ;;  %13405 = vmatprep.mubr.f32.mxu1 %v20189_v60 }
 0x21a   : > { %16219 = vmatmul.mubr.msk.f32.vlgmr.msra.gmra.mrb[6].mxu0 %vm728_vm1, %v19137_v23  ;;  %16220 = vmatmul.mubr.msk.f32.vlgmr.msra.gmra.mrb[6].mxu1 %vm728_vm1, %v19137_v23 }
 0x21b   : > { %13413 = vmatpush1.msra.mxu0 %v12791_v41  ;;  %13484 = vmatpush1.msra.mxu1 %v12793_v50 }
 0x21c   : > { %13554 = vmatprep.subr.mxu0 %v12796_v20  ;;  %13625 = vmatprep.subr.mxu1 %v12798_v30 }
 0x21d   : > { %13476 = vmatprep.mubr.f32.mxu0 %v20189_v60  ;;  %13547 = vmatprep.mubr.f32.mxu1 %v20189_v60 }
 0x21e   : > { %16221 = vmatmul.mubr.msk.f32.vlgmr.msra.gmra.mrb[8].mxu0 %vm728_vm1, %v19137_v23  ;;  %16222 = vmatmul.mubr.msk.f32.vlgmr.msra.gmra.mrb[8].mxu1 %vm728_vm1, %v19137_v23 }
 0x21f   : > { %13555 = vmatpush1.msra.mxu0 %v12795_v43  ;;  %13626 = vmatpush1.msra.mxu1 %v12797_v18 }
 0x220   : > { %13696 = vmatprep.subr.mxu0 %v12800_v15  ;;  %13767 = vmatprep.subr.mxu1 %v12802_v58 }
 0x221   : > { %13618 = vmatprep.mubr.f32.mxu0 %v20189_v60  ;;  %13689 = vmatprep.mubr.f32.mxu1 %v20189_v60 }
 0x222   : > { %16223 = vmatmul.mubr.msk.f32.vlgmr.msra.gmra.mrb[10].mxu0 %vm728_vm1, %v19137_v23  ;;  %16224 = vmatmul.mubr.msk.f32.vlgmr.msra.gmra.mrb[10].mxu1 %vm728_vm1, %v19137_v23 }
 0x223   : > { %13697 = vmatpush1.msra.mxu0 %v12799_v46  ;;  %13768 = vmatpush1.msra.mxu1 %v12801_v44 }
 0x224   : > { %13838 = vmatprep.subr.mxu0 %v12804_v9  ;;  %13909 = vmatprep.subr.mxu1 %v12806_v25 }
 0x225   : > { %13760 = vmatprep.mubr.f32.mxu0 %v20189_v60  ;;  %13831 = vmatprep.mubr.f32.mxu1 %v20189_v60 }
 0x226   : > { %16225 = vmatmul.mubr.msk.f32.vlgmr.msra.gmra.mrb[12].mxu0 %vm728_vm1, %v19137_v23  ;;  %16226 = vmatmul.mubr.msk.f32.vlgmr.msra.gmra.mrb[12].mxu1 %vm728_vm1, %v19137_v23 }
 0x227   : > { %13839 = vmatpush1.msra.mxu0 %v12803_v34  ;;  %13910 = vmatpush1.msra.mxu1 %v12805_v56 }
 0x228   : > { %13902 = vmatprep.mubr.f32.mxu0 %v20189_v60  ;;  %13973 = vmatprep.mubr.f32.mxu1 %v20189_v60 }
 0x229   : > { %14072 = vperm.xlu0 %16632, %v14052_v29   ;;  %16633 = vset.pattern.permute.xlu1 %v16688_v5  ;;  %v14051_v5 = vld [vmem:[%s20085_s4 + $0x8] sm:$0xff] }
 0x22a   : > { %16227 = vmatmul.mubr.msk.f32.vlgmr.msra.gmra.mrb[14].mxu0 %vm728_vm1, %v19137_v23  ;;  %16228 = vmatmul.mubr.msk.f32.vlgmr.msra.gmra.mrb[14].mxu1 %vm728_vm1, %v19137_v23  ;;  %v14053_v23 = vld [vmem:[%s20085_s4 + $0x18] sm:$0xff] }
 0x22b   : > { %14172 = vmatprep.mubr.f32.mxu0 %v20189_v60  ;;  %14273 = vmatprep.mubr.f32.mxu1 %v20189_v60 }
 0x22c   : > { %14062 = vperm.xlu1 %16633, %v14050_v1  }
 0x22d   : > { %14082 = vperm.xlu0 %16632, %v14054_v33  }
 0x230   : > { %14067 = vperm.xlu1 %16633, %v14051_v5  }
 0x234   : > { %14077 = vperm.xlu1 %16633, %v14053_v23  }
 0x238   : > { %14087 = vperm.xlu1 %16633, %v14055_v16  }
 0x243   : > { %v19278_v54 = vpop.permute.xlu0 %287 }
 0x2e1   : > { %v12910_v7 = vpop.f32.mrb[0].mxu0  ;;  %v12981_v32 = vpop.f32.mrb[0].mxu1 }
 0x2e2   : > { %v12983_v27 = vpop.f32.mrb[1].mxu1  ;;  %v12912_v37 = vpop.f32.mrb[1].mxu0  ;;  %v16328_v3 = vadd.f32 %v12910_v7, %v19278_v54  ;;  %v16330_v59 = vadd.f32 %v12981_v32, %v19278_v54 }
 0x2e3   : > { %v16331_v22 = vadd.f32 %v12983_v27, %v19278_v54  ;;  %v16329_v12 = vadd.f32 %v12912_v37, %v19278_v54 }
 0x2e5   : > { %v13052_v52 = vpop.f32.mrb[2].mxu0  ;;  %v13123_v53 = vpop.f32.mrb[2].mxu1  ;;  %14108 = vmatprep.subr.mxu0 %v16329_v12  ;;  %14209 = vmatprep.subr.mxu1 %v16331_v22 }
 0x2e6   : > { %v13054_v17 = vpop.f32.mrb[3].mxu0  ;;  %v13125_v10 = vpop.f32.mrb[3].mxu1  ;;  %14109 = vmatpush1.msra.mxu0 %v16328_v3  ;;  %14210 = vmatpush1.msra.mxu1 %v16330_v59  ;;  %v16332_v61 = vadd.f32 %v13052_v52, %v19278_v54  ;;  %v16334_v19 = vadd.f32 %v13123_v53, %v19278_v54 }
 0x2e7   : > { %v16333_v4 = vadd.f32 %v13054_v17, %v19278_v54  ;;  %v16335_v28 = vadd.f32 %v13125_v10, %v19278_v54  ;;  %16229 = vmatmul.mubr.msk.f32.vlgmr.msra.gmra.mrb[16].mxu0 %vm728_vm1, %v19287_v0  ;;  %16235 = vmatmul.mubr.msk.f32.vlgmr.msra.gmra.mrb[16].mxu1 %vm728_vm1, %v19287_v0 }
 0x2e8   : > { %14178 = vmatprep.mubr.f32.mxu0 %v20189_v60  ;;  %14279 = vmatprep.mubr.f32.mxu1 %v20189_v60 }
 0x2e9   : > { %v13194_v14 = vpop.f32.mrb[4].mxu0  ;;  %v13265_v51 = vpop.f32.mrb[4].mxu1  ;;  %14338 = vmatprep.subr.mxu0 %v16333_v4  ;;  %14439 = vmatprep.subr.mxu1 %v16335_v28 }
 0x2ea   : > { %v13196_v63 = vpop.f32.mrb[5].mxu0  ;;  %v13267_v41 = vpop.f32.mrb[5].mxu1  ;;  %14339 = vmatpush1.msra.mxu0 %v16332_v61  ;;  %14440 = vmatpush1.msra.mxu1 %v16334_v19  ;;  %v16336_v44 = vadd.f32 %v13194_v14, %v19278_v54  ;;  %v16338_v21 = vadd.f32 %v13265_v51, %v19278_v54 }
 0x2eb   : > { %v16337_v49 = vadd.f32 %v13196_v63, %v19278_v54  ;;  %v16339_v50 = vadd.f32 %v13267_v41, %v19278_v54  ;;  %16230 = vmatmul.mubr.msk.f32.gmra.mrb[18].mxu0 %vm728_vm1, %v19302_v24  ;;  %16236 = vmatmul.mubr.msk.f32.gmra.mrb[18].mxu1 %vm728_vm1, %v19302_v24 }
 0x2ec   : > { %14184 = vmatprep.mubr.f32.mxu0 %v20189_v60  ;;  %14285 = vmatprep.mubr.f32.mxu1 %v20189_v60 }
 0x2ed   : > { %v19317_v11 = vpop.f32.mrb[6].mxu0  ;;  %v19319_v20 = vpop.f32.mrb[6].mxu1  ;;  %14568 = vmatprep.subr.mxu0 %v16337_v49  ;;  %14669 = vmatprep.subr.mxu1 %v16339_v50 }
 0x2ee   : > { %v13338_v8 = vpop.f32.mrb[7].mxu0  ;;  %v13409_v30 = vpop.f32.mrb[7].mxu1  ;;  %v16340_v36 = vadd.f32 %v19317_v11, %v19278_v54  ;;  %v16342_v56 = vadd.f32 %v19319_v20, %v19278_v54 }
 0x2ef   : > { %16231 = vmatmul.mubr.msk.f32.gmra.mrb[20].mxu0 %vm728_vm1, %v19315_v13  ;;  %16237 = vmatmul.mubr.msk.f32.gmra.mrb[20].mxu1 %vm728_vm1, %v19315_v13  ;;  %v16341_v62 = vadd.f32 %v13338_v8, %v19278_v54  ;;  %v16343_v9 = vadd.f32 %v13409_v30, %v19278_v54 }
 0x2f0   : > { %14190 = vmatprep.mubr.f32.mxu0 %v20189_v60  ;;  %14291 = vmatprep.mubr.f32.mxu1 %v20189_v60 }
 0x2f1   : > { %v19332_v39 = vpop.f32.mrb[8].mxu0  ;;  %v19334_v26 = vpop.f32.mrb[8].mxu1 }
 0x2f2   : > { %v13480_v45 = vpop.f32.mrb[9].mxu0  ;;  %v13551_v43 = vpop.f32.mrb[9].mxu1  ;;  %v16344_v29 = vadd.f32 %v19332_v39, %v19278_v54  ;;  %v16346_v33 = vadd.f32 %v19334_v26, %v19278_v54 }
 0x2f3   : > { %16232 = vmatmul.mubr.msk.f32.gmra.mrb[22].mxu0 %vm728_vm1, %v19330_v47  ;;  %16238 = vmatmul.mubr.msk.f32.gmra.mrb[22].mxu1 %vm728_vm1, %v19330_v47  ;;  %v16345_v2 = vadd.f32 %v13480_v45, %v19278_v54  ;;  %v16347_v34 = vadd.f32 %v13551_v43, %v19278_v54 }
 0x2f4   : > { %14196 = vmatprep.mubr.f32.mxu0 %v20189_v60  ;;  %14297 = vmatprep.mubr.f32.mxu1 %v20189_v60 }
 0x2f5   : > { %v19347_v18 = vpop.f32.mrb[10].mxu0  ;;  %v19349_v38 = vpop.f32.mrb[10].mxu1 }
 0x2f6   : > { %v19351_v57 = vpop.f32.mrb[11].mxu0  ;;  %v19353_v15 = vpop.f32.mrb[11].mxu1  ;;  %v16348_v23 = vadd.f32 %v19347_v18, %v19278_v54  ;;  %v16350_v16 = vadd.f32 %v19349_v38, %v19278_v54 }
 0x2f7   : > { %16233 = vmatmul.mubr.msk.f32.gmra.mrb[24].mxu0 %vm728_vm1, %v19345_v31  ;;  %16239 = vmatmul.mubr.msk.f32.gmra.mrb[24].mxu1 %vm728_vm1, %v19345_v31  ;;  %v16349_v1 = vadd.f32 %v19351_v57, %v19278_v54  ;;  %v16351_v5 = vadd.f32 %v19353_v15, %v19278_v54 }
 0x2f8   : > { %14202 = vmatprep.mubr.f32.mxu0 %v20189_v60  ;;  %14303 = vmatprep.mubr.f32.mxu1 %v20189_v60 }
 0x2f9   : > { %v19366_v58 = vpop.f32.mrb[12].mxu0  ;;  %v19368_v35 = vpop.f32.mrb[12].mxu1 }
 0x2fa   : > { %v19370_v40 = vpop.f32.mrb[13].mxu0  ;;  %v19372_v48 = vpop.f32.mrb[13].mxu1  ;;  %v16352_v27 = vadd.f32 %v19366_v58, %v19278_v54  ;;  %v16354_v37 = vadd.f32 %v19368_v35, %v19278_v54 }
 0x2fb   : > { %16234 = vmatmul.mubr.msk.f32.gmra.mrb[26].mxu0 %vm728_vm1, %v19364_v42  ;;  %16240 = vmatmul.mubr.msk.f32.gmra.mrb[26].mxu1 %vm728_vm1, %v19364_v42  ;;  %v16353_v7 = vadd.f32 %v19370_v40, %v19278_v54  ;;  %v16355_v32 = vadd.f32 %v19372_v48, %v19278_v54 }
 0x2fc   : > { %14402 = vmatprep.mubr.f32.mxu0 %v20189_v60  ;;  %14503 = vmatprep.mubr.f32.mxu1 %v20189_v60 }
 0x2fd   : > { %v19380_v46 = vpop.f32.mrb[14].mxu0  ;;  %v19382_v6 = vpop.f32.mrb[14].mxu1 }
 0x2fe   : > { %v19386_v55 = vpop.f32.mrb[15].mxu0  ;;  %v19388_v25 = vpop.f32.mrb[15].mxu1  ;;  %v16356_v3 = vadd.f32 %v19380_v46, %v19278_v54  ;;  %v16358_v59 = vadd.f32 %v19382_v6, %v19278_v54 }
 0x2ff   : > { %16241 = vmatmul.mubr.msk.f32.vlgmr.msra.gmra.mrb[28].mxu0 %vm728_vm1, %v19287_v0  ;;  %16247 = vmatmul.mubr.msk.f32.vlgmr.msra.gmra.mrb[28].mxu1 %vm728_vm1, %v19287_v0  ;;  %v16357_v22 = vadd.f32 %v19386_v55, %v19278_v54  ;;  %v16359_v12 = vadd.f32 %v19388_v25, %v19278_v54  ;;  %v19677_v54 = vpop.permute.xlu1 %14062 }
 0x300   : > { %14569 = vmatpush1.msra.mxu0 %v16336_v44  ;;  %14670 = vmatpush1.msra.mxu1 %v16338_v21 }
 0x301   : > { %14798 = vmatprep.subr.mxu0 %v16341_v62  ;;  %14899 = vmatprep.subr.mxu1 %v16343_v9 }
 0x302   : > { %14408 = vmatprep.mubr.f32.mxu0 %v20189_v60  ;;  %14509 = vmatprep.mubr.f32.mxu1 %v20189_v60 }
 0x303   : > { %16242 = vmatmul.mubr.msk.f32.gmra.mrb[30].mxu0 %vm728_vm1, %v19302_v24  ;;  %16248 = vmatmul.mubr.msk.f32.gmra.mrb[30].mxu1 %vm728_vm1, %v19302_v24  ;;  %v19688_v61 = vpop.permute.xlu1 %14067 }
 0x304   : > { %14414 = vmatprep.mubr.f32.mxu0 %v20189_v60  ;;  %14515 = vmatprep.mubr.f32.mxu1 %v20189_v60 }
 0x307   : > { %16243 = vmatmul.mubr.msk.f32.gmra.mrb[32].mxu0 %vm728_vm1, %v19315_v13  ;;  %16249 = vmatmul.mubr.msk.f32.gmra.mrb[32].mxu1 %vm728_vm1, %v19315_v13  ;;  %v19708_v43 = vpop.permute.xlu1 %14077 }
 0x308   : > { %14420 = vmatprep.mubr.f32.mxu0 %v20189_v60  ;;  %14521 = vmatprep.mubr.f32.mxu1 %v20189_v60 }
 0x30b   : > { %16244 = vmatmul.mubr.msk.f32.gmra.mrb[34].mxu0 %vm728_vm1, %v19330_v47  ;;  %16250 = vmatmul.mubr.msk.f32.gmra.mrb[34].mxu1 %vm728_vm1, %v19330_v47  ;;  %v19728_v9 = vpop.permute.xlu1 %14087 }
 0x30c   : > { %14426 = vmatprep.mubr.f32.mxu0 %v20189_v60  ;;  %14527 = vmatprep.mubr.f32.mxu1 %v20189_v60 }
 0x30f   : > { %16245 = vmatmul.mubr.msk.f32.gmra.mrb[36].mxu0 %vm728_vm1, %v19345_v31  ;;  %16251 = vmatmul.mubr.msk.f32.gmra.mrb[36].mxu1 %vm728_vm1, %v19345_v31 }
 0x310   : > { %14432 = vmatprep.mubr.f32.mxu0 %v20189_v60  ;;  %14533 = vmatprep.mubr.f32.mxu1 %v20189_v60 }
 0x313   : > { %16246 = vmatmul.mubr.msk.f32.gmra.mrb[38].mxu0 %vm728_vm1, %v19364_v42  ;;  %16252 = vmatmul.mubr.msk.f32.gmra.mrb[38].mxu1 %vm728_vm1, %v19364_v42 }
 0x314   : > { %14632 = vmatprep.mubr.f32.mxu0 %v20189_v60  ;;  %14733 = vmatprep.mubr.f32.mxu1 %v20189_v60 }
 0x317   : > { %16253 = vmatmul.mubr.msk.f32.vlgmr.msra.gmra.mrb[40].mxu0 %vm728_vm1, %v19287_v0  ;;  %16259 = vmatmul.mubr.msk.f32.vlgmr.msra.gmra.mrb[40].mxu1 %vm728_vm1, %v19287_v0 }
 0x318   : > { %14799 = vmatpush1.msra.mxu0 %v16340_v36  ;;  %14900 = vmatpush1.msra.mxu1 %v16342_v56 }
 0x319   : > { %15028 = vmatprep.subr.mxu0 %v16345_v2  ;;  %15129 = vmatprep.subr.mxu1 %v16347_v34 }
 0x31a   : > { %14638 = vmatprep.mubr.f32.mxu0 %v20189_v60  ;;  %14739 = vmatprep.mubr.f32.mxu1 %v20189_v60 }
 0x31b   : > { %16254 = vmatmul.mubr.msk.f32.gmra.mrb[42].mxu0 %vm728_vm1, %v19302_v24  ;;  %16260 = vmatmul.mubr.msk.f32.gmra.mrb[42].mxu1 %vm728_vm1, %v19302_v24 }
 0x31c   : > { %14644 = vmatprep.mubr.f32.mxu0 %v20189_v60  ;;  %14745 = vmatprep.mubr.f32.mxu1 %v20189_v60 }
 0x31f   : > { %16255 = vmatmul.mubr.msk.f32.gmra.mrb[44].mxu0 %vm728_vm1, %v19315_v13  ;;  %16261 = vmatmul.mubr.msk.f32.gmra.mrb[44].mxu1 %vm728_vm1, %v19315_v13 }
 0x320   : > { %14650 = vmatprep.mubr.f32.mxu0 %v20189_v60  ;;  %14751 = vmatprep.mubr.f32.mxu1 %v20189_v60 }
 0x323   : > { %16256 = vmatmul.mubr.msk.f32.gmra.mrb[46].mxu0 %vm728_vm1, %v19330_v47  ;;  %16262 = vmatmul.mubr.msk.f32.gmra.mrb[46].mxu1 %vm728_vm1, %v19330_v47 }
 0x324   : > { %14656 = vmatprep.mubr.f32.mxu0 %v20189_v60  ;;  %14757 = vmatprep.mubr.f32.mxu1 %v20189_v60 }
 0x327   : > { %16257 = vmatmul.mubr.msk.f32.gmra.mrb[48].mxu0 %vm728_vm1, %v19345_v31  ;;  %16263 = vmatmul.mubr.msk.f32.gmra.mrb[48].mxu1 %vm728_vm1, %v19345_v31 }
 0x328   : > { %14662 = vmatprep.mubr.f32.mxu0 %v20189_v60  ;;  %14763 = vmatprep.mubr.f32.mxu1 %v20189_v60 }
 0x32b   : > { %16258 = vmatmul.mubr.msk.f32.gmra.mrb[50].mxu0 %vm728_vm1, %v19364_v42  ;;  %16264 = vmatmul.mubr.msk.f32.gmra.mrb[50].mxu1 %vm728_vm1, %v19364_v42 }
 0x32c   : > { %14862 = vmatprep.mubr.f32.mxu0 %v20189_v60  ;;  %14963 = vmatprep.mubr.f32.mxu1 %v20189_v60 }
 0x32f   : > { %16265 = vmatmul.mubr.msk.f32.vlgmr.msra.gmra.mrb[52].mxu0 %vm728_vm1, %v19287_v0  ;;  %16271 = vmatmul.mubr.msk.f32.vlgmr.msra.gmra.mrb[52].mxu1 %vm728_vm1, %v19287_v0 }
 0x330   : > { %15029 = vmatpush1.msra.mxu0 %v16344_v29  ;;  %15130 = vmatpush1.msra.mxu1 %v16346_v33 }
 0x331   : > { %15258 = vmatprep.subr.mxu0 %v16349_v1  ;;  %15359 = vmatprep.subr.mxu1 %v16351_v5 }
 0x332   : > { %14868 = vmatprep.mubr.f32.mxu0 %v20189_v60  ;;  %14969 = vmatprep.mubr.f32.mxu1 %v20189_v60 }
 0x333   : > { %16266 = vmatmul.mubr.msk.f32.gmra.mrb[54].mxu0 %vm728_vm1, %v19302_v24  ;;  %16272 = vmatmul.mubr.msk.f32.gmra.mrb[54].mxu1 %vm728_vm1, %v19302_v24 }
 0x334   : > { %14874 = vmatprep.mubr.f32.mxu0 %v20189_v60  ;;  %14975 = vmatprep.mubr.f32.mxu1 %v20189_v60 }
 0x337   : > { %16267 = vmatmul.mubr.msk.f32.gmra.mrb[56].mxu0 %vm728_vm1, %v19315_v13  ;;  %16273 = vmatmul.mubr.msk.f32.gmra.mrb[56].mxu1 %vm728_vm1, %v19315_v13 }
 0x338   : > { %14880 = vmatprep.mubr.f32.mxu0 %v20189_v60  ;;  %14981 = vmatprep.mubr.f32.mxu1 %v20189_v60 }
 0x33b   : > { %16268 = vmatmul.mubr.msk.f32.gmra.mrb[58].mxu0 %vm728_vm1, %v19330_v47  ;;  %16274 = vmatmul.mubr.msk.f32.gmra.mrb[58].mxu1 %vm728_vm1, %v19330_v47 }
 0x33c   : > { %14886 = vmatprep.mubr.f32.mxu0 %v20189_v60  ;;  %14987 = vmatprep.mubr.f32.mxu1 %v20189_v60 }
 0x33f   : > { %16269 = vmatmul.mubr.msk.f32.gmra.mrb[60].mxu0 %vm728_vm1, %v19345_v31  ;;  %16275 = vmatmul.mubr.msk.f32.gmra.mrb[60].mxu1 %vm728_vm1, %v19345_v31 }
 0x340   : > { %14892 = vmatprep.mubr.f32.mxu0 %v20189_v60  ;;  %14993 = vmatprep.mubr.f32.mxu1 %v20189_v60 }
 0x343   : > { %16270 = vmatmul.mubr.msk.f32.gmra.mrb[62].mxu0 %vm728_vm1, %v19364_v42  ;;  %16276 = vmatmul.mubr.msk.f32.gmra.mrb[62].mxu1 %vm728_vm1, %v19364_v42 }
 0x344   : > { %15092 = vmatprep.mubr.f32.mxu0 %v20189_v60  ;;  %15193 = vmatprep.mubr.f32.mxu1 %v20189_v60 }
 0x347   : > { %16277 = vmatmul.mubr.msk.f32.vlgmr.msra.gmra.mrb[64].mxu0 %vm728_vm1, %v19287_v0  ;;  %16283 = vmatmul.mubr.msk.f32.vlgmr.msra.gmra.mrb[64].mxu1 %vm728_vm1, %v19287_v0 }
 0x348   : > { %15259 = vmatpush1.msra.mxu0 %v16348_v23  ;;  %15360 = vmatpush1.msra.mxu1 %v16350_v16 }
 0x349   : > { %15488 = vmatprep.subr.mxu0 %v16353_v7  ;;  %15589 = vmatprep.subr.mxu1 %v16355_v32 }
 0x34a   : > { %15098 = vmatprep.mubr.f32.mxu0 %v20189_v60  ;;  %15199 = vmatprep.mubr.f32.mxu1 %v20189_v60 }
 0x34b   : > { %16278 = vmatmul.mubr.msk.f32.gmra.mrb[66].mxu0 %vm728_vm1, %v19302_v24  ;;  %16284 = vmatmul.mubr.msk.f32.gmra.mrb[66].mxu1 %vm728_vm1, %v19302_v24 }
 0x34c   : > { %15104 = vmatprep.mubr.f32.mxu0 %v20189_v60  ;;  %15205 = vmatprep.mubr.f32.mxu1 %v20189_v60 }
 0x34f   : > { %16279 = vmatmul.mubr.msk.f32.gmra.mrb[68].mxu0 %vm728_vm1, %v19315_v13  ;;  %16285 = vmatmul.mubr.msk.f32.gmra.mrb[68].mxu1 %vm728_vm1, %v19315_v13 }
 0x350   : > { %15110 = vmatprep.mubr.f32.mxu0 %v20189_v60  ;;  %15211 = vmatprep.mubr.f32.mxu1 %v20189_v60 }
 0x353   : > { %16280 = vmatmul.mubr.msk.f32.gmra.mrb[70].mxu0 %vm728_vm1, %v19330_v47  ;;  %16286 = vmatmul.mubr.msk.f32.gmra.mrb[70].mxu1 %vm728_vm1, %v19330_v47 }
 0x354   : > { %15116 = vmatprep.mubr.f32.mxu0 %v20189_v60  ;;  %15217 = vmatprep.mubr.f32.mxu1 %v20189_v60 }
 0x357   : > { %16281 = vmatmul.mubr.msk.f32.gmra.mrb[72].mxu0 %vm728_vm1, %v19345_v31  ;;  %16287 = vmatmul.mubr.msk.f32.gmra.mrb[72].mxu1 %vm728_vm1, %v19345_v31 }
 0x358   : > { %15122 = vmatprep.mubr.f32.mxu0 %v20189_v60  ;;  %15223 = vmatprep.mubr.f32.mxu1 %v20189_v60 }
 0x35b   : > { %16282 = vmatmul.mubr.msk.f32.gmra.mrb[74].mxu0 %vm728_vm1, %v19364_v42  ;;  %16288 = vmatmul.mubr.msk.f32.gmra.mrb[74].mxu1 %vm728_vm1, %v19364_v42 }
 0x35c   : > { %15322 = vmatprep.mubr.f32.mxu0 %v20189_v60  ;;  %15423 = vmatprep.mubr.f32.mxu1 %v20189_v60 }
 0x35f   : > { %16289 = vmatmul.mubr.msk.f32.vlgmr.msra.gmra.mrb[76].mxu0 %vm728_vm1, %v19287_v0  ;;  %16295 = vmatmul.mubr.msk.f32.vlgmr.msra.gmra.mrb[76].mxu1 %vm728_vm1, %v19287_v0 }
 0x360   : > { %15489 = vmatpush1.msra.mxu0 %v16352_v27  ;;  %15590 = vmatpush1.msra.mxu1 %v16354_v37 }
 0x361   : > { %15718 = vmatprep.subr.mxu0 %v16357_v22  ;;  %15819 = vmatprep.subr.mxu1 %v16359_v12 }
 0x362   : > { %15328 = vmatprep.mubr.f32.mxu0 %v20189_v60  ;;  %15429 = vmatprep.mubr.f32.mxu1 %v20189_v60 }
 0x363   : > { %16290 = vmatmul.mubr.msk.f32.gmra.mrb[78].mxu0 %vm728_vm1, %v19302_v24  ;;  %16296 = vmatmul.mubr.msk.f32.gmra.mrb[78].mxu1 %vm728_vm1, %v19302_v24 }
 0x364   : > { %15334 = vmatprep.mubr.f32.mxu0 %v20189_v60  ;;  %15435 = vmatprep.mubr.f32.mxu1 %v20189_v60 }
 0x367   : > { %16291 = vmatmul.mubr.msk.f32.gmra.mrb[80].mxu0 %vm728_vm1, %v19315_v13  ;;  %16297 = vmatmul.mubr.msk.f32.gmra.mrb[80].mxu1 %vm728_vm1, %v19315_v13 }
 0x368   : > { %15340 = vmatprep.mubr.f32.mxu0 %v20189_v60  ;;  %15441 = vmatprep.mubr.f32.mxu1 %v20189_v60 }
 0x36b   : > { %16292 = vmatmul.mubr.msk.f32.gmra.mrb[82].mxu0 %vm728_vm1, %v19330_v47  ;;  %16298 = vmatmul.mubr.msk.f32.gmra.mrb[82].mxu1 %vm728_vm1, %v19330_v47 }
 0x36c   : > { %15346 = vmatprep.mubr.f32.mxu0 %v20189_v60  ;;  %15447 = vmatprep.mubr.f32.mxu1 %v20189_v60 }
 0x36f   : > { %16293 = vmatmul.mubr.msk.f32.gmra.mrb[84].mxu0 %vm728_vm1, %v19345_v31  ;;  %16299 = vmatmul.mubr.msk.f32.gmra.mrb[84].mxu1 %vm728_vm1, %v19345_v31 }
 0x370   : > { %15352 = vmatprep.mubr.f32.mxu0 %v20189_v60  ;;  %15453 = vmatprep.mubr.f32.mxu1 %v20189_v60 }
 0x373   : > { %16294 = vmatmul.mubr.msk.f32.gmra.mrb[86].mxu0 %vm728_vm1, %v19364_v42  ;;  %16300 = vmatmul.mubr.msk.f32.gmra.mrb[86].mxu1 %vm728_vm1, %v19364_v42 }
 0x374   : > { %15552 = vmatprep.mubr.f32.mxu0 %v20189_v60  ;;  %15653 = vmatprep.mubr.f32.mxu1 %v20189_v60 }
 0x377   : > { %16301 = vmatmul.mubr.msk.f32.vlgmr.msra.gmra.mrb[88].mxu0 %vm728_vm1, %v19287_v0  ;;  %16307 = vmatmul.mubr.msk.f32.vlgmr.msra.gmra.mrb[88].mxu1 %vm728_vm1, %v19287_v0 }
 0x378   : > { %15719 = vmatpush1.msra.mxu0 %v16356_v3  ;;  %15820 = vmatpush1.msra.mxu1 %v16358_v59 }
 0x379   : > { %15558 = vmatprep.mubr.f32.mxu0 %v20189_v60  ;;  %15659 = vmatprep.mubr.f32.mxu1 %v20189_v60 }
 0x37b   : > { %16302 = vmatmul.mubr.msk.f32.gmra.mrb[90].mxu0 %vm728_vm1, %v19302_v24  ;;  %16308 = vmatmul.mubr.msk.f32.gmra.mrb[90].mxu1 %vm728_vm1, %v19302_v24 }
 0x37c   : > { %15564 = vmatprep.mubr.f32.mxu0 %v20189_v60  ;;  %15665 = vmatprep.mubr.f32.mxu1 %v20189_v60 }
 0x37f   : > { %16303 = vmatmul.mubr.msk.f32.gmra.mrb[92].mxu0 %vm728_vm1, %v19315_v13  ;;  %16309 = vmatmul.mubr.msk.f32.gmra.mrb[92].mxu1 %vm728_vm1, %v19315_v13 }
 0x380   : > { %15570 = vmatprep.mubr.f32.mxu0 %v20189_v60  ;;  %15671 = vmatprep.mubr.f32.mxu1 %v20189_v60 }
 0x383   : > { %16304 = vmatmul.mubr.msk.f32.gmra.mrb[94].mxu0 %vm728_vm1, %v19330_v47  ;;  %16310 = vmatmul.mubr.msk.f32.gmra.mrb[94].mxu1 %vm728_vm1, %v19330_v47 }
 0x384   : > { %15576 = vmatprep.mubr.f32.mxu0 %v20189_v60  ;;  %15677 = vmatprep.mubr.f32.mxu1 %v20189_v60 }
 0x387   : > { %16305 = vmatmul.mubr.msk.f32.gmra.mrb[96].mxu0 %vm728_vm1, %v19345_v31  ;;  %16311 = vmatmul.mubr.msk.f32.gmra.mrb[96].mxu1 %vm728_vm1, %v19345_v31 }
 0x388   : > { %15582 = vmatprep.mubr.f32.mxu0 %v20189_v60  ;;  %15683 = vmatprep.mubr.f32.mxu1 %v20189_v60 }
 0x38b   : > { %16306 = vmatmul.mubr.msk.f32.gmra.mrb[98].mxu0 %vm728_vm1, %v19364_v42  ;;  %16312 = vmatmul.mubr.msk.f32.gmra.mrb[98].mxu1 %vm728_vm1, %v19364_v42 }
 0x38c   : > { %15782 = vmatprep.mubr.f32.mxu0 %v20189_v60  ;;  %15883 = vmatprep.mubr.f32.mxu1 %v20189_v60 }
 0x38f   : > { %16313 = vmatmul.mubr.msk.f32.vlgmr.msra.gmra.mrb[100].mxu0 %vm728_vm1, %v19287_v0  ;;  %16319 = vmatmul.mubr.msk.f32.vlgmr.msra.gmra.mrb[100].mxu1 %vm728_vm1, %v19287_v0 }
 0x390   : > { %15788 = vmatprep.mubr.f32.mxu0 %v20189_v60  ;;  %15889 = vmatprep.mubr.f32.mxu1 %v20189_v60 }
 0x393   : > { %16314 = vmatmul.mubr.msk.f32.gmra.mrb[102].mxu0 %vm728_vm1, %v19302_v24  ;;  %16320 = vmatmul.mubr.msk.f32.gmra.mrb[102].mxu1 %vm728_vm1, %v19302_v24 }
 0x394   : > { %15794 = vmatprep.mubr.f32.mxu0 %v20189_v60  ;;  %15895 = vmatprep.mubr.f32.mxu1 %v20189_v60 }
 0x397   : > { %16315 = vmatmul.mubr.msk.f32.gmra.mrb[104].mxu0 %vm728_vm1, %v19315_v13  ;;  %16321 = vmatmul.mubr.msk.f32.gmra.mrb[104].mxu1 %vm728_vm1, %v19315_v13  ;;  %v19698_v13 = vpop.permute.xlu0 %14072 }
 0x398   : > { %15800 = vmatprep.mubr.f32.mxu0 %v20189_v60  ;;  %15901 = vmatprep.mubr.f32.mxu1 %v20189_v60 }
 0x39b   : > { %16316 = vmatmul.mubr.msk.f32.gmra.mrb[106].mxu0 %vm728_vm1, %v19330_v47  ;;  %16322 = vmatmul.mubr.msk.f32.gmra.mrb[106].mxu1 %vm728_vm1, %v19330_v47  ;;  %v19718_v40 = vpop.permute.xlu0 %14082 }
 0x39c   : > { %15806 = vmatprep.mubr.f32.mxu0 %v20189_v60  ;;  %15907 = vmatprep.mubr.f32.mxu1 %v20189_v60 }
 0x39f   : > { %16317 = vmatmul.mubr.msk.f32.gmra.mrb[108].mxu0 %vm728_vm1, %v19345_v31  ;;  %16323 = vmatmul.mubr.msk.f32.gmra.mrb[108].mxu1 %vm728_vm1, %v19345_v31 }
 0x3a0   : > { %15812 = vmatprep.mubr.f32.mxu0 %v20189_v60  ;;  %15913 = vmatprep.mubr.f32.mxu1 %v20189_v60 }
 0x3a3   : > { %16318 = vmatmul.mubr.msk.f32.gmra.mrb[110].mxu0 %vm728_vm1, %v19364_v42  ;;  %16324 = vmatmul.mubr.msk.f32.gmra.mrb[110].mxu1 %vm728_vm1, %v19364_v42 }
 0x3ba   : > { %v14174_v0 = vpop.f32.mrb[16].mxu0  ;;  %v14275_v60 = vpop.f32.mrb[16].mxu1 }
 0x3bb   : > { %v14175_v52 = vadd.f32 %v14174_v0, %v19677_v54  ;;  %v14276_v53 = vadd.f32 %v14275_v60, %v19677_v54  ;;  %v14176_v17 = vpop.f32.mrb[17].mxu0  ;;  %v14277_v10 = vpop.f32.mrb[17].mxu1 }
 0x3bc   : > { %v14177_v4 = vadd.f32 %v14176_v17, %v19677_v54  ;;  %v14278_v28 = vadd.f32 %v14277_v10, %v19677_v54 }
 0x3bd   : > { %14310 = vst [vmem:[%s19682_s29] sm:$0xff] %v14175_v52  ;;  %14312 = vst [vmem:[%s19682_s29 + $0x10] sm:$0xff] %v14276_v53 }
 0x3be   : > { %14311 = vst [vmem:[%s19682_s29 + $0x8] sm:$0xff] %v14177_v4  ;;  %14313 = vst [vmem:[%s19682_s29 + $0x18] sm:$0xff] %v14278_v28  ;;  %v14180_v19 = vpop.f32.mrb[18].mxu0  ;;  %v14281_v24 = vpop.f32.mrb[18].mxu1 }
 0x3bf   : > { %v14181_v14 = vadd.f32 %v14180_v19, %v19688_v61  ;;  %v14282_v51 = vadd.f32 %v14281_v24, %v19688_v61  ;;  %v14182_v63 = vpop.f32.mrb[19].mxu0  ;;  %v14283_v41 = vpop.f32.mrb[19].mxu1 }
 0x3c0   : > { %v14183_v49 = vadd.f32 %v14182_v63, %v19688_v61  ;;  %v14284_v50 = vadd.f32 %v14283_v41, %v19688_v61 }
 0x3c1   : > { %14314 = vst [vmem:[%s19682_s29 + $0x100] sm:$0xff] %v14181_v14  ;;  %14316 = vst [vmem:[%s19682_s29 + $0x110] sm:$0xff] %v14282_v51 }
 0x3c2   : > { %14315 = vst [vmem:[%s19682_s29 + $0x108] sm:$0xff] %v14183_v49  ;;  %14317 = vst [vmem:[%s19682_s29 + $0x118] sm:$0xff] %v14284_v50  ;;  %v14186_v11 = vpop.f32.mrb[20].mxu0  ;;  %v14287_v20 = vpop.f32.mrb[20].mxu1 }
 0x3c3   : > { %v14187_v8 = vadd.f32 %v14186_v11, %v19698_v13  ;;  %v14288_v30 = vadd.f32 %v14287_v20, %v19698_v13  ;;  %v14188_v47 = vpop.f32.mrb[21].mxu0  ;;  %v14289_v39 = vpop.f32.mrb[21].mxu1 }
 0x3c4   : > { %v14189_v26 = vadd.f32 %v14188_v47, %v19698_v13  ;;  %v14290_v45 = vadd.f32 %v14289_v39, %v19698_v13 }
 0x3c5   : > { %14318 = vst [vmem:[%s19682_s29 + $0x200] sm:$0xff] %v14187_v8  ;;  %14320 = vst [vmem:[%s19682_s29 + $0x210] sm:$0xff] %v14288_v30 }
 0x3c6   : > { %14319 = vst [vmem:[%s19682_s29 + $0x208] sm:$0xff] %v14189_v26  ;;  %14321 = vst [vmem:[%s19682_s29 + $0x218] sm:$0xff] %v14290_v45  ;;  %v14192_v31 = vpop.f32.mrb[22].mxu0  ;;  %v14293_v18 = vpop.f32.mrb[22].mxu1 }
 0x3c7   : > { %v14193_v38 = vadd.f32 %v14192_v31, %v19708_v43  ;;  %v14294_v57 = vadd.f32 %v14293_v18, %v19708_v43  ;;  %v14194_v15 = vpop.f32.mrb[23].mxu0  ;;  %v14295_v42 = vpop.f32.mrb[23].mxu1 }
 0x3c8   : > { %v14195_v58 = vadd.f32 %v14194_v15, %v19708_v43  ;;  %v14296_v35 = vadd.f32 %v14295_v42, %v19708_v43 }
 0x3c9   : > { %14322 = vst [vmem:[%s19682_s29 + $0x300] sm:$0xff] %v14193_v38  ;;  %14324 = vst [vmem:[%s19682_s29 + $0x310] sm:$0xff] %v14294_v57 }
 0x3ca   : > { %14323 = vst [vmem:[%s19682_s29 + $0x308] sm:$0xff] %v14195_v58  ;;  %14325 = vst [vmem:[%s19682_s29 + $0x318] sm:$0xff] %v14296_v35  ;;  %v14198_v48 = vpop.f32.mrb[24].mxu0  ;;  %v14299_v46 = vpop.f32.mrb[24].mxu1 }
 0x3cb   : > { %v14199_v6 = vadd.f32 %v14198_v48, %v19718_v40  ;;  %v14300_v44 = vadd.f32 %v14299_v46, %v19718_v40  ;;  %v14200_v21 = vpop.f32.mrb[25].mxu0  ;;  %v14301_v55 = vpop.f32.mrb[25].mxu1 }
 0x3cc   : > { %v14201_v25 = vadd.f32 %v14200_v21, %v19718_v40  ;;  %v14302_v62 = vadd.f32 %v14301_v55, %v19718_v40 }
 0x3cd   : > { %14326 = vst [vmem:[%s19682_s29 + $0x400] sm:$0xff] %v14199_v6  ;;  %14328 = vst [vmem:[%s19682_s29 + $0x410] sm:$0xff] %v14300_v44 }
 0x3ce   : > { %14327 = vst [vmem:[%s19682_s29 + $0x408] sm:$0xff] %v14201_v25  ;;  %14329 = vst [vmem:[%s19682_s29 + $0x418] sm:$0xff] %v14302_v62  ;;  %v14204_v36 = vpop.f32.mrb[26].mxu0  ;;  %v14305_v56 = vpop.f32.mrb[26].mxu1 }
 0x3cf   : > { %v14205_v2 = vadd.f32 %v14204_v36, %v19728_v9  ;;  %v14306_v34 = vadd.f32 %v14305_v56, %v19728_v9  ;;  %v14206_v29 = vpop.f32.mrb[27].mxu0  ;;  %v14307_v33 = vpop.f32.mrb[27].mxu1 }
 0x3d0   : > { %v14207_v1 = vadd.f32 %v14206_v29, %v19728_v9  ;;  %v14308_v5 = vadd.f32 %v14307_v33, %v19728_v9 }
 0x3d1   : > { %14330 = vst [vmem:[%s19682_s29 + $0x500] sm:$0xff] %v14205_v2  ;;  %14332 = vst [vmem:[%s19682_s29 + $0x510] sm:$0xff] %v14306_v34 }
 0x3d2   : > { %14331 = vst [vmem:[%s19682_s29 + $0x508] sm:$0xff] %v14207_v1  ;;  %14333 = vst [vmem:[%s19682_s29 + $0x518] sm:$0xff] %v14308_v5  ;;  %v14404_v23 = vpop.f32.mrb[28].mxu0  ;;  %v14505_v16 = vpop.f32.mrb[28].mxu1 }
 0x3d3   : > { %v14405_v7 = vadd.f32 %v14404_v23, %v19677_v54  ;;  %v14506_v32 = vadd.f32 %v14505_v16, %v19677_v54  ;;  %v14406_v27 = vpop.f32.mrb[29].mxu0  ;;  %v14507_v37 = vpop.f32.mrb[29].mxu1 }
 0x3d4   : > { %v14407_v22 = vadd.f32 %v14406_v27, %v19677_v54  ;;  %v14508_v12 = vadd.f32 %v14507_v37, %v19677_v54 }
 0x3d5   : > { %14540 = vst [vmem:[%s19682_s29 + $0x20] sm:$0xff] %v14405_v7  ;;  %14542 = vst [vmem:[%s19682_s29 + $0x30] sm:$0xff] %v14506_v32 }
 0x3d6   : > { %14541 = vst [vmem:[%s19682_s29 + $0x28] sm:$0xff] %v14407_v22  ;;  %14543 = vst [vmem:[%s19682_s29 + $0x38] sm:$0xff] %v14508_v12  ;;  %v14410_v3 = vpop.f32.mrb[30].mxu0  ;;  %v14511_v59 = vpop.f32.mrb[30].mxu1 }
 0x3d7   : > { %v14411_v0 = vadd.f32 %v14410_v3, %v19688_v61  ;;  %v14512_v60 = vadd.f32 %v14511_v59, %v19688_v61  ;;  %v14412_v52 = vpop.f32.mrb[31].mxu0  ;;  %v14513_v53 = vpop.f32.mrb[31].mxu1 }
 0x3d8   : > { %v14413_v17 = vadd.f32 %v14412_v52, %v19688_v61  ;;  %v14514_v10 = vadd.f32 %v14513_v53, %v19688_v61 }
 0x3d9   : > { %14544 = vst [vmem:[%s19682_s29 + $0x120] sm:$0xff] %v14411_v0  ;;  %14546 = vst [vmem:[%s19682_s29 + $0x130] sm:$0xff] %v14512_v60 }
 0x3da   : > { %14545 = vst [vmem:[%s19682_s29 + $0x128] sm:$0xff] %v14413_v17  ;;  %14547 = vst [vmem:[%s19682_s29 + $0x138] sm:$0xff] %v14514_v10  ;;  %v14416_v4 = vpop.f32.mrb[32].mxu0  ;;  %v14517_v28 = vpop.f32.mrb[32].mxu1 }
 0x3db   : > { %v14417_v19 = vadd.f32 %v14416_v4, %v19698_v13  ;;  %v14518_v24 = vadd.f32 %v14517_v28, %v19698_v13  ;;  %v14418_v14 = vpop.f32.mrb[33].mxu0  ;;  %v14519_v51 = vpop.f32.mrb[33].mxu1 }
 0x3dc   : > { %v14419_v63 = vadd.f32 %v14418_v14, %v19698_v13  ;;  %v14520_v41 = vadd.f32 %v14519_v51, %v19698_v13 }
 0x3dd   : > { %14548 = vst [vmem:[%s19682_s29 + $0x220] sm:$0xff] %v14417_v19  ;;  %14550 = vst [vmem:[%s19682_s29 + $0x230] sm:$0xff] %v14518_v24 }
 0x3de   : > { %14549 = vst [vmem:[%s19682_s29 + $0x228] sm:$0xff] %v14419_v63  ;;  %14551 = vst [vmem:[%s19682_s29 + $0x238] sm:$0xff] %v14520_v41  ;;  %v14422_v49 = vpop.f32.mrb[34].mxu0  ;;  %v14523_v50 = vpop.f32.mrb[34].mxu1 }
 0x3df   : > { %v14423_v11 = vadd.f32 %v14422_v49, %v19708_v43  ;;  %v14524_v20 = vadd.f32 %v14523_v50, %v19708_v43  ;;  %v14424_v8 = vpop.f32.mrb[35].mxu0  ;;  %v14525_v30 = vpop.f32.mrb[35].mxu1 }
 0x3e0   : > { %v14425_v47 = vadd.f32 %v14424_v8, %v19708_v43  ;;  %v14526_v39 = vadd.f32 %v14525_v30, %v19708_v43 }
 0x3e1   : > { %14552 = vst [vmem:[%s19682_s29 + $0x320] sm:$0xff] %v14423_v11  ;;  %14554 = vst [vmem:[%s19682_s29 + $0x330] sm:$0xff] %v14524_v20 }
 0x3e2   : > { %14553 = vst [vmem:[%s19682_s29 + $0x328] sm:$0xff] %v14425_v47  ;;  %14555 = vst [vmem:[%s19682_s29 + $0x338] sm:$0xff] %v14526_v39  ;;  %v14428_v26 = vpop.f32.mrb[36].mxu0  ;;  %v14529_v45 = vpop.f32.mrb[36].mxu1 }
 0x3e3   : > { %v14429_v31 = vadd.f32 %v14428_v26, %v19718_v40  ;;  %v14530_v18 = vadd.f32 %v14529_v45, %v19718_v40  ;;  %v14430_v38 = vpop.f32.mrb[37].mxu0  ;;  %v14531_v57 = vpop.f32.mrb[37].mxu1 }
 0x3e4   : > { %v14431_v15 = vadd.f32 %v14430_v38, %v19718_v40  ;;  %v14532_v42 = vadd.f32 %v14531_v57, %v19718_v40 }
 0x3e5   : > { %14556 = vst [vmem:[%s19682_s29 + $0x420] sm:$0xff] %v14429_v31  ;;  %14558 = vst [vmem:[%s19682_s29 + $0x430] sm:$0xff] %v14530_v18 }
 0x3e6   : > { %14557 = vst [vmem:[%s19682_s29 + $0x428] sm:$0xff] %v14431_v15  ;;  %14559 = vst [vmem:[%s19682_s29 + $0x438] sm:$0xff] %v14532_v42  ;;  %v14434_v58 = vpop.f32.mrb[38].mxu0  ;;  %v14535_v35 = vpop.f32.mrb[38].mxu1 }
 0x3e7   : > { %v14435_v48 = vadd.f32 %v14434_v58, %v19728_v9  ;;  %v14536_v46 = vadd.f32 %v14535_v35, %v19728_v9  ;;  %v14436_v6 = vpop.f32.mrb[39].mxu0  ;;  %v14537_v44 = vpop.f32.mrb[39].mxu1 }
 0x3e8   : > { %v14437_v21 = vadd.f32 %v14436_v6, %v19728_v9  ;;  %v14538_v55 = vadd.f32 %v14537_v44, %v19728_v9 }
 0x3e9   : > { %14560 = vst [vmem:[%s19682_s29 + $0x520] sm:$0xff] %v14435_v48  ;;  %14562 = vst [vmem:[%s19682_s29 + $0x530] sm:$0xff] %v14536_v46 }
 0x3ea   : > { %14561 = vst [vmem:[%s19682_s29 + $0x528] sm:$0xff] %v14437_v21  ;;  %14563 = vst [vmem:[%s19682_s29 + $0x538] sm:$0xff] %v14538_v55  ;;  %v14634_v25 = vpop.f32.mrb[40].mxu0  ;;  %v14735_v62 = vpop.f32.mrb[40].mxu1 }
 0x3eb   : > { %v14635_v36 = vadd.f32 %v14634_v25, %v19677_v54  ;;  %v14736_v56 = vadd.f32 %v14735_v62, %v19677_v54  ;;  %v14636_v2 = vpop.f32.mrb[41].mxu0  ;;  %v14737_v34 = vpop.f32.mrb[41].mxu1 }
 0x3ec   : > { %v14637_v29 = vadd.f32 %v14636_v2, %v19677_v54  ;;  %v14738_v33 = vadd.f32 %v14737_v34, %v19677_v54 }
 0x3ed   : > { %14770 = vst [vmem:[%s19682_s29 + $0x40] sm:$0xff] %v14635_v36  ;;  %14772 = vst [vmem:[%s19682_s29 + $0x50] sm:$0xff] %v14736_v56 }
 0x3ee   : > { %14771 = vst [vmem:[%s19682_s29 + $0x48] sm:$0xff] %v14637_v29  ;;  %14773 = vst [vmem:[%s19682_s29 + $0x58] sm:$0xff] %v14738_v33  ;;  %v14640_v1 = vpop.f32.mrb[42].mxu0  ;;  %v14741_v5 = vpop.f32.mrb[42].mxu1 }
 0x3ef   : > { %v14641_v23 = vadd.f32 %v14640_v1, %v19688_v61  ;;  %v14742_v16 = vadd.f32 %v14741_v5, %v19688_v61  ;;  %v14642_v7 = vpop.f32.mrb[43].mxu0  ;;  %v14743_v32 = vpop.f32.mrb[43].mxu1 }
 0x3f0   : > { %v14643_v27 = vadd.f32 %v14642_v7, %v19688_v61  ;;  %v14744_v37 = vadd.f32 %v14743_v32, %v19688_v61 }
 0x3f1   : > { %14774 = vst [vmem:[%s19682_s29 + $0x140] sm:$0xff] %v14641_v23  ;;  %14776 = vst [vmem:[%s19682_s29 + $0x150] sm:$0xff] %v14742_v16 }
 0x3f2   : > { %14775 = vst [vmem:[%s19682_s29 + $0x148] sm:$0xff] %v14643_v27  ;;  %14777 = vst [vmem:[%s19682_s29 + $0x158] sm:$0xff] %v14744_v37  ;;  %v14646_v22 = vpop.f32.mrb[44].mxu0  ;;  %v14747_v12 = vpop.f32.mrb[44].mxu1 }
 0x3f3   : > { %v14647_v3 = vadd.f32 %v14646_v22, %v19698_v13  ;;  %v14748_v59 = vadd.f32 %v14747_v12, %v19698_v13  ;;  %v14648_v0 = vpop.f32.mrb[45].mxu0  ;;  %v14749_v60 = vpop.f32.mrb[45].mxu1 }
 0x3f4   : > { %v14649_v52 = vadd.f32 %v14648_v0, %v19698_v13  ;;  %v14750_v53 = vadd.f32 %v14749_v60, %v19698_v13 }
 0x3f5   : > { %14778 = vst [vmem:[%s19682_s29 + $0x240] sm:$0xff] %v14647_v3  ;;  %14780 = vst [vmem:[%s19682_s29 + $0x250] sm:$0xff] %v14748_v59 }
 0x3f6   : > { %14779 = vst [vmem:[%s19682_s29 + $0x248] sm:$0xff] %v14649_v52  ;;  %14781 = vst [vmem:[%s19682_s29 + $0x258] sm:$0xff] %v14750_v53  ;;  %v14652_v17 = vpop.f32.mrb[46].mxu0  ;;  %v14753_v10 = vpop.f32.mrb[46].mxu1 }
 0x3f7   : > { %v14653_v4 = vadd.f32 %v14652_v17, %v19708_v43  ;;  %v14754_v28 = vadd.f32 %v14753_v10, %v19708_v43  ;;  %v14654_v19 = vpop.f32.mrb[47].mxu0  ;;  %v14755_v24 = vpop.f32.mrb[47].mxu1 }
 0x3f8   : > { %v14655_v14 = vadd.f32 %v14654_v19, %v19708_v43  ;;  %v14756_v51 = vadd.f32 %v14755_v24, %v19708_v43 }
 0x3f9   : > { %14782 = vst [vmem:[%s19682_s29 + $0x340] sm:$0xff] %v14653_v4  ;;  %14784 = vst [vmem:[%s19682_s29 + $0x350] sm:$0xff] %v14754_v28 }
 0x3fa   : > { %14783 = vst [vmem:[%s19682_s29 + $0x348] sm:$0xff] %v14655_v14  ;;  %14785 = vst [vmem:[%s19682_s29 + $0x358] sm:$0xff] %v14756_v51  ;;  %v14658_v63 = vpop.f32.mrb[48].mxu0  ;;  %v14759_v41 = vpop.f32.mrb[48].mxu1 }
 0x3fb   : > { %v14659_v49 = vadd.f32 %v14658_v63, %v19718_v40  ;;  %v14760_v50 = vadd.f32 %v14759_v41, %v19718_v40  ;;  %v14660_v11 = vpop.f32.mrb[49].mxu0  ;;  %v14761_v20 = vpop.f32.mrb[49].mxu1 }
 0x3fc   : > { %v14661_v8 = vadd.f32 %v14660_v11, %v19718_v40  ;;  %v14762_v30 = vadd.f32 %v14761_v20, %v19718_v40 }
 0x3fd   : > { %14786 = vst [vmem:[%s19682_s29 + $0x440] sm:$0xff] %v14659_v49  ;;  %14788 = vst [vmem:[%s19682_s29 + $0x450] sm:$0xff] %v14760_v50 }
 0x3fe   : > { %14787 = vst [vmem:[%s19682_s29 + $0x448] sm:$0xff] %v14661_v8  ;;  %14789 = vst [vmem:[%s19682_s29 + $0x458] sm:$0xff] %v14762_v30  ;;  %v14664_v47 = vpop.f32.mrb[50].mxu0  ;;  %v14765_v39 = vpop.f32.mrb[50].mxu1 }
 0x3ff   : > { %v14665_v26 = vadd.f32 %v14664_v47, %v19728_v9  ;;  %v14766_v45 = vadd.f32 %v14765_v39, %v19728_v9  ;;  %v14666_v31 = vpop.f32.mrb[51].mxu0  ;;  %v14767_v18 = vpop.f32.mrb[51].mxu1 }
 0x400   : > { %v14667_v38 = vadd.f32 %v14666_v31, %v19728_v9  ;;  %v14768_v57 = vadd.f32 %v14767_v18, %v19728_v9 }
 0x401   : > { %14790 = vst [vmem:[%s19682_s29 + $0x540] sm:$0xff] %v14665_v26  ;;  %14792 = vst [vmem:[%s19682_s29 + $0x550] sm:$0xff] %v14766_v45 }
 0x402   : > { %14791 = vst [vmem:[%s19682_s29 + $0x548] sm:$0xff] %v14667_v38  ;;  %14793 = vst [vmem:[%s19682_s29 + $0x558] sm:$0xff] %v14768_v57  ;;  %v14864_v15 = vpop.f32.mrb[52].mxu0  ;;  %v14965_v42 = vpop.f32.mrb[52].mxu1 }
 0x403   : > { %v14865_v58 = vadd.f32 %v14864_v15, %v19677_v54  ;;  %v14966_v35 = vadd.f32 %v14965_v42, %v19677_v54  ;;  %v14866_v48 = vpop.f32.mrb[53].mxu0  ;;  %v14967_v46 = vpop.f32.mrb[53].mxu1 }
 0x404   : > { %v14867_v6 = vadd.f32 %v14866_v48, %v19677_v54  ;;  %v14968_v44 = vadd.f32 %v14967_v46, %v19677_v54 }
 0x405   : > { %15000 = vst [vmem:[%s19682_s29 + $0x60] sm:$0xff] %v14865_v58  ;;  %15002 = vst [vmem:[%s19682_s29 + $0x70] sm:$0xff] %v14966_v35 }
 0x406   : > { %15001 = vst [vmem:[%s19682_s29 + $0x68] sm:$0xff] %v14867_v6  ;;  %15003 = vst [vmem:[%s19682_s29 + $0x78] sm:$0xff] %v14968_v44  ;;  %v14870_v21 = vpop.f32.mrb[54].mxu0  ;;  %v14971_v55 = vpop.f32.mrb[54].mxu1 }
 0x407   : > { %v14871_v25 = vadd.f32 %v14870_v21, %v19688_v61  ;;  %v14972_v62 = vadd.f32 %v14971_v55, %v19688_v61  ;;  %v14872_v36 = vpop.f32.mrb[55].mxu0  ;;  %v14973_v56 = vpop.f32.mrb[55].mxu1 }
 0x408   : > { %v14873_v2 = vadd.f32 %v14872_v36, %v19688_v61  ;;  %v14974_v34 = vadd.f32 %v14973_v56, %v19688_v61 }
 0x409   : > { %15004 = vst [vmem:[%s19682_s29 + $0x160] sm:$0xff] %v14871_v25  ;;  %15006 = vst [vmem:[%s19682_s29 + $0x170] sm:$0xff] %v14972_v62 }
 0x40a   : > { %15005 = vst [vmem:[%s19682_s29 + $0x168] sm:$0xff] %v14873_v2  ;;  %15007 = vst [vmem:[%s19682_s29 + $0x178] sm:$0xff] %v14974_v34  ;;  %v14876_v29 = vpop.f32.mrb[56].mxu0  ;;  %v14977_v33 = vpop.f32.mrb[56].mxu1 }
 0x40b   : > { %v14877_v1 = vadd.f32 %v14876_v29, %v19698_v13  ;;  %v14978_v5 = vadd.f32 %v14977_v33, %v19698_v13  ;;  %v14878_v23 = vpop.f32.mrb[57].mxu0  ;;  %v14979_v16 = vpop.f32.mrb[57].mxu1 }
 0x40c   : > { %v14879_v7 = vadd.f32 %v14878_v23, %v19698_v13  ;;  %v14980_v32 = vadd.f32 %v14979_v16, %v19698_v13 }
 0x40d   : > { %15008 = vst [vmem:[%s19682_s29 + $0x260] sm:$0xff] %v14877_v1  ;;  %15010 = vst [vmem:[%s19682_s29 + $0x270] sm:$0xff] %v14978_v5 }
 0x40e   : > { %15009 = vst [vmem:[%s19682_s29 + $0x268] sm:$0xff] %v14879_v7  ;;  %15011 = vst [vmem:[%s19682_s29 + $0x278] sm:$0xff] %v14980_v32  ;;  %v14882_v27 = vpop.f32.mrb[58].mxu0  ;;  %v14983_v37 = vpop.f32.mrb[58].mxu1 }
 0x40f   : > { %v14883_v22 = vadd.f32 %v14882_v27, %v19708_v43  ;;  %v14984_v12 = vadd.f32 %v14983_v37, %v19708_v43  ;;  %v14884_v3 = vpop.f32.mrb[59].mxu0  ;;  %v14985_v59 = vpop.f32.mrb[59].mxu1 }
 0x410   : > { %v14885_v0 = vadd.f32 %v14884_v3, %v19708_v43  ;;  %v14986_v60 = vadd.f32 %v14985_v59, %v19708_v43 }
 0x411   : > { %15012 = vst [vmem:[%s19682_s29 + $0x360] sm:$0xff] %v14883_v22  ;;  %15014 = vst [vmem:[%s19682_s29 + $0x370] sm:$0xff] %v14984_v12 }
 0x412   : > { %15013 = vst [vmem:[%s19682_s29 + $0x368] sm:$0xff] %v14885_v0  ;;  %15015 = vst [vmem:[%s19682_s29 + $0x378] sm:$0xff] %v14986_v60  ;;  %v14888_v52 = vpop.f32.mrb[60].mxu0  ;;  %v14989_v53 = vpop.f32.mrb[60].mxu1 }
 0x413   : > { %v14889_v17 = vadd.f32 %v14888_v52, %v19718_v40  ;;  %v14990_v10 = vadd.f32 %v14989_v53, %v19718_v40  ;;  %v14890_v4 = vpop.f32.mrb[61].mxu0  ;;  %v14991_v28 = vpop.f32.mrb[61].mxu1 }
 0x414   : > { %v14891_v19 = vadd.f32 %v14890_v4, %v19718_v40  ;;  %v14992_v24 = vadd.f32 %v14991_v28, %v19718_v40 }
 0x415   : > { %15016 = vst [vmem:[%s19682_s29 + $0x460] sm:$0xff] %v14889_v17  ;;  %15018 = vst [vmem:[%s19682_s29 + $0x470] sm:$0xff] %v14990_v10 }
 0x416   : > { %15017 = vst [vmem:[%s19682_s29 + $0x468] sm:$0xff] %v14891_v19  ;;  %15019 = vst [vmem:[%s19682_s29 + $0x478] sm:$0xff] %v14992_v24  ;;  %v14894_v14 = vpop.f32.mrb[62].mxu0  ;;  %v14995_v51 = vpop.f32.mrb[62].mxu1 }
 0x417   : > { %v14895_v63 = vadd.f32 %v14894_v14, %v19728_v9  ;;  %v14996_v41 = vadd.f32 %v14995_v51, %v19728_v9  ;;  %v14896_v49 = vpop.f32.mrb[63].mxu0  ;;  %v14997_v50 = vpop.f32.mrb[63].mxu1 }
 0x418   : > { %v14897_v11 = vadd.f32 %v14896_v49, %v19728_v9  ;;  %v14998_v20 = vadd.f32 %v14997_v50, %v19728_v9 }
 0x419   : > { %15020 = vst [vmem:[%s19682_s29 + $0x560] sm:$0xff] %v14895_v63  ;;  %15022 = vst [vmem:[%s19682_s29 + $0x570] sm:$0xff] %v14996_v41 }
 0x41a   : > { %15021 = vst [vmem:[%s19682_s29 + $0x568] sm:$0xff] %v14897_v11  ;;  %15023 = vst [vmem:[%s19682_s29 + $0x578] sm:$0xff] %v14998_v20  ;;  %v15094_v8 = vpop.f32.mrb[64].mxu0  ;;  %v15195_v30 = vpop.f32.mrb[64].mxu1 }
 0x41b   : > { %v15095_v47 = vadd.f32 %v15094_v8, %v19677_v54  ;;  %v15196_v39 = vadd.f32 %v15195_v30, %v19677_v54  ;;  %v15096_v26 = vpop.f32.mrb[65].mxu0  ;;  %v15197_v45 = vpop.f32.mrb[65].mxu1 }
 0x41c   : > { %v15097_v31 = vadd.f32 %v15096_v26, %v19677_v54  ;;  %v15198_v18 = vadd.f32 %v15197_v45, %v19677_v54 }
 0x41d   : > { %15230 = vst [vmem:[%s19682_s29 + $0x80] sm:$0xff] %v15095_v47  ;;  %15232 = vst [vmem:[%s19682_s29 + $0x90] sm:$0xff] %v15196_v39 }
 0x41e   : > { %15231 = vst [vmem:[%s19682_s29 + $0x88] sm:$0xff] %v15097_v31  ;;  %15233 = vst [vmem:[%s19682_s29 + $0x98] sm:$0xff] %v15198_v18  ;;  %v15100_v38 = vpop.f32.mrb[66].mxu0  ;;  %v15201_v57 = vpop.f32.mrb[66].mxu1 }
 0x41f   : > { %v15101_v15 = vadd.f32 %v15100_v38, %v19688_v61  ;;  %v15202_v42 = vadd.f32 %v15201_v57, %v19688_v61  ;;  %v15102_v58 = vpop.f32.mrb[67].mxu0  ;;  %v15203_v35 = vpop.f32.mrb[67].mxu1 }
 0x420   : > { %v15103_v48 = vadd.f32 %v15102_v58, %v19688_v61  ;;  %v15204_v46 = vadd.f32 %v15203_v35, %v19688_v61 }
 0x421   : > { %15234 = vst [vmem:[%s19682_s29 + $0x180] sm:$0xff] %v15101_v15  ;;  %15236 = vst [vmem:[%s19682_s29 + $0x190] sm:$0xff] %v15202_v42 }
 0x422   : > { %15235 = vst [vmem:[%s19682_s29 + $0x188] sm:$0xff] %v15103_v48  ;;  %15237 = vst [vmem:[%s19682_s29 + $0x198] sm:$0xff] %v15204_v46  ;;  %v15106_v6 = vpop.f32.mrb[68].mxu0  ;;  %v15207_v44 = vpop.f32.mrb[68].mxu1 }
 0x423   : > { %v15107_v21 = vadd.f32 %v15106_v6, %v19698_v13  ;;  %v15208_v55 = vadd.f32 %v15207_v44, %v19698_v13  ;;  %v15108_v25 = vpop.f32.mrb[69].mxu0  ;;  %v15209_v62 = vpop.f32.mrb[69].mxu1 }
 0x424   : > { %v15109_v36 = vadd.f32 %v15108_v25, %v19698_v13  ;;  %v15210_v56 = vadd.f32 %v15209_v62, %v19698_v13 }
 0x425   : > { %15238 = vst [vmem:[%s19682_s29 + $0x280] sm:$0xff] %v15107_v21  ;;  %15240 = vst [vmem:[%s19682_s29 + $0x290] sm:$0xff] %v15208_v55 }
 0x426   : > { %15239 = vst [vmem:[%s19682_s29 + $0x288] sm:$0xff] %v15109_v36  ;;  %15241 = vst [vmem:[%s19682_s29 + $0x298] sm:$0xff] %v15210_v56  ;;  %v15112_v2 = vpop.f32.mrb[70].mxu0  ;;  %v15213_v34 = vpop.f32.mrb[70].mxu1 }
 0x427   : > { %v15113_v29 = vadd.f32 %v15112_v2, %v19708_v43  ;;  %v15214_v33 = vadd.f32 %v15213_v34, %v19708_v43  ;;  %v15114_v1 = vpop.f32.mrb[71].mxu0  ;;  %v15215_v5 = vpop.f32.mrb[71].mxu1 }
 0x428   : > { %v15115_v23 = vadd.f32 %v15114_v1, %v19708_v43  ;;  %v15216_v16 = vadd.f32 %v15215_v5, %v19708_v43 }
 0x429   : > { %15242 = vst [vmem:[%s19682_s29 + $0x380] sm:$0xff] %v15113_v29  ;;  %15244 = vst [vmem:[%s19682_s29 + $0x390] sm:$0xff] %v15214_v33 }
 0x42a   : > { %15243 = vst [vmem:[%s19682_s29 + $0x388] sm:$0xff] %v15115_v23  ;;  %15245 = vst [vmem:[%s19682_s29 + $0x398] sm:$0xff] %v15216_v16  ;;  %v15118_v7 = vpop.f32.mrb[72].mxu0  ;;  %v15219_v32 = vpop.f32.mrb[72].mxu1 }
 0x42b   : > { %v15119_v27 = vadd.f32 %v15118_v7, %v19718_v40  ;;  %v15220_v37 = vadd.f32 %v15219_v32, %v19718_v40  ;;  %v15120_v22 = vpop.f32.mrb[73].mxu0  ;;  %v15221_v12 = vpop.f32.mrb[73].mxu1 }
 0x42c   : > { %v15121_v3 = vadd.f32 %v15120_v22, %v19718_v40  ;;  %v15222_v59 = vadd.f32 %v15221_v12, %v19718_v40 }
 0x42d   : > { %15246 = vst [vmem:[%s19682_s29 + $0x480] sm:$0xff] %v15119_v27  ;;  %15248 = vst [vmem:[%s19682_s29 + $0x490] sm:$0xff] %v15220_v37 }
 0x42e   : > { %15247 = vst [vmem:[%s19682_s29 + $0x488] sm:$0xff] %v15121_v3  ;;  %15249 = vst [vmem:[%s19682_s29 + $0x498] sm:$0xff] %v15222_v59  ;;  %v15124_v0 = vpop.f32.mrb[74].mxu0  ;;  %v15225_v60 = vpop.f32.mrb[74].mxu1 }
 0x42f   : > { %v15125_v52 = vadd.f32 %v15124_v0, %v19728_v9  ;;  %v15226_v53 = vadd.f32 %v15225_v60, %v19728_v9  ;;  %v15126_v17 = vpop.f32.mrb[75].mxu0  ;;  %v15227_v10 = vpop.f32.mrb[75].mxu1 }
 0x430   : > { %v15127_v4 = vadd.f32 %v15126_v17, %v19728_v9  ;;  %v15228_v28 = vadd.f32 %v15227_v10, %v19728_v9 }
 0x431   : > { %15250 = vst [vmem:[%s19682_s29 + $0x580] sm:$0xff] %v15125_v52  ;;  %15252 = vst [vmem:[%s19682_s29 + $0x590] sm:$0xff] %v15226_v53 }
 0x432   : > { %15251 = vst [vmem:[%s19682_s29 + $0x588] sm:$0xff] %v15127_v4  ;;  %15253 = vst [vmem:[%s19682_s29 + $0x598] sm:$0xff] %v15228_v28  ;;  %v15324_v19 = vpop.f32.mrb[76].mxu0  ;;  %v15425_v24 = vpop.f32.mrb[76].mxu1 }
 0x433   : > { %v15325_v14 = vadd.f32 %v15324_v19, %v19677_v54  ;;  %v15426_v51 = vadd.f32 %v15425_v24, %v19677_v54  ;;  %v15326_v63 = vpop.f32.mrb[77].mxu0  ;;  %v15427_v41 = vpop.f32.mrb[77].mxu1 }
 0x434   : > { %v15327_v49 = vadd.f32 %v15326_v63, %v19677_v54  ;;  %v15428_v50 = vadd.f32 %v15427_v41, %v19677_v54 }
 0x435   : > { %15460 = vst [vmem:[%s19682_s29 + $0xa0] sm:$0xff] %v15325_v14  ;;  %15462 = vst [vmem:[%s19682_s29 + $0xb0] sm:$0xff] %v15426_v51 }
 0x436   : > { %15461 = vst [vmem:[%s19682_s29 + $0xa8] sm:$0xff] %v15327_v49  ;;  %15463 = vst [vmem:[%s19682_s29 + $0xb8] sm:$0xff] %v15428_v50  ;;  %v15330_v11 = vpop.f32.mrb[78].mxu0  ;;  %v15431_v20 = vpop.f32.mrb[78].mxu1 }
 0x437   : > { %v15331_v8 = vadd.f32 %v15330_v11, %v19688_v61  ;;  %v15432_v30 = vadd.f32 %v15431_v20, %v19688_v61  ;;  %v15332_v47 = vpop.f32.mrb[79].mxu0  ;;  %v15433_v39 = vpop.f32.mrb[79].mxu1 }
 0x438   : > { %v15333_v26 = vadd.f32 %v15332_v47, %v19688_v61  ;;  %v15434_v45 = vadd.f32 %v15433_v39, %v19688_v61 }
 0x439   : > { %15464 = vst [vmem:[%s19682_s29 + $0x1a0] sm:$0xff] %v15331_v8  ;;  %15466 = vst [vmem:[%s19682_s29 + $0x1b0] sm:$0xff] %v15432_v30 }
 0x43a   : > { %15465 = vst [vmem:[%s19682_s29 + $0x1a8] sm:$0xff] %v15333_v26  ;;  %15467 = vst [vmem:[%s19682_s29 + $0x1b8] sm:$0xff] %v15434_v45  ;;  %v15336_v31 = vpop.f32.mrb[80].mxu0  ;;  %v15437_v18 = vpop.f32.mrb[80].mxu1 }
 0x43b   : > { %v15337_v38 = vadd.f32 %v15336_v31, %v19698_v13  ;;  %v15438_v57 = vadd.f32 %v15437_v18, %v19698_v13  ;;  %v15338_v15 = vpop.f32.mrb[81].mxu0  ;;  %v15439_v42 = vpop.f32.mrb[81].mxu1 }
 0x43c   : > { %v15339_v58 = vadd.f32 %v15338_v15, %v19698_v13  ;;  %v15440_v35 = vadd.f32 %v15439_v42, %v19698_v13 }
 0x43d   : > { %15468 = vst [vmem:[%s19682_s29 + $0x2a0] sm:$0xff] %v15337_v38  ;;  %15470 = vst [vmem:[%s19682_s29 + $0x2b0] sm:$0xff] %v15438_v57 }
 0x43e   : > { %15469 = vst [vmem:[%s19682_s29 + $0x2a8] sm:$0xff] %v15339_v58  ;;  %15471 = vst [vmem:[%s19682_s29 + $0x2b8] sm:$0xff] %v15440_v35  ;;  %v15342_v48 = vpop.f32.mrb[82].mxu0  ;;  %v15443_v46 = vpop.f32.mrb[82].mxu1 }
 0x43f   : > { %v15343_v6 = vadd.f32 %v15342_v48, %v19708_v43  ;;  %v15444_v44 = vadd.f32 %v15443_v46, %v19708_v43  ;;  %v15344_v21 = vpop.f32.mrb[83].mxu0  ;;  %v15445_v55 = vpop.f32.mrb[83].mxu1 }
 0x440   : > { %v15345_v25 = vadd.f32 %v15344_v21, %v19708_v43  ;;  %v15446_v62 = vadd.f32 %v15445_v55, %v19708_v43 }
 0x441   : > { %15472 = vst [vmem:[%s19682_s29 + $0x3a0] sm:$0xff] %v15343_v6  ;;  %15474 = vst [vmem:[%s19682_s29 + $0x3b0] sm:$0xff] %v15444_v44 }
 0x442   : > { %15473 = vst [vmem:[%s19682_s29 + $0x3a8] sm:$0xff] %v15345_v25  ;;  %15475 = vst [vmem:[%s19682_s29 + $0x3b8] sm:$0xff] %v15446_v62  ;;  %v15348_v36 = vpop.f32.mrb[84].mxu0  ;;  %v15449_v56 = vpop.f32.mrb[84].mxu1 }
 0x443   : > { %v15349_v2 = vadd.f32 %v15348_v36, %v19718_v40  ;;  %v15450_v34 = vadd.f32 %v15449_v56, %v19718_v40  ;;  %v15350_v29 = vpop.f32.mrb[85].mxu0  ;;  %v15451_v33 = vpop.f32.mrb[85].mxu1 }
 0x444   : > { %v15351_v1 = vadd.f32 %v15350_v29, %v19718_v40  ;;  %v15452_v5 = vadd.f32 %v15451_v33, %v19718_v40 }
 0x445   : > { %15476 = vst [vmem:[%s19682_s29 + $0x4a0] sm:$0xff] %v15349_v2  ;;  %15478 = vst [vmem:[%s19682_s29 + $0x4b0] sm:$0xff] %v15450_v34 }
 0x446   : > { %15477 = vst [vmem:[%s19682_s29 + $0x4a8] sm:$0xff] %v15351_v1  ;;  %15479 = vst [vmem:[%s19682_s29 + $0x4b8] sm:$0xff] %v15452_v5  ;;  %v15354_v23 = vpop.f32.mrb[86].mxu0  ;;  %v15455_v16 = vpop.f32.mrb[86].mxu1 }
 0x447   : > { %v15355_v7 = vadd.f32 %v15354_v23, %v19728_v9  ;;  %v15456_v32 = vadd.f32 %v15455_v16, %v19728_v9  ;;  %v15356_v27 = vpop.f32.mrb[87].mxu0  ;;  %v15457_v37 = vpop.f32.mrb[87].mxu1 }
 0x448   : > { %v15357_v22 = vadd.f32 %v15356_v27, %v19728_v9  ;;  %v15458_v12 = vadd.f32 %v15457_v37, %v19728_v9 }
 0x449   : > { %15480 = vst [vmem:[%s19682_s29 + $0x5a0] sm:$0xff] %v15355_v7  ;;  %15482 = vst [vmem:[%s19682_s29 + $0x5b0] sm:$0xff] %v15456_v32 }
 0x44a   : > { %15481 = vst [vmem:[%s19682_s29 + $0x5a8] sm:$0xff] %v15357_v22  ;;  %15483 = vst [vmem:[%s19682_s29 + $0x5b8] sm:$0xff] %v15458_v12  ;;  %v15554_v3 = vpop.f32.mrb[88].mxu0  ;;  %v15655_v59 = vpop.f32.mrb[88].mxu1 }
 0x44b   : > { %v15555_v0 = vadd.f32 %v15554_v3, %v19677_v54  ;;  %v15656_v60 = vadd.f32 %v15655_v59, %v19677_v54  ;;  %v15556_v52 = vpop.f32.mrb[89].mxu0  ;;  %v15657_v53 = vpop.f32.mrb[89].mxu1 }
 0x44c   : > { %v15557_v17 = vadd.f32 %v15556_v52, %v19677_v54  ;;  %v15658_v10 = vadd.f32 %v15657_v53, %v19677_v54 }
 0x44d   : > { %15690 = vst [vmem:[%s19682_s29 + $0xc0] sm:$0xff] %v15555_v0  ;;  %15692 = vst [vmem:[%s19682_s29 + $0xd0] sm:$0xff] %v15656_v60 }
 0x44e   : > { %15691 = vst [vmem:[%s19682_s29 + $0xc8] sm:$0xff] %v15557_v17  ;;  %15693 = vst [vmem:[%s19682_s29 + $0xd8] sm:$0xff] %v15658_v10  ;;  %v15560_v4 = vpop.f32.mrb[90].mxu0  ;;  %v15661_v28 = vpop.f32.mrb[90].mxu1 }
 0x44f   : > { %v15561_v19 = vadd.f32 %v15560_v4, %v19688_v61  ;;  %v15662_v24 = vadd.f32 %v15661_v28, %v19688_v61  ;;  %v15562_v14 = vpop.f32.mrb[91].mxu0  ;;  %v15663_v51 = vpop.f32.mrb[91].mxu1 }
 0x450   : > { %v15563_v63 = vadd.f32 %v15562_v14, %v19688_v61  ;;  %v15664_v41 = vadd.f32 %v15663_v51, %v19688_v61 }
 0x451   : > { %15694 = vst [vmem:[%s19682_s29 + $0x1c0] sm:$0xff] %v15561_v19  ;;  %15696 = vst [vmem:[%s19682_s29 + $0x1d0] sm:$0xff] %v15662_v24 }
 0x452   : > { %15695 = vst [vmem:[%s19682_s29 + $0x1c8] sm:$0xff] %v15563_v63  ;;  %15697 = vst [vmem:[%s19682_s29 + $0x1d8] sm:$0xff] %v15664_v41  ;;  %v15566_v49 = vpop.f32.mrb[92].mxu0  ;;  %v15667_v50 = vpop.f32.mrb[92].mxu1 }
 0x453   : > { %v15567_v11 = vadd.f32 %v15566_v49, %v19698_v13  ;;  %v15668_v20 = vadd.f32 %v15667_v50, %v19698_v13  ;;  %v15568_v8 = vpop.f32.mrb[93].mxu0  ;;  %v15669_v30 = vpop.f32.mrb[93].mxu1 }
 0x454   : > { %v15569_v47 = vadd.f32 %v15568_v8, %v19698_v13  ;;  %v15670_v39 = vadd.f32 %v15669_v30, %v19698_v13 }
 0x455   : > { %15698 = vst [vmem:[%s19682_s29 + $0x2c0] sm:$0xff] %v15567_v11  ;;  %15700 = vst [vmem:[%s19682_s29 + $0x2d0] sm:$0xff] %v15668_v20 }
 0x456   : > { %15699 = vst [vmem:[%s19682_s29 + $0x2c8] sm:$0xff] %v15569_v47  ;;  %15701 = vst [vmem:[%s19682_s29 + $0x2d8] sm:$0xff] %v15670_v39  ;;  %v15572_v26 = vpop.f32.mrb[94].mxu0  ;;  %v15673_v45 = vpop.f32.mrb[94].mxu1 }
 0x457   : > { %v15573_v31 = vadd.f32 %v15572_v26, %v19708_v43  ;;  %v15674_v18 = vadd.f32 %v15673_v45, %v19708_v43  ;;  %v15574_v38 = vpop.f32.mrb[95].mxu0  ;;  %v15675_v57 = vpop.f32.mrb[95].mxu1 }
 0x458   : > { %v15575_v15 = vadd.f32 %v15574_v38, %v19708_v43  ;;  %v15676_v42 = vadd.f32 %v15675_v57, %v19708_v43 }
 0x459   : > { %15702 = vst [vmem:[%s19682_s29 + $0x3c0] sm:$0xff] %v15573_v31  ;;  %15704 = vst [vmem:[%s19682_s29 + $0x3d0] sm:$0xff] %v15674_v18 }
 0x45a   : > { %15703 = vst [vmem:[%s19682_s29 + $0x3c8] sm:$0xff] %v15575_v15  ;;  %15705 = vst [vmem:[%s19682_s29 + $0x3d8] sm:$0xff] %v15676_v42  ;;  %v15578_v58 = vpop.f32.mrb[96].mxu0  ;;  %v15679_v35 = vpop.f32.mrb[96].mxu1 }
 0x45b   : > { %v15579_v48 = vadd.f32 %v15578_v58, %v19718_v40  ;;  %v15680_v46 = vadd.f32 %v15679_v35, %v19718_v40  ;;  %v15580_v6 = vpop.f32.mrb[97].mxu0  ;;  %v15681_v44 = vpop.f32.mrb[97].mxu1 }
 0x45c   : > { %v15581_v21 = vadd.f32 %v15580_v6, %v19718_v40  ;;  %v15682_v55 = vadd.f32 %v15681_v44, %v19718_v40 }
 0x45d   : > { %15706 = vst [vmem:[%s19682_s29 + $0x4c0] sm:$0xff] %v15579_v48  ;;  %15708 = vst [vmem:[%s19682_s29 + $0x4d0] sm:$0xff] %v15680_v46 }
 0x45e   : > { %15707 = vst [vmem:[%s19682_s29 + $0x4c8] sm:$0xff] %v15581_v21  ;;  %15709 = vst [vmem:[%s19682_s29 + $0x4d8] sm:$0xff] %v15682_v55  ;;  %v15584_v25 = vpop.f32.mrb[98].mxu0  ;;  %v15685_v62 = vpop.f32.mrb[98].mxu1 }
 0x45f   : > { %v15585_v36 = vadd.f32 %v15584_v25, %v19728_v9  ;;  %v15686_v56 = vadd.f32 %v15685_v62, %v19728_v9  ;;  %v15586_v2 = vpop.f32.mrb[99].mxu0  ;;  %v15687_v34 = vpop.f32.mrb[99].mxu1 }
 0x460   : > { %v15587_v29 = vadd.f32 %v15586_v2, %v19728_v9  ;;  %v15688_v33 = vadd.f32 %v15687_v34, %v19728_v9 }
 0x461   : > { %15710 = vst [vmem:[%s19682_s29 + $0x5c0] sm:$0xff] %v15585_v36  ;;  %15712 = vst [vmem:[%s19682_s29 + $0x5d0] sm:$0xff] %v15686_v56 }
 0x462   : > { %15711 = vst [vmem:[%s19682_s29 + $0x5c8] sm:$0xff] %v15587_v29  ;;  %15713 = vst [vmem:[%s19682_s29 + $0x5d8] sm:$0xff] %v15688_v33  ;;  %v15784_v1 = vpop.f32.mrb[100].mxu0  ;;  %v15885_v5 = vpop.f32.mrb[100].mxu1 }
 0x463   : > { %v15785_v23 = vadd.f32 %v15784_v1, %v19677_v54  ;;  %v15886_v16 = vadd.f32 %v15885_v5, %v19677_v54  ;;  %v15786_v7 = vpop.f32.mrb[101].mxu0  ;;  %v15887_v32 = vpop.f32.mrb[101].mxu1 }
 0x464   : > { %v15787_v27 = vadd.f32 %v15786_v7, %v19677_v54  ;;  %v15888_v37 = vadd.f32 %v15887_v32, %v19677_v54 }
 0x465   : > { %15920 = vst [vmem:[%s19682_s29 + $0xe0] sm:$0xff] %v15785_v23  ;;  %15922 = vst [vmem:[%s19682_s29 + $0xf0] sm:$0xff] %v15886_v16 }
 0x466   : > { %15921 = vst [vmem:[%s19682_s29 + $0xe8] sm:$0xff] %v15787_v27  ;;  %15923 = vst [vmem:[%s19682_s29 + $0xf8] sm:$0xff] %v15888_v37  ;;  %v15790_v22 = vpop.f32.mrb[102].mxu0  ;;  %v15891_v12 = vpop.f32.mrb[102].mxu1 }
 0x467   : > { %v15791_v3 = vadd.f32 %v15790_v22, %v19688_v61  ;;  %v15892_v59 = vadd.f32 %v15891_v12, %v19688_v61  ;;  %v15792_v0 = vpop.f32.mrb[103].mxu0  ;;  %v15893_v60 = vpop.f32.mrb[103].mxu1 }
 0x468   : > { %v15793_v52 = vadd.f32 %v15792_v0, %v19688_v61  ;;  %v15894_v54 = vadd.f32 %v15893_v60, %v19688_v61 }
 0x469   : > { %15924 = vst [vmem:[%s19682_s29 + $0x1e0] sm:$0xff] %v15791_v3  ;;  %15926 = vst [vmem:[%s19682_s29 + $0x1f0] sm:$0xff] %v15892_v59 }
 0x46a   : > { %15925 = vst [vmem:[%s19682_s29 + $0x1e8] sm:$0xff] %v15793_v52  ;;  %15927 = vst [vmem:[%s19682_s29 + $0x1f8] sm:$0xff] %v15894_v54  ;;  %v15796_v53 = vpop.f32.mrb[104].mxu0  ;;  %v15897_v17 = vpop.f32.mrb[104].mxu1 }
 0x46b   : > { %v15797_v10 = vadd.f32 %v15796_v53, %v19698_v13  ;;  %v15898_v4 = vadd.f32 %v15897_v17, %v19698_v13  ;;  %v15798_v28 = vpop.f32.mrb[105].mxu0  ;;  %v15899_v19 = vpop.f32.mrb[105].mxu1 }
 0x46c   : > { %v15799_v24 = vadd.f32 %v15798_v28, %v19698_v13  ;;  %v15900_v61 = vadd.f32 %v15899_v19, %v19698_v13 }
 0x46d   : > { %15928 = vst [vmem:[%s19682_s29 + $0x2e0] sm:$0xff] %v15797_v10  ;;  %15930 = vst [vmem:[%s19682_s29 + $0x2f0] sm:$0xff] %v15898_v4 }
 0x46e   : > { %15929 = vst [vmem:[%s19682_s29 + $0x2e8] sm:$0xff] %v15799_v24  ;;  %15931 = vst [vmem:[%s19682_s29 + $0x2f8] sm:$0xff] %v15900_v61  ;;  %v15802_v14 = vpop.f32.mrb[106].mxu0  ;;  %v15903_v51 = vpop.f32.mrb[106].mxu1 }
 0x46f   : > { %v15803_v63 = vadd.f32 %v15802_v14, %v19708_v43  ;;  %v15904_v41 = vadd.f32 %v15903_v51, %v19708_v43  ;;  %v15804_v49 = vpop.f32.mrb[107].mxu0  ;;  %v15905_v50 = vpop.f32.mrb[107].mxu1 }
 0x470   : > { %v15805_v11 = vadd.f32 %v15804_v49, %v19708_v43  ;;  %v15906_v13 = vadd.f32 %v15905_v50, %v19708_v43 }
 0x471   : > { %15932 = vst [vmem:[%s19682_s29 + $0x3e0] sm:$0xff] %v15803_v63  ;;  %15934 = vst [vmem:[%s19682_s29 + $0x3f0] sm:$0xff] %v15904_v41 }
 0x472   : > { %15933 = vst [vmem:[%s19682_s29 + $0x3e8] sm:$0xff] %v15805_v11  ;;  %15935 = vst [vmem:[%s19682_s29 + $0x3f8] sm:$0xff] %v15906_v13  ;;  %v15808_v20 = vpop.f32.mrb[108].mxu0  ;;  %v15909_v8 = vpop.f32.mrb[108].mxu1 }
 0x473   : > { %v15809_v30 = vadd.f32 %v15808_v20, %v19718_v40  ;;  %v15910_v47 = vadd.f32 %v15909_v8, %v19718_v40  ;;  %v15810_v39 = vpop.f32.mrb[109].mxu0  ;;  %v15911_v26 = vpop.f32.mrb[109].mxu1 }
 0x474   : > { %v15811_v45 = vadd.f32 %v15810_v39, %v19718_v40  ;;  %v15912_v43 = vadd.f32 %v15911_v26, %v19718_v40 }
 0x475   : > { %15936 = vst [vmem:[%s19682_s29 + $0x4e0] sm:$0xff] %v15809_v30  ;;  %15938 = vst [vmem:[%s19682_s29 + $0x4f0] sm:$0xff] %v15910_v47 }
 0x476   : > { %15937 = vst [vmem:[%s19682_s29 + $0x4e8] sm:$0xff] %v15811_v45  ;;  %15939 = vst [vmem:[%s19682_s29 + $0x4f8] sm:$0xff] %v15912_v43  ;;  %v15814_v31 = vpop.f32.mrb[110].mxu0  ;;  %v15915_v18 = vpop.f32.mrb[110].mxu1 }
 0x477   : > { %v15815_v38 = vadd.f32 %v15814_v31, %v19728_v9  ;;  %v15916_v57 = vadd.f32 %v15915_v18, %v19728_v9  ;;  %v15816_v15 = vpop.f32.mrb[111].mxu0  ;;  %v15917_v42 = vpop.f32.mrb[111].mxu1 }
 0x478   : > { %v15817_v58 = vadd.f32 %v15816_v15, %v19728_v9  ;;  %v15918_v35 = vadd.f32 %v15917_v42, %v19728_v9 }
 0x479   : > { %15940 = vst [vmem:[%s19682_s29 + $0x5e0] sm:$0xff] %v15815_v38  ;;  %15942 = vst [vmem:[%s19682_s29 + $0x5f0] sm:$0xff] %v15916_v57 }
 0x47a   : > { %15941 = vst [vmem:[%s19682_s29 + $0x5e8] sm:$0xff] %v15817_v58  ;;  %15943 = vst [vmem:[%s19682_s29 + $0x5f8] sm:$0xff] %v15918_v35 }
 0x47b PF: > { %s16_s21 = sadd.s32 1, %s16680_s21  }
 0x47c   : > { %p13_p4 = scmp.ge.s32.totalorder %s16_s21, 4  }
 0x47e   :  { %15 = sbr.rel (!%p13_p4) target bundleno = 1 (0x1), region = 117 }

</bundles_post_ra>
